<compile_context>
chip_gen: v5e
topology: v5e:2x2
jax: 0.10.0
libtpu: 0.0.40
codegen_flags: <defaults>
</compile_context>

<pallas_src>
import jax
import jax.numpy as jnp
from jax.experimental import pallas as pl
from jax.experimental.pallas import tpu as pltpu

_VMEM_SPEC = pl.BlockSpec(memory_space=pltpu.MemorySpace.VMEM)
_EPS = 1e-5
_VMEM_LIMIT = 32 * 1024 * 1024      # safe on v5e/v6e and within v7x's 64 MiB
_MAX_TK = 2048                      # K-tile cap; bf16 weight tiles stay ~<=2 MiB

# (cin, cout, ksize, pad, maxpool_after) -- logical (PyTorch) channel counts.
_CONV_DEFS = [
    (3, 64, 5, 2, True),
    (64, 128, 5, 2, True),
    (128, 256, 3, 1, True),
    (256, 512, 3, 1, False),
]
# conv1's 64 output channels are zero-padded to 128 for lane-dense stores /
# full MXU columns; padded channels stay mathematically inert (see init).
_COUT_PAD = [128, 128, 256, 512]


def _round_up(x, m):
    return ((x + m - 1) // m) * m


def _choose_k_tile(k_pad):
    """k_pad is already a multiple of 128; pick a K tile that divides it."""
    if k_pad <= _MAX_TK:
        return k_pad
    for tk in range(_MAX_TK, 0, -128):
        if k_pad % tk == 0:
            return tk
    return 128


# ----------------------------- Pallas kernels -------------------------------

def _gemm_bias_relu_bn_kernel(x_ref, w_ref, p_ref, o_ref, acc_ref):
    """Tiled (X @ W) with f32 accumulator; epilogue = +bias, ReLU, folded BN."""
    k = pl.program_id(2)

    @pl.when(k == 0)
    def _():
        acc_ref[...] = jnp.zeros_like(acc_ref)

    acc_ref[...] += jnp.dot(x_ref[...], w_ref[...],
                            preferred_element_type=jnp.float32)

    @pl.when(k == pl.num_programs(2) - 1)
    def _():
        p = p_ref[...]                               # (3, tn) f32: b, scale, shift
        y = acc_ref[...] + p[0:1, :]                 # bias
        y = jnp.maximum(y, 0.0)                      # ReLU (f32 on the VPU)
        y = y * p[1:2, :] + p[2:3, :]                # inference BatchNorm
        o_ref[...] = y.astype(o_ref.dtype)           # bf16 store (f32 for FC)


def gemm_bias_relu_bn(x, w_bf16, packed_f32, out_dtype):
    """Fused (X @ W + b) -> ReLU -> inference BN.

    `w_bf16` is pre-padded (rows = multiple of 128) and pre-cast bf16;
    `packed_f32` is the (3, n) [bias; scale; shift] epilogue operand.
    """
    m, k = x.shape
    k_pad, n = w_bf16.shape

    # tm: multiple of 16 (bf16 sublane packing); ensure >=2 M blocks when the
    # problem is big enough so both v7x TensorCores get work.
    tm = min(256, _round_up(m, 16))
    if tm >= 256 and _round_up(m, tm) // tm == 1:
        tm = 128
    m_pad = _round_up(m, tm)
    m_blocks = m_pad // tm

    # tn: wide lane-dense tiles; for skinny-M layers split N into >=2 blocks.
    tn = min(512, n)
    if m_blocks == 1 and n // tn < 2 and n >= 256:
        tn = n // 2
    tk = _choose_k_tile(k_pad)

    x_p = x.astype(jnp.bfloat16)
    if m_pad != m or k_pad != k:
        x_p = jnp.pad(x_p, ((0, m_pad - m), (0, k_pad - k)))

    grid = (m_pad // tm, n // tn, k_pad // tk)
    out = pl.pallas_call(
        _gemm_bias_relu_bn_kernel,
        out_shape=jax.ShapeDtypeStruct((m_pad, n), out_dtype),
        grid_spec=pltpu.PrefetchScalarGridSpec(
            num_scalar_prefetch=0,
            grid=grid,
            in_specs=[
                pl.BlockSpec((tm, tk), lambda i, j, kk: (i, kk)),
                pl.BlockSpec((tk, tn), lambda i, j, kk: (kk, j)),
                pl.BlockSpec((3, tn), lambda i, j, kk: (0, j)),
            ],
            out_specs=pl.BlockSpec((tm, tn), lambda i, j, kk: (i, j)),
            scratch_shapes=[pltpu.VMEM((tm, tn), jnp.float32)],
        ),
        compiler_params=pltpu.CompilerParams(
            dimension_semantics=("parallel", "parallel", "arbitrary"),
            vmem_limit_bytes=_VMEM_LIMIT),
    )(x_p, w_bf16, packed_f32)
    return out[:m]


def _maxpool2x2_kernel(x_ref, o_ref):
    """x_ref: (N*Ho, 2, Wo, 2C) -> o_ref: (N*Ho, Wo, C); one dense store.
    Loads bf16, compares in f32 (v5e-safe), stores bf16."""
    c = o_ref.shape[-1]
    x = x_ref[...].astype(jnp.float32)
    xh = jnp.maximum(x[:, 0, :, :], x[:, 1, :, :])            # H-pool
    o_ref[...] = jnp.maximum(xh[:, :, :c], xh[:, :, c:]).astype(o_ref.dtype)


def maxpool2x2(x):
    # TODO(synk): add a BlockSpec grid over the N*Ho dim if spatial ever grows;
    # at 16x16 the whole bf16 tensor is <=256 KiB so one VMEM block is fine.
    n, h, w, c = x.shape
    ho, wo = h // 2, w // 2
    # Free contiguous reshape: the 2C-wide lane groups hold the two W
    # neighbours side by side; the leading "2" holds the two H neighbours.
    x2 = x.reshape(n * ho, 2, wo, 2 * c)
    out = pl.pallas_call(
        _maxpool2x2_kernel,
        out_shape=jax.ShapeDtypeStruct((n * ho, wo, c), x.dtype),
        in_specs=[_VMEM_SPEC],
        out_specs=_VMEM_SPEC,
        compiler_params=pltpu.CompilerParams(vmem_limit_bytes=_VMEM_LIMIT),
    )(x2)
    return out.reshape(n, ho, wo, c)


# ------------------------------- JAX glue -----------------------------------

def _im2col(x, ksize, pad):
    """x: (N,H,W,C) NHWC bf16 -> (N*H*W, ksize*ksize*C).  'same' conv, stride 1."""
    # TODO(synk): patch extraction is materialized by XLA between pallas_calls;
    # a fully fused in-kernel im2col GEMM (halo-aware manual DMA) would read
    # the activation only once.  Cheap at spatial=16.
    n, h, w, c = x.shape
    xp = jnp.pad(x, ((0, 0), (pad, pad), (pad, pad), (0, 0)))
    cols = []
    for i in range(ksize):
        for j in range(ksize):
            cols.append(xp[:, i:i + h, j:j + w, :])
    patches = jnp.stack(cols, axis=3)               # (N, H, W, k*k, C)
    return patches.reshape(n * h * w, ksize * ksize * c)


def _bn_fold(key, c):
    """Deterministic inference-mode BatchNorm params folded to scale/shift."""
    k1, k2, k3, k4 = jax.random.split(key, 4)
    gamma = 1.0 + 0.1 * jax.random.normal(k1, (c,), jnp.float32)
    beta = 0.1 * jax.random.normal(k2, (c,), jnp.float32)
    mean = 0.1 * jax.random.normal(k3, (c,), jnp.float32)
    var = jax.random.uniform(k4, (c,), jnp.float32, minval=0.5, maxval=1.5)
    scale = gamma * jax.lax.rsqrt(var + _EPS)
    shift = beta - mean * scale
    return scale, shift


def init_params(key, spatial, fc_out):
    """All weight-side preprocessing (channel / K zero-padding, bf16 cast,
    epilogue packing) happens here ONCE so the forward path only moves bf16."""
    params = {"conv": []}
    cin_pads = [3] + _COUT_PAD[:-1]          # input channels each conv sees
    for li, (cin, cout, k, pad, _pool) in enumerate(_CONV_DEFS):
        key, kw, kb, kbn = jax.random.split(key, 4)
        fan_in = k * k * cin
        # weight laid out as (kh, kw, cin, cout) -> (kh*kw*cin, cout), matching
        # the im2col patch ordering (equivalent to torch's (cout,cin,kh,kw)).
        w = jax.random.normal(kw, (k, k, cin, cout), jnp.float32) / jnp.sqrt(float(fan_in))
        b = 0.1 * jax.random.normal(kb, (cout,), jnp.float32)
        scale, shift = _bn_fold(kbn, cout)

        cin_p, cout_p = cin_pads[li], _COUT_PAD[li]
        # Zero-pad input-channel rows / output-channel cols.  Padded output
        # channels see bias=scale=shift=0 -> stay exactly 0 through
        # ReLU/BN/maxpool; the next layer's padded cin rows are zero too.
        w = jnp.pad(w, ((0, 0), (0, 0), (0, cin_p - cin), (0, cout_p - cout)))
        w = w.reshape(k * k * cin_p, cout_p)
        k_pad = _round_up(k * k * cin_p, 128)
        w = jnp.pad(w, ((0, k_pad - w.shape[0]), (0, 0))).astype(jnp.bfloat16)
        packed = jnp.stack([
            jnp.pad(b, (0, cout_p - cout)),
            jnp.pad(scale, (0, cout_p - cout)),
            jnp.pad(shift, (0, cout_p - cout)),
        ], axis=0).astype(jnp.float32)
        params["conv"].append({"w": w, "pack": packed})

    # Original Linear(131072, 1024) assumes 128x128 input (512*16*16); with the
    # small spatial size used here the flattened dim is 512*(spatial/8)^2.
    fc_in = 512 * (spatial // 8) * (spatial // 8)
    key, kw, kb, kbn = jax.random.split(key, 4)
    w = jax.random.normal(kw, (fc_in, fc_out), jnp.float32) / jnp.sqrt(float(fc_in))
    b = 0.1 * jax.random.normal(kb, (fc_out,), jnp.float32)
    # TODO(synk): nn.BatchNorm2d(1024) applied to a 2-D (N, features) tensor
    # raises in PyTorch; implemented here as a per-feature (BatchNorm1d-style)
    # inference norm, which is the evident intent.
    scale, shift = _bn_fold(kbn, fc_out)
    k_pad = _round_up(fc_in, 128)
    w = jnp.pad(w, ((0, k_pad - fc_in), (0, 0))).astype(jnp.bfloat16)
    params["fc"] = {"w": w,
                    "pack": jnp.stack([b, scale, shift], axis=0).astype(jnp.float32)}
    return params


def forward_once(x_nchw, params):
    x = jnp.transpose(x_nchw, (0, 2, 3, 1)).astype(jnp.bfloat16)   # NCHW -> NHWC bf16
    n = x.shape[0]
    # TODO(synk): all weights (~7.5 MB bf16) and every intermediate fit in VMEM
    # even on v7x, so the whole conv stack could run as ONE pallas_call with
    # resident weights, in-kernel patch extraction and the maxpool folded into
    # the GEMM epilogue; kept as separate kernels here for robustness.
    for (_cin, _cout, k, pad, pool), cout_p, p in zip(_CONV_DEFS, _COUT_PAD,
                                                      params["conv"]):
        h, w = x.shape[1], x.shape[2]
        patches = _im2col(x, k, pad)                       # bf16 (N*H*W, k*k*Cin)
        y = gemm_bias_relu_bn(patches, p["w"], p["pack"], jnp.bfloat16)
        x = y.reshape(n, h, w, cout_p)
        if pool:
            x = maxpool2x2(x)
    # PyTorch's output.view(N, -1) flattens NCHW in (C, H, W) order.
    feat = jnp.transpose(x, (0, 3, 1, 2)).reshape(n, -1)
    pfc = params["fc"]
    return gemm_bias_relu_bn(feat, pfc["w"], pfc["pack"], jnp.float32)


def siamese_forward(input1, input2, params):
    # Run both branches as one batch: halves pallas_call dispatches, doubles M
    # in every GEMM, and DMAs each weight into VMEM once instead of twice.
    n = input1.shape[0]
    both = jnp.concatenate([input1, input2], axis=0)
    out = forward_once(both, params)
    return out[:n], out[n:]


if __name__ == "__main__":
    BATCH, SPATIAL, FC_OUT = 2, 16, 1024
    root = jax.random.PRNGKey(0)
    kp, k1, k2 = jax.random.split(root, 3)
    params = init_params(kp, SPATIAL, FC_OUT)
    x1 = jax.random.normal(k1, (BATCH, 3, SPATIAL, SPATIAL), jnp.float32)
    x2 = jax.random.normal(k2, (BATCH, 3, SPATIAL, SPATIAL), jnp.float32)
    fwd = jax.jit(siamese_forward)
    out1, out2 = fwd(x1, x2, params)
    jax.block_until_ready((out1, out2))
    assert out1.shape == (BATCH, FC_OUT) and out2.shape == (BATCH, FC_OUT)
    assert bool(jnp.all(jnp.isfinite(out1))) and bool(jnp.all(jnp.isfinite(out2)))
    print("KERNEL_OK")
</pallas_src>

<mosaic_0001>
module attributes {stable_mosaic.version = 11 : i64} {
  func.func @_gemm_bias_relu_bn_kernel(%arg0: i32, %arg1: i32, %arg2: i32, %arg3: memref<256x128xbf16, #tpu.memory_space<vmem>>, %arg4: memref<128x128xbf16, #tpu.memory_space<vmem>>, %arg5: memref<3x128xf32, #tpu.memory_space<vmem>>, %arg6: memref<256x128xbf16, #tpu.memory_space<vmem>>, %arg7: memref<256x128xf32, #tpu.memory_space<vmem>>) attributes {dimension_semantics = [#tpu.dimension_semantics<parallel>, #tpu.dimension_semantics<parallel>, #tpu.dimension_semantics<arbitrary>], iteration_bounds = array<i64: 4, 1, 1>, scalar_prefetch = 0 : i64, scratch_operands = 1 : i64, tpu.core_type = #tpu.core_type<tc>, window_params = [{transform_indices = @transform_0, window_bounds = array<i64: 256, 128>}, {transform_indices = @transform_1, window_bounds = array<i64: 128, 128>}, {transform_indices = @transform_2, window_bounds = array<i64: 3, 128>}, {transform_indices = @transform_3, window_bounds = array<i64: 256, 128>}]} {
    %c0_i32 = arith.constant 0 : i32
    %0 = arith.cmpi eq, %arg2, %c0_i32 : i32
    %1 = arith.extui %0 : i1 to i32
    %c0_i32_0 = arith.constant 0 : i32
    %2 = arith.cmpi ne, %1, %c0_i32_0 : i32
    scf.if %2 {
      %cst_10 = arith.constant 0.000000e+00 : f32
      %12 = vector.broadcast %cst_10 : f32 to vector<256x128xf32>
      %c0_11 = arith.constant 0 : index
      %c0_12 = arith.constant 0 : index
      %13 = vector.load %arg7[%c0_11, %c0_12] : memref<256x128xf32, #tpu.memory_space<vmem>>, vector<256x128xf32>
      tpu.vector_store %arg7[%c0_11, %c0_12], %12 {strides = array<i32>} : memref<256x128xf32, #tpu.memory_space<vmem>>, vector<256x128xf32>,
    } else {
    }
    %c0 = arith.constant 0 : index
    %c0_1 = arith.constant 0 : index
    %3 = vector.load %arg7[%c0, %c0_1] : memref<256x128xf32, #tpu.memory_space<vmem>>, vector<256x128xf32>
    %c0_2 = arith.constant 0 : index
    %c0_3 = arith.constant 0 : index
    %4 = vector.load %arg3[%c0_2, %c0_3] : memref<256x128xbf16, #tpu.memory_space<vmem>>, vector<256x128xbf16>
    %c0_4 = arith.constant 0 : index
    %c0_5 = arith.constant 0 : index
    %5 = vector.load %arg4[%c0_4, %c0_5] : memref<128x128xbf16, #tpu.memory_space<vmem>>, vector<128x128xbf16>
    %cst = arith.constant dense<0.000000e+00> : vector<256x128xf32>
    %6 = tpu.matmul %4, %5, %cst {dimension_numbers = #tpu.dot_dimension_numbers<[1], [0], [0], [1], [0, 0, 1, 1], [], []>} : vector<256x128xbf16>, vector<128x128xbf16>, vector<256x128xf32> -> vector<256x128xf32>
    %7 = arith.addf %3, %6 : vector<256x128xf32>
    %c0_6 = arith.constant 0 : index
    %c0_7 = arith.constant 0 : index
    %8 = vector.load %arg7[%c0_6, %c0_7] : memref<256x128xf32, #tpu.memory_space<vmem>>, vector<256x128xf32>
    tpu.vector_store %arg7[%c0_6, %c0_7], %7 {strides = array<i32>} : memref<256x128xf32, #tpu.memory_space<vmem>>, vector<256x128xf32>,
    %c0_i32_8 = arith.constant 0 : i32
    %9 = arith.cmpi eq, %arg2, %c0_i32_8 : i32
    %10 = arith.extui %9 : i1 to i32
    %c0_i32_9 = arith.constant 0 : i32
    %11 = arith.cmpi ne, %10, %c0_i32_9 : i32
    scf.if %11 {
      %c0_10 = arith.constant 0 : index
      %c0_11 = arith.constant 0 : index
      %12 = vector.load %arg5[%c0_10, %c0_11] : memref<3x128xf32, #tpu.memory_space<vmem>>, vector<3x128xf32>
      %c0_12 = arith.constant 0 : index
      %c0_13 = arith.constant 0 : index
      %13 = vector.load %arg7[%c0_12, %c0_13] : memref<256x128xf32, #tpu.memory_space<vmem>>, vector<256x128xf32>
      %14 = vector.extract_strided_slice %12 {offsets = [0, 0], sizes = [1, 128], strides = [1, 1]} : vector<3x128xf32> to vector<1x128xf32>
      %15 = vector.broadcast %14 : vector<1x128xf32> to vector<256x128xf32>
      %16 = arith.addf %13, %15 : vector<256x128xf32>
      %cst_14 = arith.constant 0.000000e+00 : f32
      %17 = vector.broadcast %cst_14 : f32 to vector<256x128xf32>
      %18 = arith.maximumf %16, %17 : vector<256x128xf32>
      %19 = vector.extract_strided_slice %12 {offsets = [1, 0], sizes = [1, 128], strides = [1, 1]} : vector<3x128xf32> to vector<1x128xf32>
      %20 = vector.broadcast %19 : vector<1x128xf32> to vector<256x128xf32>
      %21 = arith.mulf %18, %20 : vector<256x128xf32>
      %22 = vector.extract_strided_slice %12 {offsets = [2, 0], sizes = [1, 128], strides = [1, 1]} : vector<3x128xf32> to vector<1x128xf32>
      %23 = vector.broadcast %22 : vector<1x128xf32> to vector<256x128xf32>
      %24 = arith.addf %21, %23 : vector<256x128xf32>
      %25 = arith.truncf %24 : vector<256x128xf32> to vector<256x128xbf16>
      %c0_15 = arith.constant 0 : index
      %c0_16 = arith.constant 0 : index
      %26 = vector.load %arg6[%c0_15, %c0_16] : memref<256x128xbf16, #tpu.memory_space<vmem>>, vector<256x128xbf16>
      tpu.vector_store %arg6[%c0_15, %c0_16], %25 {strides = array<i32>} : memref<256x128xbf16, #tpu.memory_space<vmem>>, vector<256x128xbf16>,
    } else {
    }
    return
  }
  func.func @transform_0(%arg0: i32, %arg1: i32, %arg2: i32) -> (i32, i32) {
    %c0_i32 = arith.constant 0 : i32
    return %arg0, %arg2 : i32, i32
  }
  func.func @transform_1(%arg0: i32, %arg1: i32, %arg2: i32) -> (i32, i32) {
    %c0_i32 = arith.constant 0 : i32
    return %arg2, %arg1 : i32, i32
  }
  func.func @transform_2(%arg0: i32, %arg1: i32, %arg2: i32) -> (i32, i32) {
    %c0_i32 = arith.constant 0 : i32
    %c0_i32_0 = arith.constant 0 : i32
    return %c0_i32, %arg1 : i32, i32
  }
  func.func @transform_3(%arg0: i32, %arg1: i32, %arg2: i32) -> (i32, i32) {
    %c0_i32 = arith.constant 0 : i32
    return %arg0, %arg1 : i32, i32
  }
}

module attributes {stable_mosaic.version = 11 : i64} {
  func.func @_maxpool2x2_kernel(%arg0: memref<32x2x8x256xbf16, #tpu.memory_space<vmem>>, %arg1: memref<32x8x128xbf16, #tpu.memory_space<vmem>>) attributes {dimension_semantics = [], scalar_prefetch = 0 : i64, scratch_operands = 0 : i64, tpu.core_type = #tpu.core_type<tc>} {
    %c0 = arith.constant 0 : index
    %c0_0 = arith.constant 0 : index
    %c0_1 = arith.constant 0 : index
    %c0_2 = arith.constant 0 : index
    %0 = vector.load %arg0[%c0, %c0_0, %c0_1, %c0_2] : memref<32x2x8x256xbf16, #tpu.memory_space<vmem>>, vector<32x2x8x256xbf16>
    %1 = arith.extf %0 : vector<32x2x8x256xbf16> to vector<32x2x8x256xf32>
    %2 = vector.extract_strided_slice %1 {offsets = [0, 0, 0, 0], sizes = [32, 1, 8, 256], strides = [1, 1, 1, 1]} : vector<32x2x8x256xf32> to vector<32x1x8x256xf32>
    %3 = vector.shape_cast %2 : vector<32x1x8x256xf32> to vector<32x8x256xf32>
    %4 = vector.extract_strided_slice %1 {offsets = [0, 1, 0, 0], sizes = [32, 1, 8, 256], strides = [1, 1, 1, 1]} : vector<32x2x8x256xf32> to vector<32x1x8x256xf32>
    %5 = vector.shape_cast %4 : vector<32x1x8x256xf32> to vector<32x8x256xf32>
    %6 = arith.maximumf %3, %5 : vector<32x8x256xf32>
    %7 = vector.extract_strided_slice %6 {offsets = [0, 0, 0], sizes = [32, 8, 128], strides = [1, 1, 1]} : vector<32x8x256xf32> to vector<32x8x128xf32>
    %8 = vector.extract_strided_slice %6 {offsets = [0, 0, 128], sizes = [32, 8, 128], strides = [1, 1, 1]} : vector<32x8x256xf32> to vector<32x8x128xf32>
    %9 = arith.maximumf %7, %8 : vector<32x8x128xf32>
    %10 = arith.truncf %9 : vector<32x8x128xf32> to vector<32x8x128xbf16>
    %c0_3 = arith.constant 0 : index
    %c0_4 = arith.constant 0 : index
    %c0_5 = arith.constant 0 : index
    %11 = vector.load %arg1[%c0_3, %c0_4, %c0_5] : memref<32x8x128xbf16, #tpu.memory_space<vmem>>, vector<32x8x128xbf16>
    tpu.vector_store %arg1[%c0_3, %c0_4, %c0_5], %10 {strides = array<i32>} : memref<32x8x128xbf16, #tpu.memory_space<vmem>>, vector<32x8x128xbf16>,
    return
  }
}

module attributes {stable_mosaic.version = 11 : i64} {
  func.func @_maxpool2x2_kernel(%arg0: memref<16x2x4x256xbf16, #tpu.memory_space<vmem>>, %arg1: memref<16x4x128xbf16, #tpu.memory_space<vmem>>) attributes {dimension_semantics = [], scalar_prefetch = 0 : i64, scratch_operands = 0 : i64, tpu.core_type = #tpu.core_type<tc>} {
    %c0 = arith.constant 0 : index
    %c0_0 = arith.constant 0 : index
    %c0_1 = arith.constant 0 : index
    %c0_2 = arith.constant 0 : index
    %0 = vector.load %arg0[%c0, %c0_0, %c0_1, %c0_2] : memref<16x2x4x256xbf16, #tpu.memory_space<vmem>>, vector<16x2x4x256xbf16>
    %1 = arith.extf %0 : vector<16x2x4x256xbf16> to vector<16x2x4x256xf32>
    %2 = vector.extract_strided_slice %1 {offsets = [0, 0, 0, 0], sizes = [16, 1, 4, 256], strides = [1, 1, 1, 1]} : vector<16x2x4x256xf32> to vector<16x1x4x256xf32>
    %3 = vector.shape_cast %2 : vector<16x1x4x256xf32> to vector<16x4x256xf32>
    %4 = vector.extract_strided_slice %1 {offsets = [0, 1, 0, 0], sizes = [16, 1, 4, 256], strides = [1, 1, 1, 1]} : vector<16x2x4x256xf32> to vector<16x1x4x256xf32>
    %5 = vector.shape_cast %4 : vector<16x1x4x256xf32> to vector<16x4x256xf32>
    %6 = arith.maximumf %3, %5 : vector<16x4x256xf32>
    %7 = vector.extract_strided_slice %6 {offsets = [0, 0, 0], sizes = [16, 4, 128], strides = [1, 1, 1]} : vector<16x4x256xf32> to vector<16x4x128xf32>
    %8 = vector.extract_strided_slice %6 {offsets = [0, 0, 128], sizes = [16, 4, 128], strides = [1, 1, 1]} : vector<16x4x256xf32> to vector<16x4x128xf32>
    %9 = arith.maximumf %7, %8 : vector<16x4x128xf32>
    %10 = arith.truncf %9 : vector<16x4x128xf32> to vector<16x4x128xbf16>
    %c0_3 = arith.constant 0 : index
    %c0_4 = arith.constant 0 : index
    %c0_5 = arith.constant 0 : index
    %11 = vector.load %arg1[%c0_3, %c0_4, %c0_5] : memref<16x4x128xbf16, #tpu.memory_space<vmem>>, vector<16x4x128xbf16>
    tpu.vector_store %arg1[%c0_3, %c0_4, %c0_5], %10 {strides = array<i32>} : memref<16x4x128xbf16, #tpu.memory_space<vmem>>, vector<16x4x128xbf16>,
    return
  }
}

module attributes {stable_mosaic.version = 11 : i64} {
  func.func @_gemm_bias_relu_bn_kernel(%arg0: i32, %arg1: i32, %arg2: i32, %arg3: memref<128x640xbf16, #tpu.memory_space<vmem>>, %arg4: memref<640x128xbf16, #tpu.memory_space<vmem>>, %arg5: memref<3x128xf32, #tpu.memory_space<vmem>>, %arg6: memref<128x128xbf16, #tpu.memory_space<vmem>>, %arg7: memref<128x128xf32, #tpu.memory_space<vmem>>) attributes {dimension_semantics = [#tpu.dimension_semantics<parallel>, #tpu.dimension_semantics<parallel>, #tpu.dimension_semantics<arbitrary>], iteration_bounds = array<i64: 2, 1, 5>, scalar_prefetch = 0 : i64, scratch_operands = 1 : i64, tpu.core_type = #tpu.core_type<tc>, window_params = [{transform_indices = @transform_0, window_bounds = array<i64: 128, 640>}, {transform_indices = @transform_1, window_bounds = array<i64: 640, 128>}, {transform_indices = @transform_2, window_bounds = array<i64: 3, 128>}, {transform_indices = @transform_3, window_bounds = array<i64: 128, 128>}]} {
    %c0_i32 = arith.constant 0 : i32
    %0 = arith.cmpi eq, %arg2, %c0_i32 : i32
    %1 = arith.extui %0 : i1 to i32
    %c0_i32_0 = arith.constant 0 : i32
    %2 = arith.cmpi ne, %1, %c0_i32_0 : i32
    scf.if %2 {
      %cst_9 = arith.constant 0.000000e+00 : f32
      %12 = vector.broadcast %cst_9 : f32 to vector<128x128xf32>
      %c0_10 = arith.constant 0 : index
      %c0_11 = arith.constant 0 : index
      %13 = vector.load %arg7[%c0_10, %c0_11] : memref<128x128xf32, #tpu.memory_space<vmem>>, vector<128x128xf32>
      tpu.vector_store %arg7[%c0_10, %c0_11], %12 {strides = array<i32>} : memref<128x128xf32, #tpu.memory_space<vmem>>, vector<128x128xf32>,
    } else {
    }
    %c0 = arith.constant 0 : index
    %c0_1 = arith.constant 0 : index
    %3 = vector.load %arg7[%c0, %c0_1] : memref<128x128xf32, #tpu.memory_space<vmem>>, vector<128x128xf32>
    %c0_2 = arith.constant 0 : index
    %c0_3 = arith.constant 0 : index
    %4 = vector.load %arg3[%c0_2, %c0_3] : memref<128x640xbf16, #tpu.memory_space<vmem>>, vector<128x640xbf16>
    %c0_4 = arith.constant 0 : index
    %c0_5 = arith.constant 0 : index
    %5 = vector.load %arg4[%c0_4, %c0_5] : memref<640x128xbf16, #tpu.memory_space<vmem>>, vector<640x128xbf16>
    %cst = arith.constant dense<0.000000e+00> : vector<128x128xf32>
    %6 = tpu.matmul %4, %5, %cst {dimension_numbers = #tpu.dot_dimension_numbers<[1], [0], [0], [1], [0, 0, 1, 1], [], []>} : vector<128x640xbf16>, vector<640x128xbf16>, vector<128x128xf32> -> vector<128x128xf32>
    %7 = arith.addf %3, %6 : vector<128x128xf32>
    %c0_6 = arith.constant 0 : index
    %c0_7 = arith.constant 0 : index
    %8 = vector.load %arg7[%c0_6, %c0_7] : memref<128x128xf32, #tpu.memory_space<vmem>>, vector<128x128xf32>
    tpu.vector_store %arg7[%c0_6, %c0_7], %7 {strides = array<i32>} : memref<128x128xf32, #tpu.memory_space<vmem>>, vector<128x128xf32>,
    %c4_i32 = arith.constant 4 : i32
    %9 = arith.cmpi eq, %arg2, %c4_i32 : i32
    %10 = arith.extui %9 : i1 to i32
    %c0_i32_8 = arith.constant 0 : i32
    %11 = arith.cmpi ne, %10, %c0_i32_8 : i32
    scf.if %11 {
      %c0_9 = arith.constant 0 : index
      %c0_10 = arith.constant 0 : index
      %12 = vector.load %arg5[%c0_9, %c0_10] : memref<3x128xf32, #tpu.memory_space<vmem>>, vector<3x128xf32>
      %c0_11 = arith.constant 0 : index
      %c0_12 = arith.constant 0 : index
      %13 = vector.load %arg7[%c0_11, %c0_12] : memref<128x128xf32, #tpu.memory_space<vmem>>, vector<128x128xf32>
      %14 = vector.extract_strided_slice %12 {offsets = [0, 0], sizes = [1, 128], strides = [1, 1]} : vector<3x128xf32> to vector<1x128xf32>
      %15 = vector.broadcast %14 : vector<1x128xf32> to vector<128x128xf32>
      %16 = arith.addf %13, %15 : vector<128x128xf32>
      %cst_13 = arith.constant 0.000000e+00 : f32
      %17 = vector.broadcast %cst_13 : f32 to vector<128x128xf32>
      %18 = arith.maximumf %16, %17 : vector<128x128xf32>
      %19 = vector.extract_strided_slice %12 {offsets = [1, 0], sizes = [1, 128], strides = [1, 1]} : vector<3x128xf32> to vector<1x128xf32>
      %20 = vector.broadcast %19 : vector<1x128xf32> to vector<128x128xf32>
      %21 = arith.mulf %18, %20 : vector<128x128xf32>
      %22 = vector.extract_strided_slice %12 {offsets = [2, 0], sizes = [1, 128], strides = [1, 1]} : vector<3x128xf32> to vector<1x128xf32>
      %23 = vector.broadcast %22 : vector<1x128xf32> to vector<128x128xf32>
      %24 = arith.addf %21, %23 : vector<128x128xf32>
      %25 = arith.truncf %24 : vector<128x128xf32> to vector<128x128xbf16>
      %c0_14 = arith.constant 0 : index
      %c0_15 = arith.constant 0 : index
      %26 = vector.load %arg6[%c0_14, %c0_15] : memref<128x128xbf16, #tpu.memory_space<vmem>>, vector<128x128xbf16>
      tpu.vector_store %arg6[%c0_14, %c0_15], %25 {strides = array<i32>} : memref<128x128xbf16, #tpu.memory_space<vmem>>, vector<128x128xbf16>,
    } else {
    }
    return
  }
  func.func @transform_0(%arg0: i32, %arg1: i32, %arg2: i32) -> (i32, i32) {
    %c0_i32 = arith.constant 0 : i32
    return %arg0, %arg2 : i32, i32
  }
  func.func @transform_1(%arg0: i32, %arg1: i32, %arg2: i32) -> (i32, i32) {
    %c0_i32 = arith.constant 0 : i32
    return %arg2, %arg1 : i32, i32
  }
  func.func @transform_2(%arg0: i32, %arg1: i32, %arg2: i32) -> (i32, i32) {
    %c0_i32 = arith.constant 0 : i32
    %c0_i32_0 = arith.constant 0 : i32
    return %c0_i32, %arg1 : i32, i32
  }
  func.func @transform_3(%arg0: i32, %arg1: i32, %arg2: i32) -> (i32, i32) {
    %c0_i32 = arith.constant 0 : i32
    return %arg0, %arg1 : i32, i32
  }
}

module attributes {stable_mosaic.version = 11 : i64} {
  func.func @_gemm_bias_relu_bn_kernel(%arg0: i32, %arg1: i32, %arg2: i32, %arg3: memref<64x1152xbf16, #tpu.memory_space<vmem>>, %arg4: memref<1152x128xbf16, #tpu.memory_space<vmem>>, %arg5: memref<3x128xf32, #tpu.memory_space<vmem>>, %arg6: memref<64x128xbf16, #tpu.memory_space<vmem>>, %arg7: memref<64x128xf32, #tpu.memory_space<vmem>>) attributes {dimension_semantics = [#tpu.dimension_semantics<parallel>, #tpu.dimension_semantics<parallel>, #tpu.dimension_semantics<arbitrary>], iteration_bounds = array<i64: 1, 2, 1>, scalar_prefetch = 0 : i64, scratch_operands = 1 : i64, tpu.core_type = #tpu.core_type<tc>, window_params = [{transform_indices = @transform_0, window_bounds = array<i64: 64, 1152>}, {transform_indices = @transform_1, window_bounds = array<i64: 1152, 128>}, {transform_indices = @transform_2, window_bounds = array<i64: 3, 128>}, {transform_indices = @transform_3, window_bounds = array<i64: 64, 128>}]} {
    %c0_i32 = arith.constant 0 : i32
    %0 = arith.cmpi eq, %arg2, %c0_i32 : i32
    %1 = arith.extui %0 : i1 to i32
    %c0_i32_0 = arith.constant 0 : i32
    %2 = arith.cmpi ne, %1, %c0_i32_0 : i32
    scf.if %2 {
      %cst_10 = arith.constant 0.000000e+00 : f32
      %12 = vector.broadcast %cst_10 : f32 to vector<64x128xf32>
      %c0_11 = arith.constant 0 : index
      %c0_12 = arith.constant 0 : index
      %13 = vector.load %arg7[%c0_11, %c0_12] : memref<64x128xf32, #tpu.memory_space<vmem>>, vector<64x128xf32>
      tpu.vector_store %arg7[%c0_11, %c0_12], %12 {strides = array<i32>} : memref<64x128xf32, #tpu.memory_space<vmem>>, vector<64x128xf32>,
    } else {
    }
    %c0 = arith.constant 0 : index
    %c0_1 = arith.constant 0 : index
    %3 = vector.load %arg7[%c0, %c0_1] : memref<64x128xf32, #tpu.memory_space<vmem>>, vector<64x128xf32>
    %c0_2 = arith.constant 0 : index
    %c0_3 = arith.constant 0 : index
    %4 = vector.load %arg3[%c0_2, %c0_3] : memref<64x1152xbf16, #tpu.memory_space<vmem>>, vector<64x1152xbf16>
    %c0_4 = arith.constant 0 : index
    %c0_5 = arith.constant 0 : index
    %5 = vector.load %arg4[%c0_4, %c0_5] : memref<1152x128xbf16, #tpu.memory_space<vmem>>, vector<1152x128xbf16>
    %cst = arith.constant dense<0.000000e+00> : vector<64x128xf32>
    %6 = tpu.matmul %4, %5, %cst {dimension_numbers = #tpu.dot_dimension_numbers<[1], [0], [0], [1], [0, 0, 1, 1], [], []>} : vector<64x1152xbf16>, vector<1152x128xbf16>, vector<64x128xf32> -> vector<64x128xf32>
    %7 = arith.addf %3, %6 : vector<64x128xf32>
    %c0_6 = arith.constant 0 : index
    %c0_7 = arith.constant 0 : index
    %8 = vector.load %arg7[%c0_6, %c0_7] : memref<64x128xf32, #tpu.memory_space<vmem>>, vector<64x128xf32>
    tpu.vector_store %arg7[%c0_6, %c0_7], %7 {strides = array<i32>} : memref<64x128xf32, #tpu.memory_space<vmem>>, vector<64x128xf32>,
    %c0_i32_8 = arith.constant 0 : i32
    %9 = arith.cmpi eq, %arg2, %c0_i32_8 : i32
    %10 = arith.extui %9 : i1 to i32
    %c0_i32_9 = arith.constant 0 : i32
    %11 = arith.cmpi ne, %10, %c0_i32_9 : i32
    scf.if %11 {
      %c0_10 = arith.constant 0 : index
      %c0_11 = arith.constant 0 : index
      %12 = vector.load %arg5[%c0_10, %c0_11] : memref<3x128xf32, #tpu.memory_space<vmem>>, vector<3x128xf32>
      %c0_12 = arith.constant 0 : index
      %c0_13 = arith.constant 0 : index
      %13 = vector.load %arg7[%c0_12, %c0_13] : memref<64x128xf32, #tpu.memory_space<vmem>>, vector<64x128xf32>
      %14 = vector.extract_strided_slice %12 {offsets = [0, 0], sizes = [1, 128], strides = [1, 1]} : vector<3x128xf32> to vector<1x128xf32>
      %15 = vector.broadcast %14 : vector<1x128xf32> to vector<64x128xf32>
      %16 = arith.addf %13, %15 : vector<64x128xf32>
      %cst_14 = arith.constant 0.000000e+00 : f32
      %17 = vector.broadcast %cst_14 : f32 to vector<64x128xf32>
      %18 = arith.maximumf %16, %17 : vector<64x128xf32>
      %19 = vector.extract_strided_slice %12 {offsets = [1, 0], sizes = [1, 128], strides = [1, 1]} : vector<3x128xf32> to vector<1x128xf32>
      %20 = vector.broadcast %19 : vector<1x128xf32> to vector<64x128xf32>
      %21 = arith.mulf %18, %20 : vector<64x128xf32>
      %22 = vector.extract_strided_slice %12 {offsets = [2, 0], sizes = [1, 128], strides = [1, 1]} : vector<3x128xf32> to vector<1x128xf32>
      %23 = vector.broadcast %22 : vector<1x128xf32> to vector<64x128xf32>
      %24 = arith.addf %21, %23 : vector<64x128xf32>
      %25 = arith.truncf %24 : vector<64x128xf32> to vector<64x128xbf16>
      %c0_15 = arith.constant 0 : index
      %c0_16 = arith.constant 0 : index
      %26 = vector.load %arg6[%c0_15, %c0_16] : memref<64x128xbf16, #tpu.memory_space<vmem>>, vector<64x128xbf16>
      tpu.vector_store %arg6[%c0_15, %c0_16], %25 {strides = array<i32>} : memref<64x128xbf16, #tpu.memory_space<vmem>>, vector<64x128xbf16>,
    } else {
    }
    return
  }
  func.func @transform_0(%arg0: i32, %arg1: i32, %arg2: i32) -> (i32, i32) {
    %c0_i32 = arith.constant 0 : i32
    return %arg0, %arg2 : i32, i32
  }
  func.func @transform_1(%arg0: i32, %arg1: i32, %arg2: i32) -> (i32, i32) {
    %c0_i32 = arith.constant 0 : i32
    return %arg2, %arg1 : i32, i32
  }
  func.func @transform_2(%arg0: i32, %arg1: i32, %arg2: i32) -> (i32, i32) {
    %c0_i32 = arith.constant 0 : i32
    %c0_i32_0 = arith.constant 0 : i32
    return %c0_i32, %arg1 : i32, i32
  }
  func.func @transform_3(%arg0: i32, %arg1: i32, %arg2: i32) -> (i32, i32) {
    %c0_i32 = arith.constant 0 : i32
    return %arg0, %arg1 : i32, i32
  }
}

module attributes {stable_mosaic.version = 11 : i64} {
  func.func @_maxpool2x2_kernel(%arg0: memref<8x2x2x512xbf16, #tpu.memory_space<vmem>>, %arg1: memref<8x2x256xbf16, #tpu.memory_space<vmem>>) attributes {dimension_semantics = [], scalar_prefetch = 0 : i64, scratch_operands = 0 : i64, tpu.core_type = #tpu.core_type<tc>} {
    %c0 = arith.constant 0 : index
    %c0_0 = arith.constant 0 : index
    %c0_1 = arith.constant 0 : index
    %c0_2 = arith.constant 0 : index
    %0 = vector.load %arg0[%c0, %c0_0, %c0_1, %c0_2] : memref<8x2x2x512xbf16, #tpu.memory_space<vmem>>, vector<8x2x2x512xbf16>
    %1 = arith.extf %0 : vector<8x2x2x512xbf16> to vector<8x2x2x512xf32>
    %2 = vector.extract_strided_slice %1 {offsets = [0, 0, 0, 0], sizes = [8, 1, 2, 512], strides = [1, 1, 1, 1]} : vector<8x2x2x512xf32> to vector<8x1x2x512xf32>
    %3 = vector.shape_cast %2 : vector<8x1x2x512xf32> to vector<8x2x512xf32>
    %4 = vector.extract_strided_slice %1 {offsets = [0, 1, 0, 0], sizes = [8, 1, 2, 512], strides = [1, 1, 1, 1]} : vector<8x2x2x512xf32> to vector<8x1x2x512xf32>
    %5 = vector.shape_cast %4 : vector<8x1x2x512xf32> to vector<8x2x512xf32>
    %6 = arith.maximumf %3, %5 : vector<8x2x512xf32>
    %7 = vector.extract_strided_slice %6 {offsets = [0, 0, 0], sizes = [8, 2, 256], strides = [1, 1, 1]} : vector<8x2x512xf32> to vector<8x2x256xf32>
    %8 = vector.extract_strided_slice %6 {offsets = [0, 0, 256], sizes = [8, 2, 256], strides = [1, 1, 1]} : vector<8x2x512xf32> to vector<8x2x256xf32>
    %9 = arith.maximumf %7, %8 : vector<8x2x256xf32>
    %10 = arith.truncf %9 : vector<8x2x256xf32> to vector<8x2x256xbf16>
    %c0_3 = arith.constant 0 : index
    %c0_4 = arith.constant 0 : index
    %c0_5 = arith.constant 0 : index
    %11 = vector.load %arg1[%c0_3, %c0_4, %c0_5] : memref<8x2x256xbf16, #tpu.memory_space<vmem>>, vector<8x2x256xbf16>
    tpu.vector_store %arg1[%c0_3, %c0_4, %c0_5], %10 {strides = array<i32>} : memref<8x2x256xbf16, #tpu.memory_space<vmem>>, vector<8x2x256xbf16>,
    return
  }
}

module attributes {stable_mosaic.version = 11 : i64} {
  func.func @_gemm_bias_relu_bn_kernel(%arg0: i32, %arg1: i32, %arg2: i32, %arg3: memref<16x1152xbf16, #tpu.memory_space<vmem>>, %arg4: memref<1152x256xbf16, #tpu.memory_space<vmem>>, %arg5: memref<3x256xf32, #tpu.memory_space<vmem>>, %arg6: memref<16x256xbf16, #tpu.memory_space<vmem>>, %arg7: memref<16x256xf32, #tpu.memory_space<vmem>>) attributes {dimension_semantics = [#tpu.dimension_semantics<parallel>, #tpu.dimension_semantics<parallel>, #tpu.dimension_semantics<arbitrary>], iteration_bounds = array<i64: 1, 2, 2>, scalar_prefetch = 0 : i64, scratch_operands = 1 : i64, tpu.core_type = #tpu.core_type<tc>, window_params = [{transform_indices = @transform_0, window_bounds = array<i64: 16, 1152>}, {transform_indices = @transform_1, window_bounds = array<i64: 1152, 256>}, {transform_indices = @transform_2, window_bounds = array<i64: 3, 256>}, {transform_indices = @transform_3, window_bounds = array<i64: 16, 256>}]} {
    %c0_i32 = arith.constant 0 : i32
    %0 = arith.cmpi eq, %arg2, %c0_i32 : i32
    %1 = arith.extui %0 : i1 to i32
    %c0_i32_0 = arith.constant 0 : i32
    %2 = arith.cmpi ne, %1, %c0_i32_0 : i32
    scf.if %2 {
      %cst_9 = arith.constant 0.000000e+00 : f32
      %12 = vector.broadcast %cst_9 : f32 to vector<16x256xf32>
      %c0_10 = arith.constant 0 : index
      %c0_11 = arith.constant 0 : index
      %13 = vector.load %arg7[%c0_10, %c0_11] : memref<16x256xf32, #tpu.memory_space<vmem>>, vector<16x256xf32>
      tpu.vector_store %arg7[%c0_10, %c0_11], %12 {strides = array<i32>} : memref<16x256xf32, #tpu.memory_space<vmem>>, vector<16x256xf32>,
    } else {
    }
    %c0 = arith.constant 0 : index
    %c0_1 = arith.constant 0 : index
    %3 = vector.load %arg7[%c0, %c0_1] : memref<16x256xf32, #tpu.memory_space<vmem>>, vector<16x256xf32>
    %c0_2 = arith.constant 0 : index
    %c0_3 = arith.constant 0 : index
    %4 = vector.load %arg3[%c0_2, %c0_3] : memref<16x1152xbf16, #tpu.memory_space<vmem>>, vector<16x1152xbf16>
    %c0_4 = arith.constant 0 : index
    %c0_5 = arith.constant 0 : index
    %5 = vector.load %arg4[%c0_4, %c0_5] : memref<1152x256xbf16, #tpu.memory_space<vmem>>, vector<1152x256xbf16>
    %cst = arith.constant dense<0.000000e+00> : vector<16x256xf32>
    %6 = tpu.matmul %4, %5, %cst {dimension_numbers = #tpu.dot_dimension_numbers<[1], [0], [0], [1], [0, 0, 1, 1], [], []>} : vector<16x1152xbf16>, vector<1152x256xbf16>, vector<16x256xf32> -> vector<16x256xf32>
    %7 = arith.addf %3, %6 : vector<16x256xf32>
    %c0_6 = arith.constant 0 : index
    %c0_7 = arith.constant 0 : index
    %8 = vector.load %arg7[%c0_6, %c0_7] : memref<16x256xf32, #tpu.memory_space<vmem>>, vector<16x256xf32>
    tpu.vector_store %arg7[%c0_6, %c0_7], %7 {strides = array<i32>} : memref<16x256xf32, #tpu.memory_space<vmem>>, vector<16x256xf32>,
    %c1_i32 = arith.constant 1 : i32
    %9 = arith.cmpi eq, %arg2, %c1_i32 : i32
    %10 = arith.extui %9 : i1 to i32
    %c0_i32_8 = arith.constant 0 : i32
    %11 = arith.cmpi ne, %10, %c0_i32_8 : i32
    scf.if %11 {
      %c0_9 = arith.constant 0 : index
      %c0_10 = arith.constant 0 : index
      %12 = vector.load %arg5[%c0_9, %c0_10] : memref<3x256xf32, #tpu.memory_space<vmem>>, vector<3x256xf32>
      %c0_11 = arith.constant 0 : index
      %c0_12 = arith.constant 0 : index
      %13 = vector.load %arg7[%c0_11, %c0_12] : memref<16x256xf32, #tpu.memory_space<vmem>>, vector<16x256xf32>
      %14 = vector.extract_strided_slice %12 {offsets = [0, 0], sizes = [1, 256], strides = [1, 1]} : vector<3x256xf32> to vector<1x256xf32>
      %15 = vector.broadcast %14 : vector<1x256xf32> to vector<16x256xf32>
      %16 = arith.addf %13, %15 : vector<16x256xf32>
      %cst_13 = arith.constant 0.000000e+00 : f32
      %17 = vector.broadcast %cst_13 : f32 to vector<16x256xf32>
      %18 = arith.maximumf %16, %17 : vector<16x256xf32>
      %19 = vector.extract_strided_slice %12 {offsets = [1, 0], sizes = [1, 256], strides = [1, 1]} : vector<3x256xf32> to vector<1x256xf32>
      %20 = vector.broadcast %19 : vector<1x256xf32> to vector<16x256xf32>
      %21 = arith.mulf %18, %20 : vector<16x256xf32>
      %22 = vector.extract_strided_slice %12 {offsets = [2, 0], sizes = [1, 256], strides = [1, 1]} : vector<3x256xf32> to vector<1x256xf32>
      %23 = vector.broadcast %22 : vector<1x256xf32> to vector<16x256xf32>
      %24 = arith.addf %21, %23 : vector<16x256xf32>
      %25 = arith.truncf %24 : vector<16x256xf32> to vector<16x256xbf16>
      %c0_14 = arith.constant 0 : index
      %c0_15 = arith.constant 0 : index
      %26 = vector.load %arg6[%c0_14, %c0_15] : memref<16x256xbf16, #tpu.memory_space<vmem>>, vector<16x256xbf16>
      tpu.vector_store %arg6[%c0_14, %c0_15], %25 {strides = array<i32>} : memref<16x256xbf16, #tpu.memory_space<vmem>>, vector<16x256xbf16>,
    } else {
    }
    return
  }
  func.func @transform_0(%arg0: i32, %arg1: i32, %arg2: i32) -> (i32, i32) {
    %c0_i32 = arith.constant 0 : i32
    return %arg0, %arg2 : i32, i32
  }
  func.func @transform_1(%arg0: i32, %arg1: i32, %arg2: i32) -> (i32, i32) {
    %c0_i32 = arith.constant 0 : i32
    return %arg2, %arg1 : i32, i32
  }
  func.func @transform_2(%arg0: i32, %arg1: i32, %arg2: i32) -> (i32, i32) {
    %c0_i32 = arith.constant 0 : i32
    %c0_i32_0 = arith.constant 0 : i32
    return %c0_i32, %arg1 : i32, i32
  }
  func.func @transform_3(%arg0: i32, %arg1: i32, %arg2: i32) -> (i32, i32) {
    %c0_i32 = arith.constant 0 : i32
    return %arg0, %arg1 : i32, i32
  }
}

module attributes {stable_mosaic.version = 11 : i64} {
  func.func @_gemm_bias_relu_bn_kernel(%arg0: i32, %arg1: i32, %arg2: i32, %arg3: memref<16x2048xbf16, #tpu.memory_space<vmem>>, %arg4: memref<2048x512xbf16, #tpu.memory_space<vmem>>, %arg5: memref<3x512xf32, #tpu.memory_space<vmem>>, %arg6: memref<16x512xf32, #tpu.memory_space<vmem>>, %arg7: memref<16x512xf32, #tpu.memory_space<vmem>>) attributes {dimension_semantics = [#tpu.dimension_semantics<parallel>, #tpu.dimension_semantics<parallel>, #tpu.dimension_semantics<arbitrary>], iteration_bounds = array<i64: 1, 2, 1>, scalar_prefetch = 0 : i64, scratch_operands = 1 : i64, tpu.core_type = #tpu.core_type<tc>, window_params = [{transform_indices = @transform_0, window_bounds = array<i64: 16, 2048>}, {transform_indices = @transform_1, window_bounds = array<i64: 2048, 512>}, {transform_indices = @transform_2, window_bounds = array<i64: 3, 512>}, {transform_indices = @transform_3, window_bounds = array<i64: 16, 512>}]} {
    %c0_i32 = arith.constant 0 : i32
    %0 = arith.cmpi eq, %arg2, %c0_i32 : i32
    %1 = arith.extui %0 : i1 to i32
    %c0_i32_0 = arith.constant 0 : i32
    %2 = arith.cmpi ne, %1, %c0_i32_0 : i32
    scf.if %2 {
      %cst_10 = arith.constant 0.000000e+00 : f32
      %12 = vector.broadcast %cst_10 : f32 to vector<16x512xf32>
      %c0_11 = arith.constant 0 : index
      %c0_12 = arith.constant 0 : index
      %13 = vector.load %arg7[%c0_11, %c0_12] : memref<16x512xf32, #tpu.memory_space<vmem>>, vector<16x512xf32>
      tpu.vector_store %arg7[%c0_11, %c0_12], %12 {strides = array<i32>} : memref<16x512xf32, #tpu.memory_space<vmem>>, vector<16x512xf32>,
    } else {
    }
    %c0 = arith.constant 0 : index
    %c0_1 = arith.constant 0 : index
    %3 = vector.load %arg7[%c0, %c0_1] : memref<16x512xf32, #tpu.memory_space<vmem>>, vector<16x512xf32>
    %c0_2 = arith.constant 0 : index
    %c0_3 = arith.constant 0 : index
    %4 = vector.load %arg3[%c0_2, %c0_3] : memref<16x2048xbf16, #tpu.memory_space<vmem>>, vector<16x2048xbf16>
    %c0_4 = arith.constant 0 : index
    %c0_5 = arith.constant 0 : index
    %5 = vector.load %arg4[%c0_4, %c0_5] : memref<2048x512xbf16, #tpu.memory_space<vmem>>, vector<2048x512xbf16>
    %cst = arith.constant dense<0.000000e+00> : vector<16x512xf32>
    %6 = tpu.matmul %4, %5, %cst {dimension_numbers = #tpu.dot_dimension_numbers<[1], [0], [0], [1], [0, 0, 1, 1], [], []>} : vector<16x2048xbf16>, vector<2048x512xbf16>, vector<16x512xf32> -> vector<16x512xf32>
    %7 = arith.addf %3, %6 : vector<16x512xf32>
    %c0_6 = arith.constant 0 : index
    %c0_7 = arith.constant 0 : index
    %8 = vector.load %arg7[%c0_6, %c0_7] : memref<16x512xf32, #tpu.memory_space<vmem>>, vector<16x512xf32>
    tpu.vector_store %arg7[%c0_6, %c0_7], %7 {strides = array<i32>} : memref<16x512xf32, #tpu.memory_space<vmem>>, vector<16x512xf32>,
    %c0_i32_8 = arith.constant 0 : i32
    %9 = arith.cmpi eq, %arg2, %c0_i32_8 : i32
    %10 = arith.extui %9 : i1 to i32
    %c0_i32_9 = arith.constant 0 : i32
    %11 = arith.cmpi ne, %10, %c0_i32_9 : i32
    scf.if %11 {
      %c0_10 = arith.constant 0 : index
      %c0_11 = arith.constant 0 : index
      %12 = vector.load %arg5[%c0_10, %c0_11] : memref<3x512xf32, #tpu.memory_space<vmem>>, vector<3x512xf32>
      %c0_12 = arith.constant 0 : index
      %c0_13 = arith.constant 0 : index
      %13 = vector.load %arg7[%c0_12, %c0_13] : memref<16x512xf32, #tpu.memory_space<vmem>>, vector<16x512xf32>
      %14 = vector.extract_strided_slice %12 {offsets = [0, 0], sizes = [1, 512], strides = [1, 1]} : vector<3x512xf32> to vector<1x512xf32>
      %15 = vector.broadcast %14 : vector<1x512xf32> to vector<16x512xf32>
      %16 = arith.addf %13, %15 : vector<16x512xf32>
      %cst_14 = arith.constant 0.000000e+00 : f32
      %17 = vector.broadcast %cst_14 : f32 to vector<16x512xf32>
      %18 = arith.maximumf %16, %17 : vector<16x512xf32>
      %19 = vector.extract_strided_slice %12 {offsets = [1, 0], sizes = [1, 512], strides = [1, 1]} : vector<3x512xf32> to vector<1x512xf32>
      %20 = vector.broadcast %19 : vector<1x512xf32> to vector<16x512xf32>
      %21 = arith.mulf %18, %20 : vector<16x512xf32>
      %22 = vector.extract_strided_slice %12 {offsets = [2, 0], sizes = [1, 512], strides = [1, 1]} : vector<3x512xf32> to vector<1x512xf32>
      %23 = vector.broadcast %22 : vector<1x512xf32> to vector<16x512xf32>
      %24 = arith.addf %21, %23 : vector<16x512xf32>
      %c0_15 = arith.constant 0 : index
      %c0_16 = arith.constant 0 : index
      %25 = vector.load %arg6[%c0_15, %c0_16] : memref<16x512xf32, #tpu.memory_space<vmem>>, vector<16x512xf32>
      tpu.vector_store %arg6[%c0_15, %c0_16], %24 {strides = array<i32>} : memref<16x512xf32, #tpu.memory_space<vmem>>, vector<16x512xf32>,
    } else {
    }
    return
  }
  func.func @transform_0(%arg0: i32, %arg1: i32, %arg2: i32) -> (i32, i32) {
    %c0_i32 = arith.constant 0 : i32
    return %arg0, %arg2 : i32, i32
  }
  func.func @transform_1(%arg0: i32, %arg1: i32, %arg2: i32) -> (i32, i32) {
    %c0_i32 = arith.constant 0 : i32
    return %arg2, %arg1 : i32, i32
  }
  func.func @transform_2(%arg0: i32, %arg1: i32, %arg2: i32) -> (i32, i32) {
    %c0_i32 = arith.constant 0 : i32
    %c0_i32_0 = arith.constant 0 : i32
    return %c0_i32, %arg1 : i32, i32
  }
  func.func @transform_3(%arg0: i32, %arg1: i32, %arg2: i32) -> (i32, i32) {
    %c0_i32 = arith.constant 0 : i32
    return %arg0, %arg1 : i32, i32
  }
}

</mosaic_0001>

<bundles_post_ra>
// kernel: siamese_forward.9
= control target key start
LH: loop header
LB: loop body
LE: loop exit
PB: predicated region body
PF: predicated region fallthrough
CT: control target
= control target key end

     0   :  { %s709_s0 = inlined_call_operand.vmem [shape: bf16[32,2,8,256], index: 0, kind: input, shape index: {}]   ;;  %s710_s1 = inlined_call_operand.vmem [shape: bf16[32,8,128], index: 1, kind: output, shape index: {}]  }
   0x1   :  { %v8_v0 = vld [vmem:[%s709_s0] sm:$0xff]  ;;  %v9_v1 = vld [vmem:[%s709_s0 + $0x8] sm:$0xff]  ;;  %v10_v2 = vld [vmem:[%s709_s0 + $0x10] sm:$0xff] }
   0x2   :  { %v11_v3 = vld [vmem:[%s709_s0 + $0x18] sm:$0xff]  ;;  %v72_v4 = vunpack.c.l.bf16 %v8_v0  ;;  %v73_v5 = vunpack.c.h.bf16 %v8_v0  ;;  %v74_v6 = vunpack.c.l.bf16 %v9_v1  ;;  %v75_v7 = vunpack.c.h.bf16 %v9_v1  ;;  %v12_v8 = vld [vmem:[%s709_s0 + $0x20] sm:$0xff]  ;;  %v13_v9 = vld [vmem:[%s709_s0 + $0x28] sm:$0xff] }
   0x3   :  { %v76_v10 = vunpack.c.l.bf16 %v10_v2  ;;  %v77_v11 = vunpack.c.h.bf16 %v10_v2  ;;  %v78_v12 = vunpack.c.l.bf16 %v11_v3  ;;  %v79_v13 = vunpack.c.h.bf16 %v11_v3  ;;  %v14_v14 = vld [vmem:[%s709_s0 + $0x30] sm:$0xff]  ;;  %v15_v15 = vld [vmem:[%s709_s0 + $0x38] sm:$0xff]  ;;  %v16_v24 = vld [vmem:[%s709_s0 + $0x40] sm:$0xff] }
   0x4   :  { %v200_v16 = vmax.f32 %v72_v4, %v74_v6  ;;  %v201_v17 = vmax.f32 %v73_v5, %v75_v7  ;;  %v80_v18 = vunpack.c.l.bf16 %v12_v8  ;;  %v81_v19 = vunpack.c.h.bf16 %v12_v8  ;;  %v17_v25 = vld [vmem:[%s709_s0 + $0x48] sm:$0xff]  ;;  %v18_v34 = vld [vmem:[%s709_s0 + $0x50] sm:$0xff]  ;;  %v19_v35 = vld [vmem:[%s709_s0 + $0x58] sm:$0xff] }
   0x5   :  { %v202_v20 = vmax.f32 %v76_v10, %v78_v12  ;;  %v203_v21 = vmax.f32 %v77_v11, %v79_v13  ;;  %v82_v22 = vunpack.c.l.bf16 %v13_v9  ;;  %v83_v23 = vunpack.c.h.bf16 %v13_v9  ;;  %v20_v40 = vld [vmem:[%s709_s0 + $0x60] sm:$0xff]  ;;  %v21_v45 = vld [vmem:[%s709_s0 + $0x68] sm:$0xff]  ;;  %v22_v50 = vld [vmem:[%s709_s0 + $0x70] sm:$0xff] }
   0x6   :  { %v264_v26 = vmax.f32 %v200_v16, %v201_v17  ;;  %v84_v27 = vunpack.c.l.bf16 %v14_v14  ;;  %v85_v28 = vunpack.c.h.bf16 %v14_v14  ;;  %v86_v29 = vunpack.c.l.bf16 %v15_v15  ;;  %v23_v54 = vld [vmem:[%s709_s0 + $0x78] sm:$0xff]  ;;  %v24_v60 = vld [vmem:[%s709_s0 + $0x80] sm:$0xff]  ;;  %v25_v1 = vld [vmem:[%s709_s0 + $0x88] sm:$0xff] }
   0x7   :  { %v265_v30 = vmax.f32 %v202_v20, %v203_v21  ;;  %v87_v31 = vunpack.c.h.bf16 %v15_v15  ;;  %v204_v32 = vmax.f32 %v80_v18, %v82_v22  ;;  %v205_v33 = vmax.f32 %v81_v19, %v83_v23  ;;  %v26_v6 = vld [vmem:[%s709_s0 + $0x90] sm:$0xff]  ;;  %v27_v9 = vld [vmem:[%s709_s0 + $0x98] sm:$0xff]  ;;  %v28_v16 = vld [vmem:[%s709_s0 + $0xa0] sm:$0xff] }
   0x8   :  { %v206_v36 = vmax.f32 %v84_v27, %v86_v29  ;;  %v88_v37 = vunpack.c.l.bf16 %v16_v24  ;;  %v89_v38 = vunpack.c.h.bf16 %v16_v24  ;;  %v90_v39 = vunpack.c.l.bf16 %v17_v25  ;;  %v29_v17 = vld [vmem:[%s709_s0 + $0xa8] sm:$0xff]  ;;  %v31_v27 = vld [vmem:[%s709_s0 + $0xb8] sm:$0xff] }
   0x9   :  { %v367_v41 = vpack.c.bf16 %v265_v30, %v264_v26  ;;  %v207_v42 = vmax.f32 %v85_v28, %v87_v31  ;;  %v266_v43 = vmax.f32 %v204_v32, %v205_v33  ;;  %v91_v44 = vunpack.c.h.bf16 %v17_v25  ;;  %v30_v26 = vld [vmem:[%s709_s0 + $0xb0] sm:$0xff] }
   0xa   :  { %v92_v46 = vunpack.c.l.bf16 %v18_v34  ;;  %v93_v47 = vunpack.c.h.bf16 %v18_v34  ;;  %v94_v48 = vunpack.c.l.bf16 %v19_v35  ;;  %v95_v49 = vunpack.c.h.bf16 %v19_v35 }
   0xb   :  { %368 = vst [vmem:[%s710_s1] sm:$0xff] %v367_v41   ;;  %v267_v51 = vmax.f32 %v206_v36, %v207_v42  ;;  %v208_v52 = vmax.f32 %v88_v37, %v90_v39  ;;  %v209_v53 = vmax.f32 %v89_v38, %v91_v44  ;;  %v96_v55 = vunpack.c.l.bf16 %v20_v40  ;;  %v32_v36 = vld [vmem:[%s709_s0 + $0xc0] sm:$0xff]  ;;  %v33_v37 = vld [vmem:[%s709_s0 + $0xc8] sm:$0xff] }
   0xc   :  { %v210_v56 = vmax.f32 %v92_v46, %v94_v48  ;;  %v211_v57 = vmax.f32 %v93_v47, %v95_v49  ;;  %v97_v58 = vunpack.c.h.bf16 %v20_v40  ;;  %v98_v59 = vunpack.c.l.bf16 %v21_v45  ;;  %v34_v46 = vld [vmem:[%s709_s0 + $0xd0] sm:$0xff]  ;;  %v35_v47 = vld [vmem:[%s709_s0 + $0xd8] sm:$0xff] }
   0xd   :  { %v372_v61 = vpack.c.bf16 %v267_v51, %v266_v43  ;;  %v268_v62 = vmax.f32 %v208_v52, %v209_v53  ;;  %v99_v63 = vunpack.c.h.bf16 %v21_v45  ;;  %v100_v0 = vunpack.c.l.bf16 %v22_v50  ;;  %v36_v52 = vld [vmem:[%s709_s0 + $0xe0] sm:$0xff] }
   0xe   :  { %v269_v2 = vmax.f32 %v210_v56, %v211_v57  ;;  %v101_v3 = vunpack.c.h.bf16 %v22_v50  ;;  %v102_v4 = vunpack.c.l.bf16 %v23_v54  ;;  %v103_v5 = vunpack.c.h.bf16 %v23_v54  ;;  %v37_v57 = vld [vmem:[%s709_s0 + $0xe8] sm:$0xff] }
   0xf   :  { %444 = vst [vmem:[%s710_s1 + $0x8] sm:$0xff] %v372_v61   ;;  %v212_v7 = vmax.f32 %v96_v55, %v98_v59  ;;  %v213_v8 = vmax.f32 %v97_v58, %v99_v63  ;;  %v104_v10 = vunpack.c.l.bf16 %v24_v60  ;;  %v105_v11 = vunpack.c.h.bf16 %v24_v60 }
  0x10   :  { %v377_v12 = vpack.c.bf16 %v269_v2, %v268_v62  ;;  %v214_v13 = vmax.f32 %v100_v0, %v102_v4  ;;  %v215_v14 = vmax.f32 %v101_v3, %v103_v5  ;;  %v106_v15 = vunpack.c.l.bf16 %v25_v1  ;;  %v38_v62 = vld [vmem:[%s709_s0 + $0xf0] sm:$0xff]  ;;  %v39_v2 = vld [vmem:[%s709_s0 + $0xf8] sm:$0xff] }
  0x11   :  { %v270_v18 = vmax.f32 %v212_v7, %v213_v8  ;;  %v107_v19 = vunpack.c.h.bf16 %v25_v1  ;;  %v108_v20 = vunpack.c.l.bf16 %v26_v6  ;;  %v109_v21 = vunpack.c.h.bf16 %v26_v6  ;;  %v40_v8 = vld [vmem:[%s709_s0 + $0x100] sm:$0xff] }
  0x12   :  { %445 = vst [vmem:[%s710_s1 + $0x10] sm:$0xff] %v377_v12   ;;  %v271_v22 = vmax.f32 %v214_v13, %v215_v14  ;;  %v110_v23 = vunpack.c.l.bf16 %v27_v9  ;;  %v111_v24 = vunpack.c.h.bf16 %v27_v9  ;;  %v216_v25 = vmax.f32 %v104_v10, %v106_v15  ;;  %v41_v13 = vld [vmem:[%s709_s0 + $0x108] sm:$0xff] }
  0x13   :  { %v217_v28 = vmax.f32 %v105_v11, %v107_v19  ;;  %v112_v29 = vunpack.c.l.bf16 %v28_v16  ;;  %v113_v30 = vunpack.c.h.bf16 %v28_v16  ;;  %v114_v31 = vunpack.c.l.bf16 %v29_v17 }
  0x14   :  { %v382_v32 = vpack.c.bf16 %v271_v22, %v270_v18  ;;  %v218_v33 = vmax.f32 %v108_v20, %v110_v23  ;;  %v219_v34 = vmax.f32 %v109_v21, %v111_v24  ;;  %v115_v35 = vunpack.c.h.bf16 %v29_v17  ;;  %v42_v18 = vld [vmem:[%s709_s0 + $0x110] sm:$0xff]  ;;  %v43_v21 = vld [vmem:[%s709_s0 + $0x118] sm:$0xff] }
  0x15   :  { %v272_v38 = vmax.f32 %v216_v25, %v217_v28  ;;  %v116_v39 = vunpack.c.l.bf16 %v30_v26  ;;  %v117_v40 = vunpack.c.h.bf16 %v30_v26  ;;  %v118_v41 = vunpack.c.l.bf16 %v31_v27  ;;  %v44_v28 = vld [vmem:[%s709_s0 + $0x120] sm:$0xff] }
  0x16   :  { %446 = vst [vmem:[%s710_s1 + $0x18] sm:$0xff] %v382_v32   ;;  %v273_v42 = vmax.f32 %v218_v33, %v219_v34  ;;  %v119_v43 = vunpack.c.h.bf16 %v31_v27  ;;  %v220_v44 = vmax.f32 %v112_v29, %v114_v31  ;;  %v221_v45 = vmax.f32 %v113_v30, %v115_v35  ;;  %v45_v29 = vld [vmem:[%s709_s0 + $0x128] sm:$0xff] }
  0x17   :  { %v222_v48 = vmax.f32 %v116_v39, %v118_v41  ;;  %v120_v49 = vunpack.c.l.bf16 %v32_v36  ;;  %v121_v50 = vunpack.c.h.bf16 %v32_v36  ;;  %v122_v51 = vunpack.c.l.bf16 %v33_v37  ;;  %v47_v39 = vld [vmem:[%s709_s0 + $0x138] sm:$0xff] }
  0x18   :  { %v387_v53 = vpack.c.bf16 %v273_v42, %v272_v38  ;;  %v223_v54 = vmax.f32 %v117_v40, %v119_v43  ;;  %v274_v55 = vmax.f32 %v220_v44, %v221_v45  ;;  %v123_v56 = vunpack.c.h.bf16 %v33_v37  ;;  %v46_v38 = vld [vmem:[%s709_s0 + $0x130] sm:$0xff] }
  0x19   :  { %v124_v58 = vunpack.c.l.bf16 %v34_v46  ;;  %v125_v59 = vunpack.c.h.bf16 %v34_v46  ;;  %v126_v60 = vunpack.c.l.bf16 %v35_v47  ;;  %v127_v61 = vunpack.c.h.bf16 %v35_v47 }
  0x1a   :  { %447 = vst [vmem:[%s710_s1 + $0x20] sm:$0xff] %v387_v53   ;;  %v275_v63 = vmax.f32 %v222_v48, %v223_v54  ;;  %v224_v0 = vmax.f32 %v120_v49, %v122_v51  ;;  %v225_v1 = vmax.f32 %v121_v50, %v123_v56  ;;  %v128_v3 = vunpack.c.l.bf16 %v36_v52  ;;  %v48_v48 = vld [vmem:[%s709_s0 + $0x140] sm:$0xff]  ;;  %v49_v49 = vld [vmem:[%s709_s0 + $0x148] sm:$0xff] }
  0x1b   :  { %v226_v4 = vmax.f32 %v124_v58, %v126_v60  ;;  %v227_v5 = vmax.f32 %v125_v59, %v127_v61  ;;  %v129_v6 = vunpack.c.h.bf16 %v36_v52  ;;  %v130_v7 = vunpack.c.l.bf16 %v37_v57  ;;  %v50_v58 = vld [vmem:[%s709_s0 + $0x150] sm:$0xff]  ;;  %v51_v59 = vld [vmem:[%s709_s0 + $0x158] sm:$0xff] }
  0x1c   :  { %v392_v9 = vpack.c.bf16 %v275_v63, %v274_v55  ;;  %v276_v10 = vmax.f32 %v224_v0, %v225_v1  ;;  %v131_v11 = vunpack.c.h.bf16 %v37_v57  ;;  %v132_v12 = vunpack.c.l.bf16 %v38_v62  ;;  %v52_v0 = vld [vmem:[%s709_s0 + $0x160] sm:$0xff] }
  0x1d   :  { %v277_v14 = vmax.f32 %v226_v4, %v227_v5  ;;  %v133_v15 = vunpack.c.h.bf16 %v38_v62  ;;  %v134_v16 = vunpack.c.l.bf16 %v39_v2  ;;  %v135_v17 = vunpack.c.h.bf16 %v39_v2  ;;  %v53_v5 = vld [vmem:[%s709_s0 + $0x168] sm:$0xff] }
  0x1e   :  { %448 = vst [vmem:[%s710_s1 + $0x28] sm:$0xff] %v392_v9   ;;  %v228_v19 = vmax.f32 %v128_v3, %v130_v7  ;;  %v229_v20 = vmax.f32 %v129_v6, %v131_v11  ;;  %v136_v22 = vunpack.c.l.bf16 %v40_v8  ;;  %v137_v23 = vunpack.c.h.bf16 %v40_v8 }
  0x1f   :  { %v397_v24 = vpack.c.bf16 %v277_v14, %v276_v10  ;;  %v230_v25 = vmax.f32 %v132_v12, %v134_v16  ;;  %v231_v26 = vmax.f32 %v133_v15, %v135_v17  ;;  %v138_v27 = vunpack.c.l.bf16 %v41_v13  ;;  %v54_v10 = vld [vmem:[%s709_s0 + $0x170] sm:$0xff]  ;;  %v55_v14 = vld [vmem:[%s709_s0 + $0x178] sm:$0xff] }
  0x20   :  { %v278_v30 = vmax.f32 %v228_v19, %v229_v20  ;;  %v139_v31 = vunpack.c.h.bf16 %v41_v13  ;;  %v140_v32 = vunpack.c.l.bf16 %v42_v18  ;;  %v141_v33 = vunpack.c.h.bf16 %v42_v18  ;;  %v56_v20 = vld [vmem:[%s709_s0 + $0x180] sm:$0xff] }
  0x21   :  { %449 = vst [vmem:[%s710_s1 + $0x30] sm:$0xff] %v397_v24   ;;  %v279_v34 = vmax.f32 %v230_v25, %v231_v26  ;;  %v142_v35 = vunpack.c.l.bf16 %v43_v21  ;;  %v143_v36 = vunpack.c.h.bf16 %v43_v21  ;;  %v232_v37 = vmax.f32 %v136_v22, %v138_v27  ;;  %v57_v25 = vld [vmem:[%s709_s0 + $0x188] sm:$0xff] }
  0x22   :  { %v233_v40 = vmax.f32 %v137_v23, %v139_v31  ;;  %v144_v41 = vunpack.c.l.bf16 %v44_v28  ;;  %v145_v42 = vunpack.c.h.bf16 %v44_v28  ;;  %v146_v43 = vunpack.c.l.bf16 %v45_v29 }
  0x23   :  { %v402_v44 = vpack.c.bf16 %v279_v34, %v278_v30  ;;  %v234_v45 = vmax.f32 %v140_v32, %v142_v35  ;;  %v235_v46 = vmax.f32 %v141_v33, %v143_v36  ;;  %v147_v47 = vunpack.c.h.bf16 %v45_v29  ;;  %v58_v30 = vld [vmem:[%s709_s0 + $0x190] sm:$0xff]  ;;  %v59_v33 = vld [vmem:[%s709_s0 + $0x198] sm:$0xff] }
  0x24   :  { %v280_v50 = vmax.f32 %v232_v37, %v233_v40  ;;  %v148_v51 = vunpack.c.l.bf16 %v46_v38  ;;  %v149_v52 = vunpack.c.h.bf16 %v46_v38  ;;  %v150_v53 = vunpack.c.l.bf16 %v47_v39  ;;  %v60_v40 = vld [vmem:[%s709_s0 + $0x1a0] sm:$0xff] }
  0x25   :  { %450 = vst [vmem:[%s710_s1 + $0x38] sm:$0xff] %v402_v44   ;;  %v281_v54 = vmax.f32 %v234_v45, %v235_v46  ;;  %v151_v55 = vunpack.c.h.bf16 %v47_v39  ;;  %v236_v56 = vmax.f32 %v144_v41, %v146_v43  ;;  %v237_v57 = vmax.f32 %v145_v42, %v147_v47  ;;  %v61_v41 = vld [vmem:[%s709_s0 + $0x1a8] sm:$0xff] }
  0x26   :  { %v238_v60 = vmax.f32 %v148_v51, %v150_v53  ;;  %v152_v61 = vunpack.c.l.bf16 %v48_v48  ;;  %v153_v62 = vunpack.c.h.bf16 %v48_v48  ;;  %v154_v63 = vunpack.c.l.bf16 %v49_v49  ;;  %v63_v51 = vld [vmem:[%s709_s0 + $0x1b8] sm:$0xff] }
  0x27   :  { %v407_v1 = vpack.c.bf16 %v281_v54, %v280_v50  ;;  %v239_v2 = vmax.f32 %v149_v52, %v151_v55  ;;  %v282_v3 = vmax.f32 %v236_v56, %v237_v57  ;;  %v155_v4 = vunpack.c.h.bf16 %v49_v49  ;;  %v62_v50 = vld [vmem:[%s709_s0 + $0x1b0] sm:$0xff] }
  0x28   :  { %v156_v6 = vunpack.c.l.bf16 %v50_v58  ;;  %v157_v7 = vunpack.c.h.bf16 %v50_v58  ;;  %v158_v8 = vunpack.c.l.bf16 %v51_v59  ;;  %v159_v9 = vunpack.c.h.bf16 %v51_v59 }
  0x29   :  { %451 = vst [vmem:[%s710_s1 + $0x40] sm:$0xff] %v407_v1   ;;  %v283_v11 = vmax.f32 %v238_v60, %v239_v2  ;;  %v240_v12 = vmax.f32 %v152_v61, %v154_v63  ;;  %v241_v13 = vmax.f32 %v153_v62, %v155_v4  ;;  %v160_v15 = vunpack.c.l.bf16 %v52_v0  ;;  %v64_v60 = vld [vmem:[%s709_s0 + $0x1c0] sm:$0xff]  ;;  %v65_v61 = vld [vmem:[%s709_s0 + $0x1c8] sm:$0xff] }
  0x2a   :  { %v242_v16 = vmax.f32 %v156_v6, %v158_v8  ;;  %v243_v17 = vmax.f32 %v157_v7, %v159_v9  ;;  %v161_v18 = vunpack.c.h.bf16 %v52_v0  ;;  %v162_v19 = vunpack.c.l.bf16 %v53_v5  ;;  %v66_v6 = vld [vmem:[%s709_s0 + $0x1d0] sm:$0xff]  ;;  %v67_v7 = vld [vmem:[%s709_s0 + $0x1d8] sm:$0xff] }
  0x2b   :  { %v412_v21 = vpack.c.bf16 %v283_v11, %v282_v3  ;;  %v284_v22 = vmax.f32 %v240_v12, %v241_v13  ;;  %v163_v23 = vunpack.c.h.bf16 %v53_v5  ;;  %v164_v24 = vunpack.c.l.bf16 %v54_v10  ;;  %v68_v12 = vld [vmem:[%s709_s0 + $0x1e0] sm:$0xff] }
  0x2c   :  { %v285_v26 = vmax.f32 %v242_v16, %v243_v17  ;;  %v165_v27 = vunpack.c.h.bf16 %v54_v10  ;;  %v166_v28 = vunpack.c.l.bf16 %v55_v14  ;;  %v167_v29 = vunpack.c.h.bf16 %v55_v14  ;;  %v69_v17 = vld [vmem:[%s709_s0 + $0x1e8] sm:$0xff] }
  0x2d   :  { %452 = vst [vmem:[%s710_s1 + $0x48] sm:$0xff] %v412_v21   ;;  %v244_v31 = vmax.f32 %v160_v15, %v162_v19  ;;  %v245_v32 = vmax.f32 %v161_v18, %v163_v23  ;;  %v168_v34 = vunpack.c.l.bf16 %v56_v20  ;;  %v169_v35 = vunpack.c.h.bf16 %v56_v20 }
  0x2e   :  { %v417_v36 = vpack.c.bf16 %v285_v26, %v284_v22  ;;  %v246_v37 = vmax.f32 %v164_v24, %v166_v28  ;;  %v247_v38 = vmax.f32 %v165_v27, %v167_v29  ;;  %v170_v39 = vunpack.c.l.bf16 %v57_v25  ;;  %v70_v22 = vld [vmem:[%s709_s0 + $0x1f0] sm:$0xff]  ;;  %v71_v26 = vld [vmem:[%s709_s0 + $0x1f8] sm:$0xff] }
  0x2f   :  { %v286_v42 = vmax.f32 %v244_v31, %v245_v32  ;;  %v171_v43 = vunpack.c.h.bf16 %v57_v25  ;;  %v172_v44 = vunpack.c.l.bf16 %v58_v30  ;;  %v173_v45 = vunpack.c.h.bf16 %v58_v30 }
  0x30   :  { %453 = vst [vmem:[%s710_s1 + $0x50] sm:$0xff] %v417_v36   ;;  %v287_v46 = vmax.f32 %v246_v37, %v247_v38  ;;  %v174_v47 = vunpack.c.l.bf16 %v59_v33  ;;  %v175_v48 = vunpack.c.h.bf16 %v59_v33  ;;  %v248_v49 = vmax.f32 %v168_v34, %v170_v39 }
  0x31   :  { %v249_v52 = vmax.f32 %v169_v35, %v171_v43  ;;  %v176_v53 = vunpack.c.l.bf16 %v60_v40  ;;  %v177_v54 = vunpack.c.h.bf16 %v60_v40  ;;  %v178_v55 = vunpack.c.l.bf16 %v61_v41 }
  0x32   :  { %v422_v56 = vpack.c.bf16 %v287_v46, %v286_v42  ;;  %v250_v57 = vmax.f32 %v172_v44, %v174_v47  ;;  %v251_v58 = vmax.f32 %v173_v45, %v175_v48  ;;  %v179_v59 = vunpack.c.h.bf16 %v61_v41 }
  0x33   :  { %v288_v62 = vmax.f32 %v248_v49, %v249_v52  ;;  %v180_v63 = vunpack.c.l.bf16 %v62_v50  ;;  %v181_v0 = vunpack.c.h.bf16 %v62_v50  ;;  %v182_v1 = vunpack.c.l.bf16 %v63_v51 }
  0x34   :  { %454 = vst [vmem:[%s710_s1 + $0x58] sm:$0xff] %v422_v56   ;;  %v289_v2 = vmax.f32 %v250_v57, %v251_v58  ;;  %v183_v3 = vunpack.c.h.bf16 %v63_v51  ;;  %v252_v4 = vmax.f32 %v176_v53, %v178_v55  ;;  %v253_v5 = vmax.f32 %v177_v54, %v179_v59 }
  0x35   :  { %v254_v8 = vmax.f32 %v180_v63, %v182_v1  ;;  %v184_v9 = vunpack.c.l.bf16 %v64_v60  ;;  %v185_v10 = vunpack.c.h.bf16 %v64_v60  ;;  %v186_v11 = vunpack.c.l.bf16 %v65_v61 }
  0x36   :  { %v427_v13 = vpack.c.bf16 %v289_v2, %v288_v62  ;;  %v255_v14 = vmax.f32 %v181_v0, %v183_v3  ;;  %v290_v15 = vmax.f32 %v252_v4, %v253_v5  ;;  %v187_v16 = vunpack.c.h.bf16 %v65_v61 }
  0x37   :  { %v188_v18 = vunpack.c.l.bf16 %v66_v6  ;;  %v189_v19 = vunpack.c.h.bf16 %v66_v6  ;;  %v190_v20 = vunpack.c.l.bf16 %v67_v7  ;;  %v191_v21 = vunpack.c.h.bf16 %v67_v7 }
  0x38   :  { %455 = vst [vmem:[%s710_s1 + $0x60] sm:$0xff] %v427_v13   ;;  %v291_v23 = vmax.f32 %v254_v8, %v255_v14  ;;  %v256_v24 = vmax.f32 %v184_v9, %v186_v11  ;;  %v257_v25 = vmax.f32 %v185_v10, %v187_v16  ;;  %v192_v27 = vunpack.c.l.bf16 %v68_v12 }
  0x39   :  { %v258_v28 = vmax.f32 %v188_v18, %v190_v20  ;;  %v259_v29 = vmax.f32 %v189_v19, %v191_v21  ;;  %v193_v30 = vunpack.c.h.bf16 %v68_v12  ;;  %v194_v31 = vunpack.c.l.bf16 %v69_v17 }
  0x3a   :  { %v432_v32 = vpack.c.bf16 %v291_v23, %v290_v15  ;;  %v292_v33 = vmax.f32 %v256_v24, %v257_v25  ;;  %v195_v34 = vunpack.c.h.bf16 %v69_v17  ;;  %v196_v35 = vunpack.c.l.bf16 %v70_v22 }
  0x3b   :  { %v293_v36 = vmax.f32 %v258_v28, %v259_v29  ;;  %v197_v37 = vunpack.c.h.bf16 %v70_v22  ;;  %v198_v38 = vunpack.c.l.bf16 %v71_v26  ;;  %v199_v39 = vunpack.c.h.bf16 %v71_v26 }
  0x3c   :  { %456 = vst [vmem:[%s710_s1 + $0x68] sm:$0xff] %v432_v32   ;;  %v260_v40 = vmax.f32 %v192_v27, %v194_v31  ;;  %v261_v41 = vmax.f32 %v193_v30, %v195_v34 }
  0x3d   :  { %v437_v42 = vpack.c.bf16 %v293_v36, %v292_v33  ;;  %v262_v43 = vmax.f32 %v196_v35, %v198_v38  ;;  %v263_v44 = vmax.f32 %v197_v37, %v199_v39 }
  0x3e   :  { %v294_v45 = vmax.f32 %v260_v40, %v261_v41 }
  0x3f   :  { %457 = vst [vmem:[%s710_s1 + $0x70] sm:$0xff] %v437_v42   ;;  %v295_v46 = vmax.f32 %v262_v43, %v263_v44 }
  0x41   :  { %v442_v47 = vpack.c.bf16 %v295_v46, %v294_v45 }
  0x43   :  { %458 = vst [vmem:[%s710_s1 + $0x78] sm:$0xff] %v442_v47  }

// kernel: siamese_forward.8
= control target key start
LH: loop header
LB: loop body
LE: loop exit
PB: predicated region body
PF: predicated region fallthrough
CT: control target
= control target key end

     0   :  { %s1340_s12 = smov 0   ;;  %s1342_s13 = smov 0   ;;  %s1548_s0 = inlined_call_operand.vmem [shape: bf16[1024,128], index: 0, kind: input, shape index: {}]   ;;  %s1549_s1 = inlined_call_operand.vmem [shape: bf16[128,128], index: 1, kind: input, shape index: {}]   ;;  %s1550_s2 = inlined_call_operand.vmem [shape: f32[3,128], index: 2, kind: input, shape index: {}]   ;;  %s1551_s3 = inlined_call_operand.vmem [shape: bf16[1024,128], index: 3, kind: output, shape index: {}]  }
   0x1   :  { %s1344_s14 = smov 0  }
   0x2 LB: > { %s32_s15 = sadd.s32 1, %s1314_s13  ;;  %p1026_p0 = scmp.ge.s32.totalorder %s1318_s14, 1  ;;  %s1318_s14 = sphi %s1344_s14, %s13_s14   ;;  %s1314_s13 = sphi %s1342_s13, %s1553_s13   ;;  %s1310_s12 = sphi %s1340_s12, %s1552_s12  }
   0x3   : > { %p34_p1 = scmp.ge.s32.totalorder %s32_s15, 4  ;;  %p189_p2 = scmp.lt.s32.totalorder %s1318_s14, 5 }
   0x5   : > { %s1555_s15 = smov (%p34_p1, %s32_s15), 0  ;;  %p190_p3 = pnand %p1026_p0, %p189_p2 }
   0x6   : > { %s1027_s24 = sshll.u32 (!%p190_p3), %s1310_s12, 5 }
   0x7   : > { %193 = sbr.rel (%p190_p3) target bundleno = 245 (0xf5), region = 32  ;;  %p232_p4 = scmp.lt.s32.totalorder (!%p190_p3), %s1027_s24, 127 }
   0xc   : > { %v1152_v0 = vld [vmem:[%s1549_s1 + $0x38] sm:$0xff]  ;;  %v1151_v1 = vld [vmem:[%s1549_s1 + $0x30] sm:$0xff]  ;;  %v1150_v2 = vld [vmem:[%s1549_s1 + $0x28] sm:$0xff]  ;;  %s1557_s24 = smov (!%p232_p4, %s1027_s24), 127 }
   0xd   : > { %522 = vmatpush.bf16.msra.mxu0 %v1152_v0  ;;  %1248 = vmatpush.bf16.msra.mxu1 %v1152_v0  ;;  %v1149_v3 = vld [vmem:[%s1549_s1 + $0x20] sm:$0xff]  ;;  %v1148_v4 = vld [vmem:[%s1549_s1 + $0x18] sm:$0xff]  ;;  %v1147_v5 = vld [vmem:[%s1549_s1 + $0x10] sm:$0xff]  ;;  %s1028_s4 = sshll.u32 %s1557_s24, 2 }
   0xe   : > { %1249 = vmatpush.bf16.msra.mxu2 %v1152_v0  ;;  %1250 = vmatpush.bf16.msra.mxu3 %v1152_v0  ;;  %v1146_v6 = vld [vmem:[%s1549_s1 + $0x8] sm:$0xff]  ;;  %v1145_v7 = vld [vmem:[%s1549_s1] sm:$0xff]  ;;  %s1393_s9 = scalar_lea.vmem %s1548_s0, %s1028_s4  ;;  %s1439_s17 = scalar_lea.vmem %s1551_s3, %s1028_s4 }
   0xf   : > { %v1129_v8 = vld [vmem:[%s1393_s9] sm:$0xff]  ;;  %v1130_v12 = vld [vmem:[%s1393_s9 + $0x8] sm:$0xff]  ;;  %v1131_v16 = vld [vmem:[%s1393_s9 + $0x10] sm:$0xff] }
  0x10   : > { %v1133_v9 = vld [vmem:[%s1393_s9 + $0x20] sm:$0xff]  ;;  %v1134_v13 = vld [vmem:[%s1393_s9 + $0x28] sm:$0xff]  ;;  %v1135_v17 = vld [vmem:[%s1393_s9 + $0x30] sm:$0xff] }
  0x11   : > { %523 = vmatpush.bf16.msra.mxu0 %v1151_v1  ;;  %1251 = vmatpush.bf16.msra.mxu1 %v1151_v1  ;;  %v1137_v10 = vld [vmem:[%s1393_s9 + $0x40] sm:$0xff]  ;;  %v1138_v14 = vld [vmem:[%s1393_s9 + $0x48] sm:$0xff]  ;;  %v1139_v18 = vld [vmem:[%s1393_s9 + $0x50] sm:$0xff] }
  0x12   : > { %1252 = vmatpush.bf16.msra.mxu2 %v1151_v1  ;;  %1253 = vmatpush.bf16.msra.mxu3 %v1151_v1  ;;  %v1141_v11 = vld [vmem:[%s1393_s9 + $0x60] sm:$0xff]  ;;  %v1142_v15 = vld [vmem:[%s1393_s9 + $0x68] sm:$0xff]  ;;  %v1143_v19 = vld [vmem:[%s1393_s9 + $0x70] sm:$0xff] }
  0x13   : > { %v1132_v20 = vld [vmem:[%s1393_s9 + $0x18] sm:$0xff]  ;;  %v678_v24 = vld [vmem:[%s1550_s2] sm:$0x7] }
  0x14   : > { %v1136_v21 = vld [vmem:[%s1393_s9 + $0x38] sm:$0xff]  ;;  %v1414_v25 = vperm.slane %v678_v24, 0  ;;  %v1418_v31 = vperm.slane %v678_v24, 1  ;;  %v1422_v39 = vperm.slane %v678_v24, 2 }
  0x15   : > { %524 = vmatpush.bf16.msra.mxu0 %v1150_v2  ;;  %1254 = vmatpush.bf16.msra.mxu1 %v1150_v2  ;;  %v1140_v22 = vld [vmem:[%s1393_s9 + $0x58] sm:$0xff] }
  0x16   : > { %1255 = vmatpush.bf16.msra.mxu2 %v1150_v2  ;;  %1256 = vmatpush.bf16.msra.mxu3 %v1150_v2  ;;  %v1144_v23 = vld [vmem:[%s1393_s9 + $0x78] sm:$0xff] }
  0x19   : > { %525 = vmatpush.bf16.msra.mxu0 %v1149_v3  ;;  %1257 = vmatpush.bf16.msra.mxu1 %v1149_v3 }
  0x1a   : > { %1258 = vmatpush.bf16.msra.mxu2 %v1149_v3  ;;  %1259 = vmatpush.bf16.msra.mxu3 %v1149_v3 }
  0x1d   : > { %526 = vmatpush.bf16.msra.mxu0 %v1148_v4  ;;  %1260 = vmatpush.bf16.msra.mxu1 %v1148_v4 }
  0x1e   : > { %1261 = vmatpush.bf16.msra.mxu2 %v1148_v4  ;;  %1262 = vmatpush.bf16.msra.mxu3 %v1148_v4 }
  0x21   : > { %527 = vmatpush.bf16.msra.mxu0 %v1147_v5  ;;  %1263 = vmatpush.bf16.msra.mxu1 %v1147_v5 }
  0x22   : > { %1264 = vmatpush.bf16.msra.mxu2 %v1147_v5  ;;  %1265 = vmatpush.bf16.msra.mxu3 %v1147_v5 }
  0x25   : > { %528 = vmatpush.bf16.msra.mxu0 %v1146_v6  ;;  %1266 = vmatpush.bf16.msra.mxu1 %v1146_v6 }
  0x26   : > { %1267 = vmatpush.bf16.msra.mxu2 %v1146_v6  ;;  %1268 = vmatpush.bf16.msra.mxu3 %v1146_v6 }
  0x29   : > { %529 = vmatpush.bf16.msra.mxu0 %v1145_v7  ;;  %1269 = vmatpush.bf16.msra.mxu1 %v1145_v7 }
  0x2a   : > { %1270 = vmatpush.bf16.msra.mxu2 %v1145_v7  ;;  %1271 = vmatpush.bf16.msra.mxu3 %v1145_v7 }
  0x2c   : > { %530 = vmatmul.bf16.vlgmr.msra.gmra.mxu0 %v1129_v8  ;;  %550 = vmatmul.bf16.vlgmr.msra.gmra.mxu1 %v1133_v9 }
  0x2d   : > { %570 = vmatmul.bf16.vlgmr.msra.gmra.mxu2 %v1137_v10  ;;  %590 = vmatmul.bf16.vlgmr.msra.gmra.mxu3 %v1141_v11 }
  0x3c   : > { %535 = vmatmul.bf16.gmra.mxu0 %v1130_v12  ;;  %555 = vmatmul.bf16.gmra.mxu1 %v1134_v13 }
  0x3d   : > { %575 = vmatmul.bf16.gmra.mxu2 %v1138_v14  ;;  %595 = vmatmul.bf16.gmra.mxu3 %v1142_v15 }
  0x4c   : > { %540 = vmatmul.bf16.gmra.mxu0 %v1131_v16  ;;  %560 = vmatmul.bf16.gmra.mxu1 %v1135_v17 }
  0x4d   : > { %580 = vmatmul.bf16.gmra.mxu2 %v1139_v18  ;;  %600 = vmatmul.bf16.gmra.mxu3 %v1143_v19 }
  0x5c   : > { %545 = vmatmul.bf16.gmra.mxu0 %v1132_v20  ;;  %565 = vmatmul.bf16.gmra.mxu1 %v1136_v21 }
  0x5d   : > { %585 = vmatmul.bf16.gmra.mxu2 %v1140_v22  ;;  %605 = vmatmul.bf16.gmra.mxu3 %v1144_v23 }
  0xa9   : > { %v531_v26 = vpop.f32.mrf.mxu0  ;;  %v551_v27 = vpop.f32.mrf.mxu1 }
  0xaa   : > { %v712_v28 = vadd.f32 %v1414_v25, %v531_v26  ;;  %v720_v29 = vadd.f32 %v1414_v25, %v551_v27 }
  0xac   : > { %v744_v30 = vmax.f32 %v712_v28, 0.0  ;;  %v752_v32 = vmax.f32 %v720_v29, 0.0 }
  0xae   : > { %v777_v42 = vmul.f32 %v1418_v31, %v744_v30  ;;  %v785_v43 = vmul.f32 %v1418_v31, %v752_v32 }
  0xb0   : > { %v571_v33 = vpop.f32.mrf.mxu2  ;;  %v591_v34 = vpop.f32.mrf.mxu3  ;;  %v810_v50 = vadd.f32 %v1422_v39, %v777_v42  ;;  %v818_v51 = vadd.f32 %v1422_v39, %v785_v43 }
  0xb1   : > { %v533_v35 = vpop.f32.mrf.mxu0  ;;  %v553_v36 = vpop.f32.mrf.mxu1  ;;  %v728_v40 = vadd.f32 %v1414_v25, %v571_v33  ;;  %v736_v41 = vadd.f32 %v1414_v25, %v591_v34 }
  0xb2   : > { %v713_v37 = vadd.f32 %v1414_v25, %v533_v35  ;;  %v721_v38 = vadd.f32 %v1414_v25, %v553_v36 }
  0xb3   : > { %v760_v48 = vmax.f32 %v728_v40, 0.0  ;;  %v768_v49 = vmax.f32 %v736_v41, 0.0 }
  0xb4   : > { %v745_v44 = vmax.f32 %v713_v37, 0.0  ;;  %v753_v45 = vmax.f32 %v721_v38, 0.0 }
  0xb5   : > { %v793_v62 = vmul.f32 %v1418_v31, %v760_v48  ;;  %v801_v63 = vmul.f32 %v1418_v31, %v768_v49 }
  0xb6   : > { %v778_v46 = vmul.f32 %v1418_v31, %v745_v44  ;;  %v786_v47 = vmul.f32 %v1418_v31, %v753_v45 }
  0xb7   : > { %v826_v6 = vadd.f32 %v1422_v39, %v793_v62  ;;  %v834_v7 = vadd.f32 %v1422_v39, %v801_v63 }
  0xb8   : > { %v811_v52 = vadd.f32 %v1422_v39, %v778_v46  ;;  %v819_v53 = vadd.f32 %v1422_v39, %v786_v47  ;;  %v573_v54 = vpop.f32.mrf.mxu2  ;;  %v593_v55 = vpop.f32.mrf.mxu3 }
  0xb9   : > { %v729_v56 = vadd.f32 %v1414_v25, %v573_v54  ;;  %v737_v57 = vadd.f32 %v1414_v25, %v593_v55  ;;  %v536_v58 = vpop.f32.mrf.mxu0  ;;  %v556_v59 = vpop.f32.mrf.mxu1 }
  0xba   : > { %v1156_v60 = vpack.c.bf16 %v811_v52, %v810_v50  ;;  %v1176_v61 = vpack.c.bf16 %v819_v53, %v818_v51  ;;  %v714_v2 = vadd.f32 %v1414_v25, %v536_v58  ;;  %v722_v3 = vadd.f32 %v1414_v25, %v556_v59 }
  0xbb   : > { %v761_v0 = vmax.f32 %v729_v56, 0.0  ;;  %v769_v1 = vmax.f32 %v737_v57, 0.0 }
  0xbc   : > { %1157 = vst [vmem:[%s1439_s17] sm:$0xff] %v1156_v60   ;;  %v746_v10 = vmax.f32 %v714_v2, 0.0  ;;  %v754_v11 = vmax.f32 %v722_v3, 0.0 }
  0xbd   : > { %1236 = vst [vmem:[%s1439_s17 + $0x20] sm:$0xff] %v1176_v61   ;;  %v794_v4 = vmul.f32 %v1418_v31, %v761_v0  ;;  %v802_v5 = vmul.f32 %v1418_v31, %v769_v1 }
  0xbe   : > { %v779_v22 = vmul.f32 %v1418_v31, %v746_v10  ;;  %v787_v23 = vmul.f32 %v1418_v31, %v754_v11 }
  0xbf   : > { %v827_v8 = vadd.f32 %v1422_v39, %v794_v4  ;;  %v835_v9 = vadd.f32 %v1422_v39, %v802_v5 }
  0xc0   : > { %v576_v12 = vpop.f32.mrf.mxu2  ;;  %v596_v13 = vpop.f32.mrf.mxu3  ;;  %v812_v32 = vadd.f32 %v1422_v39, %v779_v22  ;;  %v820_v33 = vadd.f32 %v1422_v39, %v787_v23 }
  0xc1   : > { %v1196_v14 = vpack.c.bf16 %v827_v8, %v826_v6  ;;  %v1216_v15 = vpack.c.bf16 %v835_v9, %v834_v7  ;;  %v538_v16 = vpop.f32.mrf.mxu0  ;;  %v558_v17 = vpop.f32.mrf.mxu1  ;;  %v730_v20 = vadd.f32 %v1414_v25, %v576_v12  ;;  %v738_v21 = vadd.f32 %v1414_v25, %v596_v13 }
  0xc2   : > { %v715_v18 = vadd.f32 %v1414_v25, %v538_v16  ;;  %v723_v19 = vadd.f32 %v1414_v25, %v558_v17 }
  0xc3   : > { %1240 = vst [vmem:[%s1439_s17 + $0x40] sm:$0xff] %v1196_v14   ;;  %v762_v29 = vmax.f32 %v730_v20, 0.0  ;;  %v770_v30 = vmax.f32 %v738_v21, 0.0 }
  0xc4   : > { %1244 = vst [vmem:[%s1439_s17 + $0x60] sm:$0xff] %v1216_v15   ;;  %v747_v24 = vmax.f32 %v715_v18, 0.0  ;;  %v755_v26 = vmax.f32 %v723_v19, 0.0 }
  0xc5   : > { %v795_v45 = vmul.f32 %v1418_v31, %v762_v29  ;;  %v803_v46 = vmul.f32 %v1418_v31, %v770_v30 }
  0xc6   : > { %v780_v27 = vmul.f32 %v1418_v31, %v747_v24  ;;  %v788_v28 = vmul.f32 %v1418_v31, %v755_v26 }
  0xc7   : > { %v828_v53 = vadd.f32 %v1422_v39, %v795_v45  ;;  %v836_v54 = vadd.f32 %v1422_v39, %v803_v46 }
  0xc8   : > { %v813_v34 = vadd.f32 %v1422_v39, %v780_v27  ;;  %v821_v35 = vadd.f32 %v1422_v39, %v788_v28  ;;  %v578_v36 = vpop.f32.mrf.mxu2  ;;  %v598_v37 = vpop.f32.mrf.mxu3 }
  0xc9   : > { %v731_v38 = vadd.f32 %v1414_v25, %v578_v36  ;;  %v739_v40 = vadd.f32 %v1414_v25, %v598_v37  ;;  %v541_v41 = vpop.f32.mrf.mxu0  ;;  %v561_v42 = vpop.f32.mrf.mxu1 }
  0xca   : > { %v1161_v43 = vpack.c.bf16 %v813_v34, %v812_v32  ;;  %v1181_v44 = vpack.c.bf16 %v821_v35, %v820_v33  ;;  %v716_v49 = vadd.f32 %v1414_v25, %v541_v41  ;;  %v724_v50 = vadd.f32 %v1414_v25, %v561_v42 }
  0xcb   : > { %v763_v47 = vmax.f32 %v731_v38, 0.0  ;;  %v771_v48 = vmax.f32 %v739_v40, 0.0 }
  0xcc   : > { %1233 = vst [vmem:[%s1439_s17 + $0x8] sm:$0xff] %v1161_v43   ;;  %v748_v57 = vmax.f32 %v716_v49, 0.0  ;;  %v756_v58 = vmax.f32 %v724_v50, 0.0 }
  0xcd   : > { %1237 = vst [vmem:[%s1439_s17 + $0x28] sm:$0xff] %v1181_v44   ;;  %v796_v51 = vmul.f32 %v1418_v31, %v763_v47  ;;  %v804_v52 = vmul.f32 %v1418_v31, %v771_v48 }
  0xce   : > { %v781_v5 = vmul.f32 %v1418_v31, %v748_v57  ;;  %v789_v6 = vmul.f32 %v1418_v31, %v756_v58 }
  0xcf   : > { %v829_v55 = vadd.f32 %v1422_v39, %v796_v51  ;;  %v837_v56 = vadd.f32 %v1422_v39, %v804_v52 }
  0xd0   : > { %v581_v59 = vpop.f32.mrf.mxu2  ;;  %v601_v60 = vpop.f32.mrf.mxu3  ;;  %v814_v13 = vadd.f32 %v1422_v39, %v781_v5  ;;  %v822_v14 = vadd.f32 %v1422_v39, %v789_v6 }
  0xd1   : > { %v1201_v61 = vpack.c.bf16 %v829_v55, %v828_v53  ;;  %v1221_v62 = vpack.c.bf16 %v837_v56, %v836_v54  ;;  %v543_v63 = vpop.f32.mrf.mxu0  ;;  %v563_v0 = vpop.f32.mrf.mxu1  ;;  %v732_v3 = vadd.f32 %v1414_v25, %v581_v59  ;;  %v740_v4 = vadd.f32 %v1414_v25, %v601_v60 }
  0xd2   : > { %v717_v1 = vadd.f32 %v1414_v25, %v543_v63  ;;  %v725_v2 = vadd.f32 %v1414_v25, %v563_v0 }
  0xd3   : > { %1241 = vst [vmem:[%s1439_s17 + $0x48] sm:$0xff] %v1201_v61   ;;  %v764_v11 = vmax.f32 %v732_v3, 0.0  ;;  %v772_v12 = vmax.f32 %v740_v4, 0.0 }
  0xd4   : > { %1245 = vst [vmem:[%s1439_s17 + $0x68] sm:$0xff] %v1221_v62   ;;  %v749_v7 = vmax.f32 %v717_v1, 0.0  ;;  %v757_v8 = vmax.f32 %v725_v2, 0.0 }
  0xd5   : > { %v797_v26 = vmul.f32 %v1418_v31, %v764_v11  ;;  %v805_v27 = vmul.f32 %v1418_v31, %v772_v12 }
  0xd6   : > { %v782_v9 = vmul.f32 %v1418_v31, %v749_v7  ;;  %v790_v10 = vmul.f32 %v1418_v31, %v757_v8 }
  0xd7   : > { %v830_v35 = vadd.f32 %v1422_v39, %v797_v26  ;;  %v838_v36 = vadd.f32 %v1422_v39, %v805_v27 }
  0xd8   : > { %v815_v15 = vadd.f32 %v1422_v39, %v782_v9  ;;  %v823_v16 = vadd.f32 %v1422_v39, %v790_v10  ;;  %v583_v17 = vpop.f32.mrf.mxu2  ;;  %v603_v18 = vpop.f32.mrf.mxu3 }
  0xd9   : > { %v733_v19 = vadd.f32 %v1414_v25, %v583_v17  ;;  %v741_v20 = vadd.f32 %v1414_v25, %v603_v18  ;;  %v546_v21 = vpop.f32.mrf.mxu0  ;;  %v566_v22 = vpop.f32.mrf.mxu1 }
  0xda   : > { %v1166_v23 = vpack.c.bf16 %v815_v15, %v814_v13  ;;  %v1186_v24 = vpack.c.bf16 %v823_v16, %v822_v14  ;;  %v718_v30 = vadd.f32 %v1414_v25, %v546_v21  ;;  %v726_v32 = vadd.f32 %v1414_v25, %v566_v22 }
  0xdb   : > { %v765_v28 = vmax.f32 %v733_v19, 0.0  ;;  %v773_v29 = vmax.f32 %v741_v20, 0.0 }
  0xdc   : > { %1234 = vst [vmem:[%s1439_s17 + $0x10] sm:$0xff] %v1166_v23   ;;  %v750_v40 = vmax.f32 %v718_v30, 0.0  ;;  %v758_v41 = vmax.f32 %v726_v32, 0.0 }
  0xdd   : > { %1238 = vst [vmem:[%s1439_s17 + $0x30] sm:$0xff] %v1186_v24   ;;  %v798_v33 = vmul.f32 %v1418_v31, %v765_v28  ;;  %v806_v34 = vmul.f32 %v1418_v31, %v773_v29 }
  0xde   : > { %v783_v52 = vmul.f32 %v1418_v31, %v750_v40  ;;  %v791_v53 = vmul.f32 %v1418_v31, %v758_v41 }
  0xdf   : > { %v831_v37 = vadd.f32 %v1422_v39, %v798_v33  ;;  %v839_v38 = vadd.f32 %v1422_v39, %v806_v34 }
  0xe0   : > { %v586_v42 = vpop.f32.mrf.mxu2  ;;  %v606_v43 = vpop.f32.mrf.mxu3  ;;  %v816_v60 = vadd.f32 %v1422_v39, %v783_v52  ;;  %v824_v61 = vadd.f32 %v1422_v39, %v791_v53 }
  0xe1   : > { %v1206_v44 = vpack.c.bf16 %v831_v37, %v830_v35  ;;  %v1226_v45 = vpack.c.bf16 %v839_v38, %v838_v36  ;;  %v548_v46 = vpop.f32.mrf.mxu0  ;;  %v568_v47 = vpop.f32.mrf.mxu1  ;;  %v734_v50 = vadd.f32 %v1414_v25, %v586_v42  ;;  %v742_v51 = vadd.f32 %v1414_v25, %v606_v43 }
  0xe2   : > { %v719_v48 = vadd.f32 %v1414_v25, %v548_v46  ;;  %v727_v49 = vadd.f32 %v1414_v25, %v568_v47 }
  0xe3   : > { %1242 = vst [vmem:[%s1439_s17 + $0x50] sm:$0xff] %v1206_v44   ;;  %v766_v58 = vmax.f32 %v734_v50, 0.0  ;;  %v774_v59 = vmax.f32 %v742_v51, 0.0 }
  0xe4   : > { %1246 = vst [vmem:[%s1439_s17 + $0x70] sm:$0xff] %v1226_v45   ;;  %v751_v54 = vmax.f32 %v719_v48, 0.0  ;;  %v759_v55 = vmax.f32 %v727_v49, 0.0 }
  0xe5   : > { %v799_v6 = vmul.f32 %v1418_v31, %v766_v58  ;;  %v807_v7 = vmul.f32 %v1418_v31, %v774_v59 }
  0xe6   : > { %v784_v56 = vmul.f32 %v1418_v31, %v751_v54  ;;  %v792_v57 = vmul.f32 %v1418_v31, %v759_v55 }
  0xe7   : > { %v832_v12 = vadd.f32 %v1422_v39, %v799_v6 }
  0xe8   : > { %v817_v62 = vadd.f32 %v1422_v39, %v784_v56  ;;  %v825_v63 = vadd.f32 %v1422_v39, %v792_v57  ;;  %v588_v0 = vpop.f32.mrf.mxu2  ;;  %v608_v1 = vpop.f32.mrf.mxu3 }
  0xe9   : > { %v735_v2 = vadd.f32 %v1414_v25, %v588_v0  ;;  %v743_v3 = vadd.f32 %v1414_v25, %v608_v1  ;;  %v840_v25 = vadd.f32 %v1422_v39, %v807_v7 }
  0xea   : > { %v1171_v4 = vpack.c.bf16 %v817_v62, %v816_v60  ;;  %v1191_v5 = vpack.c.bf16 %v825_v63, %v824_v61 }
  0xeb   : > { %v767_v8 = vmax.f32 %v735_v2, 0.0  ;;  %v775_v9 = vmax.f32 %v743_v3, 0.0 }
  0xec   : > { %1235 = vst [vmem:[%s1439_s17 + $0x18] sm:$0xff] %v1171_v4  }
  0xed   : > { %1239 = vst [vmem:[%s1439_s17 + $0x38] sm:$0xff] %v1191_v5   ;;  %v800_v10 = vmul.f32 %v1418_v31, %v767_v8  ;;  %v808_v11 = vmul.f32 %v1418_v31, %v775_v9 }
  0xef   : > { %v833_v13 = vadd.f32 %v1422_v39, %v800_v10  ;;  %v841_v14 = vadd.f32 %v1422_v39, %v808_v11 }
  0xf1   : > { %v1211_v15 = vpack.c.bf16 %v833_v13, %v832_v12  ;;  %v1231_v16 = vpack.c.bf16 %v841_v14, %v840_v25 }
  0xf3   : > { %1243 = vst [vmem:[%s1439_s17 + $0x58] sm:$0xff] %v1211_v15  }
  0xf4   : > { %1247 = vst [vmem:[%s1439_s17 + $0x78] sm:$0xff] %v1231_v16  }
  0xf5 PF: > { %s13_s14 = sadd.s32 1, %s1318_s14   ;;  %s1552_s12 = smov %s1314_s13 }
  0xf6   : > { %p10_p5 = scmp.ge.s32.totalorder %s13_s14, 6   ;;  %s1553_s13 = smov %s1555_s15 }
  0xf8   :  { %12 = sbr.rel (!%p10_p5) target bundleno = 2 (0x2), region = 76 }

// kernel: siamese_forward.11
= control target key start
LH: loop header
LB: loop body
LE: loop exit
PB: predicated region body
PF: predicated region fallthrough
CT: control target
= control target key end

     0   :  { %s373_s0 = inlined_call_operand.vmem [shape: bf16[16,2,4,256], index: 0, kind: input, shape index: {}]   ;;  %s374_s1 = inlined_call_operand.vmem [shape: bf16[16,4,128], index: 1, kind: output, shape index: {}]  }
   0x1   :  { %v189_v0 = vld [vmem:[%s373_s0] sm:$0xff]   ;;  %v252_v1 = vld [vmem:[%s373_s0 + $0x8] sm:$0xff]   ;;  %v253_v2 = vld [vmem:[%s373_s0 + $0x10] sm:$0xff]  }
   0x2   :  { %v190_v3 = vunpack.c.l.bf16 %v189_v0  ;;  %v191_v4 = vunpack.c.h.bf16 %v189_v0  ;;  %v194_v5 = vunpack.c.l.bf16 %v252_v1  ;;  %v195_v6 = vunpack.c.h.bf16 %v252_v1  ;;  %v254_v7 = vld [vmem:[%s373_s0 + $0x18] sm:$0xff]   ;;  %v255_v8 = vld [vmem:[%s373_s0 + $0x20] sm:$0xff]   ;;  %v256_v9 = vld [vmem:[%s373_s0 + $0x28] sm:$0xff]  }
   0x3   :  { %v198_v10 = vunpack.c.l.bf16 %v253_v2  ;;  %v199_v11 = vunpack.c.h.bf16 %v253_v2  ;;  %v202_v12 = vunpack.c.l.bf16 %v254_v7  ;;  %v203_v13 = vunpack.c.h.bf16 %v254_v7  ;;  %v257_v14 = vld [vmem:[%s373_s0 + $0x30] sm:$0xff]   ;;  %v258_v23 = vld [vmem:[%s373_s0 + $0x38] sm:$0xff]   ;;  %v259_v40 = vld [vmem:[%s373_s0 + $0x40] sm:$0xff]  }
   0x4   :  { %v72_v15 = vmax.f32 %v190_v3, %v191_v4  ;;  %v73_v16 = vmax.f32 %v194_v5, %v195_v6  ;;  %v206_v17 = vunpack.c.l.bf16 %v255_v8  ;;  %v207_v18 = vunpack.c.h.bf16 %v255_v8  ;;  %v260_v45 = vld [vmem:[%s373_s0 + $0x48] sm:$0xff]   ;;  %v261_v50 = vld [vmem:[%s373_s0 + $0x50] sm:$0xff]   ;;  %v262_v55 = vld [vmem:[%s373_s0 + $0x58] sm:$0xff]  }
   0x5   :  { %v74_v19 = vmax.f32 %v198_v10, %v199_v11  ;;  %v75_v20 = vmax.f32 %v202_v12, %v203_v13  ;;  %v210_v21 = vunpack.c.l.bf16 %v256_v9  ;;  %v211_v22 = vunpack.c.h.bf16 %v256_v9  ;;  %v263_v60 = vld [vmem:[%s373_s0 + $0x60] sm:$0xff]   ;;  %v264_v1 = vld [vmem:[%s373_s0 + $0x68] sm:$0xff]   ;;  %v265_v10 = vld [vmem:[%s373_s0 + $0x70] sm:$0xff]  }
   0x6   :  { %v104_v24 = vrot.slane %v72_v15, 4  ;;  %v105_v25 = vrot.slane %v73_v16, 4  ;;  %v76_v26 = vmax.f32 %v206_v17, %v207_v18  ;;  %v214_v27 = vunpack.c.l.bf16 %v257_v14 }
   0x7   :  { %v106_v28 = vrot.slane %v74_v19, 4  ;;  %v107_v29 = vrot.slane %v75_v20, 4  ;;  %v77_v30 = vmax.f32 %v210_v21, %v211_v22  ;;  %v215_v31 = vunpack.c.h.bf16 %v257_v14 }
   0x8   :  { %v136_v32 = vmax.f32 %v72_v15, %v104_v24  ;;  %v137_v33 = vmax.f32 %v73_v16, %v105_v25  ;;  %v108_v34 = vrot.slane %v76_v26, 4  ;;  %v218_v35 = vunpack.c.l.bf16 %v258_v23 }
   0x9   :  { %v138_v36 = vmax.f32 %v74_v19, %v106_v28  ;;  %v139_v37 = vmax.f32 %v75_v20, %v107_v29  ;;  %v109_v38 = vrot.slane %v77_v30, 4  ;;  %v78_v39 = vmax.f32 %v214_v27, %v215_v31  ;;  %v266_v19 = vld [vmem:[%s373_s0 + $0x78] sm:$0xff]  }
   0xa   :  { %v152_v41 = vpack.c.bf16 %v136_v32, %v136_v32  ;;  %v153_v42 = vpack.c.bf16 %v137_v33, %v137_v33  ;;  %v140_v43 = vmax.f32 %v76_v26, %v108_v34  ;;  %v219_v44 = vunpack.c.h.bf16 %v258_v23 }
   0xb   :  { %v154_v46 = vpack.c.bf16 %v138_v36, %v138_v36  ;;  %v155_v47 = vpack.c.bf16 %v139_v37, %v139_v37  ;;  %v141_v48 = vmax.f32 %v77_v30, %v109_v38  ;;  %v110_v49 = vrot.slane %v78_v39, 4 }
   0xc   :  { %168 = vst [vmem:[%s374_s1] sm:$0x3] %v152_v41  ;;  %v156_v51 = vpack.c.bf16 %v140_v43, %v140_v43  ;;  %v79_v52 = vmax.f32 %v218_v35, %v219_v44  ;;  %v222_v53 = vunpack.c.l.bf16 %v259_v40  ;;  %v223_v54 = vunpack.c.h.bf16 %v259_v40 }
   0xd   :  { %169 = vst [vmem:[%s374_s1 + $0x2] sm:$0x3] %v153_v42  ;;  %v157_v56 = vpack.c.bf16 %v141_v48, %v141_v48  ;;  %v142_v57 = vmax.f32 %v78_v39, %v110_v49  ;;  %v226_v58 = vunpack.c.l.bf16 %v260_v45  ;;  %v227_v59 = vunpack.c.h.bf16 %v260_v45 }
   0xe   :  { %170 = vst [vmem:[%s374_s1 + $0x4] sm:$0x3] %v154_v46  ;;  %v111_v61 = vrot.slane %v79_v52, 4  ;;  %v80_v62 = vmax.f32 %v222_v53, %v223_v54  ;;  %v230_v63 = vunpack.c.l.bf16 %v261_v50  ;;  %v231_v0 = vunpack.c.h.bf16 %v261_v50 }
   0xf   :  { %171 = vst [vmem:[%s374_s1 + $0x6] sm:$0x3] %v155_v47  ;;  %v158_v2 = vpack.c.bf16 %v142_v57, %v142_v57  ;;  %v81_v3 = vmax.f32 %v226_v58, %v227_v59  ;;  %v234_v4 = vunpack.c.l.bf16 %v262_v55  ;;  %v235_v5 = vunpack.c.h.bf16 %v262_v55 }
  0x10   :  { %172 = vst [vmem:[%s374_s1 + $0x8] sm:$0x3] %v156_v51  ;;  %v143_v6 = vmax.f32 %v79_v52, %v111_v61  ;;  %v112_v7 = vrot.slane %v80_v62, 4  ;;  %v82_v8 = vmax.f32 %v230_v63, %v231_v0  ;;  %v238_v9 = vunpack.c.l.bf16 %v263_v60 }
  0x11   :  { %173 = vst [vmem:[%s374_s1 + $0xa] sm:$0x3] %v157_v56  ;;  %v113_v11 = vrot.slane %v81_v3, 4  ;;  %v83_v12 = vmax.f32 %v234_v4, %v235_v5  ;;  %v239_v13 = vunpack.c.h.bf16 %v263_v60  ;;  %v242_v14 = vunpack.c.l.bf16 %v264_v1 }
  0x12   :  { %174 = vst [vmem:[%s374_s1 + $0xc] sm:$0x3] %v158_v2  ;;  %v159_v15 = vpack.c.bf16 %v143_v6, %v143_v6  ;;  %v144_v16 = vmax.f32 %v80_v62, %v112_v7  ;;  %v114_v17 = vrot.slane %v82_v8, 4  ;;  %v243_v18 = vunpack.c.h.bf16 %v264_v1 }
  0x13   :  { %v145_v20 = vmax.f32 %v81_v3, %v113_v11  ;;  %v115_v21 = vrot.slane %v83_v12, 4  ;;  %v84_v22 = vmax.f32 %v238_v9, %v239_v13  ;;  %v246_v23 = vunpack.c.l.bf16 %v265_v10 }
  0x14   :  { %175 = vst [vmem:[%s374_s1 + $0xe] sm:$0x3] %v159_v15  ;;  %v160_v24 = vpack.c.bf16 %v144_v16, %v144_v16  ;;  %v146_v25 = vmax.f32 %v82_v8, %v114_v17  ;;  %v85_v26 = vmax.f32 %v242_v14, %v243_v18  ;;  %v247_v27 = vunpack.c.h.bf16 %v265_v10 }
  0x15   :  { %v161_v28 = vpack.c.bf16 %v145_v20, %v145_v20  ;;  %v147_v29 = vmax.f32 %v83_v12, %v115_v21  ;;  %v116_v30 = vrot.slane %v84_v22, 4  ;;  %v250_v31 = vunpack.c.l.bf16 %v266_v19 }
  0x16   :  { %176 = vst [vmem:[%s374_s1 + $0x10] sm:$0x3] %v160_v24  ;;  %v162_v32 = vpack.c.bf16 %v146_v25, %v146_v25  ;;  %v117_v33 = vrot.slane %v85_v26, 4  ;;  %v86_v34 = vmax.f32 %v246_v23, %v247_v27  ;;  %v251_v35 = vunpack.c.h.bf16 %v266_v19 }
  0x17   :  { %177 = vst [vmem:[%s374_s1 + $0x12] sm:$0x3] %v161_v28  ;;  %v163_v36 = vpack.c.bf16 %v147_v29, %v147_v29  ;;  %v148_v37 = vmax.f32 %v84_v22, %v116_v30 }
  0x18   :  { %178 = vst [vmem:[%s374_s1 + $0x14] sm:$0x3] %v162_v32  ;;  %v149_v38 = vmax.f32 %v85_v26, %v117_v33  ;;  %v118_v39 = vrot.slane %v86_v34, 4  ;;  %v87_v40 = vmax.f32 %v250_v31, %v251_v35 }
  0x19   :  { %179 = vst [vmem:[%s374_s1 + $0x16] sm:$0x3] %v163_v36  ;;  %v164_v41 = vpack.c.bf16 %v148_v37, %v148_v37 }
  0x1a   :  { %v165_v42 = vpack.c.bf16 %v149_v38, %v149_v38  ;;  %v150_v43 = vmax.f32 %v86_v34, %v118_v39  ;;  %v119_v44 = vrot.slane %v87_v40, 4 }
  0x1b   :  { %180 = vst [vmem:[%s374_s1 + $0x18] sm:$0x3] %v164_v41 }
  0x1c   :  { %181 = vst [vmem:[%s374_s1 + $0x1a] sm:$0x3] %v165_v42  ;;  %v166_v45 = vpack.c.bf16 %v150_v43, %v150_v43  ;;  %v151_v46 = vmax.f32 %v87_v40, %v119_v44 }
  0x1e   :  { %182 = vst [vmem:[%s374_s1 + $0x1c] sm:$0x3] %v166_v45  ;;  %v167_v47 = vpack.c.bf16 %v151_v46, %v151_v46 }
  0x20   :  { %183 = vst [vmem:[%s374_s1 + $0x1e] sm:$0x3] %v167_v47 }

// kernel: siamese_forward.10
= control target key start
LH: loop header
LB: loop body
LE: loop exit
PB: predicated region body
PF: predicated region fallthrough
CT: control target
= control target key end

     0   :  { %s2169_s12 = smov 0   ;;  %s2171_s13 = smov 0   ;;  %s2590_s0 = inlined_call_operand.vmem [shape: bf16[256,3200], index: 0, kind: input, shape index: {}]   ;;  %s2591_s1 = inlined_call_operand.vmem [shape: bf16[3200,128], index: 1, kind: input, shape index: {}]   ;;  %s2592_s2 = inlined_call_operand.vmem [shape: f32[3,128], index: 2, kind: input, shape index: {}]   ;;  %s2593_s3 = inlined_call_operand.vmem [shape: bf16[256,128], index: 3, kind: output, shape index: {}]  }
   0x1   :  { %s2173_s14 = smov 0   ;;  %s2175_s15 = smov 0  }
   0x2   :  { %s2177_s16 = smov 0   ;;  %s2179_s17 = smov 0  }
   0x3   :  { %s2181_s18 = smov 0  }
   0x4 LB: > { %s25_s19 = sadd.s32 1, %s2138_s16  ;;  %s32_s20 = sadd.s32 1, %s2142_s17  ;;  %s2146_s18 = sphi %s2181_s18, %s13_s18   ;;  %s2142_s17 = sphi %s2179_s17, %s2599_s17   ;;  %s2138_s16 = sphi %s2177_s16, %s2598_s16   ;;  %s2134_s15 = sphi %s2175_s15, %s2597_s15   ;;  %s2130_s14 = sphi %s2173_s14, %s2596_s14   ;;  %s2126_s13 = sphi %s2171_s13, %s2595_s13   ;;  %s2122_s12 = sphi %s2169_s12, %s2594_s12  }
   0x5   : > { %p26_p0 = scmp.ge.s32.totalorder %s25_s19, 5  ;;  %p48_p1 = scmp.ne.s32.totalorder %s2126_s13, %s2122_s12 }
   0x6   : > { %p49_p2 = scmp.eq.s32.totalorder %s2146_s18, 0  ;;  %s41_s24 = sadd.s32 1, %s2126_s13 }
   0x7   : > { %s2601_s19 = smov (%p26_p0, %s25_s19), 0  ;;  %s2603_s20 = smov (!%p26_p0, %s32_s20), %s2142_s17 }
   0x8   : > { %p50_p3 = por %p49_p2, %p48_p1  ;;  %p34_p4 = scmp.ge.s32.totalorder %s2603_s20, 2 }
   0x9   : > { %s37_s21 = ssub.s32 %s2138_s16, %s2601_s19  ;;  %p1517_p6 = scmp.ge.s32.totalorder %s2146_s18, 10 }
   0xa   : > { %s2605_s20 = smov (%p34_p4, %s2603_s20), 0 }
   0xb   : > { %s36_s22 = ssub.s32 %s2142_s17, %s2605_s20  ;;  %163 = sbr.rel (%p1517_p6) target bundleno = 73 (0x49), region = 20 }
   0xc   : > { %s38_s23 = sor.u32 %s37_s21, %s36_s22 }
   0xd   : > { %p39_p5 = scmp.eq.s32.totalorder %s38_s23, 0 }
   0xf   : > { %s2220_s25 = scalar_select %p39_p5, %s2126_s13, %s41_s24  }
  0x10   : > { %166 = sbr.rel (!%p50_p3) target bundleno = 73 (0x49), region = 24  ;;  %s168_s26 = sand.u32 (%p50_p3), 1, %s2126_s13  }
  0x11   : > { %s172_s27 = smul.u32 (%p50_p3), 5, %s2138_s16 }
  0x12   : > { %s2032_s28 = smul.u32 (%p50_p3), 320, %s168_s26 }
  0x13   : > { %s2033_s29 = smul.u32 (%p50_p3), 400, %s2142_s17 }
  0x14   : > { %s2234_s8 = scalar_lea.vmem (%p50_p3), [#allocation3], %s2032_s28 }
  0x15   : > { %s174_s30 = sadd.s32 %s2033_s29, %s172_s27 }
  0x16   : > { %s1520_s4 = sshll.u32 %s174_s30, 2 }
  0x17   : > { %s2229_s7 = scalar_lea.vmem %s2590_s0, %s1520_s4 }
  0x18   : > { %v191_v0 = vld [vmem:[%s2229_s7] sm:$0xff]  ;;  %v193_v1 = vld [vmem:[%s2229_s7 + $0x8] sm:$0xff]  ;;  %v201_v5 = vld [vmem:[%s2229_s7 + $0xd0] sm:$0xff] }
  0x19   : > { %v195_v2 = vld [vmem:[%s2229_s7 + $0x64] sm:$0xff]  ;;  %192 = vst [vmem:[%s2234_s8] sm:$0xff] %v191_v0  ;;  %v197_v3 = vld [vmem:[%s2229_s7 + $0x6c] sm:$0xff]  ;;  %v205_v7 = vld [vmem:[%s2229_s7 + $0x134] sm:$0xff] }
  0x1a   : > { %194 = vst [vmem:[%s2234_s8 + $0x8] sm:$0xff] %v193_v1  ;;  %v199_v4 = vld [vmem:[%s2229_s7 + $0xc8] sm:$0xff]  ;;  %v207_v8 = vld [vmem:[%s2229_s7 + $0x190] sm:$0xff]  ;;  %v209_v9 = vld [vmem:[%s2229_s7 + $0x198] sm:$0xff] }
  0x1b   : > { %196 = vst [vmem:[%s2234_s8 + $0x14] sm:$0xff] %v195_v2  ;;  %v203_v6 = vld [vmem:[%s2229_s7 + $0x12c] sm:$0xff]  ;;  %v211_v10 = vld [vmem:[%s2229_s7 + $0x1f4] sm:$0xff]  ;;  %v213_v11 = vld [vmem:[%s2229_s7 + $0x1fc] sm:$0xff] }
  0x1c   : > { %198 = vst [vmem:[%s2234_s8 + $0x1c] sm:$0xff] %v197_v3  ;;  %v215_v12 = vld [vmem:[%s2229_s7 + $0x258] sm:$0xff]  ;;  %v217_v13 = vld [vmem:[%s2229_s7 + $0x260] sm:$0xff]  ;;  %v225_v17 = vld [vmem:[%s2229_s7 + $0x328] sm:$0xff] }
  0x1d   : > { %200 = vst [vmem:[%s2234_s8 + $0x28] sm:$0xff] %v199_v4  ;;  %v219_v14 = vld [vmem:[%s2229_s7 + $0x2bc] sm:$0xff]  ;;  %v221_v15 = vld [vmem:[%s2229_s7 + $0x2c4] sm:$0xff]  ;;  %v229_v19 = vld [vmem:[%s2229_s7 + $0x38c] sm:$0xff] }
  0x1e   : > { %202 = vst [vmem:[%s2234_s8 + $0x30] sm:$0xff] %v201_v5  ;;  %v223_v16 = vld [vmem:[%s2229_s7 + $0x320] sm:$0xff]  ;;  %v231_v20 = vld [vmem:[%s2229_s7 + $0x3e8] sm:$0xff]  ;;  %v233_v21 = vld [vmem:[%s2229_s7 + $0x3f0] sm:$0xff] }
  0x1f   : > { %204 = vst [vmem:[%s2234_s8 + $0x3c] sm:$0xff] %v203_v6  ;;  %v227_v18 = vld [vmem:[%s2229_s7 + $0x384] sm:$0xff]  ;;  %v235_v22 = vld [vmem:[%s2229_s7 + $0x44c] sm:$0xff]  ;;  %v237_v23 = vld [vmem:[%s2229_s7 + $0x454] sm:$0xff] }
  0x20   : > { %206 = vst [vmem:[%s2234_s8 + $0x44] sm:$0xff] %v205_v7  ;;  %v239_v24 = vld [vmem:[%s2229_s7 + $0x4b0] sm:$0xff]  ;;  %v241_v25 = vld [vmem:[%s2229_s7 + $0x4b8] sm:$0xff]  ;;  %v249_v29 = vld [vmem:[%s2229_s7 + $0x580] sm:$0xff] }
  0x21   : > { %208 = vst [vmem:[%s2234_s8 + $0x50] sm:$0xff] %v207_v8  ;;  %v243_v26 = vld [vmem:[%s2229_s7 + $0x514] sm:$0xff]  ;;  %v245_v27 = vld [vmem:[%s2229_s7 + $0x51c] sm:$0xff]  ;;  %v253_v31 = vld [vmem:[%s2229_s7 + $0x5e4] sm:$0xff] }
  0x22   : > { %210 = vst [vmem:[%s2234_s8 + $0x58] sm:$0xff] %v209_v9  ;;  %v247_v28 = vld [vmem:[%s2229_s7 + $0x578] sm:$0xff]  ;;  %v1521_v32 = vld [vmem:[%s2229_s7 + $0x10] sm:$0xf]  ;;  %v1523_v33 = vld [vmem:[%s2229_s7 + $0x74] sm:$0xf] }
  0x23   : > { %212 = vst [vmem:[%s2234_s8 + $0x64] sm:$0xff] %v211_v10  ;;  %v251_v30 = vld [vmem:[%s2229_s7 + $0x5dc] sm:$0xff]  ;;  %v1525_v34 = vld [vmem:[%s2229_s7 + $0xd8] sm:$0xf]  ;;  %v1531_v37 = vld [vmem:[%s2229_s7 + $0x204] sm:$0xf] }
  0x24   : > { %214 = vst [vmem:[%s2234_s8 + $0x6c] sm:$0xff] %v213_v11  ;;  %v1527_v35 = vld [vmem:[%s2229_s7 + $0x13c] sm:$0xf]  ;;  %v1529_v36 = vld [vmem:[%s2229_s7 + $0x1a0] sm:$0xf] }
  0x25   : > { %216 = vst [vmem:[%s2234_s8 + $0x78] sm:$0xff] %v215_v12  ;;  %v1533_v38 = vld [vmem:[%s2229_s7 + $0x268] sm:$0xf]  ;;  %v1535_v39 = vld [vmem:[%s2229_s7 + $0x2cc] sm:$0xf] }
  0x26   : > { %218 = vst [vmem:[%s2234_s8 + $0x80] sm:$0xff] %v217_v13  ;;  %v1537_v40 = vld [vmem:[%s2229_s7 + $0x330] sm:$0xf]  ;;  %v1539_v41 = vld [vmem:[%s2229_s7 + $0x394] sm:$0xf] }
  0x27   : > { %220 = vst [vmem:[%s2234_s8 + $0x8c] sm:$0xff] %v219_v14  ;;  %v1541_v42 = vld [vmem:[%s2229_s7 + $0x3f8] sm:$0xf]  ;;  %v1543_v43 = vld [vmem:[%s2229_s7 + $0x45c] sm:$0xf] }
  0x28   : > { %222 = vst [vmem:[%s2234_s8 + $0x94] sm:$0xff] %v221_v15  ;;  %v1545_v44 = vld [vmem:[%s2229_s7 + $0x4c0] sm:$0xf]  ;;  %v1547_v45 = vld [vmem:[%s2229_s7 + $0x524] sm:$0xf] }
  0x29   : > { %224 = vst [vmem:[%s2234_s8 + $0xa0] sm:$0xff] %v223_v16  ;;  %v1549_v46 = vld [vmem:[%s2229_s7 + $0x588] sm:$0xf]  ;;  %v1551_v47 = vld [vmem:[%s2229_s7 + $0x5ec] sm:$0xf] }
  0x2a   : > { %226 = vst [vmem:[%s2234_s8 + $0xa8] sm:$0xff] %v225_v17 }
  0x2b   : > { %228 = vst [vmem:[%s2234_s8 + $0xb4] sm:$0xff] %v227_v18 }
  0x2c   : > { %230 = vst [vmem:[%s2234_s8 + $0xbc] sm:$0xff] %v229_v19 }
  0x2d   : > { %232 = vst [vmem:[%s2234_s8 + $0xc8] sm:$0xff] %v231_v20 }
  0x2e   : > { %234 = vst [vmem:[%s2234_s8 + $0xd0] sm:$0xff] %v233_v21 }
  0x2f   : > { %236 = vst [vmem:[%s2234_s8 + $0xdc] sm:$0xff] %v235_v22 }
  0x30   : > { %238 = vst [vmem:[%s2234_s8 + $0xe4] sm:$0xff] %v237_v23 }
  0x31   : > { %240 = vst [vmem:[%s2234_s8 + $0xf0] sm:$0xff] %v239_v24 }
  0x32   : > { %242 = vst [vmem:[%s2234_s8 + $0xf8] sm:$0xff] %v241_v25 }
  0x33   : > { %244 = vst [vmem:[%s2234_s8 + $0x104] sm:$0xff] %v243_v26 }
  0x34   : > { %246 = vst [vmem:[%s2234_s8 + $0x10c] sm:$0xff] %v245_v27 }
  0x35   : > { %248 = vst [vmem:[%s2234_s8 + $0x118] sm:$0xff] %v247_v28 }
  0x36   : > { %250 = vst [vmem:[%s2234_s8 + $0x120] sm:$0xff] %v249_v29 }
  0x37   : > { %252 = vst [vmem:[%s2234_s8 + $0x12c] sm:$0xff] %v251_v30 }
  0x38   : > { %254 = vst [vmem:[%s2234_s8 + $0x134] sm:$0xff] %v253_v31 }
  0x39   : > { %1522 = vst [vmem:[%s2234_s8 + $0x10] sm:$0xf] %v1521_v32 }
  0x3a   : > { %1524 = vst [vmem:[%s2234_s8 + $0x24] sm:$0xf] %v1523_v33 }
  0x3b   : > { %1526 = vst [vmem:[%s2234_s8 + $0x38] sm:$0xf] %v1525_v34 }
  0x3c   : > { %1528 = vst [vmem:[%s2234_s8 + $0x4c] sm:$0xf] %v1527_v35 }
  0x3d   : > { %1530 = vst [vmem:[%s2234_s8 + $0x60] sm:$0xf] %v1529_v36 }
  0x3e   : > { %1532 = vst [vmem:[%s2234_s8 + $0x74] sm:$0xf] %v1531_v37 }
  0x3f   : > { %1534 = vst [vmem:[%s2234_s8 + $0x88] sm:$0xf] %v1533_v38 }
  0x40   : > { %1536 = vst [vmem:[%s2234_s8 + $0x9c] sm:$0xf] %v1535_v39 }
  0x41   : > { %1538 = vst [vmem:[%s2234_s8 + $0xb0] sm:$0xf] %v1537_v40 }
  0x42   : > { %1540 = vst [vmem:[%s2234_s8 + $0xc4] sm:$0xf] %v1539_v41 }
  0x43   : > { %1542 = vst [vmem:[%s2234_s8 + $0xd8] sm:$0xf] %v1541_v42 }
  0x44   : > { %1544 = vst [vmem:[%s2234_s8 + $0xec] sm:$0xf] %v1543_v43 }
  0x45   : > { %1546 = vst [vmem:[%s2234_s8 + $0x100] sm:$0xf] %v1545_v44 }
  0x46   : > { %1548 = vst [vmem:[%s2234_s8 + $0x114] sm:$0xf] %v1547_v45 }
  0x47   : > { %1550 = vst [vmem:[%s2234_s8 + $0x128] sm:$0xf] %v1549_v46 }
  0x48   : > { %1552 = vst [vmem:[%s2234_s8 + $0x13c] sm:$0xf] %v1551_v47 }
  0x49 PF: > { %p1553_p7 = scmp.ge.s32.totalorder %s2146_s18, 1  ;;  %p311_p8 = scmp.lt.s32.totalorder %s2146_s18, 11 }
  0x4b   : > { %p312_p9 = pnand %p1553_p7, %p311_p8 }
  0x4c   : > { %s318_s9 = sand.u32 (!%p312_p9), 1, %s2122_s12   ;;  %s358_s10 = smul.u32 (!%p312_p9), 80, %s2130_s14 }
  0x4d   : > { %315 = sbr.rel (%p312_p9) target bundleno = 457 (0x1c9), region = 54  ;;  %s1555_s21 = sshll.u32 (!%p312_p9), %s2134_s15, 4 }
  0x4e   : > { %s2034_s11 = smul.u32 (!%p312_p9), 320, %s318_s9  ;;  %p359_p10 = scmp.lt.s32.totalorder (!%p312_p9), %s358_s10, 399 }
  0x4f   : > { %p372_p11 = scmp.lt.s32.totalorder (!%p312_p9), %s1555_s21, 31  ;;  %p1557_p12 = scmp.ne.s32.totalorder (!%p312_p9), %s2130_s14, 0 }
  0x50   : > { %s2344_s12 = scalar_lea.vmem (!%p312_p9), [#allocation3], %s2034_s11 }
  0x52   : > { %s2607_s10 = smov (!%p359_p10, %s358_s10), 399  ;;  %s2609_s21 = smov (!%p372_p11, %s1555_s21), 31 }
  0x53   : > { %s1554_s22 = sshll.u32 %s2607_s10, 2  ;;  %s1556_s27 = sshll.u32 %s2609_s21, 2 }
  0x54   : > { %s2337_s26 = scalar_lea.vmem %s2591_s1, %s1554_s22  ;;  %s2342_s30 = scalar_lea.vmem %s2593_s3, %s1556_s27 }
  0x55   : > { %383 = sbr.rel (%p1557_p12) target bundleno = 107 (0x6b), region = 62 }
  0x5a   : > { %v2148_v48 = vmov 0.0  }
  0x5b   : > { %384 = vst [vmem:[#allocation2 + $0x30] sm:$0xff] %v2148_v48 }
  0x5c   : > { %385 = vst [vmem:[#allocation2] sm:$0xff] %v2148_v48 }
  0x5d   : > { %386 = vst [vmem:[#allocation2 + $0x58] sm:$0xff] %v2148_v48 }
  0x5e   : > { %387 = vst [vmem:[#allocation2 + $0x18] sm:$0xff] %v2148_v48 }
  0x5f   : > { %388 = vst [vmem:[#allocation2 + $0x50] sm:$0xff] %v2148_v48 }
  0x60   : > { %389 = vst [vmem:[#allocation2 + $0x68] sm:$0xff] %v2148_v48 }
  0x61   : > { %390 = vst [vmem:[#allocation2 + $0x8] sm:$0xff] %v2148_v48 }
  0x62   : > { %391 = vst [vmem:[#allocation2 + $0x48] sm:$0xff] %v2148_v48 }
  0x63   : > { %392 = vst [vmem:[#allocation2 + $0x40] sm:$0xff] %v2148_v48 }
  0x64   : > { %393 = vst [vmem:[#allocation2 + $0x20] sm:$0xff] %v2148_v48 }
  0x65   : > { %394 = vst [vmem:[#allocation2 + $0x10] sm:$0xff] %v2148_v48 }
  0x66   : > { %395 = vst [vmem:[#allocation2 + $0x38] sm:$0xff] %v2148_v48 }
  0x67   : > { %396 = vst [vmem:[#allocation2 + $0x60] sm:$0xff] %v2148_v48 }
  0x68   : > { %397 = vst [vmem:[#allocation2 + $0x70] sm:$0xff] %v2148_v48 }
  0x69   : > { %398 = vst [vmem:[#allocation2 + $0x78] sm:$0xff] %v2148_v48 }
  0x6a   : > { %399 = vst [vmem:[#allocation2 + $0x28] sm:$0xff] %v2148_v48 }
  0x6b PF: > { %v1928_v49 = vld [vmem:[%s2337_s26 + $0x38] sm:$0xff]  ;;  %v1927_v50 = vld [vmem:[%s2337_s26 + $0x30] sm:$0xff]  ;;  %v1926_v51 = vld [vmem:[%s2337_s26 + $0x28] sm:$0xff]  ;;  %p1878_p13 = scmp.ne.s32.totalorder %s2130_s14, 4 }
  0x6c   : > { %2008 = vmatpush.bf16.msra.mxu1 %v1928_v49  ;;  %2009 = vmatpush.bf16.msra.mxu2 %v1928_v49  ;;  %v1925_v52 = vld [vmem:[%s2337_s26 + $0x20] sm:$0xff]  ;;  %v1924_v53 = vld [vmem:[%s2337_s26 + $0x18] sm:$0xff]  ;;  %v1923_v54 = vld [vmem:[%s2337_s26 + $0x10] sm:$0xff] }
  0x6d   : > { %2010 = vmatpush.bf16.msra.mxu3 %v1928_v49  ;;  %992 = vmatpush.bf16.msra.mxu0 %v1928_v49  ;;  %v1922_v55 = vld [vmem:[%s2337_s26 + $0x8] sm:$0xff]  ;;  %v1921_v56 = vld [vmem:[%s2337_s26] sm:$0xff]  ;;  %v1600_v57 = vld [vmem:[%s2344_s12 + $0x50] sm:$0xf] }
  0x6e   : > { %v1893_v58 = vld [vmem:[%s2344_s12 + $0x60] sm:$0xf0]  ;;  %v1640_v59 = vld [vmem:[%s2344_s12 + $0xa0] sm:$0xf]  ;;  %v1903_v60 = vld [vmem:[%s2344_s12 + $0xb0] sm:$0xf0] }
  0x6f   : > { %v1680_v61 = vld [vmem:[%s2344_s12 + $0xf0] sm:$0xf]  ;;  %v1913_v62 = vld [vmem:[%s2344_s12 + $0x100] sm:$0xf0]  ;;  %v1560_v63 = vld [vmem:[%s2344_s12] sm:$0xf]  ;;  %v1601_v3 = vor.u32 %v1893_v58, %v1600_v57  ;;  %v1641_v4 = vor.u32 %v1903_v60, %v1640_v59 }
  0x70   : > { %2011 = vmatpush.bf16.msra.mxu1 %v1927_v50  ;;  %2012 = vmatpush.bf16.msra.mxu2 %v1927_v50  ;;  %v1883_v0 = vld [vmem:[%s2344_s12 + $0x10] sm:$0xf0]  ;;  %v1944_v1 = vld [vmem:[%s2337_s26 + $0xb8] sm:$0xff]  ;;  %v1681_v5 = vor.u32 %v1913_v62, %v1680_v61  ;;  %v1942_v13 = vld [vmem:[%s2337_s26 + $0xa8] sm:$0xff] }
  0x71   : > { %2013 = vmatpush.bf16.msra.mxu3 %v1927_v50  ;;  %993 = vmatpush.bf16.msra.mxu0 %v1927_v50  ;;  %v1936_v2 = vld [vmem:[%s2337_s26 + $0x78] sm:$0xff]  ;;  %v1561_v6 = vor.u32 %v1883_v0, %v1560_v63  ;;  %v1943_v9 = vld [vmem:[%s2337_s26 + $0xb0] sm:$0xff]  ;;  %v1934_v14 = vld [vmem:[%s2337_s26 + $0x68] sm:$0xff] }
  0x72   : > { %v1952_v7 = vld [vmem:[%s2337_s26 + $0xf8] sm:$0xff]  ;;  %v1935_v10 = vld [vmem:[%s2337_s26 + $0x70] sm:$0xff]  ;;  %v1950_v15 = vld [vmem:[%s2337_s26 + $0xe8] sm:$0xff] }
  0x73   : > { %v1960_v8 = vld [vmem:[%s2337_s26 + $0x138] sm:$0xff]  ;;  %v1951_v11 = vld [vmem:[%s2337_s26 + $0xf0] sm:$0xff]  ;;  %v1958_v16 = vld [vmem:[%s2337_s26 + $0x128] sm:$0xff] }
  0x74   : > { %2014 = vmatpush.bf16.msra.mxu1 %v1926_v51  ;;  %2015 = vmatpush.bf16.msra.mxu2 %v1926_v51  ;;  %v1959_v12 = vld [vmem:[%s2337_s26 + $0x130] sm:$0xff]  ;;  %v1941_v17 = vld [vmem:[%s2337_s26 + $0xa0] sm:$0xff]  ;;  %v1620_v21 = vld [vmem:[%s2344_s12 + $0x78] sm:$0xf] }
  0x75   : > { %2016 = vmatpush.bf16.msra.mxu3 %v1926_v51  ;;  %994 = vmatpush.bf16.msra.mxu0 %v1926_v51  ;;  %v1933_v18 = vld [vmem:[%s2337_s26 + $0x60] sm:$0xff]  ;;  %v1898_v22 = vld [vmem:[%s2344_s12 + $0x88] sm:$0xf0]  ;;  %v1660_v23 = vld [vmem:[%s2344_s12 + $0xc8] sm:$0xf] }
  0x76   : > { %v1949_v19 = vld [vmem:[%s2337_s26 + $0xe0] sm:$0xff]  ;;  %v1908_v24 = vld [vmem:[%s2344_s12 + $0xd8] sm:$0xf0]  ;;  %v1700_v25 = vld [vmem:[%s2344_s12 + $0x118] sm:$0xf]  ;;  %v1621_v31 = vor.u32 %v1898_v22, %v1620_v21 }
  0x77   : > { %v1957_v20 = vld [vmem:[%s2337_s26 + $0x120] sm:$0xff]  ;;  %v1918_v26 = vld [vmem:[%s2344_s12 + $0x128] sm:$0xf0]  ;;  %v1580_v27 = vld [vmem:[%s2344_s12 + $0x28] sm:$0xf]  ;;  %v1661_v32 = vor.u32 %v1908_v24, %v1660_v23 }
  0x78   : > { %2017 = vmatpush.bf16.msra.mxu1 %v1925_v52  ;;  %2018 = vmatpush.bf16.msra.mxu2 %v1925_v52  ;;  %v1888_v28 = vld [vmem:[%s2344_s12 + $0x38] sm:$0xf0]  ;;  %v1701_v33 = vor.u32 %v1918_v26, %v1700_v25  ;;  %v1939_v37 = vld [vmem:[%s2337_s26 + $0x90] sm:$0xff]  ;;  %v1938_v41 = vld [vmem:[%s2337_s26 + $0x88] sm:$0xff] }
  0x79   : > { %2019 = vmatpush.bf16.msra.mxu3 %v1925_v52  ;;  %995 = vmatpush.bf16.msra.mxu0 %v1925_v52  ;;  %v1940_v29 = vld [vmem:[%s2337_s26 + $0x98] sm:$0xff]  ;;  %v1581_v34 = vor.u32 %v1888_v28, %v1580_v27  ;;  %v1931_v38 = vld [vmem:[%s2337_s26 + $0x50] sm:$0xff]  ;;  %v1930_v42 = vld [vmem:[%s2337_s26 + $0x48] sm:$0xff] }
  0x7a   : > { %v1932_v30 = vld [vmem:[%s2337_s26 + $0x58] sm:$0xff]  ;;  %v1947_v39 = vld [vmem:[%s2337_s26 + $0xd0] sm:$0xff]  ;;  %v1946_v43 = vld [vmem:[%s2337_s26 + $0xc8] sm:$0xff] }
  0x7b   : > { %v1948_v35 = vld [vmem:[%s2337_s26 + $0xd8] sm:$0xff]  ;;  %v1955_v40 = vld [vmem:[%s2337_s26 + $0x110] sm:$0xff]  ;;  %v1954_v44 = vld [vmem:[%s2337_s26 + $0x108] sm:$0xff] }
  0x7c   : > { %2020 = vmatpush.bf16.msra.mxu1 %v1924_v53  ;;  %2021 = vmatpush.bf16.msra.mxu2 %v1924_v53  ;;  %v1956_v36 = vld [vmem:[%s2337_s26 + $0x118] sm:$0xff]  ;;  %v1937_v45 = vld [vmem:[%s2337_s26 + $0x80] sm:$0xff]  ;;  %v1568_v51 = vld [vmem:[%s2344_s12 + $0x8] sm:$0xf] }
  0x7d   : > { %2022 = vmatpush.bf16.msra.mxu3 %v1924_v53  ;;  %996 = vmatpush.bf16.msra.mxu0 %v1924_v53  ;;  %v1929_v46 = vld [vmem:[%s2337_s26 + $0x40] sm:$0xff]  ;;  %v1562_v50 = vld [vmem:[%s2344_s12 + $0x14] sm:$0xf0]  ;;  %v1884_v52 = vld [vmem:[%s2344_s12 + $0x18] sm:$0xf0] }
  0x7e   : > { %v1945_v47 = vld [vmem:[%s2337_s26 + $0xc0] sm:$0xff]  ;;  %v1882_v53 = vld [vmem:[%s2344_s12 + $0xc] sm:$0xf]  ;;  %v1569_v58 = vor.u32 %v1884_v52, %v1568_v51  ;;  %v1588_v63 = vld [vmem:[%s2344_s12 + $0x30] sm:$0xf] }
  0x7f   : > { %v1953_v48 = vld [vmem:[%s2337_s26 + $0x100] sm:$0xff]  ;;  %v1886_v61 = vld [vmem:[%s2344_s12 + $0x2c] sm:$0xf]  ;;  %v1896_v21 = vld [vmem:[%s2344_s12 + $0x7c] sm:$0xf] }
  0x80   : > { %2023 = vmatpush.bf16.msra.mxu1 %v1923_v54  ;;  %2024 = vmatpush.bf16.msra.mxu2 %v1923_v54  ;;  %v1881_v49 = vld [vmem:[%s2344_s12 + $0x4] sm:$0xf]  ;;  %v1582_v62 = vld [vmem:[%s2344_s12 + $0x3c] sm:$0xf0]  ;;  %v1622_v22 = vld [vmem:[%s2344_s12 + $0x8c] sm:$0xf0] }
  0x81   : > { %2025 = vmatpush.bf16.msra.mxu3 %v1923_v54  ;;  %997 = vmatpush.bf16.msra.mxu0 %v1923_v54  ;;  %v1570_v54 = vld [vmem:[%s2344_s12 + $0x1c] sm:$0xf0]  ;;  %v1565_v57 = vor.u32 %v1881_v49, %v1562_v50  ;;  %v1889_v0 = vld [vmem:[%s2344_s12 + $0x40] sm:$0xf0]  ;;  %v1899_v24 = vld [vmem:[%s2344_s12 + $0x90] sm:$0xf0] }
  0x82   : > { %v1573_v59 = vor.u32 %v1882_v53, %v1570_v54  ;;  %v1628_v23 = vld [vmem:[%s2344_s12 + $0x80] sm:$0xf]  ;;  %v1897_v25 = vld [vmem:[%s2344_s12 + $0x84] sm:$0xf]  ;;  %v1630_v26 = vld [vmem:[%s2344_s12 + $0x94] sm:$0xf0] }
  0x83   : > { %v1636_v27 = vld [vmem:[%s2344_s12 + $0x88] sm:$0xf]  ;;  %v1900_v28 = vld [vmem:[%s2344_s12 + $0x98] sm:$0xf0]  ;;  %v1907_v49 = vld [vmem:[%s2344_s12 + $0xd4] sm:$0xf] }
  0x84   : > { %2026 = vmatpush.bf16.msra.mxu1 %v1922_v55  ;;  %2027 = vmatpush.bf16.msra.mxu2 %v1922_v55  ;;  %v1670_v50 = vld [vmem:[%s2344_s12 + $0xe4] sm:$0xf0]  ;;  %v1676_v51 = vld [vmem:[%s2344_s12 + $0xd8] sm:$0xf]  ;;  %v1910_v52 = vld [vmem:[%s2344_s12 + $0xe8] sm:$0xf0] }
  0x85   : > { %2028 = vmatpush.bf16.msra.mxu3 %v1922_v55  ;;  %998 = vmatpush.bf16.msra.mxu0 %v1922_v55  ;;  %v1576_v55 = vld [vmem:[%s2344_s12 + $0x10] sm:$0xf] }
  0x88   : > { %2029 = vmatpush.bf16.msra.mxu1 %v1921_v56  ;;  %2030 = vmatpush.bf16.msra.mxu2 %v1921_v56 }
  0x89   : > { %2031 = vmatpush.bf16.msra.mxu3 %v1921_v56  ;;  %999 = vmatpush.bf16.msra.mxu0 %v1921_v56  ;;  %v1885_v56 = vld [vmem:[%s2344_s12 + $0x20] sm:$0xf0] }
  0x8a   : > { %v1577_v60 = vor.u32 %v1885_v56, %v1576_v55  ;;  %v1673_v55 = vor.u32 %v1907_v49, %v1670_v50  ;;  %v1677_v56 = vor.u32 %v1910_v52, %v1676_v51  ;;  %v401_v52 = vld [vmem:[#allocation2] sm:$0xff] }
  0x8b   : > { %1010 = vmatmul.bf16.vlgmr.msra.gmra.mxu1 %v1601_v3  ;;  %1020 = vmatmul.bf16.vlgmr.msra.gmra.mxu2 %v1641_v4  ;;  %v1596_v3 = vld [vmem:[%s2344_s12 + $0x38] sm:$0xf]  ;;  %v1890_v4 = vld [vmem:[%s2344_s12 + $0x48] sm:$0xf0] }
  0x8c   : > { %1090 = vmatpush.bf16.msrb.mxu2 %v1944_v1  ;;  %1041 = vmatpush.bf16.msrb.mxu1 %v1936_v2  ;;  %v1887_v1 = vld [vmem:[%s2344_s12 + $0x34] sm:$0xf]  ;;  %v1590_v2 = vld [vmem:[%s2344_s12 + $0x44] sm:$0xf0] }
  0x8d   : > { %1030 = vmatmul.bf16.vlgmr.msra.gmra.mxu3 %v1681_v5  ;;  %1000 = vmatmul.bf16.vlgmr.msra.gmra.mxu0 %v1561_v6  ;;  %v1585_v5 = vor.u32 %v1886_v61, %v1582_v62  ;;  %v1589_v6 = vor.u32 %v1889_v0, %v1588_v63  ;;  %v1912_v61 = vld [vmem:[%s2344_s12 + $0xfc] sm:$0xf]  ;;  %v1690_v62 = vld [vmem:[%s2344_s12 + $0x10c] sm:$0xf0]  ;;  %v1696_v63 = vld [vmem:[%s2344_s12 + $0x100] sm:$0xf] }
  0x8e   : > { %1139 = vmatpush.bf16.msrb.mxu3 %v1952_v7  ;;  %1188 = vmatpush.bf16.msrb.mxu0 %v1960_v8  ;;  %v1593_v7 = vor.u32 %v1887_v1, %v1590_v2  ;;  %v1597_v8 = vor.u32 %v1890_v4, %v1596_v3  ;;  %v1915_v0 = vld [vmem:[%s2344_s12 + $0x110] sm:$0xf0]  ;;  %v1693_v4 = vor.u32 %v1912_v61, %v1690_v62  ;;  %v402_v62 = vld [vmem:[#allocation2 + $0x58] sm:$0xff] }
  0x90   : > { %1091 = vmatpush.bf16.msrb.mxu2 %v1943_v9  ;;  %1042 = vmatpush.bf16.msrb.mxu1 %v1935_v10  ;;  %v1891_v9 = vld [vmem:[%s2344_s12 + $0x54] sm:$0xf]  ;;  %v1602_v10 = vld [vmem:[%s2344_s12 + $0x64] sm:$0xf0] }
  0x92   : > { %1140 = vmatpush.bf16.msrb.mxu3 %v1951_v11  ;;  %1189 = vmatpush.bf16.msrb.mxu0 %v1959_v12  ;;  %v1608_v11 = vld [vmem:[%s2344_s12 + $0x58] sm:$0xf]  ;;  %v1894_v12 = vld [vmem:[%s2344_s12 + $0x68] sm:$0xf0] }
  0x94   : > { %1092 = vmatpush.bf16.msrb.mxu2 %v1942_v13  ;;  %1043 = vmatpush.bf16.msrb.mxu1 %v1934_v14  ;;  %v1892_v13 = vld [vmem:[%s2344_s12 + $0x5c] sm:$0xf]  ;;  %v1610_v14 = vld [vmem:[%s2344_s12 + $0x6c] sm:$0xf0] }
  0x96   : > { %1141 = vmatpush.bf16.msrb.mxu3 %v1950_v15  ;;  %1190 = vmatpush.bf16.msrb.mxu0 %v1958_v16  ;;  %v1616_v15 = vld [vmem:[%s2344_s12 + $0x60] sm:$0xf]  ;;  %v1895_v16 = vld [vmem:[%s2344_s12 + $0x70] sm:$0xf0] }
  0x98   : > { %1093 = vmatpush.bf16.msrb.mxu2 %v1941_v17  ;;  %1044 = vmatpush.bf16.msrb.mxu1 %v1933_v18  ;;  %v1605_v17 = vor.u32 %v1891_v9, %v1602_v10  ;;  %v1609_v18 = vor.u32 %v1894_v12, %v1608_v11  ;;  %v1916_v11 = vld [vmem:[%s2344_s12 + $0x11c] sm:$0xf]  ;;  %v1702_v12 = vld [vmem:[%s2344_s12 + $0x12c] sm:$0xf0] }
  0x9a   : > { %1142 = vmatpush.bf16.msrb.mxu3 %v1949_v19  ;;  %1191 = vmatpush.bf16.msrb.mxu0 %v1957_v20  ;;  %v1613_v19 = vor.u32 %v1892_v13, %v1610_v14  ;;  %v1617_v20 = vor.u32 %v1895_v16, %v1616_v15  ;;  %v1708_v13 = vld [vmem:[%s2344_s12 + $0x120] sm:$0xf]  ;;  %v1919_v14 = vld [vmem:[%s2344_s12 + $0x130] sm:$0xf0]  ;;  %v1917_v15 = vld [vmem:[%s2344_s12 + $0x124] sm:$0xf] }
  0x9b   : > { %1015 = vmatmul.bf16.gmra.mxu1 %v1621_v31  ;;  %1025 = vmatmul.bf16.gmra.mxu2 %v1661_v32  ;;  %v1633_v31 = vor.u32 %v1897_v25, %v1630_v26  ;;  %v1637_v32 = vor.u32 %v1900_v28, %v1636_v27  ;;  %v1710_v16 = vld [vmem:[%s2344_s12 + $0x134] sm:$0xf0] }
  0x9c   : > { %1094 = vmatpush.bf16.msrb.mxu2 %v1940_v29  ;;  %1045 = vmatpush.bf16.msrb.mxu1 %v1932_v30  ;;  %v1625_v29 = vor.u32 %v1896_v21, %v1622_v22  ;;  %v1629_v30 = vor.u32 %v1899_v24, %v1628_v23  ;;  %v1705_v21 = vor.u32 %v1916_v11, %v1702_v12  ;;  %v403_v12 = vld [vmem:[#allocation2 + $0x18] sm:$0xff] }
  0x9d   : > { %1035 = vmatmul.bf16.gmra.mxu3 %v1701_v33  ;;  %1005 = vmatmul.bf16.gmra.mxu0 %v1581_v34  ;;  %v1901_v33 = vld [vmem:[%s2344_s12 + $0xa4] sm:$0xf]  ;;  %v1642_v34 = vld [vmem:[%s2344_s12 + $0xb4] sm:$0xf0]  ;;  %v1709_v22 = vor.u32 %v1919_v14, %v1708_v13  ;;  %v1713_v24 = vor.u32 %v1917_v15, %v1710_v16 }
  0x9e   : > { %1143 = vmatpush.bf16.msrb.mxu3 %v1948_v35  ;;  %1192 = vmatpush.bf16.msrb.mxu0 %v1956_v36  ;;  %v1648_v35 = vld [vmem:[%s2344_s12 + $0xa8] sm:$0xf]  ;;  %v1904_v36 = vld [vmem:[%s2344_s12 + $0xb8] sm:$0xf0] }
  0xa0   : > { %1095 = vmatpush.bf16.msrb.mxu2 %v1939_v37  ;;  %1046 = vmatpush.bf16.msrb.mxu1 %v1931_v38  ;;  %v1902_v37 = vld [vmem:[%s2344_s12 + $0xac] sm:$0xf]  ;;  %v1650_v38 = vld [vmem:[%s2344_s12 + $0xbc] sm:$0xf0] }
  0xa2   : > { %1144 = vmatpush.bf16.msrb.mxu3 %v1947_v39  ;;  %1193 = vmatpush.bf16.msrb.mxu0 %v1955_v40  ;;  %v1656_v39 = vld [vmem:[%s2344_s12 + $0xb0] sm:$0xf]  ;;  %v1905_v40 = vld [vmem:[%s2344_s12 + $0xc0] sm:$0xf0] }
  0xa4   : > { %1096 = vmatpush.bf16.msrb.mxu2 %v1938_v41  ;;  %1047 = vmatpush.bf16.msrb.mxu1 %v1930_v42  ;;  %v1645_v41 = vor.u32 %v1901_v33, %v1642_v34  ;;  %v1649_v42 = vor.u32 %v1904_v36, %v1648_v35 }
  0xa6   : > { %1145 = vmatpush.bf16.msrb.mxu3 %v1946_v43  ;;  %1194 = vmatpush.bf16.msrb.mxu0 %v1954_v44  ;;  %v1653_v43 = vor.u32 %v1902_v37, %v1650_v38  ;;  %v1657_v44 = vor.u32 %v1905_v40, %v1656_v39 }
  0xa8   : > { %1097 = vmatpush.bf16.msrb.mxu2 %v1937_v45  ;;  %1048 = vmatpush.bf16.msrb.mxu1 %v1929_v46  ;;  %v1906_v45 = vld [vmem:[%s2344_s12 + $0xcc] sm:$0xf]  ;;  %v1662_v46 = vld [vmem:[%s2344_s12 + $0xdc] sm:$0xf0] }
  0xa9   : > { %v1665_v53 = vor.u32 %v1906_v45, %v1662_v46 }
  0xaa   : > { %1146 = vmatpush.bf16.msrb.mxu3 %v1945_v47  ;;  %1195 = vmatpush.bf16.msrb.mxu0 %v1953_v48  ;;  %v1668_v47 = vld [vmem:[%s2344_s12 + $0xd0] sm:$0xf]  ;;  %v1909_v48 = vld [vmem:[%s2344_s12 + $0xe0] sm:$0xf0] }
  0xab   : > { %1049 = vmatmul.bf16.vlgmr.msrb.gmra.mxu1 %v1565_v57  ;;  %1098 = vmatmul.bf16.vlgmr.msrb.gmra.mxu2 %v1569_v58  ;;  %v1669_v54 = vor.u32 %v1909_v48, %v1668_v47  ;;  %v1911_v57 = vld [vmem:[%s2344_s12 + $0xf4] sm:$0xf]  ;;  %v1682_v58 = vld [vmem:[%s2344_s12 + $0x104] sm:$0xf0] }
  0xac   : > { %v1685_v1 = vor.u32 %v1911_v57, %v1682_v58 }
  0xad   : > { %1147 = vmatmul.bf16.vlgmr.msrb.gmra.mxu3 %v1573_v59  ;;  %1196 = vmatmul.bf16.vlgmr.msrb.gmra.mxu0 %v1577_v60  ;;  %v1688_v59 = vld [vmem:[%s2344_s12 + $0xf8] sm:$0xf]  ;;  %v1914_v60 = vld [vmem:[%s2344_s12 + $0x108] sm:$0xf0] }
  0xae   : > { %v1689_v2 = vor.u32 %v1914_v60, %v1688_v59 }
  0xbb   : > { %1054 = vmatmul.bf16.gmra.mxu1 %v1585_v5  ;;  %1103 = vmatmul.bf16.gmra.mxu2 %v1589_v6  ;;  %v1697_v5 = vor.u32 %v1915_v0, %v1696_v63 }
  0xbd   : > { %1152 = vmatmul.bf16.gmra.mxu3 %v1593_v7  ;;  %1201 = vmatmul.bf16.gmra.mxu0 %v1597_v8 }
  0xcb   : > { %1059 = vmatmul.bf16.gmra.mxu1 %v1605_v17  ;;  %1108 = vmatmul.bf16.gmra.mxu2 %v1609_v18  ;;  %v1716_v17 = vld [vmem:[%s2344_s12 + $0x128] sm:$0xf]  ;;  %v1920_v18 = vld [vmem:[%s2344_s12 + $0x138] sm:$0xf0] }
  0xcc   : > { %v1717_v25 = vor.u32 %v1920_v18, %v1716_v17 }
  0xcd   : > { %1157 = vmatmul.bf16.gmra.mxu3 %v1613_v19  ;;  %1206 = vmatmul.bf16.gmra.mxu0 %v1617_v20 }
  0xdb   : > { %1064 = vmatmul.bf16.gmra.mxu1 %v1625_v29  ;;  %1113 = vmatmul.bf16.gmra.mxu2 %v1629_v30 }
  0xdd   : > { %1162 = vmatmul.bf16.gmra.mxu3 %v1633_v31  ;;  %1211 = vmatmul.bf16.gmra.mxu0 %v1637_v32 }
  0xeb   : > { %1069 = vmatmul.bf16.gmra.mxu1 %v1645_v41  ;;  %1118 = vmatmul.bf16.gmra.mxu2 %v1649_v42  ;;  %v400_v42 = vld [vmem:[#allocation2 + $0x30] sm:$0xff] }
  0xed   : > { %1167 = vmatmul.bf16.gmra.mxu3 %v1653_v43  ;;  %1216 = vmatmul.bf16.gmra.mxu0 %v1657_v44 }
  0xfb   : > { %1074 = vmatmul.bf16.gmra.mxu1 %v1665_v53  ;;  %1123 = vmatmul.bf16.gmra.mxu2 %v1669_v54 }
  0xfd   : > { %1172 = vmatmul.bf16.gmra.mxu3 %v1673_v55  ;;  %1221 = vmatmul.bf16.gmra.mxu0 %v1677_v56 }
 0x108   : > { %v2459_v3 = vpop.f32.mrf.mxu1 }
 0x10a   : > { %v1001_v6 = vpop.f32.mrf.mxu0 }
 0x10b   : > { %1079 = vmatmul.bf16.gmra.mxu1 %v1685_v1  ;;  %1128 = vmatmul.bf16.gmra.mxu2 %v1689_v2 }
 0x10d   : > { %1177 = vmatmul.bf16.gmra.mxu3 %v1693_v4  ;;  %1226 = vmatmul.bf16.gmra.mxu0 %v1697_v5 }
 0x10e   : > { %v2461_v7 = vpop.f32.mrf.mxu2 }
 0x110   : > { %v2463_v8 = vpop.f32.mrf.mxu3  ;;  %v2465_v9 = vpop.f32.mrf.mxu1 }
 0x112   : > { %v1003_v10 = vpop.f32.mrf.mxu0 }
 0x116   : > { %v2475_v19 = vpop.f32.mrf.mxu2 }
 0x118   : > { %v2477_v20 = vpop.f32.mrf.mxu3  ;;  %v2479_v23 = vpop.f32.mrf.mxu1 }
 0x11a   : > { %v1006_v26 = vpop.f32.mrf.mxu0 }
 0x11b   : > { %1084 = vmatmul.bf16.gmra.mxu1 %v1705_v21  ;;  %1133 = vmatmul.bf16.gmra.mxu2 %v1709_v22 }
 0x11d   : > { %1182 = vmatmul.bf16.gmra.mxu3 %v1713_v24  ;;  %1231 = vmatmul.bf16.gmra.mxu0 %v1717_v25  ;;  %v404_v25 = vld [vmem:[#allocation2 + $0x50] sm:$0xff] }
 0x11e   : > { %v2481_v27 = vpop.f32.mrf.mxu2 }
 0x120   : > { %v2483_v28 = vpop.f32.mrf.mxu3  ;;  %v2485_v29 = vpop.f32.mrf.mxu1 }
 0x122   : > { %v1008_v30 = vpop.f32.mrf.mxu0 }
 0x126   : > { %v2487_v31 = vpop.f32.mrf.mxu2 }
 0x128   : > { %v2489_v32 = vpop.f32.mrf.mxu3  ;;  %v1050_v33 = vpop.f32.mrf.mxu1 }
 0x129   : > { %v1051_v35 = vadd.f32 %v1050_v33, %v1001_v6 }
 0x12a   : > { %v1197_v34 = vpop.f32.mrf.mxu0 }
 0x12e   : > { %v1099_v36 = vpop.f32.mrf.mxu2 }
 0x12f   : > { %v1100_v37 = vadd.f32 %v1099_v36, %v1051_v35 }
 0x130   : > { %v1148_v38 = vpop.f32.mrf.mxu3  ;;  %v1052_v39 = vpop.f32.mrf.mxu1 }
 0x131   : > { %v1149_v40 = vadd.f32 %v1148_v38, %v1100_v37  ;;  %v1053_v45 = vadd.f32 %v1052_v39, %v1003_v10 }
 0x132   : > { %v1199_v41 = vpop.f32.mrf.mxu0 }
 0x133   : > { %v1198_v43 = vadd.f32 %v1197_v34, %v1149_v40 }
 0x135   : > { %v1237_v44 = vadd.f32 %v1198_v43, %v400_v42 }
 0x136   : > { %v1101_v46 = vpop.f32.mrf.mxu2 }
 0x137   : > { %1253 = vst [vmem:[#allocation2 + $0x30] sm:$0xff] %v1237_v44  ;;  %v1102_v47 = vadd.f32 %v1101_v46, %v1053_v45 }
 0x138   : > { %v1150_v48 = vpop.f32.mrf.mxu3  ;;  %v1055_v49 = vpop.f32.mrf.mxu1 }
 0x139   : > { %v1151_v50 = vadd.f32 %v1150_v48, %v1102_v47  ;;  %v1056_v55 = vadd.f32 %v1055_v49, %v1006_v26 }
 0x13a   : > { %v1202_v51 = vpop.f32.mrf.mxu0 }
 0x13b   : > { %v1200_v53 = vadd.f32 %v1199_v41, %v1151_v50 }
 0x13d   : > { %v1238_v54 = vadd.f32 %v1200_v53, %v401_v52 }
 0x13e   : > { %v1104_v56 = vpop.f32.mrf.mxu2 }
 0x13f   : > { %1254 = vst [vmem:[#allocation2] sm:$0xff] %v1238_v54  ;;  %v1105_v57 = vadd.f32 %v1104_v56, %v1056_v55 }
 0x140   : > { %v1153_v58 = vpop.f32.mrf.mxu3  ;;  %v1057_v59 = vpop.f32.mrf.mxu1 }
 0x141   : > { %v1154_v60 = vadd.f32 %v1153_v58, %v1105_v57  ;;  %v1058_v1 = vadd.f32 %v1057_v59, %v1008_v30 }
 0x142   : > { %v1204_v61 = vpop.f32.mrf.mxu0 }
 0x143   : > { %v1203_v63 = vadd.f32 %v1202_v51, %v1154_v60 }
 0x145   : > { %v1239_v0 = vadd.f32 %v1203_v63, %v402_v62 }
 0x146   : > { %v1106_v2 = vpop.f32.mrf.mxu2 }
 0x147   : > { %1255 = vst [vmem:[#allocation2 + $0x58] sm:$0xff] %v1239_v0  ;;  %v1107_v4 = vadd.f32 %v1106_v2, %v1058_v1 }
 0x148   : > { %v1155_v5 = vpop.f32.mrf.mxu3  ;;  %v1060_v6 = vpop.f32.mrf.mxu1 }
 0x149   : > { %v1156_v10 = vadd.f32 %v1155_v5, %v1107_v4  ;;  %v1061_v15 = vadd.f32 %v1060_v6, %v2459_v3  ;;  %v405_v3 = vld [vmem:[#allocation2 + $0x68] sm:$0xff] }
 0x14a   : > { %v1207_v11 = vpop.f32.mrf.mxu0 }
 0x14b   : > { %v1205_v13 = vadd.f32 %v1204_v61, %v1156_v10 }
 0x14d   : > { %v1240_v14 = vadd.f32 %v1205_v13, %v403_v12 }
 0x14e   : > { %v1109_v16 = vpop.f32.mrf.mxu2 }
 0x14f   : > { %1256 = vst [vmem:[#allocation2 + $0x18] sm:$0xff] %v1240_v14  ;;  %v1110_v17 = vadd.f32 %v1109_v16, %v1061_v15 }
 0x150   : > { %v1158_v18 = vpop.f32.mrf.mxu3  ;;  %v1062_v21 = vpop.f32.mrf.mxu1 }
 0x151   : > { %v1159_v22 = vadd.f32 %v1158_v18, %v1110_v17  ;;  %v1063_v33 = vadd.f32 %v1062_v21, %v2465_v9  ;;  %v406_v9 = vld [vmem:[#allocation2 + $0x8] sm:$0xff] }
 0x152   : > { %v1209_v24 = vpop.f32.mrf.mxu0 }
 0x153   : > { %v1208_v26 = vadd.f32 %v1207_v11, %v1159_v22 }
 0x155   : > { %v1241_v30 = vadd.f32 %v1208_v26, %v404_v25 }
 0x156   : > { %v1111_v34 = vpop.f32.mrf.mxu2 }
 0x157   : > { %1257 = vst [vmem:[#allocation2 + $0x50] sm:$0xff] %v1241_v30  ;;  %v1112_v35 = vadd.f32 %v1111_v34, %v1063_v33  ;;  %v410_v30 = vld [vmem:[#allocation2 + $0x10] sm:$0xff] }
 0x158   : > { %v1160_v36 = vpop.f32.mrf.mxu3  ;;  %v1065_v37 = vpop.f32.mrf.mxu1 }
 0x159   : > { %v1161_v38 = vadd.f32 %v1160_v36, %v1112_v35  ;;  %v1066_v42 = vadd.f32 %v1065_v37, %v2479_v23  ;;  %v407_v23 = vld [vmem:[#allocation2 + $0x48] sm:$0xff] }
 0x15a   : > { %v1212_v39 = vpop.f32.mrf.mxu0 }
 0x15b   : > { %v1210_v40 = vadd.f32 %v1209_v24, %v1161_v38 }
 0x15d   : > { %v1242_v41 = vadd.f32 %v1210_v40, %v405_v3  ;;  %v411_v40 = vld [vmem:[#allocation2 + $0x38] sm:$0xff] }
 0x15e   : > { %v1114_v43 = vpop.f32.mrf.mxu2 }
 0x15f   : > { %1258 = vst [vmem:[#allocation2 + $0x68] sm:$0xff] %v1242_v41  ;;  %v1115_v44 = vadd.f32 %v1114_v43, %v1066_v42 }
 0x160   : > { %v1163_v45 = vpop.f32.mrf.mxu3  ;;  %v1067_v46 = vpop.f32.mrf.mxu1 }
 0x161   : > { %v1164_v47 = vadd.f32 %v1163_v45, %v1115_v44  ;;  %v1068_v51 = vadd.f32 %v1067_v46, %v2485_v29  ;;  %v408_v29 = vld [vmem:[#allocation2 + $0x40] sm:$0xff] }
 0x162   : > { %v1214_v48 = vpop.f32.mrf.mxu0 }
 0x163   : > { %v1213_v49 = vadd.f32 %v1212_v39, %v1164_v47 }
 0x165   : > { %v1243_v50 = vadd.f32 %v1213_v49, %v406_v9  ;;  %v412_v9 = vld [vmem:[#allocation2 + $0x60] sm:$0xff] }
 0x166   : > { %v1116_v52 = vpop.f32.mrf.mxu2 }
 0x167   : > { %1259 = vst [vmem:[#allocation2 + $0x8] sm:$0xff] %v1243_v50  ;;  %v1117_v53 = vadd.f32 %v1116_v52, %v1068_v51 }
 0x168   : > { %v1165_v54 = vpop.f32.mrf.mxu3  ;;  %v1070_v55 = vpop.f32.mrf.mxu1 }
 0x169   : > { %v1166_v56 = vadd.f32 %v1165_v54, %v1117_v53  ;;  %v1071_v60 = vadd.f32 %v1070_v55, %v2461_v7  ;;  %v409_v7 = vld [vmem:[#allocation2 + $0x20] sm:$0xff] }
 0x16a   : > { %v1217_v57 = vpop.f32.mrf.mxu0 }
 0x16b   : > { %v1215_v58 = vadd.f32 %v1214_v48, %v1166_v56 }
 0x16d   : > { %v1244_v59 = vadd.f32 %v1215_v58, %v407_v23 }
 0x16e   : > { %v1119_v61 = vpop.f32.mrf.mxu2 }
 0x16f   : > { %1260 = vst [vmem:[#allocation2 + $0x48] sm:$0xff] %v1244_v59  ;;  %v1120_v62 = vadd.f32 %v1119_v61, %v1071_v60 }
 0x170   : > { %v1168_v63 = vpop.f32.mrf.mxu3  ;;  %v1072_v0 = vpop.f32.mrf.mxu1 }
 0x171   : > { %v1169_v1 = vadd.f32 %v1168_v63, %v1120_v62  ;;  %v1073_v6 = vadd.f32 %v1072_v0, %v2475_v19  ;;  %v414_v0 = vld [vmem:[#allocation2 + $0x78] sm:$0xff] }
 0x172   : > { %v1219_v2 = vpop.f32.mrf.mxu0 }
 0x173   : > { %v1218_v4 = vadd.f32 %v1217_v57, %v1169_v1  ;;  %v413_v57 = vld [vmem:[#allocation2 + $0x70] sm:$0xff] }
 0x175   : > { %v1245_v5 = vadd.f32 %v1218_v4, %v408_v29 }
 0x176   : > { %v1121_v10 = vpop.f32.mrf.mxu2 }
 0x177   : > { %1261 = vst [vmem:[#allocation2 + $0x40] sm:$0xff] %v1245_v5  ;;  %v1122_v11 = vadd.f32 %v1121_v10, %v1073_v6 }
 0x178   : > { %v1170_v12 = vpop.f32.mrf.mxu3  ;;  %v1075_v13 = vpop.f32.mrf.mxu1 }
 0x179   : > { %v1171_v14 = vadd.f32 %v1170_v12, %v1122_v11  ;;  %v1076_v18 = vadd.f32 %v1075_v13, %v2481_v27  ;;  %v415_v12 = vld [vmem:[#allocation2 + $0x28] sm:$0xff] }
 0x17a   : > { %v1222_v15 = vpop.f32.mrf.mxu0 }
 0x17b   : > { %v1220_v16 = vadd.f32 %v1219_v2, %v1171_v14 }
 0x17d   : > { %v1246_v17 = vadd.f32 %v1220_v16, %v409_v7 }
 0x17e   : > { %v1124_v21 = vpop.f32.mrf.mxu2 }
 0x17f   : > { %1262 = vst [vmem:[#allocation2 + $0x20] sm:$0xff] %v1246_v17  ;;  %v1125_v22 = vadd.f32 %v1124_v21, %v1076_v18 }
 0x180   : > { %v1173_v24 = vpop.f32.mrf.mxu3  ;;  %v1077_v25 = vpop.f32.mrf.mxu1 }
 0x181   : > { %v1174_v26 = vadd.f32 %v1173_v24, %v1125_v22  ;;  %v1078_v35 = vadd.f32 %v1077_v25, %v2487_v31 }
 0x182   : > { %v1224_v19 = vpop.f32.mrf.mxu0 }
 0x183   : > { %v1223_v33 = vadd.f32 %v1222_v15, %v1174_v26 }
 0x185   : > { %v1247_v34 = vadd.f32 %v1223_v33, %v410_v30 }
 0x186   : > { %v1126_v36 = vpop.f32.mrf.mxu2 }
 0x187   : > { %1263 = vst [vmem:[#allocation2 + $0x10] sm:$0xff] %v1247_v34  ;;  %v1127_v37 = vadd.f32 %v1126_v36, %v1078_v35 }
 0x188   : > { %v1175_v38 = vpop.f32.mrf.mxu3  ;;  %v1080_v39 = vpop.f32.mrf.mxu1 }
 0x189   : > { %v1176_v3 = vadd.f32 %v1175_v38, %v1127_v37  ;;  %v1081_v43 = vadd.f32 %v1080_v39, %v2463_v8 }
 0x18a   : > { %v1227_v41 = vpop.f32.mrf.mxu0 }
 0x18b   : > { %v1225_v27 = vadd.f32 %v1224_v19, %v1176_v3 }
 0x18d   : > { %v1248_v42 = vadd.f32 %v1225_v27, %v411_v40 }
 0x18e   : > { %v1129_v44 = vpop.f32.mrf.mxu2 }
 0x18f   : > { %1264 = vst [vmem:[#allocation2 + $0x38] sm:$0xff] %v1248_v42  ;;  %v1130_v45 = vadd.f32 %v1129_v44, %v1081_v43 }
 0x190   : > { %v1178_v46 = vpop.f32.mrf.mxu3  ;;  %v1082_v47 = vpop.f32.mrf.mxu1 }
 0x191   : > { %v1179_v48 = vadd.f32 %v1178_v46, %v1130_v45  ;;  %v1083_v50 = vadd.f32 %v1082_v47, %v2477_v20 }
 0x192   : > { %v1229_v51 = vpop.f32.mrf.mxu0 }
 0x193   : > { %v1228_v31 = vadd.f32 %v1227_v41, %v1179_v48 }
 0x195   : > { %v1249_v49 = vadd.f32 %v1228_v31, %v412_v9 }
 0x196   : > { %v1131_v52 = vpop.f32.mrf.mxu2 }
 0x197   : > { %1265 = vst [vmem:[#allocation2 + $0x60] sm:$0xff] %v1249_v49  ;;  %v1132_v53 = vadd.f32 %v1131_v52, %v1083_v50 }
 0x198   : > { %v1180_v54 = vpop.f32.mrf.mxu3  ;;  %v1085_v55 = vpop.f32.mrf.mxu1 }
 0x199   : > { %v1181_v56 = vadd.f32 %v1180_v54, %v1132_v53  ;;  %v1086_v58 = vadd.f32 %v1085_v55, %v2483_v28 }
 0x19a   : > { %v1232_v62 = vpop.f32.mrf.mxu0 }
 0x19b   : > { %v1230_v8 = vadd.f32 %v1229_v51, %v1181_v56 }
 0x19d   : > { %v1250_v23 = vadd.f32 %v1230_v8, %v413_v57 }
 0x19e   : > { %v1134_v59 = vpop.f32.mrf.mxu2 }
 0x19f   : > { %1266 = vst [vmem:[#allocation2 + $0x70] sm:$0xff] %v1250_v23  ;;  %v1135_v60 = vadd.f32 %v1134_v59, %v1086_v58 }
 0x1a0   : > { %v1183_v61 = vpop.f32.mrf.mxu3  ;;  %v1087_v20 = vpop.f32.mrf.mxu1 }
 0x1a1   : > { %v1184_v63 = vadd.f32 %v1183_v61, %v1135_v60  ;;  %v1088_v29 = vadd.f32 %v1087_v20, %v2489_v32 }
 0x1a2   : > { %v1234_v11 = vpop.f32.mrf.mxu0 }
 0x1a3   : > { %v1233_v1 = vadd.f32 %v1232_v62, %v1184_v63 }
 0x1a5   : > { %v1251_v2 = vadd.f32 %v1233_v1, %v414_v0 }
 0x1a6   : > { %v1136_v4 = vpop.f32.mrf.mxu2 }
 0x1a7   : > { %1267 = vst [vmem:[#allocation2 + $0x78] sm:$0xff] %v1251_v2  ;;  %v1137_v5 = vadd.f32 %v1136_v4, %v1088_v29 }
 0x1a8   : > { %v1185_v6 = vpop.f32.mrf.mxu3 }
 0x1a9   : > { %v1186_v10 = vadd.f32 %v1185_v6, %v1137_v5 }
 0x1ab   : > { %v1235_v28 = vadd.f32 %v1234_v11, %v1186_v10  ;;  %1272 = sbr.rel (%p1878_p13) target bundleno = 457 (0x1c9), region = 66 }
 0x1ad   : > { %v1252_v13 = vadd.f32 %v1235_v28, %v415_v12 }
 0x1af   : > { %1268 = vst [vmem:[#allocation2 + $0x28] sm:$0xff] %v1252_v13 }
 0x1b0   : > { %v1273_v14 = vld [vmem:[%s2592_s2] sm:$0x7]  ;;  %v1274_v15 = vld [vmem:[#allocation2 + $0x30] sm:$0xff]  ;;  %v1276_v16 = vld [vmem:[#allocation2 + $0x58] sm:$0xff] }
 0x1b1   : > { %v1275_v7 = vld [vmem:[#allocation2] sm:$0xff]  ;;  %v2507_v32 = vperm.slane %v1273_v14, 0  ;;  %v1277_v17 = vld [vmem:[#allocation2 + $0x18] sm:$0xff]  ;;  %v1278_v18 = vld [vmem:[#allocation2 + $0x50] sm:$0xff]  ;;  %v2509_v21 = vperm.slane %v1273_v14, 1  ;;  %v2511_v22 = vperm.slane %v1273_v14, 2 }
 0x1b2   : > { %v1279_v24 = vld [vmem:[#allocation2 + $0x68] sm:$0xff]  ;;  %v1282_v51 = vld [vmem:[#allocation2 + $0x40] sm:$0xff]  ;;  %v1284_v57 = vld [vmem:[#allocation2 + $0x10] sm:$0xff] }
 0x1b3   : > { %v1280_v25 = vld [vmem:[#allocation2 + $0x8] sm:$0xff]  ;;  %v1291_v30 = vadd.f32 %v2507_v32, %v1274_v15  ;;  %v1292_v19 = vadd.f32 %v2507_v32, %v1275_v7  ;;  %v1293_v33 = vadd.f32 %v2507_v32, %v1276_v16  ;;  %v1294_v34 = vadd.f32 %v2507_v32, %v1277_v17  ;;  %v1283_v52 = vld [vmem:[#allocation2 + $0x20] sm:$0xff]  ;;  %v1285_v8 = vld [vmem:[#allocation2 + $0x38] sm:$0xff] }
 0x1b4   : > { %v1281_v26 = vld [vmem:[#allocation2 + $0x48] sm:$0xff]  ;;  %v1295_v35 = vadd.f32 %v2507_v32, %v1278_v18  ;;  %v1296_v36 = vadd.f32 %v2507_v32, %v1279_v24  ;;  %v1297_v37 = vadd.f32 %v2507_v32, %v1280_v25  ;;  %v1286_v61 = vld [vmem:[#allocation2 + $0x60] sm:$0xff]  ;;  %v1287_v62 = vld [vmem:[#allocation2 + $0x70] sm:$0xff]  ;;  %v1299_v20 = vadd.f32 %v2507_v32, %v1282_v51 }
 0x1b5   : > { %v1298_v38 = vadd.f32 %v2507_v32, %v1281_v26  ;;  %v1307_v39 = vmax.f32 %v1291_v30, 0.0  ;;  %v1308_v3 = vmax.f32 %v1292_v19, 0.0  ;;  %v1309_v40 = vmax.f32 %v1293_v33, 0.0  ;;  %v1288_v2 = vld [vmem:[#allocation2 + $0x78] sm:$0xff] }
 0x1b6   : > { %v1310_v27 = vmax.f32 %v1294_v34, 0.0  ;;  %v1311_v41 = vmax.f32 %v1295_v35, 0.0  ;;  %v1312_v42 = vmax.f32 %v1296_v36, 0.0  ;;  %v1313_v43 = vmax.f32 %v1297_v37, 0.0  ;;  %v1289_v29 = vld [vmem:[#allocation2 + $0x28] sm:$0xff] }
 0x1b7   : > { %v1314_v44 = vmax.f32 %v1298_v38, 0.0  ;;  %v1324_v45 = vmul.f32 %v2509_v21, %v1307_v39  ;;  %v1325_v46 = vmul.f32 %v2509_v21, %v1308_v3  ;;  %v1326_v47 = vmul.f32 %v2509_v21, %v1309_v40 }
 0x1b8   : > { %v1327_v48 = vmul.f32 %v2509_v21, %v1310_v27  ;;  %v1328_v9 = vmul.f32 %v2509_v21, %v1311_v41  ;;  %v1329_v31 = vmul.f32 %v2509_v21, %v1312_v42  ;;  %v1330_v49 = vmul.f32 %v2509_v21, %v1313_v43 }
 0x1b9   : > { %v1331_v50 = vmul.f32 %v2509_v21, %v1314_v44  ;;  %v1341_v53 = vadd.f32 %v2511_v22, %v1324_v45  ;;  %v1342_v54 = vadd.f32 %v2511_v22, %v1325_v46  ;;  %v1343_v55 = vadd.f32 %v2511_v22, %v1326_v47 }
 0x1ba   : > { %v1344_v56 = vadd.f32 %v2511_v22, %v1327_v48  ;;  %v1345_v23 = vadd.f32 %v2511_v22, %v1328_v9  ;;  %v1346_v58 = vadd.f32 %v2511_v22, %v1329_v31  ;;  %v1347_v59 = vadd.f32 %v2511_v22, %v1330_v49 }
 0x1bb   : > { %v1348_v60 = vadd.f32 %v2511_v22, %v1331_v50  ;;  %v1964_v63 = vpack.c.bf16 %v1342_v54, %v1341_v53  ;;  %v1300_v1 = vadd.f32 %v2507_v32, %v1283_v52  ;;  %v1301_v6 = vadd.f32 %v2507_v32, %v1284_v57 }
 0x1bc   : > { %v1969_v0 = vpack.c.bf16 %v1344_v56, %v1343_v55  ;;  %v1974_v4 = vpack.c.bf16 %v1346_v58, %v1345_v23  ;;  %v1302_v10 = vadd.f32 %v2507_v32, %v1285_v8  ;;  %v1315_v11 = vmax.f32 %v1299_v20, 0.0 }
 0x1bd   : > { %v1979_v5 = vpack.c.bf16 %v1348_v60, %v1347_v59  ;;  %1965 = vst [vmem:[%s2342_s30] sm:$0xff] %v1964_v63   ;;  %v1316_v12 = vmax.f32 %v1300_v1, 0.0  ;;  %v1303_v28 = vadd.f32 %v2507_v32, %v1286_v61  ;;  %v1304_v13 = vadd.f32 %v2507_v32, %v1287_v62 }
 0x1be   : > { %2001 = vst [vmem:[%s2342_s30 + $0x8] sm:$0xff] %v1969_v0   ;;  %v1317_v14 = vmax.f32 %v1301_v6, 0.0  ;;  %v1318_v15 = vmax.f32 %v1302_v10, 0.0  ;;  %v1305_v7 = vadd.f32 %v2507_v32, %v1288_v2  ;;  %v1306_v16 = vadd.f32 %v2507_v32, %v1289_v29 }
 0x1bf   : > { %2002 = vst [vmem:[%s2342_s30 + $0x10] sm:$0xff] %v1974_v4   ;;  %v1332_v17 = vmul.f32 %v2509_v21, %v1315_v11  ;;  %v1333_v18 = vmul.f32 %v2509_v21, %v1316_v12  ;;  %v1319_v24 = vmax.f32 %v1303_v28, 0.0  ;;  %v1320_v25 = vmax.f32 %v1304_v13, 0.0 }
 0x1c0   : > { %2003 = vst [vmem:[%s2342_s30 + $0x18] sm:$0xff] %v1979_v5   ;;  %v1334_v26 = vmul.f32 %v2509_v21, %v1317_v14  ;;  %v1335_v30 = vmul.f32 %v2509_v21, %v1318_v15  ;;  %v1321_v19 = vmax.f32 %v1305_v7, 0.0  ;;  %v1322_v33 = vmax.f32 %v1306_v16, 0.0 }
 0x1c1   : > { %v1349_v34 = vadd.f32 %v2511_v22, %v1332_v17  ;;  %v1350_v32 = vadd.f32 %v2511_v22, %v1333_v18  ;;  %v1336_v35 = vmul.f32 %v2509_v21, %v1319_v24  ;;  %v1337_v36 = vmul.f32 %v2509_v21, %v1320_v25 }
 0x1c2   : > { %v1351_v37 = vadd.f32 %v2511_v22, %v1334_v26  ;;  %v1352_v38 = vadd.f32 %v2511_v22, %v1335_v30  ;;  %v1338_v39 = vmul.f32 %v2509_v21, %v1321_v19  ;;  %v1339_v3 = vmul.f32 %v2509_v21, %v1322_v33 }
 0x1c3   : > { %v1984_v40 = vpack.c.bf16 %v1350_v32, %v1349_v34  ;;  %v1353_v27 = vadd.f32 %v2511_v22, %v1336_v35  ;;  %v1354_v41 = vadd.f32 %v2511_v22, %v1337_v36 }
 0x1c4   : > { %v1989_v42 = vpack.c.bf16 %v1352_v38, %v1351_v37  ;;  %v1355_v43 = vadd.f32 %v2511_v22, %v1338_v39  ;;  %v1356_v44 = vadd.f32 %v2511_v22, %v1339_v3 }
 0x1c5   : > { %2004 = vst [vmem:[%s2342_s30 + $0x20] sm:$0xff] %v1984_v40   ;;  %v1994_v45 = vpack.c.bf16 %v1354_v41, %v1353_v27 }
 0x1c6   : > { %2005 = vst [vmem:[%s2342_s30 + $0x28] sm:$0xff] %v1989_v42   ;;  %v1999_v46 = vpack.c.bf16 %v1356_v44, %v1355_v43 }
 0x1c7   : > { %2006 = vst [vmem:[%s2342_s30 + $0x30] sm:$0xff] %v1994_v45  }
 0x1c8   : > { %2007 = vst [vmem:[%s2342_s30 + $0x38] sm:$0xff] %v1999_v46  }
 0x1c9 PF: > { %s13_s18 = sadd.s32 1, %s2146_s18   ;;  %s2594_s12 = smov %s2126_s13 }
 0x1ca   : > { %p10_p0 = scmp.ge.s32.totalorder %s13_s18, 12   ;;  %s2595_s13 = smov %s2220_s25 }
 0x1cb   : > { %s2596_s14 = smov %s2138_s16  ;;  %s2597_s15 = smov %s2142_s17 }
 0x1cc   : > { %s2598_s16 = smov %s2601_s19  ;;  %s2599_s17 = smov %s2605_s20 }
 0x1cd   :  { %12 = sbr.rel (!%p10_p0) target bundleno = 4 (0x4), region = 113 }

// kernel: siamese_forward.13
= control target key start
LH: loop header
LB: loop body
LE: loop exit
PB: predicated region body
PF: predicated region fallthrough
CT: control target
= control target key end

     0   :  { %vm153_vm0 = vcmask 1040384   ;;  %s303_s0 = inlined_call_operand.vmem [shape: bf16[8,2,2,512], index: 0, kind: input, shape index: {}]   ;;  %s304_s1 = inlined_call_operand.vmem [shape: bf16[8,2,256], index: 1, kind: output, shape index: {}]  }
   0x1   :  { %v199_v0 = vld [vmem:[%s303_s0] sm:$0xff]   ;;  %v230_v1 = vld [vmem:[%s303_s0 + $0x8] sm:$0xff]   ;;  %v231_v2 = vld [vmem:[%s303_s0 + $0x10] sm:$0xff]  }
   0x2   :  { %v200_v3 = vunpack.c.l.bf16 %v199_v0  ;;  %v201_v4 = vunpack.c.h.bf16 %v199_v0  ;;  %v204_v5 = vunpack.c.l.bf16 %v230_v1  ;;  %v205_v6 = vunpack.c.h.bf16 %v230_v1  ;;  %v232_v7 = vld [vmem:[%s303_s0 + $0x18] sm:$0xff]   ;;  %v233_v20 = vld [vmem:[%s303_s0 + $0x20] sm:$0xff]   ;;  %v234_v22 = vld [vmem:[%s303_s0 + $0x28] sm:$0xff]  }
   0x3   :  { %v208_v8 = vunpack.c.l.bf16 %v231_v2  ;;  %v209_v9 = vunpack.c.h.bf16 %v231_v2  ;;  %v212_v12 = vunpack.c.l.bf16 %v232_v7  ;;  %v213_v13 = vunpack.c.h.bf16 %v232_v7  ;;  %v235_v31 = vld [vmem:[%s303_s0 + $0x30] sm:$0xff]   ;;  %v236_v39 = vld [vmem:[%s303_s0 + $0x38] sm:$0xff]  }
   0x4   :  { %v40_v10 = vmax.f32 %v200_v3, %v201_v4  ;;  %v41_v11 = vmax.f32 %v204_v5, %v205_v6  ;;  %v216_v23 = vunpack.c.l.bf16 %v233_v20  ;;  %v217_v24 = vunpack.c.h.bf16 %v233_v20 }
   0x5   :  { %v42_v16 = vmax.f32 %v208_v8, %v209_v9  ;;  %v43_v19 = vmax.f32 %v212_v12, %v213_v13  ;;  %v220_v26 = vunpack.c.l.bf16 %v234_v22  ;;  %v221_v27 = vunpack.c.h.bf16 %v234_v22 }
   0x6   :  { %v56_v14 = vrot.slane %v40_v10, 4  ;;  %v57_v15 = vrot.slane %v41_v11, 4  ;;  %v44_v29 = vmax.f32 %v216_v23, %v217_v24  ;;  %v224_v42 = vunpack.c.l.bf16 %v235_v31 }
   0x7   :  { %v58_v21 = vrot.slane %v42_v16, 4  ;;  %v59_v25 = vrot.slane %v43_v19, 4  ;;  %v45_v34 = vmax.f32 %v220_v26, %v221_v27  ;;  %v225_v43 = vunpack.c.h.bf16 %v235_v31 }
   0x8   :  { %v72_v17 = vmax.f32 %v40_v10, %v56_v14  ;;  %v73_v18 = vmax.f32 %v41_v11, %v57_v15  ;;  %v60_v38 = vrot.slane %v44_v29, 4  ;;  %v228_v47 = vunpack.c.l.bf16 %v236_v39 }
   0x9   :  { %v74_v28 = vmax.f32 %v42_v16, %v58_v21  ;;  %v75_v30 = vmax.f32 %v43_v19, %v59_v25  ;;  %v61_v44 = vrot.slane %v45_v34, 4  ;;  %v229_v48 = vunpack.c.h.bf16 %v236_v39 }
   0xa   :  { %88 = vst [vmem:[#allocation1] ss:$4 sm:$0xff] %v72_v17  ;;  %v76_v49 = vmax.f32 %v44_v29, %v60_v38  ;;  %v46_v51 = vmax.f32 %v224_v42, %v225_v43 }
   0xb   :  { %92 = vst [vmem:[#allocation1 + $0x20] ss:$4 sm:$0xff] %v73_v18  ;;  %v77_v53 = vmax.f32 %v45_v34, %v61_v44  ;;  %v47_v55 = vmax.f32 %v228_v47, %v229_v48 }
   0xc   :  { %v62_v59 = vrot.slane %v46_v51, 4 }
   0xd   :  { %v63_v62 = vrot.slane %v47_v55, 4 }
   0xe   :  { %v78_v1 = vmax.f32 %v46_v51, %v62_v59 }
   0xf   :  { %v79_v4 = vmax.f32 %v47_v55, %v63_v62 }
  0x11   :  { %v89_v32 = vld.sshfl [vmem:[#allocation1] sm:$0xff pattern:$0x73625140]  ;;  %v90_v33 = vld.sshfl [vmem:[#allocation1 + $0x8] sm:$0xff pattern:$0x73625140] }
  0x12   :  { %95 = vst [vmem:[#allocation1] ss:$4 sm:$0xff] %v74_v28  ;;  %v93_v35 = vld.sshfl [vmem:[#allocation1 + $0x20] sm:$0xff pattern:$0x73625140]  ;;  %v129_v36 = vpack.c.bf16 %v90_v33, %v89_v32 }
  0x13   :  { %v94_v37 = vld.sshfl [vmem:[#allocation1 + $0x28] sm:$0xff pattern:$0x73625140] }
  0x14   :  { %98 = vst [vmem:[#allocation1 + $0x20] ss:$4 sm:$0xff] %v75_v30  ;;  %v145_v40 = vrot.slane %v129_v36, 3  ;;  %v130_v41 = vpack.c.bf16 %v94_v37, %v93_v35 }
  0x16   :  { %v156_v45 = vsel %vm153_vm0, %v129_v36, %v145_v40  ;;  %v146_v46 = vrot.slane %v130_v41, 3 }
  0x17   :  { %186 = vst [vmem:[%s304_s1] sm:$0x3] %v156_v45 }
  0x18   :  { %v159_v50 = vsel %vm153_vm0, %v130_v41, %v146_v46 }
  0x19   :  { %187 = vst [vmem:[%s304_s1 + $0x2] sm:$0x3] %v159_v50  ;;  %v96_v52 = vld.sshfl [vmem:[#allocation1] sm:$0xff pattern:$0x73625140] }
  0x1a   :  { %v97_v54 = vld.sshfl [vmem:[#allocation1 + $0x8] sm:$0xff pattern:$0x73625140] }
  0x1b   :  { %101 = vst [vmem:[#allocation1] ss:$4 sm:$0xff] %v76_v49  ;;  %v99_v56 = vld.sshfl [vmem:[#allocation1 + $0x20] sm:$0xff pattern:$0x73625140]  ;;  %v131_v57 = vpack.c.bf16 %v97_v54, %v96_v52 }
  0x1c   :  { %v100_v58 = vld.sshfl [vmem:[#allocation1 + $0x28] sm:$0xff pattern:$0x73625140] }
  0x1d   :  { %104 = vst [vmem:[#allocation1 + $0x20] ss:$4 sm:$0xff] %v77_v53  ;;  %v147_v60 = vrot.slane %v131_v57, 3  ;;  %v132_v61 = vpack.c.bf16 %v100_v58, %v99_v56 }
  0x1f   :  { %v162_v63 = vsel %vm153_vm0, %v131_v57, %v147_v60  ;;  %v148_v0 = vrot.slane %v132_v61, 3 }
  0x20   :  { %188 = vst [vmem:[%s304_s1 + $0x4] sm:$0x3] %v162_v63 }
  0x21   :  { %v165_v2 = vsel %vm153_vm0, %v132_v61, %v148_v0 }
  0x22   :  { %189 = vst [vmem:[%s304_s1 + $0x6] sm:$0x3] %v165_v2  ;;  %v102_v3 = vld.sshfl [vmem:[#allocation1] sm:$0xff pattern:$0x73625140] }
  0x23   :  { %v103_v5 = vld.sshfl [vmem:[#allocation1 + $0x8] sm:$0xff pattern:$0x73625140] }
  0x24   :  { %107 = vst [vmem:[#allocation1] ss:$4 sm:$0xff] %v78_v1  ;;  %v105_v6 = vld.sshfl [vmem:[#allocation1 + $0x20] sm:$0xff pattern:$0x73625140]  ;;  %v133_v7 = vpack.c.bf16 %v103_v5, %v102_v3 }
  0x25   :  { %v106_v8 = vld.sshfl [vmem:[#allocation1 + $0x28] sm:$0xff pattern:$0x73625140] }
  0x26   :  { %110 = vst [vmem:[#allocation1 + $0x20] ss:$4 sm:$0xff] %v79_v4  ;;  %v149_v9 = vrot.slane %v133_v7, 3  ;;  %v134_v10 = vpack.c.bf16 %v106_v8, %v105_v6 }
  0x28   :  { %v168_v11 = vsel %vm153_vm0, %v133_v7, %v149_v9  ;;  %v150_v12 = vrot.slane %v134_v10, 3 }
  0x29   :  { %190 = vst [vmem:[%s304_s1 + $0x8] sm:$0x3] %v168_v11 }
  0x2a   :  { %v171_v13 = vsel %vm153_vm0, %v134_v10, %v150_v12 }
  0x2b   :  { %191 = vst [vmem:[%s304_s1 + $0xa] sm:$0x3] %v171_v13  ;;  %v108_v14 = vld.sshfl [vmem:[#allocation1] sm:$0xff pattern:$0x73625140] }
  0x2c   :  { %v109_v15 = vld.sshfl [vmem:[#allocation1 + $0x8] sm:$0xff pattern:$0x73625140] }
  0x2d   :  { %v135_v16 = vpack.c.bf16 %v109_v15, %v108_v14  ;;  %v111_v17 = vld.sshfl [vmem:[#allocation1 + $0x20] sm:$0xff pattern:$0x73625140]  ;;  %v112_v18 = vld.sshfl [vmem:[#allocation1 + $0x28] sm:$0xff pattern:$0x73625140] }
  0x2e   :  { %v136_v19 = vpack.c.bf16 %v112_v18, %v111_v17 }
  0x2f   :  { %v151_v20 = vrot.slane %v135_v16, 3 }
  0x30   :  { %v152_v21 = vrot.slane %v136_v19, 3 }
  0x31   :  { %v174_v22 = vsel %vm153_vm0, %v135_v16, %v151_v20 }
  0x32   :  { %192 = vst [vmem:[%s304_s1 + $0xc] sm:$0x3] %v174_v22  ;;  %v177_v23 = vsel %vm153_vm0, %v136_v19, %v152_v21 }
  0x33   :  { %193 = vst [vmem:[%s304_s1 + $0xe] sm:$0x3] %v177_v23 }

// kernel: siamese_forward.12
= control target key start
LH: loop header
LB: loop body
LE: loop exit
PB: predicated region body
PF: predicated region fallthrough
CT: control target
= control target key end

     0   :  { %s2906_s12 = smov 0   ;;  %s2908_s13 = smov 0   ;;  %s3649_s0 = inlined_call_operand.vmem [shape: bf16[64,1152], index: 0, kind: input, shape index: {}]   ;;  %s3650_s1 = inlined_call_operand.vmem [shape: bf16[1152,256], index: 1, kind: input, shape index: {}]   ;;  %s3651_s2 = inlined_call_operand.vmem [shape: f32[3,256], index: 2, kind: input, shape index: {}]   ;;  %s3652_s3 = inlined_call_operand.vmem [shape: bf16[64,256], index: 3, kind: output, shape index: {}]  }
   0x1   :  { %s2910_s14 = smov 0   ;;  %s2912_s15 = smov 0  }
   0x2   :  { %s2914_s16 = smov 0  }
   0x3 LB: > { %s28_s17 = sadd.s32 1, %s2880_s15  ;;  %s2212_s18 = sadd.s32 4294967295, %s2884_s16   ;;  %s2884_s16 = sphi %s2914_s16, %s13_s16   ;;  %s2880_s15 = sphi %s2912_s15, %s3657_s15   ;;  %s2876_s14 = sphi %s2910_s14, %s3656_s14   ;;  %s2872_s13 = sphi %s2908_s13, %s3655_s13   ;;  %s2868_s12 = sphi %s2906_s12, %s3654_s12  }
   0x4   : > { %p30_p0 = scmp.ge.s32.totalorder %s28_s17, 2  ;;  %p76_p1 = scmp.ne.s32.totalorder %s2872_s13, %s2868_s12 }
   0x5   : > { %p77_p2 = scmp.eq.s32.totalorder %s2884_s16, 0  ;;  %p134_p4 = scmp.eq.s32.totalorder %s2212_s18, 1 }
   0x6   : > { %s3659_s17 = smov (%p30_p0, %s28_s17), 0  ;;  %s69_s20 = sadd.s32 1, %s2872_s13 }
   0x7   : > { %p78_p3 = por %p77_p2, %p76_p1  ;;  %s65_s19 = ssub.s32 %s2880_s15, %s3659_s17 }
   0x8   : > { %p67_p5 = scmp.eq.s32.totalorder %s65_s19, 0  ;;  %p2941_p6 = por %p134_p4, %p76_p1 }
   0x9   : > { %p2216_p7 = scmp.ge.s32.totalorder %s2884_s16, 2 }
   0xa   : > { %s2946_s22 = scalar_select %p67_p5, %s2872_s13, %s69_s20  }
   0xb   : > { %171 = sbr.rel (%p2216_p7) target bundleno = 165 (0xa5), region = 20 }
  0x10   : > { %174 = sbr.rel (!%p78_p3) target bundleno = 165 (0xa5), region = 24  ;;  %s176_s23 = sand.u32 (%p78_p3), 1, %s2872_s13  }
  0x11   : > { %s2217_s24 = sshll.u32 (%p78_p3), %s2880_s15, 2  ;;  %s2804_s25 = smul.u32 (%p78_p3), 576, %s176_s23 }
  0x12   : > { %s2954_s28 = scalar_lea.vmem (%p78_p3), %s3650_s1, %s2217_s24 }
  0x13   : > { %v200_v0 = vld [vmem:[%s2954_s28] sm:$0xf] (%p78_p3)  ;;  %v202_v1 = vld [vmem:[%s2954_s28 + $0x8] sm:$0xf] (%p78_p3)  ;;  %v204_v2 = vld [vmem:[%s2954_s28 + $0x10] sm:$0xf] (%p78_p3) }
  0x14   : > { %s2959_s29 = scalar_lea.vmem (%p78_p3), [#allocation3], %s2804_s25  ;;  %v206_v3 = vld [vmem:[%s2954_s28 + $0x18] sm:$0xf] (%p78_p3)  ;;  %v208_v4 = vld [vmem:[%s2954_s28 + $0x20] sm:$0xf] (%p78_p3) }
  0x15   : > { %201 = vst [vmem:[%s2959_s29] sm:$0xf] %v200_v0  ;;  %v210_v5 = vld [vmem:[%s2954_s28 + $0x28] sm:$0xf]  ;;  %v212_v6 = vld [vmem:[%s2954_s28 + $0x30] sm:$0xf] }
  0x16   : > { %203 = vst [vmem:[%s2959_s29 + $0x4] sm:$0xf] %v202_v1  ;;  %v214_v7 = vld [vmem:[%s2954_s28 + $0x38] sm:$0xf]  ;;  %v216_v8 = vld [vmem:[%s2954_s28 + $0x40] sm:$0xf] }
  0x17   : > { %205 = vst [vmem:[%s2959_s29 + $0x8] sm:$0xf] %v204_v2  ;;  %v218_v9 = vld [vmem:[%s2954_s28 + $0x48] sm:$0xf]  ;;  %v220_v10 = vld [vmem:[%s2954_s28 + $0x50] sm:$0xf] }
  0x18   : > { %207 = vst [vmem:[%s2959_s29 + $0xc] sm:$0xf] %v206_v3  ;;  %v222_v11 = vld [vmem:[%s2954_s28 + $0x58] sm:$0xf]  ;;  %v224_v12 = vld [vmem:[%s2954_s28 + $0x60] sm:$0xf] }
  0x19   : > { %209 = vst [vmem:[%s2959_s29 + $0x10] sm:$0xf] %v208_v4  ;;  %v226_v13 = vld [vmem:[%s2954_s28 + $0x68] sm:$0xf]  ;;  %v228_v14 = vld [vmem:[%s2954_s28 + $0x70] sm:$0xf] }
  0x1a   : > { %211 = vst [vmem:[%s2959_s29 + $0x14] sm:$0xf] %v210_v5  ;;  %v230_v15 = vld [vmem:[%s2954_s28 + $0x78] sm:$0xf]  ;;  %v232_v16 = vld [vmem:[%s2954_s28 + $0x80] sm:$0xf] }
  0x1b   : > { %213 = vst [vmem:[%s2959_s29 + $0x18] sm:$0xf] %v212_v6  ;;  %v234_v17 = vld [vmem:[%s2954_s28 + $0x88] sm:$0xf]  ;;  %v236_v18 = vld [vmem:[%s2954_s28 + $0x90] sm:$0xf] }
  0x1c   : > { %215 = vst [vmem:[%s2959_s29 + $0x1c] sm:$0xf] %v214_v7  ;;  %v238_v19 = vld [vmem:[%s2954_s28 + $0x98] sm:$0xf]  ;;  %v240_v20 = vld [vmem:[%s2954_s28 + $0xa0] sm:$0xf] }
  0x1d   : > { %217 = vst [vmem:[%s2959_s29 + $0x20] sm:$0xf] %v216_v8  ;;  %v242_v21 = vld [vmem:[%s2954_s28 + $0xa8] sm:$0xf]  ;;  %v244_v22 = vld [vmem:[%s2954_s28 + $0xb0] sm:$0xf] }
  0x1e   : > { %219 = vst [vmem:[%s2959_s29 + $0x24] sm:$0xf] %v218_v9  ;;  %v246_v23 = vld [vmem:[%s2954_s28 + $0xb8] sm:$0xf]  ;;  %v248_v24 = vld [vmem:[%s2954_s28 + $0xc0] sm:$0xf] }
  0x1f   : > { %221 = vst [vmem:[%s2959_s29 + $0x28] sm:$0xf] %v220_v10  ;;  %v250_v25 = vld [vmem:[%s2954_s28 + $0xc8] sm:$0xf]  ;;  %v252_v26 = vld [vmem:[%s2954_s28 + $0xd0] sm:$0xf] }
  0x20   : > { %223 = vst [vmem:[%s2959_s29 + $0x2c] sm:$0xf] %v222_v11  ;;  %v254_v27 = vld [vmem:[%s2954_s28 + $0xd8] sm:$0xf]  ;;  %v256_v28 = vld [vmem:[%s2954_s28 + $0xe0] sm:$0xf] }
  0x21   : > { %225 = vst [vmem:[%s2959_s29 + $0x30] sm:$0xf] %v224_v12  ;;  %v258_v29 = vld [vmem:[%s2954_s28 + $0xe8] sm:$0xf]  ;;  %v260_v30 = vld [vmem:[%s2954_s28 + $0xf0] sm:$0xf] }
  0x22   : > { %227 = vst [vmem:[%s2959_s29 + $0x34] sm:$0xf] %v226_v13  ;;  %v262_v31 = vld [vmem:[%s2954_s28 + $0xf8] sm:$0xf]  ;;  %v264_v32 = vld [vmem:[%s2954_s28 + $0x100] sm:$0xf] }
  0x23   : > { %229 = vst [vmem:[%s2959_s29 + $0x38] sm:$0xf] %v228_v14  ;;  %v266_v33 = vld [vmem:[%s2954_s28 + $0x108] sm:$0xf]  ;;  %v268_v34 = vld [vmem:[%s2954_s28 + $0x110] sm:$0xf] }
  0x24   : > { %231 = vst [vmem:[%s2959_s29 + $0x3c] sm:$0xf] %v230_v15  ;;  %v270_v35 = vld [vmem:[%s2954_s28 + $0x118] sm:$0xf]  ;;  %v272_v36 = vld [vmem:[%s2954_s28 + $0x120] sm:$0xf] }
  0x25   : > { %233 = vst [vmem:[%s2959_s29 + $0x40] sm:$0xf] %v232_v16  ;;  %v274_v37 = vld [vmem:[%s2954_s28 + $0x128] sm:$0xf]  ;;  %v276_v38 = vld [vmem:[%s2954_s28 + $0x130] sm:$0xf] }
  0x26   : > { %235 = vst [vmem:[%s2959_s29 + $0x44] sm:$0xf] %v234_v17  ;;  %v278_v39 = vld [vmem:[%s2954_s28 + $0x138] sm:$0xf]  ;;  %v280_v40 = vld [vmem:[%s2954_s28 + $0x140] sm:$0xf] }
  0x27   : > { %237 = vst [vmem:[%s2959_s29 + $0x48] sm:$0xf] %v236_v18  ;;  %v282_v41 = vld [vmem:[%s2954_s28 + $0x148] sm:$0xf]  ;;  %v284_v42 = vld [vmem:[%s2954_s28 + $0x150] sm:$0xf] }
  0x28   : > { %239 = vst [vmem:[%s2959_s29 + $0x4c] sm:$0xf] %v238_v19  ;;  %v286_v43 = vld [vmem:[%s2954_s28 + $0x158] sm:$0xf]  ;;  %v288_v44 = vld [vmem:[%s2954_s28 + $0x160] sm:$0xf] }
  0x29   : > { %241 = vst [vmem:[%s2959_s29 + $0x50] sm:$0xf] %v240_v20  ;;  %v290_v45 = vld [vmem:[%s2954_s28 + $0x168] sm:$0xf]  ;;  %v292_v46 = vld [vmem:[%s2954_s28 + $0x170] sm:$0xf] }
  0x2a   : > { %243 = vst [vmem:[%s2959_s29 + $0x54] sm:$0xf] %v242_v21  ;;  %v294_v47 = vld [vmem:[%s2954_s28 + $0x178] sm:$0xf]  ;;  %v296_v48 = vld [vmem:[%s2954_s28 + $0x180] sm:$0xf] }
  0x2b   : > { %245 = vst [vmem:[%s2959_s29 + $0x58] sm:$0xf] %v244_v22  ;;  %v298_v49 = vld [vmem:[%s2954_s28 + $0x188] sm:$0xf]  ;;  %v300_v50 = vld [vmem:[%s2954_s28 + $0x190] sm:$0xf] }
  0x2c   : > { %247 = vst [vmem:[%s2959_s29 + $0x5c] sm:$0xf] %v246_v23  ;;  %v302_v51 = vld [vmem:[%s2954_s28 + $0x198] sm:$0xf]  ;;  %v304_v52 = vld [vmem:[%s2954_s28 + $0x1a0] sm:$0xf] }
  0x2d   : > { %249 = vst [vmem:[%s2959_s29 + $0x60] sm:$0xf] %v248_v24  ;;  %v306_v53 = vld [vmem:[%s2954_s28 + $0x1a8] sm:$0xf]  ;;  %v308_v54 = vld [vmem:[%s2954_s28 + $0x1b0] sm:$0xf] }
  0x2e   : > { %251 = vst [vmem:[%s2959_s29 + $0x64] sm:$0xf] %v250_v25  ;;  %v310_v55 = vld [vmem:[%s2954_s28 + $0x1b8] sm:$0xf]  ;;  %v312_v56 = vld [vmem:[%s2954_s28 + $0x1c0] sm:$0xf] }
  0x2f   : > { %253 = vst [vmem:[%s2959_s29 + $0x68] sm:$0xf] %v252_v26  ;;  %v314_v57 = vld [vmem:[%s2954_s28 + $0x1c8] sm:$0xf]  ;;  %v316_v58 = vld [vmem:[%s2954_s28 + $0x1d0] sm:$0xf] }
  0x30   : > { %255 = vst [vmem:[%s2959_s29 + $0x6c] sm:$0xf] %v254_v27  ;;  %v318_v59 = vld [vmem:[%s2954_s28 + $0x1d8] sm:$0xf]  ;;  %v320_v60 = vld [vmem:[%s2954_s28 + $0x1e0] sm:$0xf] }
  0x31   : > { %257 = vst [vmem:[%s2959_s29 + $0x70] sm:$0xf] %v256_v28  ;;  %v322_v61 = vld [vmem:[%s2954_s28 + $0x1e8] sm:$0xf]  ;;  %v324_v62 = vld [vmem:[%s2954_s28 + $0x1f0] sm:$0xf] }
  0x32   : > { %259 = vst [vmem:[%s2959_s29 + $0x74] sm:$0xf] %v258_v29  ;;  %v326_v63 = vld [vmem:[%s2954_s28 + $0x1f8] sm:$0xf]  ;;  %v328_v0 = vld [vmem:[%s2954_s28 + $0x200] sm:$0xf] }
  0x33   : > { %261 = vst [vmem:[%s2959_s29 + $0x78] sm:$0xf] %v260_v30  ;;  %v330_v1 = vld [vmem:[%s2954_s28 + $0x208] sm:$0xf]  ;;  %v332_v2 = vld [vmem:[%s2954_s28 + $0x210] sm:$0xf] }
  0x34   : > { %263 = vst [vmem:[%s2959_s29 + $0x7c] sm:$0xf] %v262_v31  ;;  %v334_v3 = vld [vmem:[%s2954_s28 + $0x218] sm:$0xf]  ;;  %v336_v4 = vld [vmem:[%s2954_s28 + $0x220] sm:$0xf] }
  0x35   : > { %265 = vst [vmem:[%s2959_s29 + $0x80] sm:$0xf] %v264_v32  ;;  %v338_v5 = vld [vmem:[%s2954_s28 + $0x228] sm:$0xf]  ;;  %v340_v6 = vld [vmem:[%s2954_s28 + $0x230] sm:$0xf] }
  0x36   : > { %267 = vst [vmem:[%s2959_s29 + $0x84] sm:$0xf] %v266_v33  ;;  %v342_v7 = vld [vmem:[%s2954_s28 + $0x238] sm:$0xf]  ;;  %v344_v8 = vld [vmem:[%s2954_s28 + $0x240] sm:$0xf] }
  0x37   : > { %269 = vst [vmem:[%s2959_s29 + $0x88] sm:$0xf] %v268_v34  ;;  %v346_v9 = vld [vmem:[%s2954_s28 + $0x248] sm:$0xf]  ;;  %v348_v10 = vld [vmem:[%s2954_s28 + $0x250] sm:$0xf] }
  0x38   : > { %271 = vst [vmem:[%s2959_s29 + $0x8c] sm:$0xf] %v270_v35  ;;  %v350_v11 = vld [vmem:[%s2954_s28 + $0x258] sm:$0xf]  ;;  %v352_v12 = vld [vmem:[%s2954_s28 + $0x260] sm:$0xf] }
  0x39   : > { %273 = vst [vmem:[%s2959_s29 + $0x90] sm:$0xf] %v272_v36  ;;  %v354_v13 = vld [vmem:[%s2954_s28 + $0x268] sm:$0xf]  ;;  %v356_v14 = vld [vmem:[%s2954_s28 + $0x270] sm:$0xf] }
  0x3a   : > { %275 = vst [vmem:[%s2959_s29 + $0x94] sm:$0xf] %v274_v37  ;;  %v358_v15 = vld [vmem:[%s2954_s28 + $0x278] sm:$0xf]  ;;  %v360_v16 = vld [vmem:[%s2954_s28 + $0x280] sm:$0xf] }
  0x3b   : > { %277 = vst [vmem:[%s2959_s29 + $0x98] sm:$0xf] %v276_v38  ;;  %v362_v17 = vld [vmem:[%s2954_s28 + $0x288] sm:$0xf]  ;;  %v364_v18 = vld [vmem:[%s2954_s28 + $0x290] sm:$0xf] }
  0x3c   : > { %279 = vst [vmem:[%s2959_s29 + $0x9c] sm:$0xf] %v278_v39  ;;  %v366_v19 = vld [vmem:[%s2954_s28 + $0x298] sm:$0xf]  ;;  %v368_v20 = vld [vmem:[%s2954_s28 + $0x2a0] sm:$0xf] }
  0x3d   : > { %281 = vst [vmem:[%s2959_s29 + $0xa0] sm:$0xf] %v280_v40  ;;  %v370_v21 = vld [vmem:[%s2954_s28 + $0x2a8] sm:$0xf]  ;;  %v372_v22 = vld [vmem:[%s2954_s28 + $0x2b0] sm:$0xf] }
  0x3e   : > { %283 = vst [vmem:[%s2959_s29 + $0xa4] sm:$0xf] %v282_v41  ;;  %v374_v23 = vld [vmem:[%s2954_s28 + $0x2b8] sm:$0xf]  ;;  %v376_v24 = vld [vmem:[%s2954_s28 + $0x2c0] sm:$0xf] }
  0x3f   : > { %285 = vst [vmem:[%s2959_s29 + $0xa8] sm:$0xf] %v284_v42  ;;  %v378_v25 = vld [vmem:[%s2954_s28 + $0x2c8] sm:$0xf]  ;;  %v380_v26 = vld [vmem:[%s2954_s28 + $0x2d0] sm:$0xf] }
  0x40   : > { %287 = vst [vmem:[%s2959_s29 + $0xac] sm:$0xf] %v286_v43  ;;  %v382_v27 = vld [vmem:[%s2954_s28 + $0x2d8] sm:$0xf]  ;;  %v384_v28 = vld [vmem:[%s2954_s28 + $0x2e0] sm:$0xf] }
  0x41   : > { %289 = vst [vmem:[%s2959_s29 + $0xb0] sm:$0xf] %v288_v44  ;;  %v386_v29 = vld [vmem:[%s2954_s28 + $0x2e8] sm:$0xf]  ;;  %v388_v30 = vld [vmem:[%s2954_s28 + $0x2f0] sm:$0xf] }
  0x42   : > { %291 = vst [vmem:[%s2959_s29 + $0xb4] sm:$0xf] %v290_v45  ;;  %v390_v31 = vld [vmem:[%s2954_s28 + $0x2f8] sm:$0xf]  ;;  %v392_v32 = vld [vmem:[%s2954_s28 + $0x300] sm:$0xf] }
  0x43   : > { %293 = vst [vmem:[%s2959_s29 + $0xb8] sm:$0xf] %v292_v46  ;;  %v394_v33 = vld [vmem:[%s2954_s28 + $0x308] sm:$0xf]  ;;  %v396_v34 = vld [vmem:[%s2954_s28 + $0x310] sm:$0xf] }
  0x44   : > { %295 = vst [vmem:[%s2959_s29 + $0xbc] sm:$0xf] %v294_v47  ;;  %v398_v35 = vld [vmem:[%s2954_s28 + $0x318] sm:$0xf]  ;;  %v400_v36 = vld [vmem:[%s2954_s28 + $0x320] sm:$0xf] }
  0x45   : > { %297 = vst [vmem:[%s2959_s29 + $0xc0] sm:$0xf] %v296_v48  ;;  %v402_v37 = vld [vmem:[%s2954_s28 + $0x328] sm:$0xf]  ;;  %v404_v38 = vld [vmem:[%s2954_s28 + $0x330] sm:$0xf] }
  0x46   : > { %299 = vst [vmem:[%s2959_s29 + $0xc4] sm:$0xf] %v298_v49  ;;  %v406_v39 = vld [vmem:[%s2954_s28 + $0x338] sm:$0xf]  ;;  %v408_v40 = vld [vmem:[%s2954_s28 + $0x340] sm:$0xf] }
  0x47   : > { %301 = vst [vmem:[%s2959_s29 + $0xc8] sm:$0xf] %v300_v50  ;;  %v410_v41 = vld [vmem:[%s2954_s28 + $0x348] sm:$0xf]  ;;  %v412_v42 = vld [vmem:[%s2954_s28 + $0x350] sm:$0xf] }
  0x48   : > { %303 = vst [vmem:[%s2959_s29 + $0xcc] sm:$0xf] %v302_v51  ;;  %v414_v43 = vld [vmem:[%s2954_s28 + $0x358] sm:$0xf]  ;;  %v416_v44 = vld [vmem:[%s2954_s28 + $0x360] sm:$0xf] }
  0x49   : > { %305 = vst [vmem:[%s2959_s29 + $0xd0] sm:$0xf] %v304_v52  ;;  %v418_v45 = vld [vmem:[%s2954_s28 + $0x368] sm:$0xf]  ;;  %v420_v46 = vld [vmem:[%s2954_s28 + $0x370] sm:$0xf] }
  0x4a   : > { %307 = vst [vmem:[%s2959_s29 + $0xd4] sm:$0xf] %v306_v53  ;;  %v422_v47 = vld [vmem:[%s2954_s28 + $0x378] sm:$0xf]  ;;  %v424_v48 = vld [vmem:[%s2954_s28 + $0x380] sm:$0xf] }
  0x4b   : > { %309 = vst [vmem:[%s2959_s29 + $0xd8] sm:$0xf] %v308_v54  ;;  %v426_v49 = vld [vmem:[%s2954_s28 + $0x388] sm:$0xf]  ;;  %v428_v50 = vld [vmem:[%s2954_s28 + $0x390] sm:$0xf] }
  0x4c   : > { %311 = vst [vmem:[%s2959_s29 + $0xdc] sm:$0xf] %v310_v55  ;;  %v430_v51 = vld [vmem:[%s2954_s28 + $0x398] sm:$0xf]  ;;  %v432_v52 = vld [vmem:[%s2954_s28 + $0x3a0] sm:$0xf] }
  0x4d   : > { %313 = vst [vmem:[%s2959_s29 + $0xe0] sm:$0xf] %v312_v56  ;;  %v434_v53 = vld [vmem:[%s2954_s28 + $0x3a8] sm:$0xf]  ;;  %v436_v54 = vld [vmem:[%s2954_s28 + $0x3b0] sm:$0xf] }
  0x4e   : > { %315 = vst [vmem:[%s2959_s29 + $0xe4] sm:$0xf] %v314_v57  ;;  %v438_v55 = vld [vmem:[%s2954_s28 + $0x3b8] sm:$0xf]  ;;  %v440_v56 = vld [vmem:[%s2954_s28 + $0x3c0] sm:$0xf] }
  0x4f   : > { %317 = vst [vmem:[%s2959_s29 + $0xe8] sm:$0xf] %v316_v58  ;;  %v442_v57 = vld [vmem:[%s2954_s28 + $0x3c8] sm:$0xf]  ;;  %v444_v58 = vld [vmem:[%s2954_s28 + $0x3d0] sm:$0xf] }
  0x50   : > { %319 = vst [vmem:[%s2959_s29 + $0xec] sm:$0xf] %v318_v59  ;;  %v446_v59 = vld [vmem:[%s2954_s28 + $0x3d8] sm:$0xf] }
  0x51   : > { %321 = vst [vmem:[%s2959_s29 + $0xf0] sm:$0xf] %v320_v60  ;;  %v448_v60 = vld [vmem:[%s2954_s28 + $0x3e0] sm:$0xf] }
  0x52   : > { %323 = vst [vmem:[%s2959_s29 + $0xf4] sm:$0xf] %v322_v61  ;;  %v450_v61 = vld [vmem:[%s2954_s28 + $0x3e8] sm:$0xf] }
  0x53   : > { %325 = vst [vmem:[%s2959_s29 + $0xf8] sm:$0xf] %v324_v62  ;;  %v452_v62 = vld [vmem:[%s2954_s28 + $0x3f0] sm:$0xf] }
  0x54   : > { %327 = vst [vmem:[%s2959_s29 + $0xfc] sm:$0xf] %v326_v63  ;;  %v454_v63 = vld [vmem:[%s2954_s28 + $0x3f8] sm:$0xf] }
  0x55   : > { %329 = vst [vmem:[%s2959_s29 + $0x100] sm:$0xf] %v328_v0  ;;  %v456_v0 = vld [vmem:[%s2954_s28 + $0x400] sm:$0xf] }
  0x56   : > { %331 = vst [vmem:[%s2959_s29 + $0x104] sm:$0xf] %v330_v1  ;;  %v458_v1 = vld [vmem:[%s2954_s28 + $0x408] sm:$0xf] }
  0x57   : > { %333 = vst [vmem:[%s2959_s29 + $0x108] sm:$0xf] %v332_v2  ;;  %v460_v2 = vld [vmem:[%s2954_s28 + $0x410] sm:$0xf] }
  0x58   : > { %335 = vst [vmem:[%s2959_s29 + $0x10c] sm:$0xf] %v334_v3  ;;  %v462_v3 = vld [vmem:[%s2954_s28 + $0x418] sm:$0xf] }
  0x59   : > { %337 = vst [vmem:[%s2959_s29 + $0x110] sm:$0xf] %v336_v4  ;;  %v464_v4 = vld [vmem:[%s2954_s28 + $0x420] sm:$0xf] }
  0x5a   : > { %339 = vst [vmem:[%s2959_s29 + $0x114] sm:$0xf] %v338_v5  ;;  %v466_v5 = vld [vmem:[%s2954_s28 + $0x428] sm:$0xf] }
  0x5b   : > { %341 = vst [vmem:[%s2959_s29 + $0x118] sm:$0xf] %v340_v6  ;;  %v468_v6 = vld [vmem:[%s2954_s28 + $0x430] sm:$0xf] }
  0x5c   : > { %343 = vst [vmem:[%s2959_s29 + $0x11c] sm:$0xf] %v342_v7  ;;  %v470_v7 = vld [vmem:[%s2954_s28 + $0x438] sm:$0xf] }
  0x5d   : > { %345 = vst [vmem:[%s2959_s29 + $0x120] sm:$0xf] %v344_v8  ;;  %v472_v8 = vld [vmem:[%s2954_s28 + $0x440] sm:$0xf] }
  0x5e   : > { %347 = vst [vmem:[%s2959_s29 + $0x124] sm:$0xf] %v346_v9  ;;  %v474_v9 = vld [vmem:[%s2954_s28 + $0x448] sm:$0xf] }
  0x5f   : > { %349 = vst [vmem:[%s2959_s29 + $0x128] sm:$0xf] %v348_v10  ;;  %v476_v10 = vld [vmem:[%s2954_s28 + $0x450] sm:$0xf] }
  0x60   : > { %351 = vst [vmem:[%s2959_s29 + $0x12c] sm:$0xf] %v350_v11  ;;  %v478_v11 = vld [vmem:[%s2954_s28 + $0x458] sm:$0xf] }
  0x61   : > { %353 = vst [vmem:[%s2959_s29 + $0x130] sm:$0xf] %v352_v12  ;;  %v480_v12 = vld [vmem:[%s2954_s28 + $0x460] sm:$0xf] }
  0x62   : > { %355 = vst [vmem:[%s2959_s29 + $0x134] sm:$0xf] %v354_v13  ;;  %v482_v13 = vld [vmem:[%s2954_s28 + $0x468] sm:$0xf] }
  0x63   : > { %357 = vst [vmem:[%s2959_s29 + $0x138] sm:$0xf] %v356_v14  ;;  %v484_v14 = vld [vmem:[%s2954_s28 + $0x470] sm:$0xf] }
  0x64   : > { %359 = vst [vmem:[%s2959_s29 + $0x13c] sm:$0xf] %v358_v15  ;;  %v486_v15 = vld [vmem:[%s2954_s28 + $0x478] sm:$0xf] }
  0x65   : > { %361 = vst [vmem:[%s2959_s29 + $0x140] sm:$0xf] %v360_v16 }
  0x66   : > { %363 = vst [vmem:[%s2959_s29 + $0x144] sm:$0xf] %v362_v17 }
  0x67   : > { %365 = vst [vmem:[%s2959_s29 + $0x148] sm:$0xf] %v364_v18 }
  0x68   : > { %367 = vst [vmem:[%s2959_s29 + $0x14c] sm:$0xf] %v366_v19 }
  0x69   : > { %369 = vst [vmem:[%s2959_s29 + $0x150] sm:$0xf] %v368_v20 }
  0x6a   : > { %371 = vst [vmem:[%s2959_s29 + $0x154] sm:$0xf] %v370_v21 }
  0x6b   : > { %373 = vst [vmem:[%s2959_s29 + $0x158] sm:$0xf] %v372_v22 }
  0x6c   : > { %375 = vst [vmem:[%s2959_s29 + $0x15c] sm:$0xf] %v374_v23 }
  0x6d   : > { %377 = vst [vmem:[%s2959_s29 + $0x160] sm:$0xf] %v376_v24 }
  0x6e   : > { %379 = vst [vmem:[%s2959_s29 + $0x164] sm:$0xf] %v378_v25 }
  0x6f   : > { %381 = vst [vmem:[%s2959_s29 + $0x168] sm:$0xf] %v380_v26 }
  0x70   : > { %383 = vst [vmem:[%s2959_s29 + $0x16c] sm:$0xf] %v382_v27 }
  0x71   : > { %385 = vst [vmem:[%s2959_s29 + $0x170] sm:$0xf] %v384_v28 }
  0x72   : > { %387 = vst [vmem:[%s2959_s29 + $0x174] sm:$0xf] %v386_v29 }
  0x73   : > { %389 = vst [vmem:[%s2959_s29 + $0x178] sm:$0xf] %v388_v30 }
  0x74   : > { %391 = vst [vmem:[%s2959_s29 + $0x17c] sm:$0xf] %v390_v31 }
  0x75   : > { %393 = vst [vmem:[%s2959_s29 + $0x180] sm:$0xf] %v392_v32 }
  0x76   : > { %395 = vst [vmem:[%s2959_s29 + $0x184] sm:$0xf] %v394_v33 }
  0x77   : > { %397 = vst [vmem:[%s2959_s29 + $0x188] sm:$0xf] %v396_v34 }
  0x78   : > { %399 = vst [vmem:[%s2959_s29 + $0x18c] sm:$0xf] %v398_v35 }
  0x79   : > { %401 = vst [vmem:[%s2959_s29 + $0x190] sm:$0xf] %v400_v36 }
  0x7a   : > { %403 = vst [vmem:[%s2959_s29 + $0x194] sm:$0xf] %v402_v37 }
  0x7b   : > { %405 = vst [vmem:[%s2959_s29 + $0x198] sm:$0xf] %v404_v38 }
  0x7c   : > { %407 = vst [vmem:[%s2959_s29 + $0x19c] sm:$0xf] %v406_v39 }
  0x7d   : > { %409 = vst [vmem:[%s2959_s29 + $0x1a0] sm:$0xf] %v408_v40 }
  0x7e   : > { %411 = vst [vmem:[%s2959_s29 + $0x1a4] sm:$0xf] %v410_v41 }
  0x7f   : > { %413 = vst [vmem:[%s2959_s29 + $0x1a8] sm:$0xf] %v412_v42 }
  0x80   : > { %415 = vst [vmem:[%s2959_s29 + $0x1ac] sm:$0xf] %v414_v43 }
  0x81   : > { %417 = vst [vmem:[%s2959_s29 + $0x1b0] sm:$0xf] %v416_v44 }
  0x82   : > { %419 = vst [vmem:[%s2959_s29 + $0x1b4] sm:$0xf] %v418_v45 }
  0x83   : > { %421 = vst [vmem:[%s2959_s29 + $0x1b8] sm:$0xf] %v420_v46 }
  0x84   : > { %423 = vst [vmem:[%s2959_s29 + $0x1bc] sm:$0xf] %v422_v47 }
  0x85   : > { %425 = vst [vmem:[%s2959_s29 + $0x1c0] sm:$0xf] %v424_v48 }
  0x86   : > { %427 = vst [vmem:[%s2959_s29 + $0x1c4] sm:$0xf] %v426_v49 }
  0x87   : > { %429 = vst [vmem:[%s2959_s29 + $0x1c8] sm:$0xf] %v428_v50 }
  0x88   : > { %431 = vst [vmem:[%s2959_s29 + $0x1cc] sm:$0xf] %v430_v51 }
  0x89   : > { %433 = vst [vmem:[%s2959_s29 + $0x1d0] sm:$0xf] %v432_v52 }
  0x8a   : > { %435 = vst [vmem:[%s2959_s29 + $0x1d4] sm:$0xf] %v434_v53 }
  0x8b   : > { %437 = vst [vmem:[%s2959_s29 + $0x1d8] sm:$0xf] %v436_v54 }
  0x8c   : > { %439 = vst [vmem:[%s2959_s29 + $0x1dc] sm:$0xf] %v438_v55 }
  0x8d   : > { %441 = vst [vmem:[%s2959_s29 + $0x1e0] sm:$0xf] %v440_v56 }
  0x8e   : > { %443 = vst [vmem:[%s2959_s29 + $0x1e4] sm:$0xf] %v442_v57 }
  0x8f   : > { %445 = vst [vmem:[%s2959_s29 + $0x1e8] sm:$0xf] %v444_v58 }
  0x90   : > { %447 = vst [vmem:[%s2959_s29 + $0x1ec] sm:$0xf] %v446_v59 }
  0x91   : > { %449 = vst [vmem:[%s2959_s29 + $0x1f0] sm:$0xf] %v448_v60 }
  0x92   : > { %451 = vst [vmem:[%s2959_s29 + $0x1f4] sm:$0xf] %v450_v61 }
  0x93   : > { %453 = vst [vmem:[%s2959_s29 + $0x1f8] sm:$0xf] %v452_v62 }
  0x94   : > { %455 = vst [vmem:[%s2959_s29 + $0x1fc] sm:$0xf] %v454_v63 }
  0x95   : > { %457 = vst [vmem:[%s2959_s29 + $0x200] sm:$0xf] %v456_v0 }
  0x96   : > { %459 = vst [vmem:[%s2959_s29 + $0x204] sm:$0xf] %v458_v1 }
  0x97   : > { %461 = vst [vmem:[%s2959_s29 + $0x208] sm:$0xf] %v460_v2 }
  0x98   : > { %463 = vst [vmem:[%s2959_s29 + $0x20c] sm:$0xf] %v462_v3 }
  0x99   : > { %465 = vst [vmem:[%s2959_s29 + $0x210] sm:$0xf] %v464_v4 }
  0x9a   : > { %467 = vst [vmem:[%s2959_s29 + $0x214] sm:$0xf] %v466_v5 }
  0x9b   : > { %469 = vst [vmem:[%s2959_s29 + $0x218] sm:$0xf] %v468_v6 }
  0x9c   : > { %471 = vst [vmem:[%s2959_s29 + $0x21c] sm:$0xf] %v470_v7 }
  0x9d   : > { %473 = vst [vmem:[%s2959_s29 + $0x220] sm:$0xf] %v472_v8 }
  0x9e   : > { %475 = vst [vmem:[%s2959_s29 + $0x224] sm:$0xf] %v474_v9 }
  0x9f   : > { %477 = vst [vmem:[%s2959_s29 + $0x228] sm:$0xf] %v476_v10 }
  0xa0   : > { %479 = vst [vmem:[%s2959_s29 + $0x22c] sm:$0xf] %v478_v11 }
  0xa1   : > { %481 = vst [vmem:[%s2959_s29 + $0x230] sm:$0xf] %v480_v12 }
  0xa2   : > { %483 = vst [vmem:[%s2959_s29 + $0x234] sm:$0xf] %v482_v13 }
  0xa3   : > { %485 = vst [vmem:[%s2959_s29 + $0x238] sm:$0xf] %v484_v14 }
  0xa4   : > { %487 = vst [vmem:[%s2959_s29 + $0x23c] sm:$0xf] %v486_v15 }
  0xa5 PF: > { %p2218_p8 = scmp.ge.s32.totalorder %s2884_s16, 1  ;;  %p805_p9 = scmp.lt.s32.totalorder %s2884_s16, 3 }
  0xa7   : > { %p806_p10 = pnand %p2218_p8, %p805_p9 }
  0xa8   : > { %s812_s30 = sand.u32 (!%p806_p10), 1, %s2868_s12   ;;  %p861_p11 = scmp.lt.s32.totalorder (!%p806_p10), %s2876_s14, 1 }
  0xa9   : > { %809 = sbr.rel (%p806_p10) target bundleno = 512 (0x200), region = 69  ;;  %s2219_s23 = sshll.u32 (!%p806_p10), %s812_s30, 5 }
  0xaa   : > { %s2805_s4 = smul.u32 (!%p806_p10), 576, %s812_s30  ;;  %s3588_s24 = scalar_lea.vmem (!%p806_p10), [#allocation4], %s2219_s23 }
  0xac   : > { %s3251_s5 = scalar_lea.vmem (!%p806_p10), [#allocation3], %s2805_s4 }
  0xae   : > { %v2700_v16 = vld [vmem:[%s3251_s5 + $0x38] sm:$0xff]  ;;  %v2699_v18 = vld [vmem:[%s3251_s5 + $0x30] sm:$0xff]  ;;  %v2698_v22 = vld [vmem:[%s3251_s5 + $0x28] sm:$0xff]  ;;  %s862_s10 = scalar_select %p861_p11, %s2876_s14, 1 }
  0xaf   : > { %v2716_v17 = vld [vmem:[%s3251_s5 + $0xb8] sm:$0xff]  ;;  %2788 = vmatpush.bf16.msra.mxu1 %v2700_v16  ;;  %1686 = vmatpush.bf16.msra.mxu0 %v2700_v16  ;;  %v2715_v19 = vld [vmem:[%s3251_s5 + $0xb0] sm:$0xff]  ;;  %v2714_v23 = vld [vmem:[%s3251_s5 + $0xa8] sm:$0xff]  ;;  %s2654_s12 = sshll.u32 (%p2941_p6), %s2876_s14, 2 }
  0xb0   : > { %1744 = vmatpush.bf16.msra.mxu2 %v2716_v17  ;;  %v2724_v20 = vld [vmem:[%s3251_s5 + $0xf8] sm:$0xff]  ;;  %v2723_v21 = vld [vmem:[%s3251_s5 + $0xf0] sm:$0xff]  ;;  %v2722_v24 = vld [vmem:[%s3251_s5 + $0xe8] sm:$0xff]  ;;  %s2220_s11 = sshll.u32 %s862_s10, 2  ;;  %s2037_s26 = scalar_lea.vmem (%p2941_p6), %s3652_s3, %s2654_s12 }
  0xb1   : > { %1773 = vmatpush.bf16.msra.mxu3 %v2724_v20  ;;  %v2697_v25 = vld [vmem:[%s3251_s5 + $0x20] sm:$0xff]  ;;  %v2696_v28 = vld [vmem:[%s3251_s5 + $0x18] sm:$0xff]  ;;  %v2695_v31 = vld [vmem:[%s3251_s5 + $0x10] sm:$0xff]  ;;  %s864_s20 = scalar_lea.vmem %s3651_s2, %s2220_s11 }
  0xb2   : > { %v2713_v26 = vld [vmem:[%s3251_s5 + $0xa0] sm:$0xff]  ;;  %v2712_v29 = vld [vmem:[%s3251_s5 + $0x98] sm:$0xff]  ;;  %v2711_v32 = vld [vmem:[%s3251_s5 + $0x90] sm:$0xff] }
  0xb3   : > { %2789 = vmatpush.bf16.msra.mxu1 %v2699_v18  ;;  %1687 = vmatpush.bf16.msra.mxu0 %v2699_v18  ;;  %v2721_v27 = vld [vmem:[%s3251_s5 + $0xe0] sm:$0xff]  ;;  %v2720_v30 = vld [vmem:[%s3251_s5 + $0xd8] sm:$0xff]  ;;  %v2719_v33 = vld [vmem:[%s3251_s5 + $0xd0] sm:$0xff] }
  0xb4   : > { %1745 = vmatpush.bf16.msra.mxu2 %v2715_v19  ;;  %v2694_v34 = vld [vmem:[%s3251_s5 + $0x8] sm:$0xff]  ;;  %v2295_v36 = vld [vmem:[%s3649_s0 + $0x90] sm:$0xf]  ;;  %v2693_v37 = vld [vmem:[%s3251_s5] sm:$0xff] }
  0xb5   : > { %1774 = vmatpush.bf16.msra.mxu3 %v2723_v21  ;;  %v2710_v35 = vld [vmem:[%s3251_s5 + $0x88] sm:$0xff]  ;;  %v2679_v38 = vld [vmem:[%s3649_s0 + $0xb0] sm:$0xf0]  ;;  %v2708_v40 = vld [vmem:[%s3251_s5 + $0x78] sm:$0xff] }
  0xb6   : > { %v2718_v39 = vld [vmem:[%s3251_s5 + $0xc8] sm:$0xff]  ;;  %v2223_v41 = vld [vmem:[%s3649_s0] sm:$0xf]  ;;  %v2661_v42 = vld [vmem:[%s3649_s0 + $0x20] sm:$0xf0]  ;;  %v2296_v48 = vor.u32 %v2679_v38, %v2295_v36 }
  0xb7   : > { %2790 = vmatpush.bf16.msra.mxu1 %v2698_v22  ;;  %1688 = vmatpush.bf16.msra.mxu0 %v2698_v22  ;;  %v2709_v43 = vld [vmem:[%s3251_s5 + $0x80] sm:$0xff]  ;;  %v2231_v44 = vld [vmem:[%s3649_s0 + $0x8] sm:$0xf]  ;;  %v2662_v45 = vld [vmem:[%s3649_s0 + $0x28] sm:$0xf0]  ;;  %v2224_v49 = vor.u32 %v2661_v42, %v2223_v41 }
  0xb8   : > { %1746 = vmatpush.bf16.msra.mxu2 %v2714_v23  ;;  %v2732_v46 = vld [vmem:[%s3251_s5 + $0x138] sm:$0xff]  ;;  %v2232_v50 = vor.u32 %v2662_v45, %v2231_v44  ;;  %v2717_v51 = vld [vmem:[%s3251_s5 + $0xc0] sm:$0xff]  ;;  %v2658_v52 = vld [vmem:[%s3649_s0 + $0xc] sm:$0xf] }
  0xb9   : > { %1775 = vmatpush.bf16.msra.mxu3 %v2722_v24  ;;  %v2748_v47 = vld [vmem:[%s3251_s5 + $0x1b8] sm:$0xff]  ;;  %v2233_v53 = vld [vmem:[%s3649_s0 + $0x2c] sm:$0xf0]  ;;  %v2706_v59 = vld [vmem:[%s3251_s5 + $0x68] sm:$0xff] }
  0xba   : > { %v2707_v54 = vld [vmem:[%s3251_s5 + $0x70] sm:$0xff]  ;;  %v2756_v55 = vld [vmem:[%s3251_s5 + $0x1f8] sm:$0xff]  ;;  %v2236_v58 = vor.u32 %v2658_v52, %v2233_v53  ;;  %v2730_v61 = vld [vmem:[%s3251_s5 + $0x128] sm:$0xff] }
  0xbb   : > { %2791 = vmatpush.bf16.msra.mxu1 %v2697_v25  ;;  %1689 = vmatpush.bf16.msra.mxu0 %v2697_v25  ;;  %v2731_v56 = vld [vmem:[%s3251_s5 + $0x130] sm:$0xff]  ;;  %v2746_v62 = vld [vmem:[%s3251_s5 + $0x1a8] sm:$0xff]  ;;  %v2705_v63 = vld [vmem:[%s3251_s5 + $0x60] sm:$0xff] }
  0xbc   : > { %1747 = vmatpush.bf16.msra.mxu2 %v2713_v26  ;;  %v2747_v57 = vld [vmem:[%s3251_s5 + $0x1b0] sm:$0xff]  ;;  %v2754_v0 = vld [vmem:[%s3251_s5 + $0x1e8] sm:$0xff]  ;;  %v2729_v1 = vld [vmem:[%s3251_s5 + $0x120] sm:$0xff] }
  0xbd   : > { %1776 = vmatpush.bf16.msra.mxu3 %v2721_v27  ;;  %v2755_v60 = vld [vmem:[%s3251_s5 + $0x1f0] sm:$0xff]  ;;  %v2745_v2 = vld [vmem:[%s3251_s5 + $0x1a0] sm:$0xff]  ;;  %v2331_v3 = vld [vmem:[%s3649_s0 + $0xd8] sm:$0xf] }
  0xbe   : > { %v2688_v4 = vld [vmem:[%s3649_s0 + $0xf8] sm:$0xf0]  ;;  %v2259_v5 = vld [vmem:[%s3649_s0 + $0x48] sm:$0xf]  ;;  %v2670_v6 = vld [vmem:[%s3649_s0 + $0x68] sm:$0xf0] }
  0xbf   : > { %2792 = vmatpush.bf16.msra.mxu1 %v2696_v28  ;;  %1690 = vmatpush.bf16.msra.mxu0 %v2696_v28  ;;  %v2704_v7 = vld [vmem:[%s3251_s5 + $0x58] sm:$0xff]  ;;  %v2267_v8 = vld [vmem:[%s3649_s0 + $0x50] sm:$0xf]  ;;  %v2671_v9 = vld [vmem:[%s3649_s0 + $0x70] sm:$0xf0]  ;;  %v2332_v11 = vor.u32 %v2688_v4, %v2331_v3  ;;  %v2260_v12 = vor.u32 %v2670_v6, %v2259_v5 }
  0xc0   : > { %1748 = vmatpush.bf16.msra.mxu2 %v2712_v29  ;;  %v2728_v10 = vld [vmem:[%s3251_s5 + $0x118] sm:$0xff]  ;;  %v2268_v13 = vor.u32 %v2671_v9, %v2267_v8  ;;  %v2667_v14 = vld [vmem:[%s3649_s0 + $0x54] sm:$0xf]  ;;  %v2702_v20 = vld [vmem:[%s3251_s5 + $0x48] sm:$0xff] }
  0xc1   : > { %1777 = vmatpush.bf16.msra.mxu3 %v2720_v30  ;;  %v2269_v15 = vld [vmem:[%s3649_s0 + $0x74] sm:$0xf0]  ;;  %v2703_v16 = vld [vmem:[%s3251_s5 + $0x50] sm:$0xff]  ;;  %v2753_v21 = vld [vmem:[%s3251_s5 + $0x1e0] sm:$0xff] }
  0xc2   : > { %v2727_v17 = vld [vmem:[%s3251_s5 + $0x110] sm:$0xff]  ;;  %v2272_v18 = vor.u32 %v2667_v14, %v2269_v15  ;;  %v2744_v19 = vld [vmem:[%s3251_s5 + $0x198] sm:$0xff]  ;;  %v2726_v22 = vld [vmem:[%s3251_s5 + $0x108] sm:$0xff] }
  0xc3   : > { %2793 = vmatpush.bf16.msra.mxu1 %v2695_v31  ;;  %1691 = vmatpush.bf16.msra.mxu0 %v2695_v31  ;;  %v2743_v23 = vld [vmem:[%s3251_s5 + $0x190] sm:$0xff]  ;;  %v2752_v24 = vld [vmem:[%s3251_s5 + $0x1d8] sm:$0xff]  ;;  %v2701_v25 = vld [vmem:[%s3251_s5 + $0x40] sm:$0xff] }
  0xc4   : > { %1749 = vmatpush.bf16.msra.mxu2 %v2711_v32  ;;  %v2740_v26 = vld [vmem:[%s3251_s5 + $0x178] sm:$0xff]  ;;  %v2725_v27 = vld [vmem:[%s3251_s5 + $0x100] sm:$0xff]  ;;  %v2225_v30 = vld [vmem:[%s3649_s0 + $0x24] sm:$0xf0] }
  0xc5   : > { %1778 = vmatpush.bf16.msra.mxu3 %v2719_v33  ;;  %v2657_v28 = vld [vmem:[%s3649_s0 + $0x4] sm:$0xf]  ;;  %v2764_v29 = vld [vmem:[%s3251_s5 + $0x238] sm:$0xff]  ;;  %v2239_v31 = vld [vmem:[%s3649_s0 + $0x10] sm:$0xf] }
  0xc6   : > { %v2663_v32 = vld [vmem:[%s3649_s0 + $0x30] sm:$0xf0]  ;;  %v2303_v33 = vld [vmem:[%s3649_s0 + $0x98] sm:$0xf]  ;;  %v2228_v36 = vor.u32 %v2657_v28, %v2225_v30  ;;  %v2738_v42 = vld [vmem:[%s3251_s5 + $0x168] sm:$0xff] }
  0xc7   : > { %2794 = vmatpush.bf16.msra.mxu1 %v2694_v34  ;;  %1692 = vmatpush.bf16.msra.mxu0 %v2694_v34  ;;  %v2680_v34 = vld [vmem:[%s3649_s0 + $0xb8] sm:$0xf0]  ;;  %v2763_v41 = vld [vmem:[%s3251_s5 + $0x230] sm:$0xff]  ;;  %v2741_v45 = vld [vmem:[%s3251_s5 + $0x180] sm:$0xff] }
  0xc8   : > { %1750 = vmatpush.bf16.msra.mxu2 %v2710_v35  ;;  %v2739_v35 = vld [vmem:[%s3251_s5 + $0x170] sm:$0xff]  ;;  %v2304_v38 = vor.u32 %v2680_v34, %v2303_v33  ;;  %v2666_v52 = vld [vmem:[%s3649_s0 + $0x4c] sm:$0xf]  ;;  %v2760_v3 = vld [vmem:[%s3251_s5 + $0x218] sm:$0xff] }
  0xc9   : > { %1779 = vmatpush.bf16.msra.mxu3 %v2718_v39  ;;  %v2676_v39 = vld [vmem:[%s3649_s0 + $0x9c] sm:$0xf]  ;;  %v2261_v53 = vld [vmem:[%s3649_s0 + $0x6c] sm:$0xf0]  ;;  %v2733_v4 = vld [vmem:[%s3251_s5 + $0x140] sm:$0xff] }
  0xca   : > { %v2759_v5 = vld [vmem:[%s3251_s5 + $0x210] sm:$0xff]  ;;  %v2297_v8 = vld [vmem:[%s3649_s0 + $0xb4] sm:$0xf0]  ;;  %v2311_v9 = vld [vmem:[%s3649_s0 + $0xa0] sm:$0xf] }
  0xcb   : > { %2795 = vmatpush.bf16.msra.mxu1 %v2693_v37  ;;  %1693 = vmatpush.bf16.msra.mxu0 %v2693_v37  ;;  %v2240_v37 = vor.u32 %v2663_v32, %v2239_v31  ;;  %v2675_v6 = vld [vmem:[%s3649_s0 + $0x94] sm:$0xf]  ;;  %v2285_v30 = vld [vmem:[%s3649_s0 + $0x84] sm:$0xf0]  ;;  %v2241_v33 = vld [vmem:[%s3649_s0 + $0x34] sm:$0xf0] }
  0xcc   : > { %1751 = vmatpush.bf16.msra.mxu2 %v2709_v43  ;;  %v2742_v43 = vld [vmem:[%s3251_s5 + $0x188] sm:$0xff]  ;;  %v2659_v32 = vld [vmem:[%s3649_s0 + $0x14] sm:$0xf]  ;;  %v2255_v34 = vld [vmem:[%s3649_s0 + $0x20] sm:$0xf] }
  0xcd   : > { %1780 = vmatpush.bf16.msra.mxu3 %v2717_v51  ;;  %v2736_v51 = vld [vmem:[%s3251_s5 + $0x158] sm:$0xff] }
  0xce   : > { %1704 = vmatmul.bf16.vlgmr.msra.gmra.mxu1 %v2296_v48  ;;  %1694 = vmatmul.bf16.vlgmr.msra.gmra.mxu0 %v2224_v49  ;;  %v2737_v48 = vld [vmem:[%s3251_s5 + $0x160] sm:$0xff]  ;;  %v2750_v49 = vld [vmem:[%s3251_s5 + $0x1c8] sm:$0xff] }
  0xcf   : > { %1715 = vmatpush.bf16.msrb.mxu1 %v2708_v40  ;;  %1802 = vmatpush.bf16.msrb.mxu0 %v2732_v46  ;;  %v2305_v40 = vld [vmem:[%s3649_s0 + $0xbc] sm:$0xf0]  ;;  %v2751_v46 = vld [vmem:[%s3251_s5 + $0x1d0] sm:$0xff] }
  0xd0   : > { %1860 = vmatpush.bf16.msrb.mxu2 %v2748_v47  ;;  %1781 = vmatmul.bf16.vlgmr.msra.gmra.mxu3 %v2236_v58  ;;  %v2308_v44 = vor.u32 %v2676_v39, %v2305_v40  ;;  %v2762_v47 = vld [vmem:[%s3251_s5 + $0x228] sm:$0xff]  ;;  %v2735_v58 = vld [vmem:[%s3251_s5 + $0x150] sm:$0xff] }
  0xd1   : > { %1752 = vmatmul.bf16.vlgmr.msra.gmra.mxu2 %v2232_v50  ;;  %1889 = vmatpush.bf16.msrb.mxu3 %v2756_v55  ;;  %v2761_v50 = vld [vmem:[%s3251_s5 + $0x220] sm:$0xff]  ;;  %v2672_v55 = vld [vmem:[%s3649_s0 + $0x78] sm:$0xf0] }
  0xd3   : > { %1716 = vmatpush.bf16.msrb.mxu1 %v2707_v54  ;;  %1803 = vmatpush.bf16.msrb.mxu0 %v2731_v56  ;;  %v2275_v54 = vld [vmem:[%s3649_s0 + $0x58] sm:$0xf]  ;;  %v2339_v56 = vld [vmem:[%s3649_s0 + $0xe0] sm:$0xf] }
  0xd4   : > { %1861 = vmatpush.bf16.msrb.mxu2 %v2747_v57  ;;  %v2689_v57 = vld [vmem:[%s3649_s0 + $0x100] sm:$0xf0] }
  0xd5   : > { %1890 = vmatpush.bf16.msrb.mxu3 %v2755_v60  ;;  %v2276_v60 = vor.u32 %v2672_v55, %v2275_v54  ;;  %v2357_v54 = vld [vmem:[%s3649_s0 + $0x114] sm:$0xf0] }
  0xd7   : > { %1717 = vmatpush.bf16.msrb.mxu1 %v2706_v59  ;;  %1804 = vmatpush.bf16.msrb.mxu0 %v2730_v61  ;;  %v2264_v59 = vor.u32 %v2666_v52, %v2261_v53  ;;  %v2340_v61 = vor.u32 %v2689_v57, %v2339_v56  ;;  %v2687_v53 = vld [vmem:[%s3649_s0 + $0xf4] sm:$0xf]  ;;  %v2677_v56 = vld [vmem:[%s3649_s0 + $0xa4] sm:$0xf]  ;;  %v2313_v57 = vld [vmem:[%s3649_s0 + $0xc4] sm:$0xf0] }
  0xd8   : > { %1862 = vmatpush.bf16.msrb.mxu2 %v2746_v62  ;;  %v2685_v62 = vld [vmem:[%s3649_s0 + $0xe4] sm:$0xf]  ;;  %v2360_v55 = vor.u32 %v2687_v53, %v2357_v54 }
  0xd9   : > { %1891 = vmatpush.bf16.msrb.mxu3 %v2754_v0 }
  0xdb   : > { %1718 = vmatpush.bf16.msrb.mxu1 %v2705_v63  ;;  %1805 = vmatpush.bf16.msrb.mxu0 %v2729_v1  ;;  %v2341_v63 = vld [vmem:[%s3649_s0 + $0x104] sm:$0xf0] }
  0xdc   : > { %1863 = vmatpush.bf16.msrb.mxu2 %v2745_v2  ;;  %v2344_v0 = vor.u32 %v2685_v62, %v2341_v63  ;;  %v2734_v1 = vld [vmem:[%s3251_s5 + $0x148] sm:$0xff]  ;;  %v2749_v2 = vld [vmem:[%s3251_s5 + $0x1c0] sm:$0xff]  ;;  %v2316_v62 = vor.u32 %v2677_v56, %v2313_v57 }
  0xdd   : > { %1892 = vmatpush.bf16.msrb.mxu3 %v2753_v21  ;;  %v2333_v21 = vld [vmem:[%s3649_s0 + $0xfc] sm:$0xf0] }
  0xde   : > { %1709 = vmatmul.bf16.gmra.mxu1 %v2332_v11  ;;  %1699 = vmatmul.bf16.gmra.mxu0 %v2260_v12  ;;  %v2247_v11 = vld [vmem:[%s3649_s0 + $0x18] sm:$0xf]  ;;  %v2664_v12 = vld [vmem:[%s3649_s0 + $0x38] sm:$0xf0] }
  0xdf   : > { %1719 = vmatpush.bf16.msrb.mxu1 %v2704_v7  ;;  %1806 = vmatpush.bf16.msrb.mxu0 %v2728_v10  ;;  %v2758_v7 = vld [vmem:[%s3251_s5 + $0x208] sm:$0xff]  ;;  %v2681_v10 = vld [vmem:[%s3649_s0 + $0xc0] sm:$0xf0]  ;;  %v2248_v15 = vor.u32 %v2664_v12, %v2247_v11 }
  0xe0   : > { %1864 = vmatpush.bf16.msrb.mxu2 %v2744_v19  ;;  %1786 = vmatmul.bf16.gmra.mxu3 %v2272_v18  ;;  %v2312_v14 = vor.u32 %v2681_v10, %v2311_v9  ;;  %v2757_v19 = vld [vmem:[%s3251_s5 + $0x200] sm:$0xff] }
  0xe1   : > { %1757 = vmatmul.bf16.gmra.mxu2 %v2268_v13  ;;  %1893 = vmatpush.bf16.msrb.mxu3 %v2752_v24  ;;  %v2300_v13 = vor.u32 %v2675_v6, %v2297_v8  ;;  %v2283_v24 = vld [vmem:[%s3649_s0 + $0x60] sm:$0xf]  ;;  %v2349_v8 = vld [vmem:[%s3649_s0 + $0x10c] sm:$0xf0] }
  0xe3   : > { %1720 = vmatpush.bf16.msrb.mxu1 %v2703_v16  ;;  %1807 = vmatpush.bf16.msrb.mxu0 %v2727_v17  ;;  %v2660_v16 = vld [vmem:[%s3649_s0 + $0x1c] sm:$0xf]  ;;  %v2249_v17 = vld [vmem:[%s3649_s0 + $0x3c] sm:$0xf0] }
  0xe4   : > { %1865 = vmatpush.bf16.msrb.mxu2 %v2743_v23  ;;  %v2252_v18 = vor.u32 %v2660_v16, %v2249_v17  ;;  %v2690_v23 = vld [vmem:[%s3649_s0 + $0x108] sm:$0xf0] }
  0xe5   : > { %1894 = vmatpush.bf16.msrb.mxu3 %v2751_v46  ;;  %v2291_v46 = vld [vmem:[%s3649_s0 + $0x68] sm:$0xf] }
  0xe7   : > { %1721 = vmatpush.bf16.msrb.mxu1 %v2702_v20  ;;  %1808 = vmatpush.bf16.msrb.mxu0 %v2726_v22  ;;  %v2684_v20 = vld [vmem:[%s3649_s0 + $0xdc] sm:$0xf]  ;;  %v2347_v22 = vld [vmem:[%s3649_s0 + $0xe8] sm:$0xf] }
  0xe8   : > { %1866 = vmatpush.bf16.msrb.mxu2 %v2742_v43 }
  0xe9   : > { %1895 = vmatpush.bf16.msrb.mxu3 %v2750_v49  ;;  %v2691_v49 = vld [vmem:[%s3649_s0 + $0x110] sm:$0xf0] }
  0xeb   : > { %1722 = vmatpush.bf16.msrb.mxu1 %v2701_v25  ;;  %1809 = vmatpush.bf16.msrb.mxu0 %v2725_v27  ;;  %v2673_v25 = vld [vmem:[%s3649_s0 + $0x80] sm:$0xf0]  ;;  %v2348_v27 = vor.u32 %v2690_v23, %v2347_v22 }
  0xec   : > { %1867 = vmatpush.bf16.msrb.mxu2 %v2741_v45  ;;  %v2284_v28 = vor.u32 %v2673_v25, %v2283_v24  ;;  %v2277_v45 = vld [vmem:[%s3649_s0 + $0x7c] sm:$0xf0] }
  0xed   : > { %1896 = vmatpush.bf16.msrb.mxu3 %v2749_v2 }
  0xee   : > { %1723 = vmatmul.bf16.vlgmr.msrb.gmra.mxu1 %v2228_v36  ;;  %1810 = vmatmul.bf16.vlgmr.msrb.gmra.mxu0 %v2240_v37  ;;  %v2319_v36 = vld [vmem:[%s3649_s0 + $0xa8] sm:$0xf]  ;;  %v2682_v37 = vld [vmem:[%s3649_s0 + $0xc8] sm:$0xf0] }
  0xef   : > { %1831 = vmatpush.bf16.msra.mxu1 %v2740_v26  ;;  %1918 = vmatpush.bf16.msra.mxu0 %v2764_v29  ;;  %v2336_v26 = vor.u32 %v2684_v20, %v2333_v21  ;;  %v2320_v40 = vor.u32 %v2682_v37, %v2319_v36 }
  0xf0   : > { %1791 = vmatmul.bf16.gmra.mxu3 %v2308_v44  ;;  %2796 = vmatpush.bf16.msra.mxu2 %v2764_v29  ;;  %v2669_v29 = vld [vmem:[%s3649_s0 + $0x64] sm:$0xf]  ;;  %v2668_v44 = vld [vmem:[%s3649_s0 + $0x5c] sm:$0xf] }
  0xf1   : > { %1762 = vmatmul.bf16.gmra.mxu2 %v2304_v38  ;;  %v2288_v31 = vor.u32 %v2669_v29, %v2285_v30  ;;  %v2244_v38 = vor.u32 %v2659_v32, %v2241_v33 }
  0xf3   : > { %1832 = vmatpush.bf16.msra.mxu1 %v2739_v35  ;;  %1919 = vmatpush.bf16.msra.mxu0 %v2763_v41  ;;  %v2665_v35 = vld [vmem:[%s3649_s0 + $0x40] sm:$0xf0] }
  0xf4   : > { %2797 = vmatpush.bf16.msra.mxu2 %v2763_v41  ;;  %v2256_v39 = vor.u32 %v2665_v35, %v2255_v34  ;;  %v2678_v41 = vld [vmem:[%s3649_s0 + $0xac] sm:$0xf] }
  0xf7   : > { %1833 = vmatpush.bf16.msra.mxu1 %v2738_v42  ;;  %1920 = vmatpush.bf16.msra.mxu0 %v2762_v47  ;;  %v2321_v42 = vld [vmem:[%s3649_s0 + $0xcc] sm:$0xf0] }
  0xf8   : > { %2798 = vmatpush.bf16.msra.mxu2 %v2762_v47  ;;  %v2324_v43 = vor.u32 %v2678_v41, %v2321_v42  ;;  %v2674_v47 = vld [vmem:[%s3649_s0 + $0x88] sm:$0xf0] }
  0xfb   : > { %1834 = vmatpush.bf16.msra.mxu1 %v2737_v48  ;;  %1921 = vmatpush.bf16.msra.mxu0 %v2761_v50  ;;  %v2355_v48 = vld [vmem:[%s3649_s0 + $0xf0] sm:$0xf] }
  0xfc   : > { %2799 = vmatpush.bf16.msra.mxu2 %v2761_v50  ;;  %v2280_v50 = vor.u32 %v2668_v44, %v2277_v45  ;;  %v2356_v52 = vor.u32 %v2691_v49, %v2355_v48 }
  0xfe   : > { %1728 = vmatmul.bf16.gmra.mxu1 %v2264_v59  ;;  %1815 = vmatmul.bf16.gmra.mxu0 %v2276_v60  ;;  %v2683_v59 = vld [vmem:[%s3649_s0 + $0xd0] sm:$0xf0]  ;;  %v2363_v60 = vld [vmem:[%s3649_s0 + $0xf8] sm:$0xf] }
  0xff   : > { %1835 = vmatpush.bf16.msra.mxu1 %v2736_v51  ;;  %1922 = vmatpush.bf16.msra.mxu0 %v2760_v3  ;;  %v2292_v51 = vor.u32 %v2674_v47, %v2291_v46 }
 0x100   : > { %1796 = vmatmul.bf16.gmra.mxu3 %v2344_v0  ;;  %2800 = vmatpush.bf16.msra.mxu2 %v2760_v3 }
 0x101   : > { %1767 = vmatmul.bf16.gmra.mxu2 %v2340_v61  ;;  %v2692_v61 = vld [vmem:[%s3649_s0 + $0x118] sm:$0xf0] }
 0x102   : > { %v2364_v2 = vor.u32 %v2692_v61, %v2363_v60 }
 0x103   : > { %1836 = vmatpush.bf16.msra.mxu1 %v2735_v58  ;;  %1923 = vmatpush.bf16.msra.mxu0 %v2759_v5  ;;  %v2327_v58 = vld [vmem:[%s3649_s0 + $0xb0] sm:$0xf] }
 0x104   : > { %2801 = vmatpush.bf16.msra.mxu2 %v2759_v5  ;;  %v2328_v63 = vor.u32 %v2683_v59, %v2327_v58 }
 0x107   : > { %1837 = vmatpush.bf16.msra.mxu1 %v2734_v1  ;;  %1924 = vmatpush.bf16.msra.mxu0 %v2758_v7 }
 0x108   : > { %2802 = vmatpush.bf16.msra.mxu2 %v2758_v7  ;;  %v2686_v7 = vld [vmem:[%s3649_s0 + $0xec] sm:$0xf] }
 0x109   : > { %v2352_v9 = vor.u32 %v2686_v7, %v2349_v8 }
 0x10b   : > { %1838 = vmatpush.bf16.msra.mxu1 %v2733_v4  ;;  %1925 = vmatpush.bf16.msra.mxu0 %v2757_v19 }
 0x10c   : > { %2803 = vmatpush.bf16.msra.mxu2 %v2757_v19 }
 0x10e   : > { %1733 = vmatmul.bf16.gmra.mxu1 %v2300_v13  ;;  %1820 = vmatmul.bf16.gmra.mxu0 %v2312_v14 }
 0x110   : > { %1897 = vmatmul.bf16.vlgmr.msrb.gmra.mxu3 %v2252_v18 }
 0x111   : > { %1868 = vmatmul.bf16.vlgmr.msrb.gmra.mxu2 %v2248_v15 }
 0x11e   : > { %1738 = vmatmul.bf16.gmra.mxu1 %v2336_v26  ;;  %1825 = vmatmul.bf16.gmra.mxu0 %v2348_v27 }
 0x120   : > { %1902 = vmatmul.bf16.gmra.mxu3 %v2288_v31 }
 0x121   : > { %1873 = vmatmul.bf16.gmra.mxu2 %v2284_v28 }
 0x12e   : > { %1839 = vmatmul.bf16.vlgmr.msra.gmra.mxu1 %v2244_v38  ;;  %1926 = vmatmul.bf16.vlgmr.msra.gmra.mxu0 %v2256_v39 }
 0x130   : > { %1907 = vmatmul.bf16.gmra.mxu3 %v2324_v43 }
 0x131   : > { %1878 = vmatmul.bf16.gmra.mxu2 %v2320_v40 }
 0x13e   : > { %1844 = vmatmul.bf16.gmra.mxu1 %v2280_v50  ;;  %1931 = vmatmul.bf16.gmra.mxu0 %v2292_v51 }
 0x140   : > { %1912 = vmatmul.bf16.gmra.mxu3 %v2360_v55 }
 0x141   : > { %1883 = vmatmul.bf16.gmra.mxu2 %v2356_v52 }
 0x14b   : > { %v1705_v0 = vpop.f32.mrf.mxu1  ;;  %v1695_v1 = vpop.f32.mrf.mxu0 }
 0x14e   : > { %1849 = vmatmul.bf16.gmra.mxu1 %v2316_v62  ;;  %1936 = vmatmul.bf16.gmra.mxu0 %v2328_v63 }
 0x151   : > { %1941 = vmatmul.bf16.vlgmr.msra.gmra.mxu2 %v2364_v2 }
 0x153   : > { %v1707_v4 = vpop.f32.mrf.mxu1  ;;  %v1697_v5 = vpop.f32.mrf.mxu0 }
 0x154   : > { %v1753_v3 = vpop.f32.mrf.mxu2  ;;  %v1782_v6 = vpop.f32.mrf.mxu3 }
 0x15b   : > { %v1710_v11 = vpop.f32.mrf.mxu1  ;;  %v1700_v12 = vpop.f32.mrf.mxu0 }
 0x15c   : > { %v1755_v10 = vpop.f32.mrf.mxu2  ;;  %v3541_v13 = vpop.f32.mrf.mxu3 }
 0x15e   : > { %1854 = vmatmul.bf16.gmra.mxu1 %v2352_v9 }
 0x163   : > { %v1712_v15 = vpop.f32.mrf.mxu1  ;;  %v1702_v16 = vpop.f32.mrf.mxu0 }
 0x164   : > { %v1758_v14 = vpop.f32.mrf.mxu2  ;;  %v1787_v17 = vpop.f32.mrf.mxu3 }
 0x16b   : > { %v1724_v19 = vpop.f32.mrf.mxu1  ;;  %v1811_v20 = vpop.f32.mrf.mxu0 }
 0x16c   : > { %v1760_v18 = vpop.f32.mrf.mxu2  ;;  %v1725_v21 = vadd.f32 %v1724_v19, %v1695_v1  ;;  %v3543_v23 = vpop.f32.mrf.mxu3 }
 0x16e   : > { %v1754_v22 = vadd.f32 %v1753_v3, %v1725_v21 }
 0x170   : > { %v1783_v24 = vadd.f32 %v1782_v6, %v1754_v22 }
 0x172   : > { %v1812_v25 = vadd.f32 %v1811_v20, %v1783_v24 }
 0x173   : > { %v1726_v27 = vpop.f32.mrf.mxu1  ;;  %v1813_v28 = vpop.f32.mrf.mxu0 }
 0x174   : > { %v1763_v26 = vpop.f32.mrf.mxu2  ;;  %v1727_v29 = vadd.f32 %v1726_v27, %v1697_v5  ;;  %v1792_v31 = vpop.f32.mrf.mxu3 }
 0x176   : > { %v1756_v30 = vadd.f32 %v1755_v10, %v1727_v29 }
 0x17b   : > { %v1729_v33 = vpop.f32.mrf.mxu1  ;;  %v1816_v34 = vpop.f32.mrf.mxu0 }
 0x17c   : > { %v1765_v32 = vpop.f32.mrf.mxu2  ;;  %v1730_v35 = vadd.f32 %v1729_v33, %v1700_v12  ;;  %v3547_v40 = vpop.f32.mrf.mxu3 }
 0x17e   : > { %v1759_v36 = vadd.f32 %v1758_v14, %v1730_v35  ;;  %v1785_v14 = vadd.f32 %v3541_v13, %v1756_v30 }
 0x180   : > { %v1788_v37 = vadd.f32 %v1787_v17, %v1759_v36  ;;  %v1966_v17 = vld [vmem:[%s864_s20] sm:$0x7]  ;;  %v1814_v19 = vadd.f32 %v1813_v28, %v1785_v14 }
 0x181   : > { %v3571_v20 = vperm.slane %v1966_v17, 0  ;;  %v3574_v33 = vperm.slane %v1966_v17, 1 }
 0x182   : > { %v3545_v38 = vadd.f32 %v1816_v34, %v1788_v37 }
 0x183   : > { %v1731_v41 = vpop.f32.mrf.mxu1  ;;  %v3549_v42 = vpop.f32.mrf.mxu0 }
 0x184   : > { %v1768_v39 = vpop.f32.mrf.mxu2  ;;  %v1732_v43 = vadd.f32 %v1731_v41, %v1702_v16  ;;  %v1797_v49 = vpop.f32.mrf.mxu3 }
 0x186   : > { %v1761_v44 = vadd.f32 %v1760_v18, %v1732_v43 }
 0x188   : > { %v1790_v36 = vadd.f32 %v3543_v23, %v1761_v44 }
 0x18b   : > { %v1734_v46 = vpop.f32.mrf.mxu1  ;;  %v1821_v47 = vpop.f32.mrf.mxu0 }
 0x18c   : > { %v1770_v45 = vpop.f32.mrf.mxu2  ;;  %v1735_v48 = vadd.f32 %v1734_v46, %v1705_v0  ;;  %v3557_v58 = vpop.f32.mrf.mxu3 }
 0x18e   : > { %v1764_v50 = vadd.f32 %v1763_v26, %v1735_v48 }
 0x190   : > { %v1793_v51 = vadd.f32 %v1792_v31, %v1764_v50 }
 0x192   : > { %v3551_v52 = vadd.f32 %v1821_v47, %v1793_v51 }
 0x193   : > { %v1736_v54 = vpop.f32.mrf.mxu1  ;;  %v3553_v55 = vpop.f32.mrf.mxu0 }
 0x194   : > { %v1869_v53 = vpop.f32.mrf.mxu2  ;;  %v1737_v56 = vadd.f32 %v1736_v54, %v1707_v4  ;;  %v1898_v1 = vpop.f32.mrf.mxu3 }
 0x196   : > { %v3555_v57 = vadd.f32 %v1765_v32, %v1737_v56 }
 0x19b   : > { %v1739_v60 = vpop.f32.mrf.mxu1  ;;  %v1826_v61 = vpop.f32.mrf.mxu0 }
 0x19c   : > { %v1871_v59 = vpop.f32.mrf.mxu2  ;;  %v1740_v62 = vadd.f32 %v1739_v60, %v1710_v11  ;;  %v1900_v8 = vpop.f32.mrf.mxu3 }
 0x19e   : > { %v1769_v63 = vadd.f32 %v1768_v39, %v1740_v62  ;;  %v3580_v39 = vperm.slane %v1966_v17, 2 }
 0x1a0   : > { %v1798_v0 = vadd.f32 %v1797_v49, %v1769_v63  ;;  %v1819_v49 = vadd.f32 %v3549_v42, %v1790_v36 }
 0x1a2   : > { %v3560_v2 = vadd.f32 %v1826_v61, %v1798_v0 }
 0x1a3   : > { %v1741_v5 = vpop.f32.mrf.mxu1  ;;  %v3562_v6 = vpop.f32.mrf.mxu0 }
 0x1a4   : > { %v1874_v3 = vpop.f32.mrf.mxu2  ;;  %v1742_v4 = vadd.f32 %v1741_v5, %v1712_v15  ;;  %v1903_v26 = vpop.f32.mrf.mxu3 }
 0x1a6   : > { %v3565_v7 = vadd.f32 %v1770_v45, %v1742_v4  ;;  %v1795_v4 = vadd.f32 %v3547_v40, %v3555_v57 }
 0x1a8   : > { %v1824_v14 = vadd.f32 %v3553_v55, %v1795_v4 }
 0x1ab   : > { %v1840_v9 = vpop.f32.mrf.mxu1  ;;  %v1927_v10 = vpop.f32.mrf.mxu0 }
 0x1ac   : > { %v1841_v12 = vadd.f32 %v1840_v9, %v1812_v25  ;;  %v1876_v11 = vpop.f32.mrf.mxu2  ;;  %v1905_v45 = vpop.f32.mrf.mxu3 }
 0x1ae   : > { %v1870_v16 = vadd.f32 %v1869_v53, %v1841_v12 }
 0x1b0   : > { %v1899_v18 = vadd.f32 %v1898_v1, %v1870_v16 }
 0x1b2   : > { %v1928_v15 = vadd.f32 %v1927_v10, %v1899_v18 }
 0x1b3   : > { %v1842_v21 = vpop.f32.mrf.mxu1  ;;  %v1929_v22 = vpop.f32.mrf.mxu0 }
 0x1b4   : > { %v1843_v24 = vadd.f32 %v1842_v21, %v1814_v19  ;;  %v1976_v25 = vadd.f32 %v3571_v20, %v1928_v15  ;;  %v1879_v29 = vpop.f32.mrf.mxu2  ;;  %v1908_v61 = vpop.f32.mrf.mxu3 }
 0x1b6   : > { %v1872_v27 = vadd.f32 %v1871_v59, %v1843_v24  ;;  %v1984_v32 = vmax.f32 %v1976_v25, 0.0 }
 0x1b8   : > { %v1901_v31 = vadd.f32 %v1900_v8, %v1872_v27  ;;  %v1993_v37 = vmul.f32 %v3574_v33, %v1984_v32 }
 0x1ba   : > { %v1930_v13 = vadd.f32 %v1929_v22, %v1901_v31  ;;  %v2002_v50 = vadd.f32 %v3580_v39, %v1993_v37 }
 0x1bb   : > { %v1845_v30 = vpop.f32.mrf.mxu1  ;;  %v1932_v34 = vpop.f32.mrf.mxu0 }
 0x1bc   : > { %v1977_v28 = vadd.f32 %v3571_v20, %v1930_v13  ;;  %v1846_v35 = vadd.f32 %v1845_v30, %v3545_v38  ;;  %v1881_v48 = vpop.f32.mrf.mxu2  ;;  %v1800_v13 = vadd.f32 %v3557_v58, %v3565_v7 }
 0x1be   : > { %v1985_v41 = vmax.f32 %v1977_v28, 0.0  ;;  %v1875_v43 = vadd.f32 %v1874_v3, %v1846_v35 }
 0x1c0   : > { %v1994_v46 = vmul.f32 %v3574_v33, %v1985_v41  ;;  %v1904_v47 = vadd.f32 %v1903_v26, %v1875_v43  ;;  %v1829_v41 = vadd.f32 %v3562_v6, %v1800_v13 }
 0x1c2   : > { %v2003_v38 = vadd.f32 %v3580_v39, %v1994_v46  ;;  %v1933_v23 = vadd.f32 %v1932_v34, %v1904_v47 }
 0x1c3   : > { %v1847_v44 = vpop.f32.mrf.mxu1  ;;  %v1934_v51 = vpop.f32.mrf.mxu0 }
 0x1c4   : > { %v2768_v53 = vpack.c.bf16 %v2003_v38, %v2002_v50  ;;  %v1848_v54 = vadd.f32 %v1847_v44, %v1819_v49  ;;  %v1978_v56 = vadd.f32 %v3571_v20, %v1933_v23  ;;  %v1884_v63 = vpop.f32.mrf.mxu2 }
 0x1c6   : > { %2769 = vst [vmem:[%s3588_s24] sm:$0xff] %v2768_v53   ;;  %v1877_v59 = vadd.f32 %v1876_v11, %v1848_v54  ;;  %v1986_v62 = vmax.f32 %v1978_v56, 0.0 }
 0x1c8   : > { %v1906_v60 = vadd.f32 %v1905_v45, %v1877_v59  ;;  %v1995_v8 = vmul.f32 %v3574_v33, %v1986_v62 }
 0x1ca   : > { %v1935_v42 = vadd.f32 %v1934_v51, %v1906_v60  ;;  %v2004_v16 = vadd.f32 %v3580_v39, %v1995_v8 }
 0x1cb   : > { %v1850_v0 = vpop.f32.mrf.mxu1  ;;  %v1937_v5 = vpop.f32.mrf.mxu0 }
 0x1cc   : > { %v1979_v1 = vadd.f32 %v3571_v20, %v1935_v42  ;;  %v1851_v3 = vadd.f32 %v1850_v0, %v3551_v52  ;;  %v1910_v52 = vpop.f32.mrf.mxu3  ;;  %v1886_v22 = vpop.f32.mrf.mxu2 }
 0x1ce   : > { %v1987_v9 = vmax.f32 %v1979_v1, 0.0  ;;  %v1880_v10 = vadd.f32 %v1879_v29, %v1851_v3 }
 0x1d0   : > { %v1996_v12 = vmul.f32 %v3574_v33, %v1987_v9  ;;  %v1909_v11 = vadd.f32 %v1908_v61, %v1880_v10 }
 0x1d2   : > { %v2005_v17 = vadd.f32 %v3580_v39, %v1996_v12  ;;  %v1938_v18 = vadd.f32 %v1937_v5, %v1909_v11 }
 0x1d3   : > { %v1852_v19 = vpop.f32.mrf.mxu1  ;;  %v1939_v24 = vpop.f32.mrf.mxu0 }
 0x1d4   : > { %v2773_v15 = vpack.c.bf16 %v2005_v17, %v2004_v16  ;;  %v1853_v21 = vadd.f32 %v1852_v19, %v1824_v14  ;;  %v1980_v40 = vadd.f32 %v3571_v20, %v1938_v18  ;;  %v1913_v32 = vpop.f32.mrf.mxu3  ;;  %v1942_v35 = vpop.f32.mrf.mxu2 }
 0x1d6   : > { %2785 = vst [vmem:[%s3588_s24 + $0x8] sm:$0xff] %v2773_v15   ;;  %v1882_v57 = vadd.f32 %v1881_v48, %v1853_v21  ;;  %v1988_v25 = vmax.f32 %v1980_v40, 0.0 }
 0x1d8   : > { %v1911_v26 = vadd.f32 %v1910_v52, %v1882_v57  ;;  %v1997_v30 = vmul.f32 %v3574_v33, %v1988_v25 }
 0x1da   : > { %v1940_v27 = vadd.f32 %v1939_v24, %v1911_v26  ;;  %v2006_v43 = vadd.f32 %v3580_v39, %v1997_v30 }
 0x1db   : > { %v1855_v29 = vpop.f32.mrf.mxu1 }
 0x1dc   : > { %v1981_v55 = vadd.f32 %v3571_v20, %v1940_v27  ;;  %v1856_v31 = vadd.f32 %v1855_v29, %v3560_v2  ;;  %v1915_v49 = vpop.f32.mrf.mxu3  ;;  %v1944_v38 = vpop.f32.mrf.mxu2 }
 0x1dd   : > { %v2060_v61 = vld [vmem:[%s3588_s24 + $0xc] sm:$0xf] (%p2941_p6) }
 0x1de   : > { %v1989_v34 = vmax.f32 %v1981_v55, 0.0  ;;  %v1885_v28 = vadd.f32 %v1884_v63, %v1856_v31  ;;  %2061 = vst [vmem:[%s2037_s26 + $0x18] sm:$0xf] (%p2941_p6), %v2060_v61 }
 0x1e0   : > { %v1998_v36 = vmul.f32 %v3574_v33, %v1989_v34  ;;  %v1914_v37 = vadd.f32 %v1913_v32, %v1885_v28 }
 0x1e2   : > { %v2007_v45 = vadd.f32 %v3580_v39, %v1998_v36  ;;  %v1943_v2 = vadd.f32 %v1942_v35, %v1914_v37 }
 0x1e3   : > { %v1857_v46 = vpop.f32.mrf.mxu1 }
 0x1e4   : > { %v2778_v47 = vpack.c.bf16 %v2007_v45, %v2006_v43  ;;  %v1858_v48 = vadd.f32 %v1857_v46, %v1829_v41  ;;  %v1982_v58 = vadd.f32 %v3571_v20, %v1943_v2 }
 0x1e6   : > { %2786 = vst [vmem:[%s3588_s24 + $0x10] sm:$0xff] %v2778_v47   ;;  %v1887_v7 = vadd.f32 %v1886_v22, %v1858_v48  ;;  %v1990_v23 = vmax.f32 %v1982_v58, 0.0 }
 0x1e8   : > { %v1916_v50 = vadd.f32 %v1915_v49, %v1887_v7  ;;  %v1999_v51 = vmul.f32 %v3574_v33, %v1990_v23 }
 0x1ea   : > { %v1945_v44 = vadd.f32 %v1944_v38, %v1916_v50  ;;  %v2008_v56 = vadd.f32 %v3580_v39, %v1999_v51 }
 0x1ec   : > { %v1983_v6 = vadd.f32 %v3571_v20, %v1945_v44  ;;  %v2054_v20 = vld [vmem:[%s3588_s24] sm:$0xf] (%p2941_p6) }
 0x1ed   : > { %2055 = vst [vmem:[%s2037_s26] sm:$0xf] (%p2941_p6), %v2054_v20  ;;  %v2062_v62 = vld [vmem:[%s3588_s24 + $0x10] sm:$0xf] (%p2941_p6)  ;;  %v2064_v42 = vld [vmem:[%s3588_s24 + $0x14] sm:$0xf] (%p2941_p6) }
 0x1ee   : > { %v1991_v53 = vmax.f32 %v1983_v6, 0.0  ;;  %2063 = vst [vmem:[%s2037_s26 + $0x20] sm:$0xf] (%p2941_p6), %v2062_v62 }
 0x1ef   : > { %2065 = vst [vmem:[%s2037_s26 + $0x28] sm:$0xf] (%p2941_p6), %v2064_v42 }
 0x1f0   : > { %v2000_v54 = vmul.f32 %v3574_v33, %v1991_v53  ;;  %v2056_v33 = vld [vmem:[%s3588_s24 + $0x4] sm:$0xf] (%p2941_p6) }
 0x1f1   : > { %2057 = vst [vmem:[%s2037_s26 + $0x8] sm:$0xf] (%p2941_p6), %v2056_v33 }
 0x1f2   : > { %v2009_v59 = vadd.f32 %v3580_v39, %v2000_v54  ;;  %2032 = sbr.rel (!%p2941_p6) target bundleno = 512 (0x200), region = 85  ;;  %v2058_v39 = vld [vmem:[%s3588_s24 + $0x8] sm:$0xf] (%p2941_p6) }
 0x1f3   : > { %2059 = vst [vmem:[%s2037_s26 + $0x10] sm:$0xf] (%p2941_p6), %v2058_v39 }
 0x1f4   : > { %v2783_v60 = vpack.c.bf16 %v2009_v59, %v2008_v56 }
 0x1f6   : > { %2787 = vst [vmem:[%s3588_s24 + $0x18] sm:$0xff] %v2783_v60  }
 0x1fd   : > { %v2066_v63 = vld [vmem:[%s3588_s24 + $0x18] sm:$0xf]  ;;  %v2068_v0 = vld [vmem:[%s3588_s24 + $0x1c] sm:$0xf] }
 0x1fe   : > { %2067 = vst [vmem:[%s2037_s26 + $0x30] sm:$0xf] %v2066_v63 }
 0x1ff   : > { %2069 = vst [vmem:[%s2037_s26 + $0x38] sm:$0xf] %v2068_v0 }
 0x200 PF: > { %s13_s16 = sadd.s32 1, %s2884_s16   ;;  %s3654_s12 = smov %s2872_s13 }
 0x201   : > { %p10_p12 = scmp.ge.s32.totalorder %s13_s16, 4   ;;  %s3655_s13 = smov %s2946_s22 }
 0x202   : > { %s3656_s14 = smov %s2880_s15  ;;  %s3657_s15 = smov %s3659_s17 }
 0x203   :  { %12 = sbr.rel (!%p10_p12) target bundleno = 3 (0x3), region = 163 }

// kernel: siamese_forward.14
= control target key start
LH: loop header
LB: loop body
LE: loop exit
PB: predicated region body
PF: predicated region fallthrough
CT: control target
= control target key end

     0   :  { %s4108_s0 = inlined_call_operand.vmem [shape: bf16[16,2304], index: 0, kind: input, shape index: {}]   ;;  %s4109_s1 = inlined_call_operand.vmem [shape: bf16[2304,512], index: 1, kind: input, shape index: {}]   ;;  %s4110_s2 = inlined_call_operand.vmem [shape: f32[3,512], index: 2, kind: input, shape index: {}]   ;;  %s4111_s3 = inlined_call_operand.vmem [shape: bf16[16,512], index: 3, kind: output, shape index: {}]  }
   0x1   :  { %4114 = sst [smem:[#allocation8_spill]] %s4108_s0 }
   0x2   :  { %4115 = sst [smem:[#allocation9_spill]] %s4109_s1 }
   0x3   :  { %s3297_s12 = smov 0   ;;  %s3299_s13 = smov 0  }
   0x4   :  { %s3301_s14 = smov 0   ;;  %s3303_s15 = smov 0  }
   0x5   :  { %s3305_s16 = smov 0   ;;  %s3307_s17 = smov 0  }
   0x6   :  { %s3309_s18 = smov 0   ;;  %s3311_s19 = smov 0  }
   0x7   :  { %s3313_s20 = smov 0   ;;  %s3315_s21 = smov 0  }
   0x8   :  { %s3317_s22 = smov 0  }
   0x9 LB: > { %s2304_s23 = sadd.s32 4294967295, %s3274_s22   ;;  %s25_s24 = sadd.s32 1, %s3266_s20  ;;  %s3274_s22 = sphi %s3317_s22, %s13_s22   ;;  %s3270_s21 = sphi %s3315_s21, %s4134_s21   ;;  %s3266_s20 = sphi %s3313_s20, %s4133_s20   ;;  %s3262_s19 = sphi %s3311_s19, %s4132_s19   ;;  %s3258_s18 = sphi %s3309_s18, %s4131_s18   ;;  %s3254_s17 = sphi %s3307_s17, %s4130_s17   ;;  %s3250_s16 = sphi %s3305_s16, %s4129_s16   ;;  %s3246_s15 = sphi %s3303_s15, %s4128_s15   ;;  %s3242_s14 = sphi %s3301_s14, %s4127_s14   ;;  %s3238_s13 = sphi %s3299_s13, %s4126_s13   ;;  %s3234_s12 = sphi %s3297_s12, %s4125_s12  }
   0xa   : > { %p26_p0 = scmp.ge.s32.totalorder %s25_s24, 2  ;;  %s28_s25 = sadd.s32 1, %s3270_s21 }
   0xb   : > { %s41_s26 = sadd.s32 1, %s3254_s17  ;;  %p48_p1 = scmp.ne.s32.totalorder %s3254_s17, %s3250_s16 }
   0xc   : > { %s4136_s24 = smov (%p26_p0, %s25_s24), 0  ;;  %s4138_s25 = smov (!%p26_p0, %s28_s25), %s3270_s21 }
   0xd   : > { %4116 = sst [smem:[#allocation6_spill]] %s4136_s24  ;;  %s37_s27 = ssub.s32 %s3266_s20, %s4136_s24 }
   0xe   : > { %p49_p2 = scmp.eq.s32.totalorder %s3274_s22, 0  ;;  %p30_p3 = scmp.ge.s32.totalorder %s4138_s25, 2 }
   0xf   : > { %p39_p4 = scmp.eq.s32.totalorder %s37_s27, 0  ;;  %s69_s29 = sadd.s32 1, %s3246_s15 }
  0x10   : > { %p3364_p5 = por %p49_p2, %p48_p1  ;;  %s4140_s25 = smov (%p30_p3, %s4138_s25), 0 }
  0x11   : > { %4118 = sst [smem:[#allocation7_spill]] %s4140_s25  ;;  %s65_s4 = ssub.s32 %s3270_s21, %s4140_s25 }
  0x12   : > { %s3372_s30 = scalar_select %p39_p4, %s3254_s17, %s41_s26  }
  0x13   : > { %p76_p6 = scmp.ne.s32.totalorder %s3246_s15, %s3242_s14  ;;  %s66_s5 = sor.u32 %s65_s4, %s37_s27 }
  0x14   : > { %p121_p7 = scmp.eq.s32.totalorder %s65_s4, 0  ;;  %p67_p8 = scmp.eq.s32.totalorder %s66_s5, 0 }
  0x15   : > { %p3378_p9 = por %p76_p6, %p49_p2  ;;  %s123_s7 = sadd.s32 1, %s3238_s13 }
  0x16   : > { %p133_p10 = scmp.ne.s32.totalorder %s3238_s13, %s3234_s12  ;;  %p134_p11 = scmp.eq.s32.totalorder %s2304_s23, 3 }
  0x17   : > { %s3386_s8 = scalar_select %p67_p8, %s3246_s15, %s69_s29  }
  0x18   : > { %s3389_s9 = scalar_select %p121_p7, %s3238_s13, %s123_s7  }
  0x19   : > { %p3391_p12 = por %p134_p11, %p133_p10  ;;  %p2307_p13 = scmp.ge.s32.totalorder %s3274_s22, 4 }
  0x1b   : > { %156 = sbr.rel (%p2307_p13) target bundleno = 205 (0xcd), region = 16 }
  0x20   : > { %159 = sbr.rel (!%p3364_p5) target bundleno = 51 (0x33), region = 20  ;;  %s161_s11 = sand.u32 (%p3364_p5), 1, %s3254_s17  }
  0x21   : > { %s2939_s26 = smul.u32 (%p3364_p5), 36, %s3266_s20  ;;  %s4121_s0 = sld [smem:[#allocation8_spill]] (%p3364_p5) }
  0x22   : > { %s3095_s27 = smul.u32 (%p3364_p5), 72, %s161_s11 }
  0x24   : > { %s163_s23 = scalar_lea.vmem (%p3364_p5), [#allocation3], %s3095_s27 }
  0x27   : > { %s169_s5 = scalar_lea.vmem %s4121_s0, %s2939_s26 }
  0x28   : > { %v184_v0 = vld [vmem:[%s169_s5] sm:$0xff]  ;;  %v186_v1 = vld [vmem:[%s169_s5 + $0x8] sm:$0xff]  ;;  %v188_v2 = vld [vmem:[%s169_s5 + $0x10] sm:$0xff] }
  0x29   : > { %185 = vst [vmem:[%s163_s23] sm:$0xff] %v184_v0  ;;  %v190_v3 = vld [vmem:[%s169_s5 + $0x18] sm:$0xff]  ;;  %v192_v4 = vld [vmem:[%s169_s5 + $0x48] sm:$0xff]  ;;  %v194_v5 = vld [vmem:[%s169_s5 + $0x50] sm:$0xff] }
  0x2a   : > { %187 = vst [vmem:[%s163_s23 + $0x8] sm:$0xff] %v186_v1  ;;  %v196_v6 = vld [vmem:[%s169_s5 + $0x58] sm:$0xff]  ;;  %v198_v7 = vld [vmem:[%s169_s5 + $0x60] sm:$0xff]  ;;  %v2311_v9 = vld [vmem:[%s169_s5 + $0x68] sm:$0xf] }
  0x2b   : > { %189 = vst [vmem:[%s163_s23 + $0x10] sm:$0xff] %v188_v2  ;;  %v2309_v8 = vld [vmem:[%s169_s5 + $0x20] sm:$0xf] }
  0x2c   : > { %191 = vst [vmem:[%s163_s23 + $0x18] sm:$0xff] %v190_v3 }
  0x2d   : > { %193 = vst [vmem:[%s163_s23 + $0x24] sm:$0xff] %v192_v4 }
  0x2e   : > { %195 = vst [vmem:[%s163_s23 + $0x2c] sm:$0xff] %v194_v5 }
  0x2f   : > { %197 = vst [vmem:[%s163_s23 + $0x34] sm:$0xff] %v196_v6 }
  0x30   : > { %199 = vst [vmem:[%s163_s23 + $0x3c] sm:$0xff] %v198_v7 }
  0x31   : > { %2310 = vst [vmem:[%s163_s23 + $0x20] sm:$0xf] %v2309_v8 }
  0x32   : > { %2312 = vst [vmem:[%s163_s23 + $0x44] sm:$0xf] %v2311_v9 }
  0x33 PF: > { %217 = sbr.rel (!%p3378_p9) target bundleno = 205 (0xcd), region = 46  ;;  %s219_s28 = sand.u32 (%p3378_p9), 1, %s3246_s15  }
  0x34   : > { %s3096_s7 = smul.u32 (%p3378_p9), 1152, %s219_s28  ;;  %s2313_s11 = sshll.u32 (%p3378_p9), %s3270_s21, 1 }
  0x35   : > { %s2940_s26 = smul.u32 (%p3378_p9), 576, %s3266_s20  ;;  %s4122_s1 = sld [smem:[#allocation9_spill]] (%p3378_p9) }
  0x36   : > { %s3416_s6 = scalar_lea.vmem (%p3378_p9), [#allocation4], %s3096_s7 }
  0x37   : > { %s225_s27 = sadd.s32 (%p3378_p9), %s2940_s26, %s2313_s11 }
  0x38   : > { %s2315_s29 = sshll.u32 %s225_s27, 2 }
  0x3b   : > { %s3411_s5 = scalar_lea.vmem %s4122_s1, %s2315_s29 }
  0x3c   : > { %v542_v10 = vld [vmem:[%s3411_s5] sm:$0xff]  ;;  %v544_v11 = vld [vmem:[%s3411_s5 + $0x10] sm:$0xff] }
  0x3d   : > { %v546_v12 = vld [vmem:[%s3411_s5 + $0x20] sm:$0xff]  ;;  %543 = vst [vmem:[%s3416_s6] sm:$0xff] %v542_v10  ;;  %v548_v13 = vld [vmem:[%s3411_s5 + $0x30] sm:$0xff] }
  0x3e   : > { %545 = vst [vmem:[%s3416_s6 + $0x8] sm:$0xff] %v544_v11  ;;  %v550_v14 = vld [vmem:[%s3411_s5 + $0x40] sm:$0xff]  ;;  %v552_v15 = vld [vmem:[%s3411_s5 + $0x50] sm:$0xff] }
  0x3f   : > { %547 = vst [vmem:[%s3416_s6 + $0x10] sm:$0xff] %v546_v12  ;;  %v554_v16 = vld [vmem:[%s3411_s5 + $0x60] sm:$0xff]  ;;  %v556_v17 = vld [vmem:[%s3411_s5 + $0x70] sm:$0xff] }
  0x40   : > { %549 = vst [vmem:[%s3416_s6 + $0x18] sm:$0xff] %v548_v13  ;;  %v558_v18 = vld [vmem:[%s3411_s5 + $0x80] sm:$0xff]  ;;  %v560_v19 = vld [vmem:[%s3411_s5 + $0x90] sm:$0xff] }
  0x41   : > { %551 = vst [vmem:[%s3416_s6 + $0x20] sm:$0xff] %v550_v14  ;;  %v562_v20 = vld [vmem:[%s3411_s5 + $0xa0] sm:$0xff]  ;;  %v564_v21 = vld [vmem:[%s3411_s5 + $0xb0] sm:$0xff] }
  0x42   : > { %553 = vst [vmem:[%s3416_s6 + $0x28] sm:$0xff] %v552_v15  ;;  %v566_v22 = vld [vmem:[%s3411_s5 + $0xc0] sm:$0xff]  ;;  %v568_v23 = vld [vmem:[%s3411_s5 + $0xd0] sm:$0xff] }
  0x43   : > { %555 = vst [vmem:[%s3416_s6 + $0x30] sm:$0xff] %v554_v16  ;;  %v570_v24 = vld [vmem:[%s3411_s5 + $0xe0] sm:$0xff]  ;;  %v572_v25 = vld [vmem:[%s3411_s5 + $0xf0] sm:$0xff] }
  0x44   : > { %557 = vst [vmem:[%s3416_s6 + $0x38] sm:$0xff] %v556_v17  ;;  %v574_v26 = vld [vmem:[%s3411_s5 + $0x100] sm:$0xff]  ;;  %v576_v27 = vld [vmem:[%s3411_s5 + $0x110] sm:$0xff] }
  0x45   : > { %559 = vst [vmem:[%s3416_s6 + $0x40] sm:$0xff] %v558_v18  ;;  %v578_v28 = vld [vmem:[%s3411_s5 + $0x120] sm:$0xff]  ;;  %v580_v29 = vld [vmem:[%s3411_s5 + $0x130] sm:$0xff] }
  0x46   : > { %561 = vst [vmem:[%s3416_s6 + $0x48] sm:$0xff] %v560_v19  ;;  %v582_v30 = vld [vmem:[%s3411_s5 + $0x140] sm:$0xff]  ;;  %v584_v31 = vld [vmem:[%s3411_s5 + $0x150] sm:$0xff] }
  0x47   : > { %563 = vst [vmem:[%s3416_s6 + $0x50] sm:$0xff] %v562_v20  ;;  %v586_v32 = vld [vmem:[%s3411_s5 + $0x160] sm:$0xff]  ;;  %v588_v33 = vld [vmem:[%s3411_s5 + $0x170] sm:$0xff] }
  0x48   : > { %565 = vst [vmem:[%s3416_s6 + $0x58] sm:$0xff] %v564_v21  ;;  %v590_v34 = vld [vmem:[%s3411_s5 + $0x180] sm:$0xff]  ;;  %v592_v35 = vld [vmem:[%s3411_s5 + $0x190] sm:$0xff] }
  0x49   : > { %567 = vst [vmem:[%s3416_s6 + $0x60] sm:$0xff] %v566_v22  ;;  %v594_v36 = vld [vmem:[%s3411_s5 + $0x1a0] sm:$0xff]  ;;  %v596_v37 = vld [vmem:[%s3411_s5 + $0x1b0] sm:$0xff] }
  0x4a   : > { %569 = vst [vmem:[%s3416_s6 + $0x68] sm:$0xff] %v568_v23  ;;  %v598_v38 = vld [vmem:[%s3411_s5 + $0x1c0] sm:$0xff]  ;;  %v600_v39 = vld [vmem:[%s3411_s5 + $0x1d0] sm:$0xff] }
  0x4b   : > { %571 = vst [vmem:[%s3416_s6 + $0x70] sm:$0xff] %v570_v24  ;;  %v602_v40 = vld [vmem:[%s3411_s5 + $0x1e0] sm:$0xff]  ;;  %v604_v41 = vld [vmem:[%s3411_s5 + $0x1f0] sm:$0xff] }
  0x4c   : > { %573 = vst [vmem:[%s3416_s6 + $0x78] sm:$0xff] %v572_v25  ;;  %v606_v42 = vld [vmem:[%s3411_s5 + $0x200] sm:$0xff]  ;;  %v608_v43 = vld [vmem:[%s3411_s5 + $0x210] sm:$0xff] }
  0x4d   : > { %575 = vst [vmem:[%s3416_s6 + $0x80] sm:$0xff] %v574_v26  ;;  %v610_v44 = vld [vmem:[%s3411_s5 + $0x220] sm:$0xff]  ;;  %v612_v45 = vld [vmem:[%s3411_s5 + $0x230] sm:$0xff] }
  0x4e   : > { %577 = vst [vmem:[%s3416_s6 + $0x88] sm:$0xff] %v576_v27  ;;  %v614_v46 = vld [vmem:[%s3411_s5 + $0x240] sm:$0xff]  ;;  %v616_v47 = vld [vmem:[%s3411_s5 + $0x250] sm:$0xff] }
  0x4f   : > { %579 = vst [vmem:[%s3416_s6 + $0x90] sm:$0xff] %v578_v28  ;;  %v618_v48 = vld [vmem:[%s3411_s5 + $0x260] sm:$0xff]  ;;  %v620_v49 = vld [vmem:[%s3411_s5 + $0x270] sm:$0xff] }
  0x50   : > { %581 = vst [vmem:[%s3416_s6 + $0x98] sm:$0xff] %v580_v29  ;;  %v622_v50 = vld [vmem:[%s3411_s5 + $0x280] sm:$0xff]  ;;  %v624_v51 = vld [vmem:[%s3411_s5 + $0x290] sm:$0xff] }
  0x51   : > { %583 = vst [vmem:[%s3416_s6 + $0xa0] sm:$0xff] %v582_v30  ;;  %v626_v52 = vld [vmem:[%s3411_s5 + $0x2a0] sm:$0xff]  ;;  %v628_v53 = vld [vmem:[%s3411_s5 + $0x2b0] sm:$0xff] }
  0x52   : > { %585 = vst [vmem:[%s3416_s6 + $0xa8] sm:$0xff] %v584_v31  ;;  %v630_v54 = vld [vmem:[%s3411_s5 + $0x2c0] sm:$0xff]  ;;  %v632_v55 = vld [vmem:[%s3411_s5 + $0x2d0] sm:$0xff] }
  0x53   : > { %587 = vst [vmem:[%s3416_s6 + $0xb0] sm:$0xff] %v586_v32  ;;  %v634_v56 = vld [vmem:[%s3411_s5 + $0x2e0] sm:$0xff]  ;;  %v636_v57 = vld [vmem:[%s3411_s5 + $0x2f0] sm:$0xff] }
  0x54   : > { %589 = vst [vmem:[%s3416_s6 + $0xb8] sm:$0xff] %v588_v33  ;;  %v638_v58 = vld [vmem:[%s3411_s5 + $0x300] sm:$0xff]  ;;  %v640_v59 = vld [vmem:[%s3411_s5 + $0x310] sm:$0xff] }
  0x55   : > { %591 = vst [vmem:[%s3416_s6 + $0xc0] sm:$0xff] %v590_v34  ;;  %v642_v60 = vld [vmem:[%s3411_s5 + $0x320] sm:$0xff]  ;;  %v644_v61 = vld [vmem:[%s3411_s5 + $0x330] sm:$0xff] }
  0x56   : > { %593 = vst [vmem:[%s3416_s6 + $0xc8] sm:$0xff] %v592_v35  ;;  %v646_v62 = vld [vmem:[%s3411_s5 + $0x340] sm:$0xff]  ;;  %v648_v63 = vld [vmem:[%s3411_s5 + $0x350] sm:$0xff] }
  0x57   : > { %595 = vst [vmem:[%s3416_s6 + $0xd0] sm:$0xff] %v594_v36  ;;  %v650_v0 = vld [vmem:[%s3411_s5 + $0x360] sm:$0xff]  ;;  %v652_v1 = vld [vmem:[%s3411_s5 + $0x370] sm:$0xff] }
  0x58   : > { %597 = vst [vmem:[%s3416_s6 + $0xd8] sm:$0xff] %v596_v37  ;;  %v654_v2 = vld [vmem:[%s3411_s5 + $0x380] sm:$0xff]  ;;  %v656_v3 = vld [vmem:[%s3411_s5 + $0x390] sm:$0xff] }
  0x59   : > { %599 = vst [vmem:[%s3416_s6 + $0xe0] sm:$0xff] %v598_v38  ;;  %v658_v4 = vld [vmem:[%s3411_s5 + $0x3a0] sm:$0xff]  ;;  %v660_v5 = vld [vmem:[%s3411_s5 + $0x3b0] sm:$0xff] }
  0x5a   : > { %601 = vst [vmem:[%s3416_s6 + $0xe8] sm:$0xff] %v600_v39  ;;  %v662_v6 = vld [vmem:[%s3411_s5 + $0x3c0] sm:$0xff]  ;;  %v664_v7 = vld [vmem:[%s3411_s5 + $0x3d0] sm:$0xff] }
  0x5b   : > { %603 = vst [vmem:[%s3416_s6 + $0xf0] sm:$0xff] %v602_v40  ;;  %v666_v8 = vld [vmem:[%s3411_s5 + $0x3e0] sm:$0xff]  ;;  %v668_v9 = vld [vmem:[%s3411_s5 + $0x3f0] sm:$0xff] }
  0x5c   : > { %605 = vst [vmem:[%s3416_s6 + $0xf8] sm:$0xff] %v604_v41  ;;  %v670_v10 = vld [vmem:[%s3411_s5 + $0x400] sm:$0xff]  ;;  %v672_v11 = vld [vmem:[%s3411_s5 + $0x410] sm:$0xff] }
  0x5d   : > { %607 = vst [vmem:[%s3416_s6 + $0x100] sm:$0xff] %v606_v42  ;;  %v674_v12 = vld [vmem:[%s3411_s5 + $0x420] sm:$0xff]  ;;  %v676_v13 = vld [vmem:[%s3411_s5 + $0x430] sm:$0xff] }
  0x5e   : > { %609 = vst [vmem:[%s3416_s6 + $0x108] sm:$0xff] %v608_v43  ;;  %v678_v14 = vld [vmem:[%s3411_s5 + $0x440] sm:$0xff]  ;;  %v680_v15 = vld [vmem:[%s3411_s5 + $0x450] sm:$0xff] }
  0x5f   : > { %611 = vst [vmem:[%s3416_s6 + $0x110] sm:$0xff] %v610_v44  ;;  %v682_v16 = vld [vmem:[%s3411_s5 + $0x460] sm:$0xff]  ;;  %v684_v17 = vld [vmem:[%s3411_s5 + $0x470] sm:$0xff] }
  0x60   : > { %613 = vst [vmem:[%s3416_s6 + $0x118] sm:$0xff] %v612_v45  ;;  %v686_v18 = vld [vmem:[%s3411_s5 + $0x480] sm:$0xff]  ;;  %v688_v19 = vld [vmem:[%s3411_s5 + $0x490] sm:$0xff] }
  0x61   : > { %615 = vst [vmem:[%s3416_s6 + $0x120] sm:$0xff] %v614_v46  ;;  %v690_v20 = vld [vmem:[%s3411_s5 + $0x4a0] sm:$0xff]  ;;  %v692_v21 = vld [vmem:[%s3411_s5 + $0x4b0] sm:$0xff] }
  0x62   : > { %617 = vst [vmem:[%s3416_s6 + $0x128] sm:$0xff] %v616_v47  ;;  %v694_v22 = vld [vmem:[%s3411_s5 + $0x4c0] sm:$0xff]  ;;  %v696_v23 = vld [vmem:[%s3411_s5 + $0x4d0] sm:$0xff] }
  0x63   : > { %619 = vst [vmem:[%s3416_s6 + $0x130] sm:$0xff] %v618_v48  ;;  %v698_v24 = vld [vmem:[%s3411_s5 + $0x4e0] sm:$0xff]  ;;  %v700_v25 = vld [vmem:[%s3411_s5 + $0x4f0] sm:$0xff] }
  0x64   : > { %621 = vst [vmem:[%s3416_s6 + $0x138] sm:$0xff] %v620_v49  ;;  %v702_v26 = vld [vmem:[%s3411_s5 + $0x500] sm:$0xff]  ;;  %v704_v27 = vld [vmem:[%s3411_s5 + $0x510] sm:$0xff] }
  0x65   : > { %623 = vst [vmem:[%s3416_s6 + $0x140] sm:$0xff] %v622_v50  ;;  %v706_v28 = vld [vmem:[%s3411_s5 + $0x520] sm:$0xff]  ;;  %v708_v29 = vld [vmem:[%s3411_s5 + $0x530] sm:$0xff] }
  0x66   : > { %625 = vst [vmem:[%s3416_s6 + $0x148] sm:$0xff] %v624_v51  ;;  %v710_v30 = vld [vmem:[%s3411_s5 + $0x540] sm:$0xff]  ;;  %v712_v31 = vld [vmem:[%s3411_s5 + $0x550] sm:$0xff] }
  0x67   : > { %627 = vst [vmem:[%s3416_s6 + $0x150] sm:$0xff] %v626_v52  ;;  %v714_v32 = vld [vmem:[%s3411_s5 + $0x560] sm:$0xff]  ;;  %v716_v33 = vld [vmem:[%s3411_s5 + $0x570] sm:$0xff] }
  0x68   : > { %629 = vst [vmem:[%s3416_s6 + $0x158] sm:$0xff] %v628_v53  ;;  %v718_v34 = vld [vmem:[%s3411_s5 + $0x580] sm:$0xff]  ;;  %v720_v35 = vld [vmem:[%s3411_s5 + $0x590] sm:$0xff] }
  0x69   : > { %631 = vst [vmem:[%s3416_s6 + $0x160] sm:$0xff] %v630_v54  ;;  %v722_v36 = vld [vmem:[%s3411_s5 + $0x5a0] sm:$0xff]  ;;  %v724_v37 = vld [vmem:[%s3411_s5 + $0x5b0] sm:$0xff] }
  0x6a   : > { %633 = vst [vmem:[%s3416_s6 + $0x168] sm:$0xff] %v632_v55  ;;  %v726_v38 = vld [vmem:[%s3411_s5 + $0x5c0] sm:$0xff]  ;;  %v728_v39 = vld [vmem:[%s3411_s5 + $0x5d0] sm:$0xff] }
  0x6b   : > { %635 = vst [vmem:[%s3416_s6 + $0x170] sm:$0xff] %v634_v56  ;;  %v730_v40 = vld [vmem:[%s3411_s5 + $0x5e0] sm:$0xff]  ;;  %v732_v41 = vld [vmem:[%s3411_s5 + $0x5f0] sm:$0xff] }
  0x6c   : > { %637 = vst [vmem:[%s3416_s6 + $0x178] sm:$0xff] %v636_v57  ;;  %v734_v42 = vld [vmem:[%s3411_s5 + $0x600] sm:$0xff]  ;;  %v736_v43 = vld [vmem:[%s3411_s5 + $0x610] sm:$0xff] }
  0x6d   : > { %639 = vst [vmem:[%s3416_s6 + $0x180] sm:$0xff] %v638_v58  ;;  %v738_v44 = vld [vmem:[%s3411_s5 + $0x620] sm:$0xff]  ;;  %v740_v45 = vld [vmem:[%s3411_s5 + $0x630] sm:$0xff] }
  0x6e   : > { %641 = vst [vmem:[%s3416_s6 + $0x188] sm:$0xff] %v640_v59  ;;  %v742_v46 = vld [vmem:[%s3411_s5 + $0x640] sm:$0xff]  ;;  %v744_v47 = vld [vmem:[%s3411_s5 + $0x650] sm:$0xff] }
  0x6f   : > { %643 = vst [vmem:[%s3416_s6 + $0x190] sm:$0xff] %v642_v60  ;;  %v746_v48 = vld [vmem:[%s3411_s5 + $0x660] sm:$0xff]  ;;  %v748_v49 = vld [vmem:[%s3411_s5 + $0x670] sm:$0xff] }
  0x70   : > { %645 = vst [vmem:[%s3416_s6 + $0x198] sm:$0xff] %v644_v61  ;;  %v750_v50 = vld [vmem:[%s3411_s5 + $0x680] sm:$0xff]  ;;  %v752_v51 = vld [vmem:[%s3411_s5 + $0x690] sm:$0xff] }
  0x71   : > { %647 = vst [vmem:[%s3416_s6 + $0x1a0] sm:$0xff] %v646_v62  ;;  %v754_v52 = vld [vmem:[%s3411_s5 + $0x6a0] sm:$0xff]  ;;  %v756_v53 = vld [vmem:[%s3411_s5 + $0x6b0] sm:$0xff] }
  0x72   : > { %649 = vst [vmem:[%s3416_s6 + $0x1a8] sm:$0xff] %v648_v63  ;;  %v758_v54 = vld [vmem:[%s3411_s5 + $0x6c0] sm:$0xff]  ;;  %v760_v55 = vld [vmem:[%s3411_s5 + $0x6d0] sm:$0xff] }
  0x73   : > { %651 = vst [vmem:[%s3416_s6 + $0x1b0] sm:$0xff] %v650_v0  ;;  %v762_v56 = vld [vmem:[%s3411_s5 + $0x6e0] sm:$0xff]  ;;  %v764_v57 = vld [vmem:[%s3411_s5 + $0x6f0] sm:$0xff] }
  0x74   : > { %653 = vst [vmem:[%s3416_s6 + $0x1b8] sm:$0xff] %v652_v1  ;;  %v766_v58 = vld [vmem:[%s3411_s5 + $0x700] sm:$0xff]  ;;  %v768_v59 = vld [vmem:[%s3411_s5 + $0x710] sm:$0xff] }
  0x75   : > { %655 = vst [vmem:[%s3416_s6 + $0x1c0] sm:$0xff] %v654_v2  ;;  %v770_v60 = vld [vmem:[%s3411_s5 + $0x720] sm:$0xff]  ;;  %v772_v61 = vld [vmem:[%s3411_s5 + $0x730] sm:$0xff] }
  0x76   : > { %657 = vst [vmem:[%s3416_s6 + $0x1c8] sm:$0xff] %v656_v3  ;;  %v774_v62 = vld [vmem:[%s3411_s5 + $0x740] sm:$0xff]  ;;  %v776_v63 = vld [vmem:[%s3411_s5 + $0x750] sm:$0xff] }
  0x77   : > { %659 = vst [vmem:[%s3416_s6 + $0x1d0] sm:$0xff] %v658_v4  ;;  %v778_v0 = vld [vmem:[%s3411_s5 + $0x760] sm:$0xff]  ;;  %v780_v1 = vld [vmem:[%s3411_s5 + $0x770] sm:$0xff] }
  0x78   : > { %661 = vst [vmem:[%s3416_s6 + $0x1d8] sm:$0xff] %v660_v5  ;;  %v782_v2 = vld [vmem:[%s3411_s5 + $0x780] sm:$0xff]  ;;  %v784_v3 = vld [vmem:[%s3411_s5 + $0x790] sm:$0xff] }
  0x79   : > { %663 = vst [vmem:[%s3416_s6 + $0x1e0] sm:$0xff] %v662_v6  ;;  %v786_v4 = vld [vmem:[%s3411_s5 + $0x7a0] sm:$0xff]  ;;  %v788_v5 = vld [vmem:[%s3411_s5 + $0x7b0] sm:$0xff] }
  0x7a   : > { %665 = vst [vmem:[%s3416_s6 + $0x1e8] sm:$0xff] %v664_v7  ;;  %v790_v6 = vld [vmem:[%s3411_s5 + $0x7c0] sm:$0xff]  ;;  %v792_v7 = vld [vmem:[%s3411_s5 + $0x7d0] sm:$0xff] }
  0x7b   : > { %667 = vst [vmem:[%s3416_s6 + $0x1f0] sm:$0xff] %v666_v8  ;;  %v794_v8 = vld [vmem:[%s3411_s5 + $0x7e0] sm:$0xff] }
  0x7c   : > { %669 = vst [vmem:[%s3416_s6 + $0x1f8] sm:$0xff] %v668_v9  ;;  %v796_v9 = vld [vmem:[%s3411_s5 + $0x7f0] sm:$0xff] }
  0x7d   : > { %671 = vst [vmem:[%s3416_s6 + $0x200] sm:$0xff] %v670_v10  ;;  %v798_v10 = vld [vmem:[%s3411_s5 + $0x800] sm:$0xff] }
  0x7e   : > { %673 = vst [vmem:[%s3416_s6 + $0x208] sm:$0xff] %v672_v11  ;;  %v800_v11 = vld [vmem:[%s3411_s5 + $0x810] sm:$0xff] }
  0x7f   : > { %675 = vst [vmem:[%s3416_s6 + $0x210] sm:$0xff] %v674_v12  ;;  %v802_v12 = vld [vmem:[%s3411_s5 + $0x820] sm:$0xff] }
  0x80   : > { %677 = vst [vmem:[%s3416_s6 + $0x218] sm:$0xff] %v676_v13  ;;  %v804_v13 = vld [vmem:[%s3411_s5 + $0x830] sm:$0xff] }
  0x81   : > { %679 = vst [vmem:[%s3416_s6 + $0x220] sm:$0xff] %v678_v14  ;;  %v806_v14 = vld [vmem:[%s3411_s5 + $0x840] sm:$0xff] }
  0x82   : > { %681 = vst [vmem:[%s3416_s6 + $0x228] sm:$0xff] %v680_v15  ;;  %v808_v15 = vld [vmem:[%s3411_s5 + $0x850] sm:$0xff] }
  0x83   : > { %683 = vst [vmem:[%s3416_s6 + $0x230] sm:$0xff] %v682_v16  ;;  %v810_v16 = vld [vmem:[%s3411_s5 + $0x860] sm:$0xff] }
  0x84   : > { %685 = vst [vmem:[%s3416_s6 + $0x238] sm:$0xff] %v684_v17  ;;  %v812_v17 = vld [vmem:[%s3411_s5 + $0x870] sm:$0xff] }
  0x85   : > { %687 = vst [vmem:[%s3416_s6 + $0x240] sm:$0xff] %v686_v18  ;;  %v814_v18 = vld [vmem:[%s3411_s5 + $0x880] sm:$0xff] }
  0x86   : > { %689 = vst [vmem:[%s3416_s6 + $0x248] sm:$0xff] %v688_v19  ;;  %v816_v19 = vld [vmem:[%s3411_s5 + $0x890] sm:$0xff] }
  0x87   : > { %691 = vst [vmem:[%s3416_s6 + $0x250] sm:$0xff] %v690_v20  ;;  %v818_v20 = vld [vmem:[%s3411_s5 + $0x8a0] sm:$0xff] }
  0x88   : > { %693 = vst [vmem:[%s3416_s6 + $0x258] sm:$0xff] %v692_v21  ;;  %v820_v21 = vld [vmem:[%s3411_s5 + $0x8b0] sm:$0xff] }
  0x89   : > { %695 = vst [vmem:[%s3416_s6 + $0x260] sm:$0xff] %v694_v22  ;;  %v822_v22 = vld [vmem:[%s3411_s5 + $0x8c0] sm:$0xff] }
  0x8a   : > { %697 = vst [vmem:[%s3416_s6 + $0x268] sm:$0xff] %v696_v23  ;;  %v824_v23 = vld [vmem:[%s3411_s5 + $0x8d0] sm:$0xff] }
  0x8b   : > { %699 = vst [vmem:[%s3416_s6 + $0x270] sm:$0xff] %v698_v24  ;;  %v826_v24 = vld [vmem:[%s3411_s5 + $0x8e0] sm:$0xff] }
  0x8c   : > { %701 = vst [vmem:[%s3416_s6 + $0x278] sm:$0xff] %v700_v25  ;;  %v828_v25 = vld [vmem:[%s3411_s5 + $0x8f0] sm:$0xff] }
  0x8d   : > { %703 = vst [vmem:[%s3416_s6 + $0x280] sm:$0xff] %v702_v26 }
  0x8e   : > { %705 = vst [vmem:[%s3416_s6 + $0x288] sm:$0xff] %v704_v27 }
  0x8f   : > { %707 = vst [vmem:[%s3416_s6 + $0x290] sm:$0xff] %v706_v28 }
  0x90   : > { %709 = vst [vmem:[%s3416_s6 + $0x298] sm:$0xff] %v708_v29 }
  0x91   : > { %711 = vst [vmem:[%s3416_s6 + $0x2a0] sm:$0xff] %v710_v30 }
  0x92   : > { %713 = vst [vmem:[%s3416_s6 + $0x2a8] sm:$0xff] %v712_v31 }
  0x93   : > { %715 = vst [vmem:[%s3416_s6 + $0x2b0] sm:$0xff] %v714_v32 }
  0x94   : > { %717 = vst [vmem:[%s3416_s6 + $0x2b8] sm:$0xff] %v716_v33 }
  0x95   : > { %719 = vst [vmem:[%s3416_s6 + $0x2c0] sm:$0xff] %v718_v34 }
  0x96   : > { %721 = vst [vmem:[%s3416_s6 + $0x2c8] sm:$0xff] %v720_v35 }
  0x97   : > { %723 = vst [vmem:[%s3416_s6 + $0x2d0] sm:$0xff] %v722_v36 }
  0x98   : > { %725 = vst [vmem:[%s3416_s6 + $0x2d8] sm:$0xff] %v724_v37 }
  0x99   : > { %727 = vst [vmem:[%s3416_s6 + $0x2e0] sm:$0xff] %v726_v38 }
  0x9a   : > { %729 = vst [vmem:[%s3416_s6 + $0x2e8] sm:$0xff] %v728_v39 }
  0x9b   : > { %731 = vst [vmem:[%s3416_s6 + $0x2f0] sm:$0xff] %v730_v40 }
  0x9c   : > { %733 = vst [vmem:[%s3416_s6 + $0x2f8] sm:$0xff] %v732_v41 }
  0x9d   : > { %735 = vst [vmem:[%s3416_s6 + $0x300] sm:$0xff] %v734_v42 }
  0x9e   : > { %737 = vst [vmem:[%s3416_s6 + $0x308] sm:$0xff] %v736_v43 }
  0x9f   : > { %739 = vst [vmem:[%s3416_s6 + $0x310] sm:$0xff] %v738_v44 }
  0xa0   : > { %741 = vst [vmem:[%s3416_s6 + $0x318] sm:$0xff] %v740_v45 }
  0xa1   : > { %743 = vst [vmem:[%s3416_s6 + $0x320] sm:$0xff] %v742_v46 }
  0xa2   : > { %745 = vst [vmem:[%s3416_s6 + $0x328] sm:$0xff] %v744_v47 }
  0xa3   : > { %747 = vst [vmem:[%s3416_s6 + $0x330] sm:$0xff] %v746_v48 }
  0xa4   : > { %749 = vst [vmem:[%s3416_s6 + $0x338] sm:$0xff] %v748_v49 }
  0xa5   : > { %751 = vst [vmem:[%s3416_s6 + $0x340] sm:$0xff] %v750_v50 }
  0xa6   : > { %753 = vst [vmem:[%s3416_s6 + $0x348] sm:$0xff] %v752_v51 }
  0xa7   : > { %755 = vst [vmem:[%s3416_s6 + $0x350] sm:$0xff] %v754_v52 }
  0xa8   : > { %757 = vst [vmem:[%s3416_s6 + $0x358] sm:$0xff] %v756_v53 }
  0xa9   : > { %759 = vst [vmem:[%s3416_s6 + $0x360] sm:$0xff] %v758_v54 }
  0xaa   : > { %761 = vst [vmem:[%s3416_s6 + $0x368] sm:$0xff] %v760_v55 }
  0xab   : > { %763 = vst [vmem:[%s3416_s6 + $0x370] sm:$0xff] %v762_v56 }
  0xac   : > { %765 = vst [vmem:[%s3416_s6 + $0x378] sm:$0xff] %v764_v57 }
  0xad   : > { %767 = vst [vmem:[%s3416_s6 + $0x380] sm:$0xff] %v766_v58 }
  0xae   : > { %769 = vst [vmem:[%s3416_s6 + $0x388] sm:$0xff] %v768_v59 }
  0xaf   : > { %771 = vst [vmem:[%s3416_s6 + $0x390] sm:$0xff] %v770_v60 }
  0xb0   : > { %773 = vst [vmem:[%s3416_s6 + $0x398] sm:$0xff] %v772_v61 }
  0xb1   : > { %775 = vst [vmem:[%s3416_s6 + $0x3a0] sm:$0xff] %v774_v62 }
  0xb2   : > { %777 = vst [vmem:[%s3416_s6 + $0x3a8] sm:$0xff] %v776_v63 }
  0xb3   : > { %779 = vst [vmem:[%s3416_s6 + $0x3b0] sm:$0xff] %v778_v0 }
  0xb4   : > { %781 = vst [vmem:[%s3416_s6 + $0x3b8] sm:$0xff] %v780_v1 }
  0xb5   : > { %783 = vst [vmem:[%s3416_s6 + $0x3c0] sm:$0xff] %v782_v2 }
  0xb6   : > { %785 = vst [vmem:[%s3416_s6 + $0x3c8] sm:$0xff] %v784_v3 }
  0xb7   : > { %787 = vst [vmem:[%s3416_s6 + $0x3d0] sm:$0xff] %v786_v4 }
  0xb8   : > { %789 = vst [vmem:[%s3416_s6 + $0x3d8] sm:$0xff] %v788_v5 }
  0xb9   : > { %791 = vst [vmem:[%s3416_s6 + $0x3e0] sm:$0xff] %v790_v6 }
  0xba   : > { %793 = vst [vmem:[%s3416_s6 + $0x3e8] sm:$0xff] %v792_v7 }
  0xbb   : > { %795 = vst [vmem:[%s3416_s6 + $0x3f0] sm:$0xff] %v794_v8 }
  0xbc   : > { %797 = vst [vmem:[%s3416_s6 + $0x3f8] sm:$0xff] %v796_v9 }
  0xbd   : > { %799 = vst [vmem:[%s3416_s6 + $0x400] sm:$0xff] %v798_v10 }
  0xbe   : > { %801 = vst [vmem:[%s3416_s6 + $0x408] sm:$0xff] %v800_v11 }
  0xbf   : > { %803 = vst [vmem:[%s3416_s6 + $0x410] sm:$0xff] %v802_v12 }
  0xc0   : > { %805 = vst [vmem:[%s3416_s6 + $0x418] sm:$0xff] %v804_v13 }
  0xc1   : > { %807 = vst [vmem:[%s3416_s6 + $0x420] sm:$0xff] %v806_v14 }
  0xc2   : > { %809 = vst [vmem:[%s3416_s6 + $0x428] sm:$0xff] %v808_v15 }
  0xc3   : > { %811 = vst [vmem:[%s3416_s6 + $0x430] sm:$0xff] %v810_v16 }
  0xc4   : > { %813 = vst [vmem:[%s3416_s6 + $0x438] sm:$0xff] %v812_v17 }
  0xc5   : > { %815 = vst [vmem:[%s3416_s6 + $0x440] sm:$0xff] %v814_v18 }
  0xc6   : > { %817 = vst [vmem:[%s3416_s6 + $0x448] sm:$0xff] %v816_v19 }
  0xc7   : > { %819 = vst [vmem:[%s3416_s6 + $0x450] sm:$0xff] %v818_v20 }
  0xc8   : > { %821 = vst [vmem:[%s3416_s6 + $0x458] sm:$0xff] %v820_v21 }
  0xc9   : > { %823 = vst [vmem:[%s3416_s6 + $0x460] sm:$0xff] %v822_v22 }
  0xca   : > { %825 = vst [vmem:[%s3416_s6 + $0x468] sm:$0xff] %v824_v23 }
  0xcb   : > { %827 = vst [vmem:[%s3416_s6 + $0x470] sm:$0xff] %v826_v24 }
  0xcc   : > { %829 = vst [vmem:[%s3416_s6 + $0x478] sm:$0xff] %v828_v25 }
  0xcd PF: > { %p2316_p0 = scmp.ge.s32.totalorder %s3274_s22, 1  ;;  %p843_p1 = scmp.lt.s32.totalorder %s3274_s22, 5 }
  0xcf   : > { %p844_p2 = pnand %p2316_p0, %p843_p1 }
  0xd0   : > { %s850_s0 = sand.u32 (!%p844_p2), 1, %s3250_s16   ;;  %s857_s23 = sand.u32 (!%p844_p2), 1, %s3242_s14  }
  0xd1   : > { %847 = sbr.rel (%p844_p2) target bundleno = 555 (0x22b), region = 88  ;;  %s885_s7 = sand.u32 (!%p844_p2), 1, %s3234_s12  }
  0xd2   : > { %s3097_s28 = smul.u32 (!%p844_p2), 72, %s850_s0  ;;  %s2317_s26 = sshll.u32 (!%p844_p2), %s885_s7, 4 }
  0xd3   : > { %s3098_s11 = smul.u32 (!%p844_p2), 1152, %s857_s23  ;;  %s2318_s27 = sshll.u32 (!%p844_p2), %s3262_s19, 1 }
  0xd4   : > { %p893_p3 = scmp.lt.s32.totalorder (!%p844_p2), %s2318_s27, 3  ;;  %s3714_s1 = scalar_lea.vmem (!%p844_p2), [#allocation3], %s3097_s28 }
  0xd5   : > { %s3716_s25 = scalar_lea.vmem (!%p844_p2), [#allocation4], %s3098_s11  ;;  %s3718_s24 = scalar_lea.vmem (!%p844_p2), [#allocation5], %s2317_s26 }
  0xd6   : > { %s4142_s27 = smov (!%p893_p3, %s2318_s27), 3  ;;  %p2320_p4 = scmp.ne.s32.totalorder %s3258_s18, 0 }
  0xd7   : > { %s2319_s29 = sshll.u32 %s4142_s27, 2 }
  0xd8   : > { %s3712_s6 = scalar_lea.vmem %s4110_s2, %s2319_s29  ;;  %903 = sbr.rel (%p2320_p4) target bundleno = 226 (0xe2), region = 100 }
  0xdd   : > { %v3276_v26 = vmov 0.0  }
  0xde   : > { %904 = vst [vmem:[#allocation2 + $0x10] sm:$0xff] %v3276_v26 }
  0xdf   : > { %905 = vst [vmem:[#allocation2] sm:$0xff] %v3276_v26 }
  0xe0   : > { %906 = vst [vmem:[#allocation2 + $0x18] sm:$0xff] %v3276_v26 }
  0xe1   : > { %907 = vst [vmem:[#allocation2 + $0x8] sm:$0xff] %v3276_v26 }
  0xe2 PF: > { %v2415_v27 = vld [vmem:[%s3716_s25 + $0x70] sm:$0xf]  ;;  %v2965_v28 = vld [vmem:[%s3716_s25 + $0x74] sm:$0xf0]  ;;  %v2407_v38 = vld [vmem:[%s3716_s25 + $0x60] sm:$0xf] }
  0xe3   : > { %v2479_v29 = vld [vmem:[%s3716_s25 + $0xf0] sm:$0xf]  ;;  %v2416_v30 = vor.u32 %v2965_v28, %v2415_v27  ;;  %v2981_v31 = vld [vmem:[%s3716_s25 + $0xf4] sm:$0xf0]  ;;  %v2963_v40 = vld [vmem:[%s3716_s25 + $0x64] sm:$0xf0] }
  0xe4   : > { %v2543_v32 = vld [vmem:[%s3716_s25 + $0x170] sm:$0xf]  ;;  %v2997_v33 = vld [vmem:[%s3716_s25 + $0x174] sm:$0xf0]  ;;  %v2480_v34 = vor.u32 %v2981_v31, %v2479_v29  ;;  %v2471_v41 = vld [vmem:[%s3716_s25 + $0xe0] sm:$0xf]  ;;  %v2408_v43 = vor.u32 %v2963_v40, %v2407_v38 }
  0xe5   : > { %v2544_v35 = vor.u32 %v2997_v33, %v2543_v32  ;;  %v2607_v36 = vld [vmem:[%s3716_s25 + $0x1f0] sm:$0xf]  ;;  %v3013_v37 = vld [vmem:[%s3716_s25 + $0x1f4] sm:$0xf0]  ;;  %1832 = vmatpush.bf16.msra.mxu0 %v2416_v30  ;;  %v2979_v42 = vld [vmem:[%s3716_s25 + $0xe4] sm:$0xf0] }
  0xe6   : > { %v2608_v39 = vor.u32 %v3013_v37, %v2607_v36  ;;  %1846 = vmatpush.bf16.msra.mxu1 %v2480_v34  ;;  %v2472_v44 = vor.u32 %v2979_v42, %v2471_v41  ;;  %v2535_v45 = vld [vmem:[%s3716_s25 + $0x160] sm:$0xf]  ;;  %v2995_v46 = vld [vmem:[%s3716_s25 + $0x164] sm:$0xf0]  ;;  %v2399_v50 = vld [vmem:[%s3716_s25 + $0x50] sm:$0xf] }
  0xe7   : > { %1860 = vmatpush.bf16.msra.mxu2 %v2544_v35  ;;  %v2599_v47 = vld [vmem:[%s3716_s25 + $0x1e0] sm:$0xf]  ;;  %v2536_v48 = vor.u32 %v2995_v46, %v2535_v45  ;;  %v3011_v49 = vld [vmem:[%s3716_s25 + $0x1e4] sm:$0xf0]  ;;  %v2961_v51 = vld [vmem:[%s3716_s25 + $0x54] sm:$0xf0] }
  0xe8   : > { %1874 = vmatpush.bf16.msra.mxu3 %v2608_v39  ;;  %v2600_v52 = vor.u32 %v3011_v49, %v2599_v47  ;;  %v2463_v53 = vld [vmem:[%s3716_s25 + $0xd0] sm:$0xf]  ;;  %v2977_v54 = vld [vmem:[%s3716_s25 + $0xd4] sm:$0xf0]  ;;  %v2400_v56 = vor.u32 %v2961_v51, %v2399_v50  ;;  %v2391_v62 = vld [vmem:[%s3716_s25 + $0x40] sm:$0xf] }
  0xe9   : > { %v2527_v55 = vld [vmem:[%s3716_s25 + $0x150] sm:$0xf]  ;;  %1833 = vmatpush.bf16.msra.mxu0 %v2408_v43  ;;  %v2993_v57 = vld [vmem:[%s3716_s25 + $0x154] sm:$0xf0]  ;;  %v2464_v60 = vor.u32 %v2977_v54, %v2463_v53  ;;  %v2959_v63 = vld [vmem:[%s3716_s25 + $0x44] sm:$0xf0] }
  0xea   : > { %v2591_v58 = vld [vmem:[%s3716_s25 + $0x1d0] sm:$0xf]  ;;  %v3009_v59 = vld [vmem:[%s3716_s25 + $0x1d4] sm:$0xf0]  ;;  %1847 = vmatpush.bf16.msra.mxu1 %v2472_v44  ;;  %v2528_v61 = vor.u32 %v2993_v57, %v2527_v55  ;;  %v2455_v0 = vld [vmem:[%s3716_s25 + $0xc0] sm:$0xf]  ;;  %v2392_v7 = vor.u32 %v2959_v63, %v2391_v62 }
  0xeb   : > { %1861 = vmatpush.bf16.msra.mxu2 %v2536_v48  ;;  %v2592_v1 = vor.u32 %v3009_v59, %v2591_v58  ;;  %v2975_v2 = vld [vmem:[%s3716_s25 + $0xc4] sm:$0xf0]  ;;  %v2519_v3 = vld [vmem:[%s3716_s25 + $0x140] sm:$0xf]  ;;  %v2383_v10 = vld [vmem:[%s3716_s25 + $0x30] sm:$0xf] }
  0xec   : > { %1875 = vmatpush.bf16.msra.mxu3 %v2600_v52  ;;  %v2991_v4 = vld [vmem:[%s3716_s25 + $0x144] sm:$0xf0]  ;;  %v2583_v5 = vld [vmem:[%s3716_s25 + $0x1c0] sm:$0xf]  ;;  %v2456_v8 = vor.u32 %v2975_v2, %v2455_v0  ;;  %v2957_v11 = vld [vmem:[%s3716_s25 + $0x34] sm:$0xf0] }
  0xed   : > { %v3007_v6 = vld [vmem:[%s3716_s25 + $0x1c4] sm:$0xf0]  ;;  %1834 = vmatpush.bf16.msra.mxu0 %v2400_v56  ;;  %v2520_v9 = vor.u32 %v2991_v4, %v2519_v3  ;;  %v2447_v12 = vld [vmem:[%s3716_s25 + $0xb0] sm:$0xf]  ;;  %v2973_v14 = vld [vmem:[%s3716_s25 + $0xb4] sm:$0xf0]  ;;  %v2384_v19 = vor.u32 %v2957_v11, %v2383_v10 }
  0xee   : > { %1848 = vmatpush.bf16.msra.mxu1 %v2464_v60  ;;  %v2584_v13 = vor.u32 %v3007_v6, %v2583_v5  ;;  %v2511_v15 = vld [vmem:[%s3716_s25 + $0x130] sm:$0xf]  ;;  %v2989_v16 = vld [vmem:[%s3716_s25 + $0x134] sm:$0xf0]  ;;  %v2448_v20 = vor.u32 %v2973_v14, %v2447_v12  ;;  %v2375_v22 = vld [vmem:[%s3716_s25 + $0x20] sm:$0xf] }
  0xef   : > { %1862 = vmatpush.bf16.msra.mxu2 %v2528_v61  ;;  %v2575_v17 = vld [vmem:[%s3716_s25 + $0x1b0] sm:$0xf]  ;;  %v3005_v18 = vld [vmem:[%s3716_s25 + $0x1b4] sm:$0xf0]  ;;  %v2512_v21 = vor.u32 %v2989_v16, %v2511_v15  ;;  %v2955_v23 = vld [vmem:[%s3716_s25 + $0x24] sm:$0xf0] }
  0xf0   : > { %1876 = vmatpush.bf16.msra.mxu3 %v2592_v1  ;;  %v2439_v24 = vld [vmem:[%s3716_s25 + $0xa0] sm:$0xf]  ;;  %v2576_v25 = vor.u32 %v3005_v18, %v2575_v17  ;;  %v2971_v26 = vld [vmem:[%s3716_s25 + $0xa4] sm:$0xf0]  ;;  %v2376_v31 = vor.u32 %v2955_v23, %v2375_v22  ;;  %v2367_v34 = vld [vmem:[%s3716_s25 + $0x10] sm:$0xf] }
  0xf1   : > { %1835 = vmatpush.bf16.msra.mxu0 %v2392_v7  ;;  %v2503_v27 = vld [vmem:[%s3716_s25 + $0x120] sm:$0xf]  ;;  %v2987_v28 = vld [vmem:[%s3716_s25 + $0x124] sm:$0xf0]  ;;  %v2440_v32 = vor.u32 %v2971_v26, %v2439_v24  ;;  %v2953_v35 = vld [vmem:[%s3716_s25 + $0x14] sm:$0xf0] }
  0xf2   : > { %1849 = vmatpush.bf16.msra.mxu1 %v2456_v8  ;;  %v2567_v29 = vld [vmem:[%s3716_s25 + $0x1a0] sm:$0xf]  ;;  %v3003_v30 = vld [vmem:[%s3716_s25 + $0x1a4] sm:$0xf0]  ;;  %v2504_v33 = vor.u32 %v2987_v28, %v2503_v27  ;;  %v2431_v36 = vld [vmem:[%s3716_s25 + $0x90] sm:$0xf]  ;;  %v2368_v43 = vor.u32 %v2953_v35, %v2367_v34 }
  0xf3   : > { %1863 = vmatpush.bf16.msra.mxu2 %v2520_v9  ;;  %v2568_v37 = vor.u32 %v3003_v30, %v2567_v29  ;;  %v2969_v38 = vld [vmem:[%s3716_s25 + $0x94] sm:$0xf0]  ;;  %v2495_v39 = vld [vmem:[%s3716_s25 + $0x110] sm:$0xf]  ;;  %v2359_v44 = vld [vmem:[%s3716_s25] sm:$0xf] }
  0xf4   : > { %1877 = vmatpush.bf16.msra.mxu3 %v2584_v13  ;;  %v2985_v40 = vld [vmem:[%s3716_s25 + $0x114] sm:$0xf0]  ;;  %v2559_v41 = vld [vmem:[%s3716_s25 + $0x190] sm:$0xf]  ;;  %v2951_v45 = vld [vmem:[%s3716_s25 + $0x4] sm:$0xf0]  ;;  %v2432_v46 = vor.u32 %v2969_v38, %v2431_v36 }
  0xf5   : > { %1836 = vmatpush.bf16.msra.mxu0 %v2384_v19  ;;  %v3001_v42 = vld [vmem:[%s3716_s25 + $0x194] sm:$0xf0]  ;;  %v2496_v47 = vor.u32 %v2985_v40, %v2495_v39  ;;  %v2423_v48 = vld [vmem:[%s3716_s25 + $0x80] sm:$0xf]  ;;  %v2967_v49 = vld [vmem:[%s3716_s25 + $0x84] sm:$0xf0]  ;;  %v2360_v58 = vor.u32 %v2951_v45, %v2359_v44 }
  0xf6   : > { %1850 = vmatpush.bf16.msra.mxu1 %v2448_v20  ;;  %v2487_v50 = vld [vmem:[%s3716_s25 + $0x100] sm:$0xf]  ;;  %v2560_v51 = vor.u32 %v3001_v42, %v2559_v41  ;;  %v2983_v52 = vld [vmem:[%s3716_s25 + $0x104] sm:$0xf0]  ;;  %v2671_v53 = vld [vmem:[%s3716_s25 + $0x270] sm:$0xf]  ;;  %v2424_v62 = vor.u32 %v2967_v49, %v2423_v48 }
  0xf7   : > { %1864 = vmatpush.bf16.msra.mxu2 %v2512_v21  ;;  %v3029_v54 = vld [vmem:[%s3716_s25 + $0x274] sm:$0xf0]  ;;  %v2735_v55 = vld [vmem:[%s3716_s25 + $0x2f0] sm:$0xf]  ;;  %v2551_v60 = vld [vmem:[%s3716_s25 + $0x180] sm:$0xf]  ;;  %v2488_v63 = vor.u32 %v2983_v52, %v2487_v50 }
  0xf8   : > { %1878 = vmatpush.bf16.msra.mxu3 %v2576_v25  ;;  %v3045_v56 = vld [vmem:[%s3716_s25 + $0x2f4] sm:$0xf0]  ;;  %v2799_v57 = vld [vmem:[%s3716_s25 + $0x370] sm:$0xf]  ;;  %v2999_v61 = vld [vmem:[%s3716_s25 + $0x184] sm:$0xf0]  ;;  %v2672_v2 = vor.u32 %v3029_v54, %v2671_v53 }
  0xf9   : > { %1837 = vmatpush.bf16.msra.mxu0 %v2376_v31  ;;  %v3061_v59 = vld [vmem:[%s3716_s25 + $0x374] sm:$0xf0]  ;;  %v2863_v0 = vld [vmem:[%s3716_s25 + $0x3f0] sm:$0xf]  ;;  %v2736_v3 = vor.u32 %v3045_v56, %v2735_v55  ;;  %v2663_v4 = vld [vmem:[%s3716_s25 + $0x260] sm:$0xf]  ;;  %v2552_v7 = vor.u32 %v2999_v61, %v2551_v60 }
  0xfa   : > { %1851 = vmatpush.bf16.msra.mxu1 %v2440_v32  ;;  %v3077_v1 = vld [vmem:[%s3716_s25 + $0x3f4] sm:$0xf0]  ;;  %v3027_v5 = vld [vmem:[%s3716_s25 + $0x264] sm:$0xf0]  ;;  %v2800_v6 = vor.u32 %v3061_v59, %v2799_v57  ;;  %v2727_v8 = vld [vmem:[%s3716_s25 + $0x2e0] sm:$0xf] }
  0xfb   : > { %1865 = vmatpush.bf16.msra.mxu2 %v2504_v33  ;;  %v3043_v9 = vld [vmem:[%s3716_s25 + $0x2e4] sm:$0xf0]  ;;  %v2791_v10 = vld [vmem:[%s3716_s25 + $0x360] sm:$0xf]  ;;  %v2864_v11 = vor.u32 %v3077_v1, %v2863_v0  ;;  %v2655_v15 = vld [vmem:[%s3716_s25 + $0x250] sm:$0xf]  ;;  %v2664_v19 = vor.u32 %v3027_v5, %v2663_v4 }
  0xfc   : > { %1879 = vmatpush.bf16.msra.mxu3 %v2568_v37  ;;  %v3059_v12 = vld [vmem:[%s3716_s25 + $0x364] sm:$0xf0]  ;;  %v2855_v13 = vld [vmem:[%s3716_s25 + $0x3e0] sm:$0xf]  ;;  %v2323_v16 = vld [vmem:[%s3714_s1] sm:$0xf]  ;;  %v2728_v20 = vor.u32 %v3043_v9, %v2727_v8 }
  0xfd   : > { %1838 = vmatpush.bf16.msra.mxu0 %v2368_v43  ;;  %v3075_v14 = vld [vmem:[%s3716_s25 + $0x3e4] sm:$0xf0]  ;;  %v2945_v17 = vld [vmem:[%s3714_s1 + $0x20] sm:$0xf0]  ;;  %v2331_v18 = vld [vmem:[%s3714_s1 + $0x8] sm:$0xf]  ;;  %v2792_v25 = vor.u32 %v3059_v12, %v2791_v10 }
  0xfe   : > { %1852 = vmatpush.bf16.msra.mxu1 %v2432_v46  ;;  %v3025_v21 = vld [vmem:[%s3716_s25 + $0x254] sm:$0xf0]  ;;  %v2719_v22 = vld [vmem:[%s3716_s25 + $0x2d0] sm:$0xf]  ;;  %v3807_v23 = vor.u32 %v2945_v17, %v2323_v16  ;;  %v2946_v24 = vld [vmem:[%s3714_s1 + $0x28] sm:$0xf0]  ;;  %v2856_v30 = vor.u32 %v3075_v14, %v2855_v13 }
  0xff   : > { %1866 = vmatpush.bf16.msra.mxu2 %v2496_v47  ;;  %v3041_v26 = vld [vmem:[%s3716_s25 + $0x2d4] sm:$0xf0]  ;;  %v2783_v27 = vld [vmem:[%s3716_s25 + $0x350] sm:$0xf]  ;;  %v3813_v29 = vor.u32 %v2946_v24, %v2331_v18  ;;  %v2941_v32 = vld [vmem:[%s3714_s1 + $0x4] sm:$0xf]  ;;  %v2656_v38 = vor.u32 %v3025_v21, %v2655_v15 }
 0x100   : > { %1880 = vmatpush.bf16.msra.mxu3 %v2560_v51  ;;  %v3057_v28 = vld [vmem:[%s3716_s25 + $0x354] sm:$0xf0]  ;;  %v2847_v31 = vld [vmem:[%s3716_s25 + $0x3d0] sm:$0xf]  ;;  %v2942_v36 = vld [vmem:[%s3714_s1 + $0xc] sm:$0xf]  ;;  %v2720_v39 = vor.u32 %v3041_v26, %v2719_v22 }
 0x101   : > { %1839 = vmatpush.bf16.msra.mxu0 %v2360_v58  ;;  %v2325_v33 = vld [vmem:[%s3714_s1 + $0x24] sm:$0xf0]  ;;  %v2333_v37 = vld [vmem:[%s3714_s1 + $0x2c] sm:$0xf0]  ;;  %v2784_v42 = vor.u32 %v3057_v28, %v2783_v27  ;;  %v2639_v53 = vld [vmem:[%s3716_s25 + $0x230] sm:$0xf] }
 0x102   : > { %1853 = vmatpush.bf16.msra.mxu1 %v2424_v62  ;;  %v3073_v34 = vld [vmem:[%s3716_s25 + $0x3d4] sm:$0xf0]  ;;  %v3821_v35 = vor.u32 %v2941_v32, %v2325_v33  ;;  %v2647_v40 = vld [vmem:[%s3716_s25 + $0x240] sm:$0xf]  ;;  %v3826_v41 = vor.u32 %v2942_v36, %v2333_v37  ;;  %v3023_v43 = vld [vmem:[%s3716_s25 + $0x244] sm:$0xf0] }
 0x103   : > { %1867 = vmatpush.bf16.msra.mxu2 %v2488_v63  ;;  %v2711_v44 = vld [vmem:[%s3716_s25 + $0x2c0] sm:$0xf]  ;;  %v3039_v45 = vld [vmem:[%s3716_s25 + $0x2c4] sm:$0xf0]  ;;  %v2848_v46 = vor.u32 %v3073_v34, %v2847_v31  ;;  %v2648_v51 = vor.u32 %v3023_v43, %v2647_v40  ;;  %v3021_v55 = vld [vmem:[%s3716_s25 + $0x234] sm:$0xf0] }
 0x104   : > { %1881 = vmatpush.bf16.msra.mxu3 %v2552_v7  ;;  %1840 = vmatmul.bf16.vlgmr.msra.gmra.mxu0 %v3807_v23  ;;  %v2775_v47 = vld [vmem:[%s3716_s25 + $0x340] sm:$0xf]  ;;  %v3055_v48 = vld [vmem:[%s3716_s25 + $0x344] sm:$0xf0]  ;;  %v2712_v52 = vor.u32 %v3039_v45, %v2711_v44  ;;  %v2703_v56 = vld [vmem:[%s3716_s25 + $0x2b0] sm:$0xf]  ;;  %v2640_v63 = vor.u32 %v3021_v55, %v2639_v53 }
 0x105   : > { %1888 = vmatpush.bf16.msrb.mxu0 %v2672_v2  ;;  %1854 = vmatmul.bf16.vlgmr.msra.gmra.mxu1 %v3821_v35  ;;  %v2839_v49 = vld [vmem:[%s3716_s25 + $0x3c0] sm:$0xf]  ;;  %v3071_v50 = vld [vmem:[%s3716_s25 + $0x3c4] sm:$0xf0]  ;;  %v2776_v54 = vor.u32 %v3055_v48, %v2775_v47  ;;  %v3037_v57 = vld [vmem:[%s3716_s25 + $0x2b4] sm:$0xf0] }
 0x106   : > { %1902 = vmatpush.bf16.msrb.mxu1 %v2736_v3  ;;  %1868 = vmatmul.bf16.vlgmr.msra.gmra.mxu2 %v3813_v29  ;;  %v2840_v58 = vor.u32 %v3071_v50, %v2839_v49  ;;  %v2767_v59 = vld [vmem:[%s3716_s25 + $0x330] sm:$0xf]  ;;  %v3053_v60 = vld [vmem:[%s3716_s25 + $0x334] sm:$0xf0]  ;;  %v2704_v0 = vor.u32 %v3037_v57, %v2703_v56  ;;  %v2631_v1 = vld [vmem:[%s3716_s25 + $0x220] sm:$0xf] }
 0x107   : > { %1916 = vmatpush.bf16.msrb.mxu2 %v2800_v6  ;;  %1882 = vmatmul.bf16.vlgmr.msra.gmra.mxu3 %v3826_v41  ;;  %v2831_v61 = vld [vmem:[%s3716_s25 + $0x3b0] sm:$0xf]  ;;  %v3069_v62 = vld [vmem:[%s3716_s25 + $0x3b4] sm:$0xf0]  ;;  %v2768_v2 = vor.u32 %v3053_v60, %v2767_v59  ;;  %v3019_v3 = vld [vmem:[%s3716_s25 + $0x224] sm:$0xf0] }
 0x108   : > { %1930 = vmatpush.bf16.msrb.mxu3 %v2864_v11  ;;  %v2695_v4 = vld [vmem:[%s3716_s25 + $0x2a0] sm:$0xf]  ;;  %v3035_v5 = vld [vmem:[%s3716_s25 + $0x2a4] sm:$0xf0]  ;;  %v2832_v6 = vor.u32 %v3069_v62, %v2831_v61  ;;  %v2632_v11 = vor.u32 %v3019_v3, %v2631_v1  ;;  %v2623_v13 = vld [vmem:[%s3716_s25 + $0x210] sm:$0xf] }
 0x109   : > { %1889 = vmatpush.bf16.msrb.mxu0 %v2664_v19  ;;  %v2759_v7 = vld [vmem:[%s3716_s25 + $0x320] sm:$0xf]  ;;  %v3051_v8 = vld [vmem:[%s3716_s25 + $0x324] sm:$0xf0]  ;;  %v2696_v12 = vor.u32 %v3035_v5, %v2695_v4  ;;  %v3017_v14 = vld [vmem:[%s3716_s25 + $0x214] sm:$0xf0] }
 0x10a   : > { %1903 = vmatpush.bf16.msrb.mxu1 %v2728_v20  ;;  %v2823_v9 = vld [vmem:[%s3716_s25 + $0x3a0] sm:$0xf]  ;;  %v3067_v10 = vld [vmem:[%s3716_s25 + $0x3a4] sm:$0xf0]  ;;  %v2760_v15 = vor.u32 %v3051_v8, %v2759_v7  ;;  %v2687_v16 = vld [vmem:[%s3716_s25 + $0x290] sm:$0xf]  ;;  %v2624_v28 = vor.u32 %v3017_v14, %v2623_v13 }
 0x10b   : > { %1917 = vmatpush.bf16.msrb.mxu2 %v2792_v25  ;;  %v3033_v17 = vld [vmem:[%s3716_s25 + $0x294] sm:$0xf0]  ;;  %v2751_v18 = vld [vmem:[%s3716_s25 + $0x310] sm:$0xf]  ;;  %v2824_v19 = vor.u32 %v3067_v10, %v2823_v9  ;;  %v2615_v24 = vld [vmem:[%s3716_s25 + $0x200] sm:$0xf] }
 0x10c   : > { %1931 = vmatpush.bf16.msrb.mxu3 %v2856_v30  ;;  %v3049_v20 = vld [vmem:[%s3716_s25 + $0x314] sm:$0xf0]  ;;  %v2815_v21 = vld [vmem:[%s3716_s25 + $0x390] sm:$0xf]  ;;  %v3015_v25 = vld [vmem:[%s3716_s25 + $0x204] sm:$0xf0]  ;;  %v2688_v30 = vor.u32 %v3033_v17, %v2687_v16 }
 0x10d   : > { %1890 = vmatpush.bf16.msrb.mxu0 %v2656_v38  ;;  %v3065_v22 = vld [vmem:[%s3716_s25 + $0x394] sm:$0xf0]  ;;  %v2679_v26 = vld [vmem:[%s3716_s25 + $0x280] sm:$0xf]  ;;  %v3031_v27 = vld [vmem:[%s3716_s25 + $0x284] sm:$0xf0]  ;;  %v2752_v34 = vor.u32 %v3049_v20, %v2751_v18  ;;  %v2616_v47 = vor.u32 %v3015_v25, %v2615_v24 }
 0x10e   : > { %1904 = vmatpush.bf16.msrb.mxu1 %v2720_v39  ;;  %v2743_v31 = vld [vmem:[%s3716_s25 + $0x300] sm:$0xf]  ;;  %v3047_v32 = vld [vmem:[%s3716_s25 + $0x304] sm:$0xf0]  ;;  %v2927_v33 = vld [vmem:[%s3716_s25 + $0x470] sm:$0xf]  ;;  %v2816_v39 = vor.u32 %v3065_v22, %v2815_v21  ;;  %v2680_v48 = vor.u32 %v3031_v27, %v2679_v26 }
 0x10f   : > { %1918 = vmatpush.bf16.msrb.mxu2 %v2784_v42  ;;  %v3093_v36 = vld [vmem:[%s3716_s25 + $0x474] sm:$0xf0]  ;;  %v2964_v37 = vld [vmem:[%s3716_s25 + $0x74] sm:$0xf]  ;;  %v2417_v38 = vld [vmem:[%s3716_s25 + $0x78] sm:$0xf0] }
 0x110   : > { %1932 = vmatpush.bf16.msrb.mxu3 %v2848_v46  ;;  %v2980_v40 = vld [vmem:[%s3716_s25 + $0xf4] sm:$0xf]  ;;  %v2481_v42 = vld [vmem:[%s3716_s25 + $0xf8] sm:$0xf0]  ;;  %v2807_v43 = vld [vmem:[%s3716_s25 + $0x380] sm:$0xf]  ;;  %v2928_v53 = vor.u32 %v3093_v36, %v2927_v33  ;;  %v2420_v57 = vor.u32 %v2964_v37, %v2417_v38 }
 0x111   : > { %1891 = vmatpush.bf16.msrb.mxu0 %v2648_v51  ;;  %v3063_v44 = vld [vmem:[%s3716_s25 + $0x384] sm:$0xf0]  ;;  %v2947_v46 = vld [vmem:[%s3714_s1 + $0x30] sm:$0xf0]  ;;  %v2948_v50 = vld [vmem:[%s3714_s1 + $0x38] sm:$0xf0] }
 0x112   : > { %1905 = vmatpush.bf16.msrb.mxu1 %v2712_v52  ;;  %v2339_v45 = vld [vmem:[%s3714_s1 + $0x10] sm:$0xf]  ;;  %v2347_v49 = vld [vmem:[%s3714_s1 + $0x18] sm:$0xf]  ;;  %v2996_v51 = vld [vmem:[%s3716_s25 + $0x174] sm:$0xf]  ;;  %v2744_v52 = vor.u32 %v3047_v32, %v2743_v31  ;;  %v2808_v62 = vor.u32 %v3063_v44, %v2807_v43 }
 0x113   : > { %1919 = vmatpush.bf16.msrb.mxu2 %v2776_v54  ;;  %v2545_v54 = vld [vmem:[%s3716_s25 + $0x178] sm:$0xf0]  ;;  %v2943_v55 = vld [vmem:[%s3714_s1 + $0x14] sm:$0xf]  ;;  %v2341_v56 = vld [vmem:[%s3714_s1 + $0x34] sm:$0xf0]  ;;  %v3891_v3 = vor.u32 %v2948_v50, %v2347_v49 }
 0x114   : > { %1933 = vmatpush.bf16.msrb.mxu3 %v2840_v58  ;;  %v2484_v58 = vor.u32 %v2980_v40, %v2481_v42  ;;  %v2944_v59 = vld [vmem:[%s3714_s1 + $0x1c] sm:$0xf]  ;;  %v2919_v60 = vld [vmem:[%s3716_s25 + $0x460] sm:$0xf]  ;;  %v3091_v61 = vld [vmem:[%s3716_s25 + $0x464] sm:$0xf0]  ;;  %v2548_v4 = vor.u32 %v2996_v51, %v2545_v54  ;;  %v3895_v7 = vor.u32 %v2943_v55, %v2341_v56 }
 0x115   : > { %1892 = vmatpush.bf16.msrb.mxu0 %v2640_v63  ;;  %v3886_v63 = vor.u32 %v2947_v46, %v2339_v45  ;;  %v2962_v1 = vld [vmem:[%s3716_s25 + $0x64] sm:$0xf]  ;;  %v2920_v8 = vor.u32 %v3091_v61, %v2919_v60  ;;  %v2537_v10 = vld [vmem:[%s3716_s25 + $0x168] sm:$0xf0]  ;;  %v2911_v13 = vld [vmem:[%s3716_s25 + $0x450] sm:$0xf] }
 0x116   : > { %1906 = vmatpush.bf16.msrb.mxu1 %v2704_v0  ;;  %v2349_v0 = vld [vmem:[%s3714_s1 + $0x3c] sm:$0xf0]  ;;  %v2978_v5 = vld [vmem:[%s3716_s25 + $0xe4] sm:$0xf]  ;;  %v2960_v16 = vld [vmem:[%s3716_s25 + $0x54] sm:$0xf] }
 0x117   : > { %1920 = vmatpush.bf16.msrb.mxu2 %v2768_v2  ;;  %v2409_v2 = vld [vmem:[%s3716_s25 + $0x68] sm:$0xf0]  ;;  %v2994_v9 = vld [vmem:[%s3716_s25 + $0x164] sm:$0xf]  ;;  %v3089_v14 = vld [vmem:[%s3716_s25 + $0x454] sm:$0xf0] }
 0x118   : > { %1934 = vmatpush.bf16.msrb.mxu3 %v2832_v6  ;;  %v2473_v6 = vld [vmem:[%s3716_s25 + $0xe8] sm:$0xf0]  ;;  %v2401_v17 = vld [vmem:[%s3716_s25 + $0x58] sm:$0xf0]  ;;  %v2540_v18 = vor.u32 %v2994_v9, %v2537_v10  ;;  %v2912_v21 = vor.u32 %v3089_v14, %v2911_v13  ;;  %v2992_v22 = vld [vmem:[%s3716_s25 + $0x154] sm:$0xf] }
 0x119   : > { %1893 = vmatpush.bf16.msrb.mxu0 %v2632_v11  ;;  %v3899_v11 = vor.u32 %v2944_v59, %v2349_v0  ;;  %v2465_v20 = vld [vmem:[%s3716_s25 + $0xd8] sm:$0xf0]  ;;  %v2404_v25 = vor.u32 %v2960_v16, %v2401_v17  ;;  %v2903_v26 = vld [vmem:[%s3716_s25 + $0x440] sm:$0xf]  ;;  %v3087_v27 = vld [vmem:[%s3716_s25 + $0x444] sm:$0xf0] }
 0x11a   : > { %1907 = vmatpush.bf16.msrb.mxu1 %v2696_v12  ;;  %v2412_v12 = vor.u32 %v2962_v1, %v2409_v2  ;;  %v2529_v24 = vld [vmem:[%s3716_s25 + $0x158] sm:$0xf0]  ;;  %v2393_v31 = vld [vmem:[%s3716_s25 + $0x48] sm:$0xf0]  ;;  %v2974_v33 = vld [vmem:[%s3716_s25 + $0xc4] sm:$0xf]  ;;  %v2904_v36 = vor.u32 %v3087_v27, %v2903_v26 }
 0x11b   : > { %1921 = vmatpush.bf16.msrb.mxu2 %v2760_v15  ;;  %v2476_v15 = vor.u32 %v2978_v5, %v2473_v6  ;;  %v2532_v32 = vor.u32 %v2992_v22, %v2529_v24  ;;  %v2990_v37 = vld [vmem:[%s3716_s25 + $0x144] sm:$0xf]  ;;  %v2521_v38 = vld [vmem:[%s3716_s25 + $0x148] sm:$0xf0]  ;;  %v2895_v40 = vld [vmem:[%s3716_s25 + $0x430] sm:$0xf] }
 0x11c   : > { %1935 = vmatpush.bf16.msrb.mxu3 %v2824_v19  ;;  %v2976_v19 = vld [vmem:[%s3716_s25 + $0xd4] sm:$0xf]  ;;  %v3085_v42 = vld [vmem:[%s3716_s25 + $0x434] sm:$0xf0]  ;;  %v2385_v45 = vld [vmem:[%s3716_s25 + $0x38] sm:$0xf0]  ;;  %v2524_v46 = vor.u32 %v2990_v37, %v2521_v38 }
 0x11d   : > { %1894 = vmatpush.bf16.msrb.mxu0 %v2624_v28  ;;  %v2468_v28 = vor.u32 %v2976_v19, %v2465_v20  ;;  %v2956_v44 = vld [vmem:[%s3716_s25 + $0x34] sm:$0xf]  ;;  %v2896_v49 = vor.u32 %v3085_v42, %v2895_v40  ;;  %v2513_v51 = vld [vmem:[%s3716_s25 + $0x138] sm:$0xf0]  ;;  %v3083_v54 = vld [vmem:[%s3716_s25 + $0x424] sm:$0xf0] }
 0x11e   : > { %1908 = vmatpush.bf16.msrb.mxu1 %v2688_v30  ;;  %v2958_v30 = vld [vmem:[%s3716_s25 + $0x44] sm:$0xf]  ;;  %v2988_v50 = vld [vmem:[%s3716_s25 + $0x134] sm:$0xf]  ;;  %v2441_v60 = vld [vmem:[%s3716_s25 + $0xa8] sm:$0xf0] }
 0x11f   : > { %1922 = vmatpush.bf16.msrb.mxu2 %v2752_v34  ;;  %v2457_v34 = vld [vmem:[%s3716_s25 + $0xc8] sm:$0xf0]  ;;  %v2954_v56 = vld [vmem:[%s3716_s25 + $0x24] sm:$0xf]  ;;  %v2879_v2 = vld [vmem:[%s3716_s25 + $0x410] sm:$0xf] }
 0x120   : > { %1936 = vmatpush.bf16.msrb.mxu3 %v2816_v39  ;;  %v2396_v39 = vor.u32 %v2958_v30, %v2393_v31  ;;  %v2460_v43 = vor.u32 %v2974_v33, %v2457_v34  ;;  %v2970_v59 = vld [vmem:[%s3716_s25 + $0xa4] sm:$0xf]  ;;  %v2505_v0 = vld [vmem:[%s3716_s25 + $0x128] sm:$0xf0]  ;;  %v2952_v6 = vld [vmem:[%s3716_s25 + $0x14] sm:$0xf] }
 0x121   : > { %1895 = vmatpush.bf16.msrb.mxu0 %v2616_v47  ;;  %v2972_v47 = vld [vmem:[%s3716_s25 + $0xb4] sm:$0xf]  ;;  %v2444_v5 = vor.u32 %v2970_v59, %v2441_v60  ;;  %v2497_v14 = vld [vmem:[%s3716_s25 + $0x118] sm:$0xf0]  ;;  %v2871_v16 = vld [vmem:[%s3716_s25 + $0x400] sm:$0xf] }
 0x122   : > { %1909 = vmatpush.bf16.msrb.mxu1 %v2680_v48  ;;  %v2449_v48 = vld [vmem:[%s3716_s25 + $0xb8] sm:$0xf0]  ;;  %v2968_v9 = vld [vmem:[%s3716_s25 + $0x94] sm:$0xf]  ;;  %v3079_v17 = vld [vmem:[%s3716_s25 + $0x404] sm:$0xf0] }
 0x123   : > { %1923 = vmatpush.bf16.msrb.mxu2 %v2744_v52  ;;  %v2388_v52 = vor.u32 %v2956_v44, %v2385_v45  ;;  %v2452_v55 = vor.u32 %v2972_v47, %v2449_v48  ;;  %v2984_v13 = vld [vmem:[%s3716_s25 + $0x114] sm:$0xf]  ;;  %v2361_v20 = vld [vmem:[%s3716_s25 + $0x8] sm:$0xf0]  ;;  %v2609_v26 = vld [vmem:[%s3716_s25 + $0x1f8] sm:$0xf0]  ;;  %v2872_v33 = vor.u32 %v3079_v17, %v2871_v16 }
 0x124   : > { %1937 = vmatpush.bf16.msrb.mxu3 %v2808_v62  ;;  %1896 = vmatmul.bf16.vlgmr.msrb.gmra.mxu0 %v3886_v63  ;;  %v2986_v62 = vld [vmem:[%s3716_s25 + $0x124] sm:$0xf]  ;;  %v2425_v22 = vld [vmem:[%s3716_s25 + $0x88] sm:$0xf0]  ;;  %v3028_v27 = vld [vmem:[%s3716_s25 + $0x274] sm:$0xf] }
 0x125   : > { %1944 = vmatpush.bf16.msra.mxu0 %v2928_v53  ;;  %1910 = vmatmul.bf16.vlgmr.msrb.gmra.mxu1 %v3895_v7  ;;  %v2887_v53 = vld [vmem:[%s3716_s25 + $0x420] sm:$0xf]  ;;  %v2508_v10 = vor.u32 %v2986_v62, %v2505_v0  ;;  %v2673_v30 = vld [vmem:[%s3716_s25 + $0x278] sm:$0xf0]  ;;  %v3044_v31 = vld [vmem:[%s3716_s25 + $0x2f4] sm:$0xf] }
 0x126   : > { %1958 = vmatpush.bf16.msra.mxu1 %v2420_v57  ;;  %1924 = vmatmul.bf16.vlgmr.msrb.gmra.mxu2 %v3891_v3  ;;  %v2377_v57 = vld [vmem:[%s3716_s25 + $0x28] sm:$0xf0]  ;;  %v2888_v61 = vor.u32 %v3083_v54, %v2887_v53  ;;  %v2982_v34 = vld [vmem:[%s3716_s25 + $0x104] sm:$0xf]  ;;  %v2355_v37 = vld [vmem:[%s3714_s1 + $0x20] sm:$0xf]  ;;  %v2676_v45 = vor.u32 %v3028_v27, %v2673_v30 }
 0x127   : > { %1972 = vmatpush.bf16.msra.mxu2 %v2484_v58  ;;  %1938 = vmatmul.bf16.vlgmr.msrb.gmra.mxu3 %v3899_v11  ;;  %v2516_v58 = vor.u32 %v2988_v50, %v2513_v51  ;;  %v2380_v1 = vor.u32 %v2954_v56, %v2377_v57  ;;  %v2949_v40 = vld [vmem:[%s3714_s1 + $0x40] sm:$0xf0]  ;;  %v2601_v47 = vld [vmem:[%s3716_s25 + $0x1e8] sm:$0xf0]  ;;  %v3026_v50 = vld [vmem:[%s3716_s25 + $0x264] sm:$0xf] }
 0x128   : > { %1986 = vmatpush.bf16.msra.mxu3 %v2548_v4  ;;  %v3081_v4 = vld [vmem:[%s3716_s25 + $0x414] sm:$0xf0]  ;;  %v3060_v42 = vld [vmem:[%s3716_s25 + $0x374] sm:$0xf]  ;;  %v2665_v51 = vld [vmem:[%s3716_s25 + $0x268] sm:$0xf0] }
 0x129   : > { %1945 = vmatpush.bf16.msra.mxu0 %v2920_v8  ;;  %v2369_v8 = vld [vmem:[%s3716_s25 + $0x18] sm:$0xf0]  ;;  %v3042_v54 = vld [vmem:[%s3716_s25 + $0x2e4] sm:$0xf]  ;;  %v2668_v59 = vor.u32 %v3026_v50, %v2665_v51  ;;  %v3008_v60 = vld [vmem:[%s3716_s25 + $0x1d4] sm:$0xf] }
 0x12a   : > { %1959 = vmatpush.bf16.msra.mxu1 %v2412_v12  ;;  %v2433_v12 = vld [vmem:[%s3716_s25 + $0x98] sm:$0xf0]  ;;  %v2372_v19 = vor.u32 %v2952_v6, %v2369_v8  ;;  %v3058_v57 = vld [vmem:[%s3716_s25 + $0x364] sm:$0xf]  ;;  %v3024_v0 = vld [vmem:[%s3716_s25 + $0x254] sm:$0xf] }
 0x12b   : > { %1973 = vmatpush.bf16.msra.mxu2 %v2476_v15  ;;  %v2880_v15 = vor.u32 %v3081_v4, %v2879_v2  ;;  %v2436_v24 = vor.u32 %v2968_v9, %v2433_v12  ;;  %v3040_v4 = vld [vmem:[%s3716_s25 + $0x2d4] sm:$0xf]  ;;  %v2785_v9 = vld [vmem:[%s3716_s25 + $0x358] sm:$0xf0]  ;;  %v3006_v12 = vld [vmem:[%s3716_s25 + $0x1c4] sm:$0xf] }
 0x12c   : > { %1987 = vmatpush.bf16.msra.mxu3 %v2540_v18  ;;  %v2950_v18 = vld [vmem:[%s3716_s25 + $0x4] sm:$0xf]  ;;  %v3056_v8 = vld [vmem:[%s3716_s25 + $0x354] sm:$0xf]  ;;  %v2649_v16 = vld [vmem:[%s3716_s25 + $0x248] sm:$0xf0] }
 0x12d   : > { %1946 = vmatpush.bf16.msra.mxu0 %v2912_v21  ;;  %v2966_v21 = vld [vmem:[%s3716_s25 + $0x84] sm:$0xf]  ;;  %v2364_v38 = vor.u32 %v2950_v18, %v2361_v20  ;;  %v2713_v18 = vld [vmem:[%s3716_s25 + $0x2c8] sm:$0xf0]  ;;  %v2705_v30 = vld [vmem:[%s3716_s25 + $0x2b8] sm:$0xf0] }
 0x12e   : > { %1960 = vmatpush.bf16.msra.mxu1 %v2404_v25  ;;  %v3012_v25 = vld [vmem:[%s3716_s25 + $0x1f4] sm:$0xf]  ;;  %v2428_v44 = vor.u32 %v2966_v21, %v2425_v22  ;;  %v3038_v17 = vld [vmem:[%s3716_s25 + $0x2c4] sm:$0xf]  ;;  %v2561_v50 = vld [vmem:[%s3716_s25 + $0x198] sm:$0xf0] }
 0x12f   : > { %1974 = vmatpush.bf16.msra.mxu2 %v2468_v28  ;;  %v2500_v28 = vor.u32 %v2984_v13, %v2497_v14  ;;  %v2585_v13 = vld [vmem:[%s3716_s25 + $0x1c8] sm:$0xf0]  ;;  %v3054_v20 = vld [vmem:[%s3716_s25 + $0x344] sm:$0xf]  ;;  %v3004_v22 = vld [vmem:[%s3716_s25 + $0x1b4] sm:$0xf] }
 0x130   : > { %1988 = vmatpush.bf16.msra.mxu3 %v2532_v32  ;;  %v2737_v32 = vld [vmem:[%s3716_s25 + $0x2f8] sm:$0xf0]  ;;  %p2933_p5 = scmp.ne.s32.totalorder %s3258_s18, 1 }
 0x131   : > { %1947 = vmatpush.bf16.msra.mxu0 %v2904_v36  ;;  %v2489_v36 = vld [vmem:[%s3716_s25 + $0x108] sm:$0xf0]  ;;  %v2740_v48 = vor.u32 %v3044_v31, %v2737_v32  ;;  %v3052_v32 = vld [vmem:[%s3716_s25 + $0x334] sm:$0xf] }
 0x132   : > { %1961 = vmatpush.bf16.msra.mxu1 %v2396_v39  ;;  %v2612_v39 = vor.u32 %v3012_v25, %v2609_v26  ;;  %v3020_v25 = vld [vmem:[%s3716_s25 + $0x234] sm:$0xf]  ;;  %v2641_v26 = vld [vmem:[%s3716_s25 + $0x238] sm:$0xf0] }
 0x133   : > { %1975 = vmatpush.bf16.msra.mxu2 %v2460_v43  ;;  %v2801_v43 = vld [vmem:[%s3716_s25 + $0x378] sm:$0xf0] }
 0x134   : > { %1989 = vmatpush.bf16.msra.mxu3 %v2524_v46  ;;  %v3010_v46 = vld [vmem:[%s3716_s25 + $0x1e4] sm:$0xf]  ;;  %v2804_v53 = vor.u32 %v3060_v42, %v2801_v43 }
 0x135   : > { %1948 = vmatpush.bf16.msra.mxu0 %v2896_v49  ;;  %v2492_v49 = vor.u32 %v2982_v34, %v2489_v36  ;;  %v2604_v56 = vor.u32 %v3010_v46, %v2601_v47  ;;  %v2644_v34 = vor.u32 %v3020_v25, %v2641_v26  ;;  %v3002_v36 = vld [vmem:[%s3716_s25 + $0x1a4] sm:$0xf]  ;;  %v2761_v47 = vld [vmem:[%s3716_s25 + $0x328] sm:$0xf0]  ;;  %v3072_v26 = vld [vmem:[%s3716_s25 + $0x3d4] sm:$0xf] }
 0x136   : > { %1962 = vmatpush.bf16.msra.mxu1 %v2388_v52  ;;  %v3967_v52 = vor.u32 %v2949_v40, %v2355_v37  ;;  %v2569_v37 = vld [vmem:[%s3716_s25 + $0x1a8] sm:$0xf0]  ;;  %v3034_v43 = vld [vmem:[%s3716_s25 + $0x2a4] sm:$0xf] }
 0x137   : > { %1976 = vmatpush.bf16.msra.mxu2 %v2452_v55  ;;  %v2729_v55 = vld [vmem:[%s3716_s25 + $0x2e8] sm:$0xf0]  ;;  %v3050_v46 = vld [vmem:[%s3716_s25 + $0x324] sm:$0xf] }
 0x138   : > { %1990 = vmatpush.bf16.msra.mxu3 %v2516_v58  ;;  %v2793_v58 = vld [vmem:[%s3716_s25 + $0x368] sm:$0xf0]  ;;  %v2732_v62 = vor.u32 %v3042_v54, %v2729_v55  ;;  %v2625_v54 = vld [vmem:[%s3716_s25 + $0x218] sm:$0xf0]  ;;  %v2764_v55 = vor.u32 %v3050_v46, %v2761_v47 }
 0x139   : > { %1949 = vmatpush.bf16.msra.mxu0 %v2888_v61  ;;  %v2593_v61 = vld [vmem:[%s3716_s25 + $0x1d8] sm:$0xf0]  ;;  %v2796_v2 = vor.u32 %v3058_v57, %v2793_v58  ;;  %v2633_v40 = vld [vmem:[%s3716_s25 + $0x228] sm:$0xf0] }
 0x13a   : > { %1963 = vmatpush.bf16.msra.mxu1 %v2380_v1  ;;  %v2657_v1 = vld [vmem:[%s3716_s25 + $0x258] sm:$0xf0]  ;;  %v2596_v6 = vor.u32 %v3008_v60, %v2593_v61  ;;  %v2998_v61 = vld [vmem:[%s3716_s25 + $0x184] sm:$0xf]  ;;  %v2889_v46 = vld [vmem:[%s3716_s25 + $0x428] sm:$0xf0] }
 0x13b   : > { %1977 = vmatpush.bf16.msra.mxu2 %v2444_v5  ;;  %v2721_v5 = vld [vmem:[%s3716_s25 + $0x2d8] sm:$0xf0] }
 0x13c   : > { %1991 = vmatpush.bf16.msra.mxu3 %v2508_v10  ;;  %v2660_v10 = vor.u32 %v3024_v0, %v2657_v1  ;;  %v2724_v14 = vor.u32 %v3040_v4, %v2721_v5  ;;  %v2689_v57 = vld [vmem:[%s3716_s25 + $0x298] sm:$0xf0]  ;;  %v2553_v0 = vld [vmem:[%s3716_s25 + $0x188] sm:$0xf0]  ;;  %v3014_v1 = vld [vmem:[%s3716_s25 + $0x204] sm:$0xf] }
 0x13d   : > { %1950 = vmatpush.bf16.msra.mxu0 %v2880_v15  ;;  %v3022_v15 = vld [vmem:[%s3716_s25 + $0x244] sm:$0xf]  ;;  %v2753_v60 = vld [vmem:[%s3716_s25 + $0x318] sm:$0xf0] }
 0x13e   : > { %1964 = vmatpush.bf16.msra.mxu1 %v2372_v19  ;;  %v2588_v19 = vor.u32 %v3006_v12, %v2585_v13  ;;  %v2652_v21 = vor.u32 %v3022_v15, %v2649_v16  ;;  %v3030_v5 = vld [vmem:[%s3716_s25 + $0x284] sm:$0xf]  ;;  %v3092_v12 = vld [vmem:[%s3716_s25 + $0x474] sm:$0xf]  ;;  %v2929_v13 = vld [vmem:[%s3716_s25 + $0x478] sm:$0xf0] }
 0x13f   : > { %1978 = vmatpush.bf16.msra.mxu2 %v2436_v24  ;;  %v2577_v24 = vld [vmem:[%s3716_s25 + $0x1b8] sm:$0xf0]  ;;  %v3046_v15 = vld [vmem:[%s3716_s25 + $0x304] sm:$0xf]  ;;  %v2745_v16 = vld [vmem:[%s3716_s25 + $0x308] sm:$0xf0] }
 0x140   : > { %1992 = vmatpush.bf16.msra.mxu3 %v2500_v28  ;;  %v3036_v28 = vld [vmem:[%s3716_s25 + $0x2b4] sm:$0xf]  ;;  %v2580_v31 = vor.u32 %v3004_v22, %v2577_v24  ;;  %v3090_v22 = vld [vmem:[%s3716_s25 + $0x464] sm:$0xf]  ;;  %v2921_v24 = vld [vmem:[%s3716_s25 + $0x468] sm:$0xf0] }
 0x141   : > { %1951 = vmatpush.bf16.msra.mxu0 %v2872_v33  ;;  %v2769_v33 = vld [vmem:[%s3716_s25 + $0x338] sm:$0xf0]  ;;  %v2924_v25 = vor.u32 %v3090_v22, %v2921_v24 }
 0x142   : > { %1965 = vmatpush.bf16.msra.mxu1 %v2364_v38  ;;  %v2708_v38 = vor.u32 %v3036_v28, %v2705_v30  ;;  %v2772_v42 = vor.u32 %v3052_v32, %v2769_v33  ;;  %v3088_v28 = vld [vmem:[%s3716_s25 + $0x454] sm:$0xf]  ;;  %v2913_v30 = vld [vmem:[%s3716_s25 + $0x458] sm:$0xf0]  ;;  %v3070_v33 = vld [vmem:[%s3716_s25 + $0x3c4] sm:$0xf] }
 0x143   : > { %1979 = vmatpush.bf16.msra.mxu2 %v2428_v44  ;;  %v2697_v44 = vld [vmem:[%s3716_s25 + $0x2a8] sm:$0xf0]  ;;  %v2916_v32 = vor.u32 %v3088_v28, %v2913_v30 }
 0x144   : > { %1993 = vmatpush.bf16.msra.mxu3 %v2492_v49  ;;  %1952 = vmatmul.bf16.vlgmr.msra.gmra.mxu0 %v3967_v52  ;;  %v3000_v49 = vld [vmem:[%s3716_s25 + $0x194] sm:$0xf]  ;;  %v2700_v51 = vor.u32 %v3034_v43, %v2697_v44  ;;  %v3066_v43 = vld [vmem:[%s3716_s25 + $0x3a4] sm:$0xf]  ;;  %v2825_v44 = vld [vmem:[%s3716_s25 + $0x3a8] sm:$0xf0] }
 0x145   : > { %2000 = vmatpush.bf16.msrb.mxu0 %v2612_v39  ;;  %1966 = vmatmul.bf16.vlgmr.msra.gmra.mxu1 %v3807_v23  ;;  %v2716_v23 = vor.u32 %v3038_v17, %v2713_v18  ;;  %v3018_v39 = vld [vmem:[%s3716_s25 + $0x224] sm:$0xf]  ;;  %v2564_v58 = vor.u32 %v3000_v49, %v2561_v50  ;;  %v2828_v47 = vor.u32 %v3066_v43, %v2825_v44  ;;  %v3064_v49 = vld [vmem:[%s3716_s25 + $0x394] sm:$0xf]  ;;  %v2817_v50 = vld [vmem:[%s3716_s25 + $0x398] sm:$0xf0] }
 0x146   : > { %2014 = vmatpush.bf16.msrb.mxu1 %v2676_v45  ;;  %1980 = vmatmul.bf16.vlgmr.msra.gmra.mxu2 %v3821_v35  ;;  %v2788_v35 = vor.u32 %v3056_v8, %v2785_v9  ;;  %v2572_v45 = vor.u32 %v3002_v36, %v2569_v37  ;;  %v2865_v8 = vld [vmem:[%s3716_s25 + $0x3f8] sm:$0xf0]  ;;  %v2905_v36 = vld [vmem:[%s3716_s25 + $0x448] sm:$0xf0]  ;;  %v3068_v37 = vld [vmem:[%s3716_s25 + $0x3b4] sm:$0xf] }
 0x147   : > { %2028 = vmatpush.bf16.msrb.mxu2 %v2740_v48  ;;  %1994 = vmatmul.bf16.vlgmr.msra.gmra.mxu3 %v3813_v29  ;;  %v2777_v29 = vld [vmem:[%s3716_s25 + $0x348] sm:$0xf0]  ;;  %v2636_v48 = vor.u32 %v3018_v39, %v2633_v40  ;;  %v3084_v39 = vld [vmem:[%s3716_s25 + $0x434] sm:$0xf] }
 0x148   : > { %2042 = vmatpush.bf16.msrb.mxu3 %v2804_v53  ;;  %v2780_v27 = vor.u32 %v3054_v20, %v2777_v29  ;;  %v3016_v53 = vld [vmem:[%s3716_s25 + $0x214] sm:$0xf]  ;;  %v3074_v20 = vld [vmem:[%s3716_s25 + $0x3e4] sm:$0xf]  ;;  %v2857_v29 = vld [vmem:[%s3716_s25 + $0x3e8] sm:$0xf0] }
 0x149   : > { %2001 = vmatpush.bf16.msrb.mxu0 %v2604_v56  ;;  %v3032_v56 = vld [vmem:[%s3716_s25 + $0x294] sm:$0xf] }
 0x14a   : > { %2015 = vmatpush.bf16.msrb.mxu1 %v2668_v59  ;;  %v3048_v59 = vld [vmem:[%s3716_s25 + $0x314] sm:$0xf]  ;;  %v2692_v4 = vor.u32 %v3032_v56, %v2689_v57  ;;  %v3062_v56 = vld [vmem:[%s3716_s25 + $0x384] sm:$0xf]  ;;  %v2809_v57 = vld [vmem:[%s3716_s25 + $0x388] sm:$0xf0] }
 0x14b   : > { %2029 = vmatpush.bf16.msrb.mxu2 %v2732_v62  ;;  %v2628_v62 = vor.u32 %v3016_v53, %v2625_v54  ;;  %v2756_v9 = vor.u32 %v3048_v59, %v2753_v60  ;;  %v2881_v53 = vld [vmem:[%s3716_s25 + $0x418] sm:$0xf0]  ;;  %v2820_v54 = vor.u32 %v3064_v49, %v2817_v50  ;;  %v2873_v59 = vld [vmem:[%s3716_s25 + $0x408] sm:$0xf0]  ;;  %v2812_v60 = vor.u32 %v3062_v56, %v2809_v57 }
 0x14c   : > { %2043 = vmatpush.bf16.msrb.mxu3 %v2796_v2  ;;  %v2617_v2 = vld [vmem:[%s3716_s25 + $0x208] sm:$0xf0] }
 0x14d   : > { %2002 = vmatpush.bf16.msrb.mxu0 %v2596_v6  ;;  %v3076_v6 = vld [vmem:[%s3716_s25 + $0x3f4] sm:$0xf] }
 0x14e   : > { %2016 = vmatpush.bf16.msrb.mxu1 %v2660_v10  ;;  %v2681_v10 = vld [vmem:[%s3716_s25 + $0x288] sm:$0xf0]  ;;  %v2868_v17 = vor.u32 %v3076_v6, %v2865_v8 }
 0x14f   : > { %2030 = vmatpush.bf16.msrb.mxu2 %v2724_v14  ;;  %v2556_v14 = vor.u32 %v2998_v61, %v2553_v0  ;;  %v2684_v18 = vor.u32 %v3030_v5, %v2681_v10 }
 0x150   : > { %2044 = vmatpush.bf16.msrb.mxu3 %v2788_v35  ;;  %v2620_v35 = vor.u32 %v3014_v1, %v2617_v2 }
 0x151   : > { %2003 = vmatpush.bf16.msrb.mxu0 %v2588_v19  ;;  %v2932_v19 = vor.u32 %v3092_v12, %v2929_v13 }
 0x152   : > { %2017 = vmatpush.bf16.msrb.mxu1 %v2652_v21  ;;  %v2748_v21 = vor.u32 %v3046_v15, %v2745_v16 }
 0x153   : > { %2031 = vmatpush.bf16.msrb.mxu2 %v2716_v23  ;;  %v2860_v23 = vor.u32 %v3074_v20, %v2857_v29 }
 0x154   : > { %2045 = vmatpush.bf16.msrb.mxu3 %v2780_v27  ;;  %v2849_v27 = vld [vmem:[%s3716_s25 + $0x3d8] sm:$0xf0] }
 0x155   : > { %2004 = vmatpush.bf16.msrb.mxu0 %v2580_v31  ;;  %v2852_v31 = vor.u32 %v3072_v26, %v2849_v27 }
 0x156   : > { %2018 = vmatpush.bf16.msrb.mxu1 %v2644_v34  ;;  %v2841_v34 = vld [vmem:[%s3716_s25 + $0x3c8] sm:$0xf0] }
 0x157   : > { %2032 = vmatpush.bf16.msrb.mxu2 %v2708_v38  ;;  %v2833_v38 = vld [vmem:[%s3716_s25 + $0x3b8] sm:$0xf0] }
 0x158   : > { %2046 = vmatpush.bf16.msrb.mxu3 %v2772_v42  ;;  %v2836_v40 = vor.u32 %v3068_v37, %v2833_v38 }
 0x159   : > { %2005 = vmatpush.bf16.msrb.mxu0 %v2572_v45  ;;  %v3082_v45 = vld [vmem:[%s3716_s25 + $0x424] sm:$0xf] }
 0x15a   : > { %2019 = vmatpush.bf16.msrb.mxu1 %v2636_v48  ;;  %v2892_v48 = vor.u32 %v3082_v45, %v2889_v46 }
 0x15b   : > { %2033 = vmatpush.bf16.msrb.mxu2 %v2700_v51  ;;  %v3080_v51 = vld [vmem:[%s3716_s25 + $0x414] sm:$0xf] }
 0x15c   : > { %2047 = vmatpush.bf16.msrb.mxu3 %v2764_v55  ;;  %v2884_v55 = vor.u32 %v3080_v51, %v2881_v53 }
 0x15d   : > { %2006 = vmatpush.bf16.msrb.mxu0 %v2564_v58  ;;  %v3078_v58 = vld [vmem:[%s3716_s25 + $0x404] sm:$0xf] }
 0x15e   : > { %2020 = vmatpush.bf16.msrb.mxu1 %v2628_v62  ;;  %v2876_v61 = vor.u32 %v3078_v58, %v2873_v59 }
 0x15f   : > { %2034 = vmatpush.bf16.msrb.mxu2 %v2692_v4 }
 0x160   : > { %2048 = vmatpush.bf16.msrb.mxu3 %v2756_v9 }
 0x161   : > { %2007 = vmatpush.bf16.msrb.mxu0 %v2556_v14 }
 0x162   : > { %2021 = vmatpush.bf16.msrb.mxu1 %v2620_v35 }
 0x163   : > { %2035 = vmatpush.bf16.msrb.mxu2 %v2684_v18 }
 0x164   : > { %2049 = vmatpush.bf16.msrb.mxu3 %v2748_v21  ;;  %2008 = vmatmul.bf16.vlgmr.msrb.gmra.mxu0 %v3826_v41  ;;  %v3086_v41 = vld [vmem:[%s3716_s25 + $0x444] sm:$0xf] }
 0x165   : > { %2056 = vmatpush.bf16.msra.mxu0 %v2868_v17  ;;  %2022 = vmatmul.bf16.vlgmr.msrb.gmra.mxu1 %v3886_v63  ;;  %v2844_v63 = vor.u32 %v3070_v33, %v2841_v34  ;;  %v910_v33 = vld [vmem:[#allocation2 + $0x18] sm:$0xff] }
 0x166   : > { %2070 = vmatpush.bf16.msra.mxu1 %v2932_v19  ;;  %2036 = vmatmul.bf16.vlgmr.msrb.gmra.mxu2 %v3895_v7  ;;  %v2908_v7 = vor.u32 %v3086_v41, %v2905_v36 }
 0x167   : > { %2050 = vmatmul.bf16.vlgmr.msrb.gmra.mxu3 %v3891_v3  ;;  %v2897_v3 = vld [vmem:[%s3716_s25 + $0x438] sm:$0xf0] }
 0x168   : > { %v2900_v42 = vor.u32 %v3084_v39, %v2897_v3 }
 0x169   : > { %2057 = vmatpush.bf16.msra.mxu0 %v2860_v23  ;;  %v908_v23 = vld [vmem:[#allocation2 + $0x10] sm:$0xff] }
 0x16a   : > { %2071 = vmatpush.bf16.msra.mxu1 %v2924_v25 }
 0x16d   : > { %2058 = vmatpush.bf16.msra.mxu0 %v2852_v31 }
 0x16e   : > { %2072 = vmatpush.bf16.msra.mxu1 %v2916_v32 }
 0x171   : > { %2059 = vmatpush.bf16.msra.mxu0 %v2844_v63 }
 0x172   : > { %2073 = vmatpush.bf16.msra.mxu1 %v2908_v7 }
 0x175   : > { %2060 = vmatpush.bf16.msra.mxu0 %v2836_v40 }
 0x176   : > { %2074 = vmatpush.bf16.msra.mxu1 %v2900_v42 }
 0x179   : > { %2061 = vmatpush.bf16.msra.mxu0 %v2828_v47 }
 0x17a   : > { %2075 = vmatpush.bf16.msra.mxu1 %v2892_v48 }
 0x17d   : > { %2062 = vmatpush.bf16.msra.mxu0 %v2820_v54 }
 0x17e   : > { %2076 = vmatpush.bf16.msra.mxu1 %v2884_v55 }
 0x181   : > { %2063 = vmatpush.bf16.msra.mxu0 %v2812_v60  ;;  %v1841_v62 = vpop.f32.mrf.mxu0 }
 0x182   : > { %2077 = vmatpush.bf16.msra.mxu1 %v2876_v61  ;;  %v1855_v0 = vpop.f32.mrf.mxu1 }
 0x183   : > { %v1856_v5 = vadd.f32 %v1855_v0, %v1841_v62  ;;  %v909_v62 = vld [vmem:[#allocation2] sm:$0xff] }
 0x184   : > { %2064 = vmatmul.bf16.vlgmr.msra.gmra.mxu0 %v3899_v11 }
 0x185   : > { %2078 = vmatmul.bf16.vlgmr.msra.gmra.mxu1 %v3967_v52 }
 0x189   : > { %v1869_v1 = vpop.f32.mrf.mxu2  ;;  %v1843_v2 = vpop.f32.mrf.mxu0 }
 0x18a   : > { %v1883_v4 = vpop.f32.mrf.mxu3  ;;  %v1857_v6 = vpop.f32.mrf.mxu1  ;;  %v1870_v8 = vadd.f32 %v1869_v1, %v1856_v5 }
 0x18b   : > { %v1858_v14 = vadd.f32 %v1857_v6, %v1843_v2 }
 0x18c   : > { %v1884_v12 = vadd.f32 %v1883_v4, %v1870_v8 }
 0x191   : > { %v1871_v9 = vpop.f32.mrf.mxu2 }
 0x192   : > { %v1885_v13 = vpop.f32.mrf.mxu3  ;;  %v1872_v17 = vadd.f32 %v1871_v9, %v1858_v14  ;;  %v911_v9 = vld [vmem:[#allocation2 + $0x8] sm:$0xff] }
 0x194   : > { %v1886_v19 = vadd.f32 %v1885_v13, %v1872_v17 }
 0x1a1   : > { %v1897_v10 = vpop.f32.mrf.mxu0 }
 0x1a2   : > { %v1898_v15 = vadd.f32 %v1897_v10, %v1884_v12  ;;  %v1911_v16 = vpop.f32.mrf.mxu1 }
 0x1a4   : > { %v1912_v11 = vadd.f32 %v1911_v16, %v1898_v15 }
 0x1a9   : > { %v1925_v35 = vpop.f32.mrf.mxu2  ;;  %v1899_v18 = vpop.f32.mrf.mxu0 }
 0x1aa   : > { %v1939_v52 = vpop.f32.mrf.mxu3  ;;  %v1926_v20 = vadd.f32 %v1925_v35, %v1912_v11  ;;  %v1900_v29 = vadd.f32 %v1899_v18, %v1886_v19  ;;  %v1913_v21 = vpop.f32.mrf.mxu1 }
 0x1ac   : > { %v1940_v22 = vadd.f32 %v1939_v52, %v1926_v20  ;;  %v1914_v26 = vadd.f32 %v1913_v21, %v1900_v29 }
 0x1b1   : > { %v1927_v24 = vpop.f32.mrf.mxu2 }
 0x1b2   : > { %v1928_v28 = vadd.f32 %v1927_v24, %v1914_v26  ;;  %v1941_v31 = vpop.f32.mrf.mxu3 }
 0x1b4   : > { %v1942_v32 = vadd.f32 %v1941_v31, %v1928_v28 }
 0x1c1   : > { %v1953_v25 = vpop.f32.mrf.mxu0 }
 0x1c2   : > { %v1954_v27 = vadd.f32 %v1953_v25, %v1940_v22  ;;  %v1967_v63 = vpop.f32.mrf.mxu1 }
 0x1c4   : > { %v2084_v30 = vadd.f32 %v1954_v27, %v908_v23 }
 0x1c6   : > { %2088 = vst [vmem:[#allocation2 + $0x10] sm:$0xff] %v2084_v30 }
 0x1c9   : > { %v1955_v34 = vpop.f32.mrf.mxu0  ;;  %v1981_v7 = vpop.f32.mrf.mxu2 }
 0x1ca   : > { %v1956_v41 = vadd.f32 %v1955_v34, %v1942_v32  ;;  %v1969_v37 = vpop.f32.mrf.mxu1  ;;  %v1995_v38 = vpop.f32.mrf.mxu3  ;;  %v1982_v39 = vadd.f32 %v1981_v7, %v1967_v63 }
 0x1cc   : > { %v2086_v36 = vadd.f32 %v1956_v41, %v910_v33  ;;  %v1996_v42 = vadd.f32 %v1995_v38, %v1982_v39 }
 0x1ce   : > { %2090 = vst [vmem:[#allocation2 + $0x18] sm:$0xff] %v2086_v36 }
 0x1d1   : > { %v1983_v3 = vpop.f32.mrf.mxu2 }
 0x1d2   : > { %v1997_v44 = vpop.f32.mrf.mxu3  ;;  %v1984_v47 = vadd.f32 %v1983_v3, %v1969_v37 }
 0x1d4   : > { %v1998_v53 = vadd.f32 %v1997_v44, %v1984_v47 }
 0x1e1   : > { %v2009_v40 = vpop.f32.mrf.mxu0 }
 0x1e2   : > { %v2023_v43 = vpop.f32.mrf.mxu1  ;;  %v2010_v45 = vadd.f32 %v2009_v40, %v1996_v42 }
 0x1e4   : > { %v2024_v48 = vadd.f32 %v2023_v43, %v2010_v45 }
 0x1e9   : > { %v2037_v46 = vpop.f32.mrf.mxu2  ;;  %v2011_v49 = vpop.f32.mrf.mxu0 }
 0x1ea   : > { %v2025_v50 = vpop.f32.mrf.mxu1  ;;  %v2051_v51 = vpop.f32.mrf.mxu3  ;;  %v2038_v54 = vadd.f32 %v2037_v46, %v2024_v48  ;;  %v2012_v55 = vadd.f32 %v2011_v49, %v1998_v53 }
 0x1ec   : > { %v2052_v56 = vadd.f32 %v2051_v51, %v2038_v54  ;;  %v2026_v59 = vadd.f32 %v2025_v50, %v2012_v55 }
 0x1f1   : > { %v2039_v57 = vpop.f32.mrf.mxu2 }
 0x1f2   : > { %v2040_v0 = vadd.f32 %v2039_v57, %v2026_v59  ;;  %v2053_v2 = vpop.f32.mrf.mxu3 }
 0x1f4   : > { %v2054_v5 = vadd.f32 %v2053_v2, %v2040_v0 }
 0x201   : > { %v2065_v58 = vpop.f32.mrf.mxu0 }
 0x202   : > { %v2066_v60 = vadd.f32 %v2065_v58, %v2052_v56  ;;  %v2079_v61 = vpop.f32.mrf.mxu1 }
 0x204   : > { %v2080_v1 = vadd.f32 %v2079_v61, %v2066_v60 }
 0x206   : > { %v2085_v4 = vadd.f32 %v2080_v1, %v909_v62 }
 0x208   : > { %2089 = vst [vmem:[#allocation2] sm:$0xff] %v2085_v4 }
 0x209   : > { %v2067_v6 = vpop.f32.mrf.mxu0 }
 0x20a   : > { %v2068_v8 = vadd.f32 %v2067_v6, %v2054_v5  ;;  %v2081_v10 = vpop.f32.mrf.mxu1 }
 0x20c   : > { %v2082_v12 = vadd.f32 %v2081_v10, %v2068_v8  ;;  %2095 = sbr.rel (%p2933_p5) target bundleno = 547 (0x223), region = 104 }
 0x20e   : > { %v2087_v13 = vadd.f32 %v2082_v12, %v911_v9 }
 0x210   : > { %2091 = vst [vmem:[#allocation2 + $0x8] sm:$0xff] %v2087_v13 }
 0x211   : > { %v2096_v14 = vld [vmem:[%s3712_s6] sm:$0x77]  ;;  %v2097_v15 = vld [vmem:[#allocation2 + $0x10] sm:$0xff]  ;;  %v2099_v20 = vld [vmem:[#allocation2 + $0x18] sm:$0xff] }
 0x212   : > { %v2102_v16 = vperm.slane %v2096_v14, 0  ;;  %v2103_v35 = vperm.slane %v2096_v14, 4  ;;  %v2116_v17 = vperm.slane %v2096_v14, 1  ;;  %v2117_v11 = vperm.slane %v2096_v14, 5  ;;  %v2098_v18 = vld [vmem:[#allocation2] sm:$0xff] }
 0x213   : > { %v2126_v52 = vperm.slane %v2096_v14, 2  ;;  %v2127_v19 = vperm.slane %v2096_v14, 6 }
 0x214   : > { %v2106_v21 = vperm.slane %v2102_v16, 0  ;;  %v2107_v22 = vperm.slane %v2103_v35, 0  ;;  %v2120_v24 = vperm.slane %v2116_v17, 1  ;;  %v2121_v23 = vperm.slane %v2117_v11, 1 }
 0x215   : > { %v2130_v30 = vperm.slane %v2126_v52, 2  ;;  %v2131_v31 = vperm.slane %v2127_v19, 2 }
 0x216   : > { %v2108_v25 = vadd.f32 %v2106_v21, %v2097_v15  ;;  %v2109_v26 = vadd.f32 %v2107_v22, %v2098_v18  ;;  %v2110_v27 = vadd.f32 %v2106_v21, %v2099_v20 }
 0x217   : > { %v2100_v29 = vld [vmem:[#allocation2 + $0x8] sm:$0xff] }
 0x218   : > { %v2111_v28 = vadd.f32 %v2107_v22, %v2100_v29  ;;  %v2112_v32 = vmax.f32 %v2108_v25, 0.0  ;;  %v2113_v33 = vmax.f32 %v2109_v26, 0.0  ;;  %v2114_v34 = vmax.f32 %v2110_v27, 0.0 }
 0x21a   : > { %v2115_v41 = vmax.f32 %v2111_v28, 0.0  ;;  %v2122_v36 = vmul.f32 %v2120_v24, %v2112_v32  ;;  %v2123_v63 = vmul.f32 %v2121_v23, %v2113_v33  ;;  %v2124_v7 = vmul.f32 %v2120_v24, %v2114_v34 }
 0x21c   : > { %v2125_v37 = vmul.f32 %v2121_v23, %v2115_v41  ;;  %v2132_v38 = vadd.f32 %v2130_v30, %v2122_v36  ;;  %v2133_v39 = vadd.f32 %v2131_v31, %v2123_v63  ;;  %v2134_v3 = vadd.f32 %v2130_v30, %v2124_v7 }
 0x21e   : > { %v2135_v40 = vadd.f32 %v2131_v31, %v2125_v37  ;;  %v2136_v42 = vpack.c.bf16 %v2133_v39, %v2132_v38 }
 0x220   : > { %v2137_v43 = vpack.c.bf16 %v2135_v40, %v2134_v3  ;;  %2138 = vst [vmem:[%s3718_s24] sm:$0xff] %v2136_v42 }
 0x222   : > { %2139 = vst [vmem:[%s3718_s24 + $0x8] sm:$0xff] %v2137_v43 }
 0x223 PF: > { %2146 = sbr.rel (!%p3391_p12) target bundleno = 555 (0x22b), region = 108  ;;  %s3094_s1 = sshll.u32 (%p3391_p12), %s3262_s19, 3 }
 0x224   : > { %s2152_s16 = scalar_lea.vmem (%p3391_p12), %s4111_s3, %s3094_s1 }
 0x227   : > { %v2183_v44 = vld [vmem:[%s3718_s24] sm:$0xff] (%p3391_p12) }
 0x228   : > { %2184 = vst [vmem:[%s2152_s16] sm:$0xff] %v2183_v44 }
 0x229   : > { %v2185_v45 = vld [vmem:[%s3718_s24 + $0x8] sm:$0xff] }
 0x22a   : > { %2186 = vst [vmem:[%s2152_s16 + $0x10] sm:$0xff] %v2185_v45 }
 0x22b PF: > { %s13_s22 = sadd.s32 1, %s3274_s22   ;;  %s4123_s24 = sld [smem:[#allocation6_spill]] }
 0x22c   : > { %p10_p6 = scmp.ge.s32.totalorder %s13_s22, 6   ;;  %s4124_s25 = sld [smem:[#allocation7_spill]] }
 0x22d   : > { %s4125_s12 = smov %s3238_s13  ;;  %s4126_s13 = smov %s3389_s9 }
 0x22e   : > { %s4127_s14 = smov %s3246_s15  ;;  %s4128_s15 = smov %s3386_s8 }
 0x22f   : > { %s4129_s16 = smov %s3254_s17  ;;  %s4130_s17 = smov %s3372_s30 }
 0x230   : > { %s4131_s18 = smov %s3266_s20  ;;  %s4132_s19 = smov %s3270_s21 }
 0x231   : > { %s4133_s20 = smov %s4123_s24  ;;  %12 = sbr.rel (!%p10_p6) target bundleno = 9 (0x9), region = 194 }
 0x232   : > { %s4134_s21 = smov %s4124_s25 }

// kernel: siamese_forward.15
= control target key start
LH: loop header
LB: loop body
LE: loop exit
PB: predicated region body
PF: predicated region fallthrough
CT: control target
= control target key end

     0   :  { %s9035_s12 = smov 0   ;;  %s9037_s13 = smov 0   ;;  %s11095_s0 = inlined_call_operand.vmem [shape: bf16[16,2048], index: 0, kind: input, shape index: {}]   ;;  %s11096_s1 = inlined_call_operand.vmem [shape: bf16[2048,1024], index: 1, kind: input, shape index: {}]   ;;  %s11097_s2 = inlined_call_operand.vmem [shape: f32[3,1024], index: 2, kind: input, shape index: {}]   ;;  %s11098_s3 = inlined_call_operand.vmem [shape: f32[16,1024], index: 3, kind: output, shape index: {}]  }
   0x1   :  { %s9039_s14 = smov 0   ;;  %s9041_s15 = smov 0  }
   0x2   :  { %s9043_s16 = smov 0  }
   0x3 LB: > { %s28_s17 = sadd.s32 1, %s8993_s15  ;;  %s6208_s18 = sadd.s32 4294967295, %s8997_s16   ;;  %s8997_s16 = sphi %s9043_s16, %s13_s16   ;;  %s8993_s15 = sphi %s9041_s15, %s11109_s15   ;;  %s8989_s14 = sphi %s9039_s14, %s11108_s14   ;;  %s8985_s13 = sphi %s9037_s13, %s11107_s13   ;;  %s8981_s12 = sphi %s9035_s12, %s11106_s12  }
   0x4   : > { %p30_p0 = scmp.ge.s32.totalorder %s28_s17, 2  ;;  %p76_p1 = scmp.ne.s32.totalorder %s8985_s13, %s8981_s12 }
   0x5   : > { %p77_p2 = scmp.eq.s32.totalorder %s8997_s16, 0  ;;  %p134_p4 = scmp.eq.s32.totalorder %s6208_s18, 1 }
   0x6   : > { %s11111_s17 = smov (%p30_p0, %s28_s17), 0  ;;  %s69_s20 = sadd.s32 1, %s8985_s13 }
   0x7   : > { %p78_p3 = por %p77_p2, %p76_p1  ;;  %s65_s19 = ssub.s32 %s8993_s15, %s11111_s17 }
   0x8   : > { %p67_p5 = scmp.eq.s32.totalorder %s65_s19, 0  ;;  %p9070_p6 = por %p134_p4, %p76_p1 }
   0x9   : > { %p6212_p7 = scmp.ge.s32.totalorder %s8997_s16, 2 }
   0xa   : > { %s9075_s22 = scalar_select %p67_p5, %s8985_s13, %s69_s20  }
   0xb   : > { %171 = sbr.rel (%p6212_p7) target bundleno = 278 (0x116), region = 20 }
  0x10   : > { %174 = sbr.rel (!%p78_p3) target bundleno = 278 (0x116), region = 24  ;;  %s176_s23 = sand.u32 (%p78_p3), 1, %s8985_s13  }
  0x11   : > { %s8340_s24 = sshll.u32 (%p78_p3), %s8993_s15, 4  ;;  %s9080_s25 = sshll.u32 (%p78_p3), %s176_s23, 12 }
  0x12   : > { %s9085_s28 = scalar_lea.vmem (%p78_p3), %s11096_s1, %s8340_s24   ;;  %s178_s29 = scalar_lea.vmem (%p78_p3), [#allocation3], %s9080_s25  }
  0x13   : > { %s11100_s30 = smov (%p78_p3), %s178_s29  ;;  %s11101_s4 = smov (%p78_p3), %s9085_s28 }
  0x14   : > { %s9095_s5 = smov (%p78_p3), 0   ;;  %s9097_s6 = smov (%p78_p3), 0  }
  0x15 LB: >> { %v198_v0 = vld [vmem:[%s9005_s4] sm:$0xff]  ;;  %s710_s7 = sadd.s32 1, %s9009_s5  ;;  %s194_s6 = sadd.s32 1, %s9013_s6   ;;  %s9013_s6 = sphi %s9097_s6, %s194_s6   ;;  %s9009_s5 = sphi %s9095_s5, %s11104_s5   ;;  %s9005_s4 = sphi %s11101_s4, %s11103_s4   ;;  %s9001_s30 = sphi %s11100_s30, %s11102_s30  }
  0x16   : >> { %v200_v1 = vld [vmem:[%s9005_s4 + $0x20] sm:$0xff]  ;;  %199 = vst [vmem:[%s9001_s30] sm:$0xff] %v198_v0  ;;  %p711_p8 = scmp.ge.s32.totalorder %s710_s7, 2  ;;  %p191_p9 = scmp.ge.s32.totalorder %s194_s6, 2  }
  0x17   : >> { %v202_v2 = vld [vmem:[%s9005_s4 + $0x40] sm:$0xff]  ;;  %201 = vst [vmem:[%s9001_s30 + $0x10] sm:$0xff] %v200_v1 }
  0x18   : >> { %v204_v3 = vld [vmem:[%s9005_s4 + $0x60] sm:$0xff]  ;;  %203 = vst [vmem:[%s9001_s30 + $0x20] sm:$0xff] %v202_v2  ;;  %s11113_s7 = smov (%p711_p8, %s710_s7), 0 }
  0x19   : >> { %v206_v4 = vld [vmem:[%s9005_s4 + $0x80] sm:$0xff]  ;;  %205 = vst [vmem:[%s9001_s30 + $0x30] sm:$0xff] %v204_v3  ;;  %s6216_s8 = sshll.u32 %s11113_s7, 3  ;;  %s11104_s5 = smov %s11113_s7 }
  0x1a   : >> { %v208_v5 = vld [vmem:[%s9005_s4 + $0xa0] sm:$0xff]  ;;  %207 = vst [vmem:[%s9001_s30 + $0x40] sm:$0xff] %v206_v4  ;;  %s9375_s9 = scalar_lea.vmem %s9085_s28, %s6216_s8   ;;  %s9379_s10 = scalar_lea.vmem %s178_s29, %s6216_s8 [#allocation3]  }
  0x1b   : >> { %v210_v6 = vld [vmem:[%s9005_s4 + $0xc0] sm:$0xff]  ;;  %209 = vst [vmem:[%s9001_s30 + $0x50] sm:$0xff] %v208_v5 }
  0x1c   : >> { %v212_v7 = vld [vmem:[%s9005_s4 + $0xe0] sm:$0xff]  ;;  %211 = vst [vmem:[%s9001_s30 + $0x60] sm:$0xff] %v210_v6 }
  0x1d   : >> { %v214_v8 = vld [vmem:[%s9005_s4 + $0x100] sm:$0xff]  ;;  %213 = vst [vmem:[%s9001_s30 + $0x70] sm:$0xff] %v212_v7 }
  0x1e   : >> { %v216_v9 = vld [vmem:[%s9005_s4 + $0x120] sm:$0xff]  ;;  %215 = vst [vmem:[%s9001_s30 + $0x80] sm:$0xff] %v214_v8 }
  0x1f   : >> { %v218_v10 = vld [vmem:[%s9005_s4 + $0x140] sm:$0xff]  ;;  %217 = vst [vmem:[%s9001_s30 + $0x90] sm:$0xff] %v216_v9 }
  0x20   : >> { %v220_v11 = vld [vmem:[%s9005_s4 + $0x160] sm:$0xff]  ;;  %219 = vst [vmem:[%s9001_s30 + $0xa0] sm:$0xff] %v218_v10 }
  0x21   : >> { %v222_v12 = vld [vmem:[%s9005_s4 + $0x180] sm:$0xff]  ;;  %221 = vst [vmem:[%s9001_s30 + $0xb0] sm:$0xff] %v220_v11 }
  0x22   : >> { %v224_v13 = vld [vmem:[%s9005_s4 + $0x1a0] sm:$0xff]  ;;  %223 = vst [vmem:[%s9001_s30 + $0xc0] sm:$0xff] %v222_v12 }
  0x23   : >> { %v226_v14 = vld [vmem:[%s9005_s4 + $0x1c0] sm:$0xff]  ;;  %225 = vst [vmem:[%s9001_s30 + $0xd0] sm:$0xff] %v224_v13 }
  0x24   : >> { %v228_v15 = vld [vmem:[%s9005_s4 + $0x1e0] sm:$0xff]  ;;  %227 = vst [vmem:[%s9001_s30 + $0xe0] sm:$0xff] %v226_v14 }
  0x25   : >> { %v230_v16 = vld [vmem:[%s9005_s4 + $0x200] sm:$0xff]  ;;  %229 = vst [vmem:[%s9001_s30 + $0xf0] sm:$0xff] %v228_v15 }
  0x26   : >> { %v232_v17 = vld [vmem:[%s9005_s4 + $0x220] sm:$0xff]  ;;  %231 = vst [vmem:[%s9001_s30 + $0x100] sm:$0xff] %v230_v16 }
  0x27   : >> { %v234_v18 = vld [vmem:[%s9005_s4 + $0x240] sm:$0xff]  ;;  %233 = vst [vmem:[%s9001_s30 + $0x110] sm:$0xff] %v232_v17 }
  0x28   : >> { %v236_v19 = vld [vmem:[%s9005_s4 + $0x260] sm:$0xff]  ;;  %235 = vst [vmem:[%s9001_s30 + $0x120] sm:$0xff] %v234_v18 }
  0x29   : >> { %v238_v20 = vld [vmem:[%s9005_s4 + $0x280] sm:$0xff]  ;;  %237 = vst [vmem:[%s9001_s30 + $0x130] sm:$0xff] %v236_v19 }
  0x2a   : >> { %v240_v21 = vld [vmem:[%s9005_s4 + $0x2a0] sm:$0xff]  ;;  %239 = vst [vmem:[%s9001_s30 + $0x140] sm:$0xff] %v238_v20 }
  0x2b   : >> { %v242_v22 = vld [vmem:[%s9005_s4 + $0x2c0] sm:$0xff]  ;;  %241 = vst [vmem:[%s9001_s30 + $0x150] sm:$0xff] %v240_v21 }
  0x2c   : >> { %v244_v23 = vld [vmem:[%s9005_s4 + $0x2e0] sm:$0xff]  ;;  %243 = vst [vmem:[%s9001_s30 + $0x160] sm:$0xff] %v242_v22 }
  0x2d   : >> { %v246_v24 = vld [vmem:[%s9005_s4 + $0x300] sm:$0xff]  ;;  %245 = vst [vmem:[%s9001_s30 + $0x170] sm:$0xff] %v244_v23 }
  0x2e   : >> { %v248_v25 = vld [vmem:[%s9005_s4 + $0x320] sm:$0xff]  ;;  %247 = vst [vmem:[%s9001_s30 + $0x180] sm:$0xff] %v246_v24 }
  0x2f   : >> { %v250_v26 = vld [vmem:[%s9005_s4 + $0x340] sm:$0xff]  ;;  %249 = vst [vmem:[%s9001_s30 + $0x190] sm:$0xff] %v248_v25 }
  0x30   : >> { %v252_v27 = vld [vmem:[%s9005_s4 + $0x360] sm:$0xff]  ;;  %251 = vst [vmem:[%s9001_s30 + $0x1a0] sm:$0xff] %v250_v26 }
  0x31   : >> { %v254_v28 = vld [vmem:[%s9005_s4 + $0x380] sm:$0xff]  ;;  %253 = vst [vmem:[%s9001_s30 + $0x1b0] sm:$0xff] %v252_v27 }
  0x32   : >> { %v256_v29 = vld [vmem:[%s9005_s4 + $0x3a0] sm:$0xff]  ;;  %255 = vst [vmem:[%s9001_s30 + $0x1c0] sm:$0xff] %v254_v28 }
  0x33   : >> { %v258_v30 = vld [vmem:[%s9005_s4 + $0x3c0] sm:$0xff]  ;;  %257 = vst [vmem:[%s9001_s30 + $0x1d0] sm:$0xff] %v256_v29 }
  0x34   : >> { %v260_v31 = vld [vmem:[%s9005_s4 + $0x3e0] sm:$0xff]  ;;  %259 = vst [vmem:[%s9001_s30 + $0x1e0] sm:$0xff] %v258_v30 }
  0x35   : >> { %v262_v32 = vld [vmem:[%s9005_s4 + $0x400] sm:$0xff]  ;;  %261 = vst [vmem:[%s9001_s30 + $0x1f0] sm:$0xff] %v260_v31 }
  0x36   : >> { %v264_v33 = vld [vmem:[%s9005_s4 + $0x420] sm:$0xff]  ;;  %263 = vst [vmem:[%s9001_s30 + $0x200] sm:$0xff] %v262_v32 }
  0x37   : >> { %v266_v34 = vld [vmem:[%s9005_s4 + $0x440] sm:$0xff]  ;;  %265 = vst [vmem:[%s9001_s30 + $0x210] sm:$0xff] %v264_v33 }
  0x38   : >> { %v268_v35 = vld [vmem:[%s9005_s4 + $0x460] sm:$0xff]  ;;  %267 = vst [vmem:[%s9001_s30 + $0x220] sm:$0xff] %v266_v34 }
  0x39   : >> { %v270_v36 = vld [vmem:[%s9005_s4 + $0x480] sm:$0xff]  ;;  %269 = vst [vmem:[%s9001_s30 + $0x230] sm:$0xff] %v268_v35 }
  0x3a   : >> { %v272_v37 = vld [vmem:[%s9005_s4 + $0x4a0] sm:$0xff]  ;;  %271 = vst [vmem:[%s9001_s30 + $0x240] sm:$0xff] %v270_v36 }
  0x3b   : >> { %v274_v38 = vld [vmem:[%s9005_s4 + $0x4c0] sm:$0xff]  ;;  %273 = vst [vmem:[%s9001_s30 + $0x250] sm:$0xff] %v272_v37 }
  0x3c   : >> { %v276_v39 = vld [vmem:[%s9005_s4 + $0x4e0] sm:$0xff]  ;;  %275 = vst [vmem:[%s9001_s30 + $0x260] sm:$0xff] %v274_v38 }
  0x3d   : >> { %v278_v40 = vld [vmem:[%s9005_s4 + $0x500] sm:$0xff]  ;;  %277 = vst [vmem:[%s9001_s30 + $0x270] sm:$0xff] %v276_v39 }
  0x3e   : >> { %v280_v41 = vld [vmem:[%s9005_s4 + $0x520] sm:$0xff]  ;;  %279 = vst [vmem:[%s9001_s30 + $0x280] sm:$0xff] %v278_v40 }
  0x3f   : >> { %v282_v42 = vld [vmem:[%s9005_s4 + $0x540] sm:$0xff]  ;;  %281 = vst [vmem:[%s9001_s30 + $0x290] sm:$0xff] %v280_v41 }
  0x40   : >> { %v284_v43 = vld [vmem:[%s9005_s4 + $0x560] sm:$0xff]  ;;  %283 = vst [vmem:[%s9001_s30 + $0x2a0] sm:$0xff] %v282_v42 }
  0x41   : >> { %v286_v44 = vld [vmem:[%s9005_s4 + $0x580] sm:$0xff]  ;;  %285 = vst [vmem:[%s9001_s30 + $0x2b0] sm:$0xff] %v284_v43 }
  0x42   : >> { %v288_v45 = vld [vmem:[%s9005_s4 + $0x5a0] sm:$0xff]  ;;  %287 = vst [vmem:[%s9001_s30 + $0x2c0] sm:$0xff] %v286_v44 }
  0x43   : >> { %v290_v46 = vld [vmem:[%s9005_s4 + $0x5c0] sm:$0xff]  ;;  %289 = vst [vmem:[%s9001_s30 + $0x2d0] sm:$0xff] %v288_v45 }
  0x44   : >> { %v292_v47 = vld [vmem:[%s9005_s4 + $0x5e0] sm:$0xff]  ;;  %291 = vst [vmem:[%s9001_s30 + $0x2e0] sm:$0xff] %v290_v46 }
  0x45   : >> { %v294_v48 = vld [vmem:[%s9005_s4 + $0x600] sm:$0xff]  ;;  %293 = vst [vmem:[%s9001_s30 + $0x2f0] sm:$0xff] %v292_v47 }
  0x46   : >> { %v296_v49 = vld [vmem:[%s9005_s4 + $0x620] sm:$0xff]  ;;  %295 = vst [vmem:[%s9001_s30 + $0x300] sm:$0xff] %v294_v48 }
  0x47   : >> { %v298_v50 = vld [vmem:[%s9005_s4 + $0x640] sm:$0xff]  ;;  %297 = vst [vmem:[%s9001_s30 + $0x310] sm:$0xff] %v296_v49 }
  0x48   : >> { %v300_v51 = vld [vmem:[%s9005_s4 + $0x660] sm:$0xff]  ;;  %299 = vst [vmem:[%s9001_s30 + $0x320] sm:$0xff] %v298_v50 }
  0x49   : >> { %v302_v52 = vld [vmem:[%s9005_s4 + $0x680] sm:$0xff]  ;;  %301 = vst [vmem:[%s9001_s30 + $0x330] sm:$0xff] %v300_v51 }
  0x4a   : >> { %v304_v53 = vld [vmem:[%s9005_s4 + $0x6a0] sm:$0xff]  ;;  %303 = vst [vmem:[%s9001_s30 + $0x340] sm:$0xff] %v302_v52 }
  0x4b   : >> { %v306_v54 = vld [vmem:[%s9005_s4 + $0x6c0] sm:$0xff]  ;;  %305 = vst [vmem:[%s9001_s30 + $0x350] sm:$0xff] %v304_v53 }
  0x4c   : >> { %v308_v55 = vld [vmem:[%s9005_s4 + $0x6e0] sm:$0xff]  ;;  %307 = vst [vmem:[%s9001_s30 + $0x360] sm:$0xff] %v306_v54 }
  0x4d   : >> { %v310_v56 = vld [vmem:[%s9005_s4 + $0x700] sm:$0xff]  ;;  %309 = vst [vmem:[%s9001_s30 + $0x370] sm:$0xff] %v308_v55 }
  0x4e   : >> { %v312_v57 = vld [vmem:[%s9005_s4 + $0x720] sm:$0xff]  ;;  %311 = vst [vmem:[%s9001_s30 + $0x380] sm:$0xff] %v310_v56 }
  0x4f   : >> { %v314_v58 = vld [vmem:[%s9005_s4 + $0x740] sm:$0xff]  ;;  %313 = vst [vmem:[%s9001_s30 + $0x390] sm:$0xff] %v312_v57 }
  0x50   : >> { %v316_v59 = vld [vmem:[%s9005_s4 + $0x760] sm:$0xff]  ;;  %315 = vst [vmem:[%s9001_s30 + $0x3a0] sm:$0xff] %v314_v58 }
  0x51   : >> { %v318_v60 = vld [vmem:[%s9005_s4 + $0x780] sm:$0xff]  ;;  %317 = vst [vmem:[%s9001_s30 + $0x3b0] sm:$0xff] %v316_v59 }
  0x52   : >> { %v320_v61 = vld [vmem:[%s9005_s4 + $0x7a0] sm:$0xff]  ;;  %319 = vst [vmem:[%s9001_s30 + $0x3c0] sm:$0xff] %v318_v60 }
  0x53   : >> { %v322_v62 = vld [vmem:[%s9005_s4 + $0x7c0] sm:$0xff]  ;;  %321 = vst [vmem:[%s9001_s30 + $0x3d0] sm:$0xff] %v320_v61 }
  0x54   : >> { %v324_v63 = vld [vmem:[%s9005_s4 + $0x7e0] sm:$0xff]  ;;  %323 = vst [vmem:[%s9001_s30 + $0x3e0] sm:$0xff] %v322_v62 }
  0x55   : >> { %v326_v0 = vld [vmem:[%s9005_s4 + $0x800] sm:$0xff]  ;;  %325 = vst [vmem:[%s9001_s30 + $0x3f0] sm:$0xff] %v324_v63 }
  0x56   : >> { %v328_v1 = vld [vmem:[%s9005_s4 + $0x820] sm:$0xff]  ;;  %327 = vst [vmem:[%s9001_s30 + $0x400] sm:$0xff] %v326_v0 }
  0x57   : >> { %v330_v2 = vld [vmem:[%s9005_s4 + $0x840] sm:$0xff]  ;;  %329 = vst [vmem:[%s9001_s30 + $0x410] sm:$0xff] %v328_v1 }
  0x58   : >> { %v332_v3 = vld [vmem:[%s9005_s4 + $0x860] sm:$0xff]  ;;  %331 = vst [vmem:[%s9001_s30 + $0x420] sm:$0xff] %v330_v2 }
  0x59   : >> { %v334_v4 = vld [vmem:[%s9005_s4 + $0x880] sm:$0xff]  ;;  %333 = vst [vmem:[%s9001_s30 + $0x430] sm:$0xff] %v332_v3 }
  0x5a   : >> { %v336_v5 = vld [vmem:[%s9005_s4 + $0x8a0] sm:$0xff]  ;;  %335 = vst [vmem:[%s9001_s30 + $0x440] sm:$0xff] %v334_v4 }
  0x5b   : >> { %v338_v6 = vld [vmem:[%s9005_s4 + $0x8c0] sm:$0xff]  ;;  %337 = vst [vmem:[%s9001_s30 + $0x450] sm:$0xff] %v336_v5 }
  0x5c   : >> { %v340_v7 = vld [vmem:[%s9005_s4 + $0x8e0] sm:$0xff]  ;;  %339 = vst [vmem:[%s9001_s30 + $0x460] sm:$0xff] %v338_v6 }
  0x5d   : >> { %v342_v8 = vld [vmem:[%s9005_s4 + $0x900] sm:$0xff]  ;;  %341 = vst [vmem:[%s9001_s30 + $0x470] sm:$0xff] %v340_v7 }
  0x5e   : >> { %v344_v9 = vld [vmem:[%s9005_s4 + $0x920] sm:$0xff]  ;;  %343 = vst [vmem:[%s9001_s30 + $0x480] sm:$0xff] %v342_v8 }
  0x5f   : >> { %v346_v10 = vld [vmem:[%s9005_s4 + $0x940] sm:$0xff]  ;;  %345 = vst [vmem:[%s9001_s30 + $0x490] sm:$0xff] %v344_v9 }
  0x60   : >> { %v348_v11 = vld [vmem:[%s9005_s4 + $0x960] sm:$0xff]  ;;  %347 = vst [vmem:[%s9001_s30 + $0x4a0] sm:$0xff] %v346_v10 }
  0x61   : >> { %v350_v12 = vld [vmem:[%s9005_s4 + $0x980] sm:$0xff]  ;;  %349 = vst [vmem:[%s9001_s30 + $0x4b0] sm:$0xff] %v348_v11 }
  0x62   : >> { %v352_v13 = vld [vmem:[%s9005_s4 + $0x9a0] sm:$0xff]  ;;  %351 = vst [vmem:[%s9001_s30 + $0x4c0] sm:$0xff] %v350_v12 }
  0x63   : >> { %v354_v14 = vld [vmem:[%s9005_s4 + $0x9c0] sm:$0xff]  ;;  %353 = vst [vmem:[%s9001_s30 + $0x4d0] sm:$0xff] %v352_v13 }
  0x64   : >> { %v356_v15 = vld [vmem:[%s9005_s4 + $0x9e0] sm:$0xff]  ;;  %355 = vst [vmem:[%s9001_s30 + $0x4e0] sm:$0xff] %v354_v14 }
  0x65   : >> { %v358_v16 = vld [vmem:[%s9005_s4 + $0xa00] sm:$0xff]  ;;  %357 = vst [vmem:[%s9001_s30 + $0x4f0] sm:$0xff] %v356_v15 }
  0x66   : >> { %v360_v17 = vld [vmem:[%s9005_s4 + $0xa20] sm:$0xff]  ;;  %359 = vst [vmem:[%s9001_s30 + $0x500] sm:$0xff] %v358_v16 }
  0x67   : >> { %v362_v18 = vld [vmem:[%s9005_s4 + $0xa40] sm:$0xff]  ;;  %361 = vst [vmem:[%s9001_s30 + $0x510] sm:$0xff] %v360_v17 }
  0x68   : >> { %v364_v19 = vld [vmem:[%s9005_s4 + $0xa60] sm:$0xff]  ;;  %363 = vst [vmem:[%s9001_s30 + $0x520] sm:$0xff] %v362_v18 }
  0x69   : >> { %v366_v20 = vld [vmem:[%s9005_s4 + $0xa80] sm:$0xff]  ;;  %365 = vst [vmem:[%s9001_s30 + $0x530] sm:$0xff] %v364_v19 }
  0x6a   : >> { %v368_v21 = vld [vmem:[%s9005_s4 + $0xaa0] sm:$0xff]  ;;  %367 = vst [vmem:[%s9001_s30 + $0x540] sm:$0xff] %v366_v20 }
  0x6b   : >> { %v370_v22 = vld [vmem:[%s9005_s4 + $0xac0] sm:$0xff]  ;;  %369 = vst [vmem:[%s9001_s30 + $0x550] sm:$0xff] %v368_v21 }
  0x6c   : >> { %v372_v23 = vld [vmem:[%s9005_s4 + $0xae0] sm:$0xff]  ;;  %371 = vst [vmem:[%s9001_s30 + $0x560] sm:$0xff] %v370_v22 }
  0x6d   : >> { %v374_v24 = vld [vmem:[%s9005_s4 + $0xb00] sm:$0xff]  ;;  %373 = vst [vmem:[%s9001_s30 + $0x570] sm:$0xff] %v372_v23 }
  0x6e   : >> { %v376_v25 = vld [vmem:[%s9005_s4 + $0xb20] sm:$0xff]  ;;  %375 = vst [vmem:[%s9001_s30 + $0x580] sm:$0xff] %v374_v24 }
  0x6f   : >> { %v378_v26 = vld [vmem:[%s9005_s4 + $0xb40] sm:$0xff]  ;;  %377 = vst [vmem:[%s9001_s30 + $0x590] sm:$0xff] %v376_v25 }
  0x70   : >> { %v380_v27 = vld [vmem:[%s9005_s4 + $0xb60] sm:$0xff]  ;;  %379 = vst [vmem:[%s9001_s30 + $0x5a0] sm:$0xff] %v378_v26 }
  0x71   : >> { %v382_v28 = vld [vmem:[%s9005_s4 + $0xb80] sm:$0xff]  ;;  %381 = vst [vmem:[%s9001_s30 + $0x5b0] sm:$0xff] %v380_v27 }
  0x72   : >> { %v384_v29 = vld [vmem:[%s9005_s4 + $0xba0] sm:$0xff]  ;;  %383 = vst [vmem:[%s9001_s30 + $0x5c0] sm:$0xff] %v382_v28 }
  0x73   : >> { %v386_v30 = vld [vmem:[%s9005_s4 + $0xbc0] sm:$0xff]  ;;  %385 = vst [vmem:[%s9001_s30 + $0x5d0] sm:$0xff] %v384_v29 }
  0x74   : >> { %v388_v31 = vld [vmem:[%s9005_s4 + $0xbe0] sm:$0xff]  ;;  %387 = vst [vmem:[%s9001_s30 + $0x5e0] sm:$0xff] %v386_v30 }
  0x75   : >> { %v390_v32 = vld [vmem:[%s9005_s4 + $0xc00] sm:$0xff]  ;;  %389 = vst [vmem:[%s9001_s30 + $0x5f0] sm:$0xff] %v388_v31 }
  0x76   : >> { %v392_v33 = vld [vmem:[%s9005_s4 + $0xc20] sm:$0xff]  ;;  %391 = vst [vmem:[%s9001_s30 + $0x600] sm:$0xff] %v390_v32 }
  0x77   : >> { %v394_v34 = vld [vmem:[%s9005_s4 + $0xc40] sm:$0xff]  ;;  %393 = vst [vmem:[%s9001_s30 + $0x610] sm:$0xff] %v392_v33 }
  0x78   : >> { %v396_v35 = vld [vmem:[%s9005_s4 + $0xc60] sm:$0xff]  ;;  %395 = vst [vmem:[%s9001_s30 + $0x620] sm:$0xff] %v394_v34 }
  0x79   : >> { %v398_v36 = vld [vmem:[%s9005_s4 + $0xc80] sm:$0xff]  ;;  %397 = vst [vmem:[%s9001_s30 + $0x630] sm:$0xff] %v396_v35 }
  0x7a   : >> { %v400_v37 = vld [vmem:[%s9005_s4 + $0xca0] sm:$0xff]  ;;  %399 = vst [vmem:[%s9001_s30 + $0x640] sm:$0xff] %v398_v36 }
  0x7b   : >> { %v402_v38 = vld [vmem:[%s9005_s4 + $0xcc0] sm:$0xff]  ;;  %401 = vst [vmem:[%s9001_s30 + $0x650] sm:$0xff] %v400_v37 }
  0x7c   : >> { %v404_v39 = vld [vmem:[%s9005_s4 + $0xce0] sm:$0xff]  ;;  %403 = vst [vmem:[%s9001_s30 + $0x660] sm:$0xff] %v402_v38 }
  0x7d   : >> { %v406_v40 = vld [vmem:[%s9005_s4 + $0xd00] sm:$0xff]  ;;  %405 = vst [vmem:[%s9001_s30 + $0x670] sm:$0xff] %v404_v39 }
  0x7e   : >> { %v408_v41 = vld [vmem:[%s9005_s4 + $0xd20] sm:$0xff]  ;;  %407 = vst [vmem:[%s9001_s30 + $0x680] sm:$0xff] %v406_v40 }
  0x7f   : >> { %v410_v42 = vld [vmem:[%s9005_s4 + $0xd40] sm:$0xff]  ;;  %409 = vst [vmem:[%s9001_s30 + $0x690] sm:$0xff] %v408_v41 }
  0x80   : >> { %v412_v43 = vld [vmem:[%s9005_s4 + $0xd60] sm:$0xff]  ;;  %411 = vst [vmem:[%s9001_s30 + $0x6a0] sm:$0xff] %v410_v42 }
  0x81   : >> { %v414_v44 = vld [vmem:[%s9005_s4 + $0xd80] sm:$0xff]  ;;  %413 = vst [vmem:[%s9001_s30 + $0x6b0] sm:$0xff] %v412_v43 }
  0x82   : >> { %v416_v45 = vld [vmem:[%s9005_s4 + $0xda0] sm:$0xff]  ;;  %415 = vst [vmem:[%s9001_s30 + $0x6c0] sm:$0xff] %v414_v44 }
  0x83   : >> { %v418_v46 = vld [vmem:[%s9005_s4 + $0xdc0] sm:$0xff]  ;;  %417 = vst [vmem:[%s9001_s30 + $0x6d0] sm:$0xff] %v416_v45 }
  0x84   : >> { %v420_v47 = vld [vmem:[%s9005_s4 + $0xde0] sm:$0xff]  ;;  %419 = vst [vmem:[%s9001_s30 + $0x6e0] sm:$0xff] %v418_v46 }
  0x85   : >> { %v422_v48 = vld [vmem:[%s9005_s4 + $0xe00] sm:$0xff]  ;;  %421 = vst [vmem:[%s9001_s30 + $0x6f0] sm:$0xff] %v420_v47 }
  0x86   : >> { %v424_v49 = vld [vmem:[%s9005_s4 + $0xe20] sm:$0xff]  ;;  %423 = vst [vmem:[%s9001_s30 + $0x700] sm:$0xff] %v422_v48 }
  0x87   : >> { %v426_v50 = vld [vmem:[%s9005_s4 + $0xe40] sm:$0xff]  ;;  %425 = vst [vmem:[%s9001_s30 + $0x710] sm:$0xff] %v424_v49 }
  0x88   : >> { %v428_v51 = vld [vmem:[%s9005_s4 + $0xe60] sm:$0xff]  ;;  %427 = vst [vmem:[%s9001_s30 + $0x720] sm:$0xff] %v426_v50 }
  0x89   : >> { %v430_v52 = vld [vmem:[%s9005_s4 + $0xe80] sm:$0xff]  ;;  %429 = vst [vmem:[%s9001_s30 + $0x730] sm:$0xff] %v428_v51 }
  0x8a   : >> { %v432_v53 = vld [vmem:[%s9005_s4 + $0xea0] sm:$0xff]  ;;  %431 = vst [vmem:[%s9001_s30 + $0x740] sm:$0xff] %v430_v52 }
  0x8b   : >> { %v434_v54 = vld [vmem:[%s9005_s4 + $0xec0] sm:$0xff]  ;;  %433 = vst [vmem:[%s9001_s30 + $0x750] sm:$0xff] %v432_v53 }
  0x8c   : >> { %v436_v55 = vld [vmem:[%s9005_s4 + $0xee0] sm:$0xff]  ;;  %435 = vst [vmem:[%s9001_s30 + $0x760] sm:$0xff] %v434_v54 }
  0x8d   : >> { %v438_v56 = vld [vmem:[%s9005_s4 + $0xf00] sm:$0xff]  ;;  %437 = vst [vmem:[%s9001_s30 + $0x770] sm:$0xff] %v436_v55 }
  0x8e   : >> { %v440_v57 = vld [vmem:[%s9005_s4 + $0xf20] sm:$0xff]  ;;  %439 = vst [vmem:[%s9001_s30 + $0x780] sm:$0xff] %v438_v56 }
  0x8f   : >> { %v442_v58 = vld [vmem:[%s9005_s4 + $0xf40] sm:$0xff]  ;;  %441 = vst [vmem:[%s9001_s30 + $0x790] sm:$0xff] %v440_v57 }
  0x90   : >> { %v444_v59 = vld [vmem:[%s9005_s4 + $0xf60] sm:$0xff]  ;;  %443 = vst [vmem:[%s9001_s30 + $0x7a0] sm:$0xff] %v442_v58 }
  0x91   : >> { %v446_v60 = vld [vmem:[%s9005_s4 + $0xf80] sm:$0xff]  ;;  %445 = vst [vmem:[%s9001_s30 + $0x7b0] sm:$0xff] %v444_v59 }
  0x92   : >> { %v448_v61 = vld [vmem:[%s9005_s4 + $0xfa0] sm:$0xff]  ;;  %447 = vst [vmem:[%s9001_s30 + $0x7c0] sm:$0xff] %v446_v60 }
  0x93   : >> { %v450_v62 = vld [vmem:[%s9005_s4 + $0xfc0] sm:$0xff]  ;;  %449 = vst [vmem:[%s9001_s30 + $0x7d0] sm:$0xff] %v448_v61 }
  0x94   : >> { %v452_v63 = vld [vmem:[%s9005_s4 + $0xfe0] sm:$0xff]  ;;  %451 = vst [vmem:[%s9001_s30 + $0x7e0] sm:$0xff] %v450_v62 }
  0x95   : >> { %v454_v0 = vld [vmem:[%s9005_s4 + $0x1000] sm:$0xff]  ;;  %453 = vst [vmem:[%s9001_s30 + $0x7f0] sm:$0xff] %v452_v63 }
  0x96   : >> { %v456_v1 = vld [vmem:[%s9005_s4 + $0x1020] sm:$0xff]  ;;  %455 = vst [vmem:[%s9001_s30 + $0x800] sm:$0xff] %v454_v0 }
  0x97   : >> { %v458_v2 = vld [vmem:[%s9005_s4 + $0x1040] sm:$0xff]  ;;  %457 = vst [vmem:[%s9001_s30 + $0x810] sm:$0xff] %v456_v1 }
  0x98   : >> { %v460_v3 = vld [vmem:[%s9005_s4 + $0x1060] sm:$0xff]  ;;  %459 = vst [vmem:[%s9001_s30 + $0x820] sm:$0xff] %v458_v2 }
  0x99   : >> { %v462_v4 = vld [vmem:[%s9005_s4 + $0x1080] sm:$0xff]  ;;  %461 = vst [vmem:[%s9001_s30 + $0x830] sm:$0xff] %v460_v3 }
  0x9a   : >> { %v464_v5 = vld [vmem:[%s9005_s4 + $0x10a0] sm:$0xff]  ;;  %463 = vst [vmem:[%s9001_s30 + $0x840] sm:$0xff] %v462_v4 }
  0x9b   : >> { %v466_v6 = vld [vmem:[%s9005_s4 + $0x10c0] sm:$0xff]  ;;  %465 = vst [vmem:[%s9001_s30 + $0x850] sm:$0xff] %v464_v5 }
  0x9c   : >> { %v468_v7 = vld [vmem:[%s9005_s4 + $0x10e0] sm:$0xff]  ;;  %467 = vst [vmem:[%s9001_s30 + $0x860] sm:$0xff] %v466_v6 }
  0x9d   : >> { %v470_v8 = vld [vmem:[%s9005_s4 + $0x1100] sm:$0xff]  ;;  %469 = vst [vmem:[%s9001_s30 + $0x870] sm:$0xff] %v468_v7 }
  0x9e   : >> { %v472_v9 = vld [vmem:[%s9005_s4 + $0x1120] sm:$0xff]  ;;  %471 = vst [vmem:[%s9001_s30 + $0x880] sm:$0xff] %v470_v8 }
  0x9f   : >> { %v474_v10 = vld [vmem:[%s9005_s4 + $0x1140] sm:$0xff]  ;;  %473 = vst [vmem:[%s9001_s30 + $0x890] sm:$0xff] %v472_v9 }
  0xa0   : >> { %v476_v11 = vld [vmem:[%s9005_s4 + $0x1160] sm:$0xff]  ;;  %475 = vst [vmem:[%s9001_s30 + $0x8a0] sm:$0xff] %v474_v10 }
  0xa1   : >> { %v478_v12 = vld [vmem:[%s9005_s4 + $0x1180] sm:$0xff]  ;;  %477 = vst [vmem:[%s9001_s30 + $0x8b0] sm:$0xff] %v476_v11 }
  0xa2   : >> { %v480_v13 = vld [vmem:[%s9005_s4 + $0x11a0] sm:$0xff]  ;;  %479 = vst [vmem:[%s9001_s30 + $0x8c0] sm:$0xff] %v478_v12 }
  0xa3   : >> { %v482_v14 = vld [vmem:[%s9005_s4 + $0x11c0] sm:$0xff]  ;;  %481 = vst [vmem:[%s9001_s30 + $0x8d0] sm:$0xff] %v480_v13 }
  0xa4   : >> { %v484_v15 = vld [vmem:[%s9005_s4 + $0x11e0] sm:$0xff]  ;;  %483 = vst [vmem:[%s9001_s30 + $0x8e0] sm:$0xff] %v482_v14 }
  0xa5   : >> { %v486_v16 = vld [vmem:[%s9005_s4 + $0x1200] sm:$0xff]  ;;  %485 = vst [vmem:[%s9001_s30 + $0x8f0] sm:$0xff] %v484_v15 }
  0xa6   : >> { %v488_v17 = vld [vmem:[%s9005_s4 + $0x1220] sm:$0xff]  ;;  %487 = vst [vmem:[%s9001_s30 + $0x900] sm:$0xff] %v486_v16 }
  0xa7   : >> { %v490_v18 = vld [vmem:[%s9005_s4 + $0x1240] sm:$0xff]  ;;  %489 = vst [vmem:[%s9001_s30 + $0x910] sm:$0xff] %v488_v17 }
  0xa8   : >> { %v492_v19 = vld [vmem:[%s9005_s4 + $0x1260] sm:$0xff]  ;;  %491 = vst [vmem:[%s9001_s30 + $0x920] sm:$0xff] %v490_v18 }
  0xa9   : >> { %v494_v20 = vld [vmem:[%s9005_s4 + $0x1280] sm:$0xff]  ;;  %493 = vst [vmem:[%s9001_s30 + $0x930] sm:$0xff] %v492_v19 }
  0xaa   : >> { %v496_v21 = vld [vmem:[%s9005_s4 + $0x12a0] sm:$0xff]  ;;  %495 = vst [vmem:[%s9001_s30 + $0x940] sm:$0xff] %v494_v20 }
  0xab   : >> { %v498_v22 = vld [vmem:[%s9005_s4 + $0x12c0] sm:$0xff]  ;;  %497 = vst [vmem:[%s9001_s30 + $0x950] sm:$0xff] %v496_v21 }
  0xac   : >> { %v500_v23 = vld [vmem:[%s9005_s4 + $0x12e0] sm:$0xff]  ;;  %499 = vst [vmem:[%s9001_s30 + $0x960] sm:$0xff] %v498_v22 }
  0xad   : >> { %v502_v24 = vld [vmem:[%s9005_s4 + $0x1300] sm:$0xff]  ;;  %501 = vst [vmem:[%s9001_s30 + $0x970] sm:$0xff] %v500_v23 }
  0xae   : >> { %v504_v25 = vld [vmem:[%s9005_s4 + $0x1320] sm:$0xff]  ;;  %503 = vst [vmem:[%s9001_s30 + $0x980] sm:$0xff] %v502_v24 }
  0xaf   : >> { %v506_v26 = vld [vmem:[%s9005_s4 + $0x1340] sm:$0xff]  ;;  %505 = vst [vmem:[%s9001_s30 + $0x990] sm:$0xff] %v504_v25 }
  0xb0   : >> { %v508_v27 = vld [vmem:[%s9005_s4 + $0x1360] sm:$0xff]  ;;  %507 = vst [vmem:[%s9001_s30 + $0x9a0] sm:$0xff] %v506_v26 }
  0xb1   : >> { %v510_v28 = vld [vmem:[%s9005_s4 + $0x1380] sm:$0xff]  ;;  %509 = vst [vmem:[%s9001_s30 + $0x9b0] sm:$0xff] %v508_v27 }
  0xb2   : >> { %v512_v29 = vld [vmem:[%s9005_s4 + $0x13a0] sm:$0xff]  ;;  %511 = vst [vmem:[%s9001_s30 + $0x9c0] sm:$0xff] %v510_v28 }
  0xb3   : >> { %v514_v30 = vld [vmem:[%s9005_s4 + $0x13c0] sm:$0xff]  ;;  %513 = vst [vmem:[%s9001_s30 + $0x9d0] sm:$0xff] %v512_v29 }
  0xb4   : >> { %v516_v31 = vld [vmem:[%s9005_s4 + $0x13e0] sm:$0xff]  ;;  %515 = vst [vmem:[%s9001_s30 + $0x9e0] sm:$0xff] %v514_v30 }
  0xb5   : >> { %v518_v32 = vld [vmem:[%s9005_s4 + $0x1400] sm:$0xff]  ;;  %517 = vst [vmem:[%s9001_s30 + $0x9f0] sm:$0xff] %v516_v31 }
  0xb6   : >> { %v520_v33 = vld [vmem:[%s9005_s4 + $0x1420] sm:$0xff]  ;;  %519 = vst [vmem:[%s9001_s30 + $0xa00] sm:$0xff] %v518_v32 }
  0xb7   : >> { %v522_v34 = vld [vmem:[%s9005_s4 + $0x1440] sm:$0xff]  ;;  %521 = vst [vmem:[%s9001_s30 + $0xa10] sm:$0xff] %v520_v33 }
  0xb8   : >> { %v524_v35 = vld [vmem:[%s9005_s4 + $0x1460] sm:$0xff]  ;;  %523 = vst [vmem:[%s9001_s30 + $0xa20] sm:$0xff] %v522_v34 }
  0xb9   : >> { %v526_v36 = vld [vmem:[%s9005_s4 + $0x1480] sm:$0xff]  ;;  %525 = vst [vmem:[%s9001_s30 + $0xa30] sm:$0xff] %v524_v35 }
  0xba   : >> { %v528_v37 = vld [vmem:[%s9005_s4 + $0x14a0] sm:$0xff]  ;;  %527 = vst [vmem:[%s9001_s30 + $0xa40] sm:$0xff] %v526_v36 }
  0xbb   : >> { %v530_v38 = vld [vmem:[%s9005_s4 + $0x14c0] sm:$0xff]  ;;  %529 = vst [vmem:[%s9001_s30 + $0xa50] sm:$0xff] %v528_v37 }
  0xbc   : >> { %v532_v39 = vld [vmem:[%s9005_s4 + $0x14e0] sm:$0xff]  ;;  %531 = vst [vmem:[%s9001_s30 + $0xa60] sm:$0xff] %v530_v38 }
  0xbd   : >> { %v534_v40 = vld [vmem:[%s9005_s4 + $0x1500] sm:$0xff]  ;;  %533 = vst [vmem:[%s9001_s30 + $0xa70] sm:$0xff] %v532_v39 }
  0xbe   : >> { %v536_v41 = vld [vmem:[%s9005_s4 + $0x1520] sm:$0xff]  ;;  %535 = vst [vmem:[%s9001_s30 + $0xa80] sm:$0xff] %v534_v40 }
  0xbf   : >> { %v538_v42 = vld [vmem:[%s9005_s4 + $0x1540] sm:$0xff]  ;;  %537 = vst [vmem:[%s9001_s30 + $0xa90] sm:$0xff] %v536_v41 }
  0xc0   : >> { %v540_v43 = vld [vmem:[%s9005_s4 + $0x1560] sm:$0xff]  ;;  %539 = vst [vmem:[%s9001_s30 + $0xaa0] sm:$0xff] %v538_v42 }
  0xc1   : >> { %v542_v44 = vld [vmem:[%s9005_s4 + $0x1580] sm:$0xff]  ;;  %541 = vst [vmem:[%s9001_s30 + $0xab0] sm:$0xff] %v540_v43 }
  0xc2   : >> { %v544_v45 = vld [vmem:[%s9005_s4 + $0x15a0] sm:$0xff]  ;;  %543 = vst [vmem:[%s9001_s30 + $0xac0] sm:$0xff] %v542_v44 }
  0xc3   : >> { %v546_v46 = vld [vmem:[%s9005_s4 + $0x15c0] sm:$0xff]  ;;  %545 = vst [vmem:[%s9001_s30 + $0xad0] sm:$0xff] %v544_v45 }
  0xc4   : >> { %v548_v47 = vld [vmem:[%s9005_s4 + $0x15e0] sm:$0xff]  ;;  %547 = vst [vmem:[%s9001_s30 + $0xae0] sm:$0xff] %v546_v46 }
  0xc5   : >> { %v550_v48 = vld [vmem:[%s9005_s4 + $0x1600] sm:$0xff]  ;;  %549 = vst [vmem:[%s9001_s30 + $0xaf0] sm:$0xff] %v548_v47 }
  0xc6   : >> { %v552_v49 = vld [vmem:[%s9005_s4 + $0x1620] sm:$0xff]  ;;  %551 = vst [vmem:[%s9001_s30 + $0xb00] sm:$0xff] %v550_v48 }
  0xc7   : >> { %v554_v50 = vld [vmem:[%s9005_s4 + $0x1640] sm:$0xff]  ;;  %553 = vst [vmem:[%s9001_s30 + $0xb10] sm:$0xff] %v552_v49 }
  0xc8   : >> { %v556_v51 = vld [vmem:[%s9005_s4 + $0x1660] sm:$0xff]  ;;  %555 = vst [vmem:[%s9001_s30 + $0xb20] sm:$0xff] %v554_v50 }
  0xc9   : >> { %v558_v52 = vld [vmem:[%s9005_s4 + $0x1680] sm:$0xff]  ;;  %557 = vst [vmem:[%s9001_s30 + $0xb30] sm:$0xff] %v556_v51 }
  0xca   : >> { %v560_v53 = vld [vmem:[%s9005_s4 + $0x16a0] sm:$0xff]  ;;  %559 = vst [vmem:[%s9001_s30 + $0xb40] sm:$0xff] %v558_v52 }
  0xcb   : >> { %v562_v54 = vld [vmem:[%s9005_s4 + $0x16c0] sm:$0xff]  ;;  %561 = vst [vmem:[%s9001_s30 + $0xb50] sm:$0xff] %v560_v53 }
  0xcc   : >> { %v564_v55 = vld [vmem:[%s9005_s4 + $0x16e0] sm:$0xff]  ;;  %563 = vst [vmem:[%s9001_s30 + $0xb60] sm:$0xff] %v562_v54 }
  0xcd   : >> { %v566_v56 = vld [vmem:[%s9005_s4 + $0x1700] sm:$0xff]  ;;  %565 = vst [vmem:[%s9001_s30 + $0xb70] sm:$0xff] %v564_v55 }
  0xce   : >> { %v568_v57 = vld [vmem:[%s9005_s4 + $0x1720] sm:$0xff]  ;;  %567 = vst [vmem:[%s9001_s30 + $0xb80] sm:$0xff] %v566_v56 }
  0xcf   : >> { %v570_v58 = vld [vmem:[%s9005_s4 + $0x1740] sm:$0xff]  ;;  %569 = vst [vmem:[%s9001_s30 + $0xb90] sm:$0xff] %v568_v57 }
  0xd0   : >> { %v572_v59 = vld [vmem:[%s9005_s4 + $0x1760] sm:$0xff]  ;;  %571 = vst [vmem:[%s9001_s30 + $0xba0] sm:$0xff] %v570_v58 }
  0xd1   : >> { %v574_v60 = vld [vmem:[%s9005_s4 + $0x1780] sm:$0xff]  ;;  %573 = vst [vmem:[%s9001_s30 + $0xbb0] sm:$0xff] %v572_v59 }
  0xd2   : >> { %v576_v61 = vld [vmem:[%s9005_s4 + $0x17a0] sm:$0xff]  ;;  %575 = vst [vmem:[%s9001_s30 + $0xbc0] sm:$0xff] %v574_v60 }
  0xd3   : >> { %v578_v62 = vld [vmem:[%s9005_s4 + $0x17c0] sm:$0xff]  ;;  %577 = vst [vmem:[%s9001_s30 + $0xbd0] sm:$0xff] %v576_v61 }
  0xd4   : >> { %v580_v63 = vld [vmem:[%s9005_s4 + $0x17e0] sm:$0xff]  ;;  %579 = vst [vmem:[%s9001_s30 + $0xbe0] sm:$0xff] %v578_v62 }
  0xd5   : >> { %v582_v0 = vld [vmem:[%s9005_s4 + $0x1800] sm:$0xff]  ;;  %581 = vst [vmem:[%s9001_s30 + $0xbf0] sm:$0xff] %v580_v63 }
  0xd6   : >> { %v584_v1 = vld [vmem:[%s9005_s4 + $0x1820] sm:$0xff]  ;;  %583 = vst [vmem:[%s9001_s30 + $0xc00] sm:$0xff] %v582_v0 }
  0xd7   : >> { %v586_v2 = vld [vmem:[%s9005_s4 + $0x1840] sm:$0xff]  ;;  %585 = vst [vmem:[%s9001_s30 + $0xc10] sm:$0xff] %v584_v1 }
  0xd8   : >> { %v588_v3 = vld [vmem:[%s9005_s4 + $0x1860] sm:$0xff]  ;;  %587 = vst [vmem:[%s9001_s30 + $0xc20] sm:$0xff] %v586_v2 }
  0xd9   : >> { %v590_v4 = vld [vmem:[%s9005_s4 + $0x1880] sm:$0xff]  ;;  %589 = vst [vmem:[%s9001_s30 + $0xc30] sm:$0xff] %v588_v3 }
  0xda   : >> { %v592_v5 = vld [vmem:[%s9005_s4 + $0x18a0] sm:$0xff]  ;;  %591 = vst [vmem:[%s9001_s30 + $0xc40] sm:$0xff] %v590_v4 }
  0xdb   : >> { %v594_v6 = vld [vmem:[%s9005_s4 + $0x18c0] sm:$0xff]  ;;  %593 = vst [vmem:[%s9001_s30 + $0xc50] sm:$0xff] %v592_v5 }
  0xdc   : >> { %v596_v7 = vld [vmem:[%s9005_s4 + $0x18e0] sm:$0xff]  ;;  %595 = vst [vmem:[%s9001_s30 + $0xc60] sm:$0xff] %v594_v6 }
  0xdd   : >> { %v598_v8 = vld [vmem:[%s9005_s4 + $0x1900] sm:$0xff]  ;;  %597 = vst [vmem:[%s9001_s30 + $0xc70] sm:$0xff] %v596_v7 }
  0xde   : >> { %v600_v9 = vld [vmem:[%s9005_s4 + $0x1920] sm:$0xff]  ;;  %599 = vst [vmem:[%s9001_s30 + $0xc80] sm:$0xff] %v598_v8 }
  0xdf   : >> { %v602_v10 = vld [vmem:[%s9005_s4 + $0x1940] sm:$0xff]  ;;  %601 = vst [vmem:[%s9001_s30 + $0xc90] sm:$0xff] %v600_v9 }
  0xe0   : >> { %v604_v11 = vld [vmem:[%s9005_s4 + $0x1960] sm:$0xff]  ;;  %603 = vst [vmem:[%s9001_s30 + $0xca0] sm:$0xff] %v602_v10 }
  0xe1   : >> { %v606_v12 = vld [vmem:[%s9005_s4 + $0x1980] sm:$0xff]  ;;  %605 = vst [vmem:[%s9001_s30 + $0xcb0] sm:$0xff] %v604_v11 }
  0xe2   : >> { %v608_v13 = vld [vmem:[%s9005_s4 + $0x19a0] sm:$0xff]  ;;  %607 = vst [vmem:[%s9001_s30 + $0xcc0] sm:$0xff] %v606_v12 }
  0xe3   : >> { %v610_v14 = vld [vmem:[%s9005_s4 + $0x19c0] sm:$0xff]  ;;  %609 = vst [vmem:[%s9001_s30 + $0xcd0] sm:$0xff] %v608_v13 }
  0xe4   : >> { %v612_v15 = vld [vmem:[%s9005_s4 + $0x19e0] sm:$0xff]  ;;  %611 = vst [vmem:[%s9001_s30 + $0xce0] sm:$0xff] %v610_v14 }
  0xe5   : >> { %v614_v16 = vld [vmem:[%s9005_s4 + $0x1a00] sm:$0xff]  ;;  %613 = vst [vmem:[%s9001_s30 + $0xcf0] sm:$0xff] %v612_v15 }
  0xe6   : >> { %v616_v17 = vld [vmem:[%s9005_s4 + $0x1a20] sm:$0xff]  ;;  %615 = vst [vmem:[%s9001_s30 + $0xd00] sm:$0xff] %v614_v16 }
  0xe7   : >> { %v618_v18 = vld [vmem:[%s9005_s4 + $0x1a40] sm:$0xff]  ;;  %617 = vst [vmem:[%s9001_s30 + $0xd10] sm:$0xff] %v616_v17 }
  0xe8   : >> { %v620_v19 = vld [vmem:[%s9005_s4 + $0x1a60] sm:$0xff]  ;;  %619 = vst [vmem:[%s9001_s30 + $0xd20] sm:$0xff] %v618_v18 }
  0xe9   : >> { %v622_v20 = vld [vmem:[%s9005_s4 + $0x1a80] sm:$0xff]  ;;  %621 = vst [vmem:[%s9001_s30 + $0xd30] sm:$0xff] %v620_v19 }
  0xea   : >> { %v624_v21 = vld [vmem:[%s9005_s4 + $0x1aa0] sm:$0xff]  ;;  %623 = vst [vmem:[%s9001_s30 + $0xd40] sm:$0xff] %v622_v20 }
  0xeb   : >> { %v626_v22 = vld [vmem:[%s9005_s4 + $0x1ac0] sm:$0xff]  ;;  %625 = vst [vmem:[%s9001_s30 + $0xd50] sm:$0xff] %v624_v21 }
  0xec   : >> { %v628_v23 = vld [vmem:[%s9005_s4 + $0x1ae0] sm:$0xff]  ;;  %627 = vst [vmem:[%s9001_s30 + $0xd60] sm:$0xff] %v626_v22 }
  0xed   : >> { %v630_v24 = vld [vmem:[%s9005_s4 + $0x1b00] sm:$0xff]  ;;  %629 = vst [vmem:[%s9001_s30 + $0xd70] sm:$0xff] %v628_v23 }
  0xee   : >> { %v632_v25 = vld [vmem:[%s9005_s4 + $0x1b20] sm:$0xff]  ;;  %631 = vst [vmem:[%s9001_s30 + $0xd80] sm:$0xff] %v630_v24 }
  0xef   : >> { %v634_v26 = vld [vmem:[%s9005_s4 + $0x1b40] sm:$0xff]  ;;  %633 = vst [vmem:[%s9001_s30 + $0xd90] sm:$0xff] %v632_v25 }
  0xf0   : >> { %v636_v27 = vld [vmem:[%s9005_s4 + $0x1b60] sm:$0xff]  ;;  %635 = vst [vmem:[%s9001_s30 + $0xda0] sm:$0xff] %v634_v26 }
  0xf1   : >> { %v638_v28 = vld [vmem:[%s9005_s4 + $0x1b80] sm:$0xff]  ;;  %637 = vst [vmem:[%s9001_s30 + $0xdb0] sm:$0xff] %v636_v27 }
  0xf2   : >> { %v640_v29 = vld [vmem:[%s9005_s4 + $0x1ba0] sm:$0xff]  ;;  %639 = vst [vmem:[%s9001_s30 + $0xdc0] sm:$0xff] %v638_v28 }
  0xf3   : >> { %v642_v30 = vld [vmem:[%s9005_s4 + $0x1bc0] sm:$0xff]  ;;  %641 = vst [vmem:[%s9001_s30 + $0xdd0] sm:$0xff] %v640_v29 }
  0xf4   : >> { %v644_v31 = vld [vmem:[%s9005_s4 + $0x1be0] sm:$0xff]  ;;  %643 = vst [vmem:[%s9001_s30 + $0xde0] sm:$0xff] %v642_v30 }
  0xf5   : >> { %v646_v32 = vld [vmem:[%s9005_s4 + $0x1c00] sm:$0xff]  ;;  %645 = vst [vmem:[%s9001_s30 + $0xdf0] sm:$0xff] %v644_v31 }
  0xf6   : >> { %v648_v33 = vld [vmem:[%s9005_s4 + $0x1c20] sm:$0xff]  ;;  %647 = vst [vmem:[%s9001_s30 + $0xe00] sm:$0xff] %v646_v32 }
  0xf7   : >> { %v650_v34 = vld [vmem:[%s9005_s4 + $0x1c40] sm:$0xff]  ;;  %649 = vst [vmem:[%s9001_s30 + $0xe10] sm:$0xff] %v648_v33 }
  0xf8   : >> { %v652_v35 = vld [vmem:[%s9005_s4 + $0x1c60] sm:$0xff]  ;;  %651 = vst [vmem:[%s9001_s30 + $0xe20] sm:$0xff] %v650_v34 }
  0xf9   : >> { %v654_v36 = vld [vmem:[%s9005_s4 + $0x1c80] sm:$0xff]  ;;  %653 = vst [vmem:[%s9001_s30 + $0xe30] sm:$0xff] %v652_v35 }
  0xfa   : >> { %v656_v37 = vld [vmem:[%s9005_s4 + $0x1ca0] sm:$0xff]  ;;  %655 = vst [vmem:[%s9001_s30 + $0xe40] sm:$0xff] %v654_v36 }
  0xfb   : >> { %v658_v38 = vld [vmem:[%s9005_s4 + $0x1cc0] sm:$0xff]  ;;  %657 = vst [vmem:[%s9001_s30 + $0xe50] sm:$0xff] %v656_v37 }
  0xfc   : >> { %v660_v39 = vld [vmem:[%s9005_s4 + $0x1ce0] sm:$0xff]  ;;  %659 = vst [vmem:[%s9001_s30 + $0xe60] sm:$0xff] %v658_v38 }
  0xfd   : >> { %v662_v40 = vld [vmem:[%s9005_s4 + $0x1d00] sm:$0xff]  ;;  %661 = vst [vmem:[%s9001_s30 + $0xe70] sm:$0xff] %v660_v39 }
  0xfe   : >> { %v664_v41 = vld [vmem:[%s9005_s4 + $0x1d20] sm:$0xff]  ;;  %663 = vst [vmem:[%s9001_s30 + $0xe80] sm:$0xff] %v662_v40 }
  0xff   : >> { %v666_v42 = vld [vmem:[%s9005_s4 + $0x1d40] sm:$0xff]  ;;  %665 = vst [vmem:[%s9001_s30 + $0xe90] sm:$0xff] %v664_v41 }
 0x100   : >> { %v668_v43 = vld [vmem:[%s9005_s4 + $0x1d60] sm:$0xff]  ;;  %667 = vst [vmem:[%s9001_s30 + $0xea0] sm:$0xff] %v666_v42 }
 0x101   : >> { %v670_v44 = vld [vmem:[%s9005_s4 + $0x1d80] sm:$0xff]  ;;  %669 = vst [vmem:[%s9001_s30 + $0xeb0] sm:$0xff] %v668_v43 }
 0x102   : >> { %v672_v45 = vld [vmem:[%s9005_s4 + $0x1da0] sm:$0xff]  ;;  %671 = vst [vmem:[%s9001_s30 + $0xec0] sm:$0xff] %v670_v44 }
 0x103   : >> { %v674_v46 = vld [vmem:[%s9005_s4 + $0x1dc0] sm:$0xff]  ;;  %673 = vst [vmem:[%s9001_s30 + $0xed0] sm:$0xff] %v672_v45 }
 0x104   : >> { %v676_v47 = vld [vmem:[%s9005_s4 + $0x1de0] sm:$0xff]  ;;  %675 = vst [vmem:[%s9001_s30 + $0xee0] sm:$0xff] %v674_v46 }
 0x105   : >> { %v678_v48 = vld [vmem:[%s9005_s4 + $0x1e00] sm:$0xff]  ;;  %677 = vst [vmem:[%s9001_s30 + $0xef0] sm:$0xff] %v676_v47 }
 0x106   : >> { %v680_v49 = vld [vmem:[%s9005_s4 + $0x1e20] sm:$0xff]  ;;  %679 = vst [vmem:[%s9001_s30 + $0xf00] sm:$0xff] %v678_v48 }
 0x107   : >> { %v682_v50 = vld [vmem:[%s9005_s4 + $0x1e40] sm:$0xff]  ;;  %681 = vst [vmem:[%s9001_s30 + $0xf10] sm:$0xff] %v680_v49 }
 0x108   : >> { %v684_v51 = vld [vmem:[%s9005_s4 + $0x1e60] sm:$0xff]  ;;  %683 = vst [vmem:[%s9001_s30 + $0xf20] sm:$0xff] %v682_v50 }
 0x109   : >> { %v686_v52 = vld [vmem:[%s9005_s4 + $0x1e80] sm:$0xff]  ;;  %685 = vst [vmem:[%s9001_s30 + $0xf30] sm:$0xff] %v684_v51 }
 0x10a   : >> { %v688_v53 = vld [vmem:[%s9005_s4 + $0x1ea0] sm:$0xff]  ;;  %687 = vst [vmem:[%s9001_s30 + $0xf40] sm:$0xff] %v686_v52 }
 0x10b   : >> { %v690_v54 = vld [vmem:[%s9005_s4 + $0x1ec0] sm:$0xff]  ;;  %689 = vst [vmem:[%s9001_s30 + $0xf50] sm:$0xff] %v688_v53 }
 0x10c   : >> { %v692_v55 = vld [vmem:[%s9005_s4 + $0x1ee0] sm:$0xff]  ;;  %691 = vst [vmem:[%s9001_s30 + $0xf60] sm:$0xff] %v690_v54 }
 0x10d   : >> { %v694_v56 = vld [vmem:[%s9005_s4 + $0x1f00] sm:$0xff]  ;;  %693 = vst [vmem:[%s9001_s30 + $0xf70] sm:$0xff] %v692_v55 }
 0x10e   : >> { %v696_v57 = vld [vmem:[%s9005_s4 + $0x1f20] sm:$0xff]  ;;  %695 = vst [vmem:[%s9001_s30 + $0xf80] sm:$0xff] %v694_v56 }
 0x10f   : >> { %v698_v58 = vld [vmem:[%s9005_s4 + $0x1f40] sm:$0xff]  ;;  %697 = vst [vmem:[%s9001_s30 + $0xf90] sm:$0xff] %v696_v57 }
 0x110   : >> { %v700_v59 = vld [vmem:[%s9005_s4 + $0x1f60] sm:$0xff]  ;;  %699 = vst [vmem:[%s9001_s30 + $0xfa0] sm:$0xff] %v698_v58 }
 0x111   : >> { %v702_v60 = vld [vmem:[%s9005_s4 + $0x1f80] sm:$0xff]  ;;  %701 = vst [vmem:[%s9001_s30 + $0xfb0] sm:$0xff] %v700_v59  ;;  %193 = sbr.rel (!%p191_p9) target bundleno = 21 (0x15), region = 143 }
 0x112   : >> { %v704_v61 = vld [vmem:[%s9005_s4 + $0x1fa0] sm:$0xff]  ;;  %703 = vst [vmem:[%s9001_s30 + $0xfc0] sm:$0xff] %v702_v60 }
 0x113   : >> { %v706_v62 = vld [vmem:[%s9005_s4 + $0x1fc0] sm:$0xff]  ;;  %705 = vst [vmem:[%s9001_s30 + $0xfd0] sm:$0xff] %v704_v61 }
 0x114   : >> { %v708_v63 = vld [vmem:[%s9005_s4 + $0x1fe0] sm:$0xff]  ;;  %707 = vst [vmem:[%s9001_s30 + $0xfe0] sm:$0xff] %v706_v62  ;;  %s11103_s4 = smov %s9375_s9 }
 0x115   : >> { %709 = vst [vmem:[%s9001_s30 + $0xff0] sm:$0xff] %v708_v63  ;;  %s11102_s30 = smov %s9379_s10 }
 0x116 PF: > { %p6218_p10 = scmp.ge.s32.totalorder %s8997_s16, 1  ;;  %p1782_p11 = scmp.lt.s32.totalorder %s8997_s16, 3 }
 0x118   : > { %p1783_p12 = pnand %p6218_p10, %p1782_p11 }
 0x119   : > { %s1789_s11 = sand.u32 (!%p1783_p12), 1, %s8981_s12   ;;  %s6221_s8 = sshll.u32 (!%p1783_p12), %s8989_s14, 2 }
 0x11a   : > { %1786 = sbr.rel (%p1783_p12) target bundleno = 968 (0x3c8), region = 65  ;;  %s6219_s18 = sshll.u32 (!%p1783_p12), %s1789_s11, 12 }
 0x11b   : > { %s9651_s19 = scalar_lea.vmem (!%p1783_p12), [#allocation3], %s6219_s18  ;;  %p10359_p13 = scmp.lt.s32.totalorder (!%p1783_p12), %s6221_s8, 7 }
 0x11c   : > { %s10450_s24 = sshll.u32 (!%p1783_p12), %s1789_s11, 6 }
 0x11d   : > { %s10484_s12 = scalar_lea.vmem (!%p1783_p12), [#allocation4], %s10450_s24 }
 0x11f   : > { %v6401_v0 = vld [vmem:[%s9651_s19 + $0xe0] sm:$0xf]  ;;  %v8387_v1 = vld [vmem:[%s9651_s19 + $0xec] sm:$0xf0]  ;;  %s11115_s8 = smov (!%p10359_p13, %s6221_s8), 7  ;;  %s8869_s11 = sshll.u32 (%p9070_p6), %s8989_s14, 5 }
 0x120   : > { %v6529_v2 = vld [vmem:[%s9651_s19 + $0x1e0] sm:$0xf]  ;;  %v6402_v3 = vor.u32 %v8387_v1, %v6401_v0  ;;  %v8419_v4 = vld [vmem:[%s9651_s19 + $0x1ec] sm:$0xf0]  ;;  %s6222_s10 = sshll.u32 %s11115_s8, 2  ;;  %s6051_s26 = scalar_lea.vmem (%p9070_p6), %s11098_s3, %s8869_s11 }
 0x121   : > { %v6657_v5 = vld [vmem:[%s9651_s19 + $0x2e0] sm:$0xf]  ;;  %v8451_v6 = vld [vmem:[%s9651_s19 + $0x2ec] sm:$0xf0]  ;;  %v6530_v7 = vor.u32 %v8419_v4, %v6529_v2  ;;  %s10415_s23 = scalar_lea.vmem %s11097_s2, %s6222_s10 }
 0x122   : > { %v6658_v8 = vor.u32 %v8451_v6, %v6657_v5  ;;  %v6785_v9 = vld [vmem:[%s9651_s19 + $0x3e0] sm:$0xf]  ;;  %v8483_v10 = vld [vmem:[%s9651_s19 + $0x3ec] sm:$0xf0]  ;;  %5036 = vmatpush.bf16.msra.mxu0 %v6402_v3 }
 0x123   : > { %v6385_v11 = vld [vmem:[%s9651_s19 + $0xc0] sm:$0xf]  ;;  %v6786_v12 = vor.u32 %v8483_v10, %v6785_v9  ;;  %v8383_v13 = vld [vmem:[%s9651_s19 + $0xcc] sm:$0xf0]  ;;  %5050 = vmatpush.bf16.msra.mxu1 %v6530_v7 }
 0x124   : > { %v6513_v14 = vld [vmem:[%s9651_s19 + $0x1c0] sm:$0xf]  ;;  %v8415_v15 = vld [vmem:[%s9651_s19 + $0x1cc] sm:$0xf0]  ;;  %5064 = vmatpush.bf16.msra.mxu2 %v6658_v8  ;;  %v6386_v16 = vor.u32 %v8383_v13, %v6385_v11 }
 0x125   : > { %v6514_v17 = vor.u32 %v8415_v15, %v6513_v14  ;;  %v6641_v18 = vld [vmem:[%s9651_s19 + $0x2c0] sm:$0xf]  ;;  %v8447_v19 = vld [vmem:[%s9651_s19 + $0x2cc] sm:$0xf0]  ;;  %5078 = vmatpush.bf16.msra.mxu3 %v6786_v12 }
 0x126   : > { %v6769_v20 = vld [vmem:[%s9651_s19 + $0x3c0] sm:$0xf]  ;;  %v6642_v21 = vor.u32 %v8447_v19, %v6641_v18  ;;  %v8479_v22 = vld [vmem:[%s9651_s19 + $0x3cc] sm:$0xf0]  ;;  %5037 = vmatpush.bf16.msra.mxu0 %v6386_v16 }
 0x127   : > { %v6369_v23 = vld [vmem:[%s9651_s19 + $0xa0] sm:$0xf]  ;;  %v8379_v24 = vld [vmem:[%s9651_s19 + $0xac] sm:$0xf0]  ;;  %v6770_v25 = vor.u32 %v8479_v22, %v6769_v20  ;;  %5051 = vmatpush.bf16.msra.mxu1 %v6514_v17 }
 0x128   : > { %v6497_v26 = vld [vmem:[%s9651_s19 + $0x1a0] sm:$0xf]  ;;  %v8411_v27 = vld [vmem:[%s9651_s19 + $0x1ac] sm:$0xf0]  ;;  %v6370_v29 = vor.u32 %v8379_v24, %v6369_v23  ;;  %5065 = vmatpush.bf16.msra.mxu2 %v6642_v21 }
 0x129   : > { %v6625_v28 = vld [vmem:[%s9651_s19 + $0x2a0] sm:$0xf]  ;;  %v8443_v30 = vld [vmem:[%s9651_s19 + $0x2ac] sm:$0xf0]  ;;  %v6498_v33 = vor.u32 %v8411_v27, %v6497_v26  ;;  %5079 = vmatpush.bf16.msra.mxu3 %v6770_v25 }
 0x12a   : > { %v6753_v31 = vld [vmem:[%s9651_s19 + $0x3a0] sm:$0xf]  ;;  %v8475_v32 = vld [vmem:[%s9651_s19 + $0x3ac] sm:$0xf0]  ;;  %v6626_v34 = vor.u32 %v8443_v30, %v6625_v28  ;;  %5038 = vmatpush.bf16.msra.mxu0 %v6370_v29 }
 0x12b   : > { %v6353_v35 = vld [vmem:[%s9651_s19 + $0x80] sm:$0xf]  ;;  %v8375_v36 = vld [vmem:[%s9651_s19 + $0x8c] sm:$0xf0]  ;;  %v6754_v38 = vor.u32 %v8475_v32, %v6753_v31  ;;  %5052 = vmatpush.bf16.msra.mxu1 %v6498_v33 }
 0x12c   : > { %v6481_v37 = vld [vmem:[%s9651_s19 + $0x180] sm:$0xf]  ;;  %v8407_v39 = vld [vmem:[%s9651_s19 + $0x18c] sm:$0xf0]  ;;  %v6354_v44 = vor.u32 %v8375_v36, %v6353_v35  ;;  %5066 = vmatpush.bf16.msra.mxu2 %v6626_v34 }
 0x12d   : > { %v6609_v40 = vld [vmem:[%s9651_s19 + $0x280] sm:$0xf]  ;;  %v8439_v41 = vld [vmem:[%s9651_s19 + $0x28c] sm:$0xf0]  ;;  %v6482_v45 = vor.u32 %v8407_v39, %v6481_v37  ;;  %5080 = vmatpush.bf16.msra.mxu3 %v6754_v38 }
 0x12e   : > { %v6737_v42 = vld [vmem:[%s9651_s19 + $0x380] sm:$0xf]  ;;  %v8471_v43 = vld [vmem:[%s9651_s19 + $0x38c] sm:$0xf0]  ;;  %v6610_v46 = vor.u32 %v8439_v41, %v6609_v40  ;;  %5039 = vmatpush.bf16.msra.mxu0 %v6354_v44 }
 0x12f   : > { %v6337_v47 = vld [vmem:[%s9651_s19 + $0x60] sm:$0xf]  ;;  %v8371_v48 = vld [vmem:[%s9651_s19 + $0x6c] sm:$0xf0]  ;;  %v6738_v50 = vor.u32 %v8471_v43, %v6737_v42  ;;  %5053 = vmatpush.bf16.msra.mxu1 %v6482_v45 }
 0x130   : > { %v6465_v49 = vld [vmem:[%s9651_s19 + $0x160] sm:$0xf]  ;;  %v8403_v51 = vld [vmem:[%s9651_s19 + $0x16c] sm:$0xf0]  ;;  %v6338_v56 = vor.u32 %v8371_v48, %v6337_v47  ;;  %5067 = vmatpush.bf16.msra.mxu2 %v6610_v46 }
 0x131   : > { %v6593_v52 = vld [vmem:[%s9651_s19 + $0x260] sm:$0xf]  ;;  %v8435_v53 = vld [vmem:[%s9651_s19 + $0x26c] sm:$0xf0]  ;;  %v6466_v57 = vor.u32 %v8403_v51, %v6465_v49  ;;  %5081 = vmatpush.bf16.msra.mxu3 %v6738_v50 }
 0x132   : > { %v6721_v54 = vld [vmem:[%s9651_s19 + $0x360] sm:$0xf]  ;;  %v8467_v55 = vld [vmem:[%s9651_s19 + $0x36c] sm:$0xf0]  ;;  %v6594_v58 = vor.u32 %v8435_v53, %v6593_v52  ;;  %5040 = vmatpush.bf16.msra.mxu0 %v6338_v56 }
 0x133   : > { %v6321_v59 = vld [vmem:[%s9651_s19 + $0x40] sm:$0xf]  ;;  %v8367_v60 = vld [vmem:[%s9651_s19 + $0x4c] sm:$0xf0]  ;;  %v6722_v62 = vor.u32 %v8467_v55, %v6721_v54  ;;  %5054 = vmatpush.bf16.msra.mxu1 %v6466_v57  ;;  %v6233_v54 = vld [vmem:[%s11095_s0 + $0x8] sm:$0xf] }
 0x134   : > { %v6449_v61 = vld [vmem:[%s9651_s19 + $0x140] sm:$0xf]  ;;  %v8399_v63 = vld [vmem:[%s9651_s19 + $0x14c] sm:$0xf0]  ;;  %v6322_v4 = vor.u32 %v8367_v60, %v6321_v59  ;;  %5068 = vmatpush.bf16.msra.mxu2 %v6594_v58  ;;  %v8350_v59 = vld [vmem:[%s11095_s0 + $0x44] sm:$0xf0] }
 0x135   : > { %v6577_v0 = vld [vmem:[%s9651_s19 + $0x240] sm:$0xf]  ;;  %v8431_v1 = vld [vmem:[%s9651_s19 + $0x24c] sm:$0xf0]  ;;  %v6450_v5 = vor.u32 %v8399_v63, %v6449_v61  ;;  %5082 = vmatpush.bf16.msra.mxu3 %v6722_v62 }
 0x136   : > { %v6705_v2 = vld [vmem:[%s9651_s19 + $0x340] sm:$0xf]  ;;  %v8463_v3 = vld [vmem:[%s9651_s19 + $0x34c] sm:$0xf0]  ;;  %v6578_v6 = vor.u32 %v8431_v1, %v6577_v0  ;;  %5041 = vmatpush.bf16.msra.mxu0 %v6322_v4  ;;  %v9752_v1 = vor.u32 %v8350_v59, %v6233_v54 }
 0x137   : > { %v6305_v7 = vld [vmem:[%s9651_s19 + $0x20] sm:$0xf]  ;;  %v8363_v8 = vld [vmem:[%s9651_s19 + $0x2c] sm:$0xf0]  ;;  %v6706_v10 = vor.u32 %v8463_v3, %v6705_v2  ;;  %5055 = vmatpush.bf16.msra.mxu1 %v6450_v5 }
 0x138   : > { %v6433_v9 = vld [vmem:[%s9651_s19 + $0x120] sm:$0xf]  ;;  %v8395_v11 = vld [vmem:[%s9651_s19 + $0x12c] sm:$0xf0]  ;;  %v6306_v16 = vor.u32 %v8363_v8, %v6305_v7  ;;  %5069 = vmatpush.bf16.msra.mxu2 %v6578_v6  ;;  %v8341_v6 = vld [vmem:[%s11095_s0 + $0x4] sm:$0xf] }
 0x139   : > { %v6561_v12 = vld [vmem:[%s9651_s19 + $0x220] sm:$0xf]  ;;  %v8427_v13 = vld [vmem:[%s9651_s19 + $0x22c] sm:$0xf0]  ;;  %v6434_v19 = vor.u32 %v8395_v11, %v6433_v9  ;;  %5083 = vmatpush.bf16.msra.mxu3 %v6706_v10  ;;  %v6227_v7 = vld [vmem:[%s11095_s0 + $0x40] sm:$0xf0] }
 0x13a   : > { %v6689_v14 = vld [vmem:[%s9651_s19 + $0x320] sm:$0xf]  ;;  %v8459_v15 = vld [vmem:[%s9651_s19 + $0x32c] sm:$0xf0]  ;;  %v6562_v20 = vor.u32 %v8427_v13, %v6561_v12  ;;  %5042 = vmatpush.bf16.msra.mxu0 %v6306_v16  ;;  %v8342_v8 = vld [vmem:[%s11095_s0 + $0xc] sm:$0xf]  ;;  %v9768_v10 = vor.u32 %v8341_v6, %v6227_v7 }
 0x13b   : > { %v6289_v17 = vld [vmem:[%s9651_s19] sm:$0xf]  ;;  %v8359_v18 = vld [vmem:[%s9651_s19 + $0xc] sm:$0xf0]  ;;  %v6690_v24 = vor.u32 %v8459_v15, %v6689_v14  ;;  %5056 = vmatpush.bf16.msra.mxu1 %v6434_v19  ;;  %v6235_v11 = vld [vmem:[%s11095_s0 + $0x48] sm:$0xf0] }
 0x13c   : > { %v6417_v21 = vld [vmem:[%s9651_s19 + $0x100] sm:$0xf]  ;;  %v8391_v22 = vld [vmem:[%s9651_s19 + $0x10c] sm:$0xf0]  ;;  %v6290_v31 = vor.u32 %v8359_v18, %v6289_v17  ;;  %5070 = vmatpush.bf16.msra.mxu2 %v6562_v20  ;;  %v9776_v17 = vor.u32 %v8342_v8, %v6235_v11 }
 0x13d   : > { %v6545_v23 = vld [vmem:[%s9651_s19 + $0x200] sm:$0xf]  ;;  %v8423_v25 = vld [vmem:[%s9651_s19 + $0x20c] sm:$0xf0]  ;;  %v6418_v35 = vor.u32 %v8391_v22, %v6417_v21  ;;  %5084 = vmatpush.bf16.msra.mxu3 %v6690_v24 }
 0x13e   : > { %v6673_v26 = vld [vmem:[%s9651_s19 + $0x300] sm:$0xf]  ;;  %v8455_v27 = vld [vmem:[%s9651_s19 + $0x30c] sm:$0xf0]  ;;  %v6546_v36 = vor.u32 %v8423_v25, %v6545_v23  ;;  %5043 = vmatpush.bf16.msra.mxu0 %v6290_v31 }
 0x13f   : > { %v6913_v28 = vld [vmem:[%s9651_s19 + $0x4e0] sm:$0xf]  ;;  %v8515_v29 = vld [vmem:[%s9651_s19 + $0x4ec] sm:$0xf0]  ;;  %v6674_v39 = vor.u32 %v8455_v27, %v6673_v26  ;;  %5057 = vmatpush.bf16.msra.mxu1 %v6418_v35 }
 0x140   : > { %v7041_v30 = vld [vmem:[%s9651_s19 + $0x5e0] sm:$0xf]  ;;  %v8547_v32 = vld [vmem:[%s9651_s19 + $0x5ec] sm:$0xf0]  ;;  %v6914_v40 = vor.u32 %v8515_v29, %v6913_v28  ;;  %5071 = vmatpush.bf16.msra.mxu2 %v6546_v36 }
 0x141   : > { %v7169_v33 = vld [vmem:[%s9651_s19 + $0x6e0] sm:$0xf]  ;;  %v8579_v34 = vld [vmem:[%s9651_s19 + $0x6ec] sm:$0xf0]  ;;  %v7042_v43 = vor.u32 %v8547_v32, %v7041_v30  ;;  %5085 = vmatpush.bf16.msra.mxu3 %v6674_v39 }
 0x142   : > { %v7297_v37 = vld [vmem:[%s9651_s19 + $0x7e0] sm:$0xf]  ;;  %v8611_v38 = vld [vmem:[%s9651_s19 + $0x7ec] sm:$0xf0]  ;;  %v7170_v44 = vor.u32 %v8579_v34, %v7169_v33  ;;  %5092 = vmatpush.bf16.msrb.mxu0 %v6914_v40  ;;  %5058 = vmatmul.bf16.vlgmr.msra.gmra.mxu1 %v9768_v10 }
 0x143   : > { %v6897_v41 = vld [vmem:[%s9651_s19 + $0x4c0] sm:$0xf]  ;;  %v8511_v42 = vld [vmem:[%s9651_s19 + $0x4cc] sm:$0xf0]  ;;  %v7298_v48 = vor.u32 %v8611_v38, %v7297_v37  ;;  %5106 = vmatpush.bf16.msrb.mxu1 %v7042_v43  ;;  %5072 = vmatmul.bf16.vlgmr.msra.gmra.mxu2 %v9752_v1 }
 0x144   : > { %v7025_v45 = vld [vmem:[%s9651_s19 + $0x5c0] sm:$0xf]  ;;  %v8543_v46 = vld [vmem:[%s9651_s19 + $0x5cc] sm:$0xf0]  ;;  %v6898_v55 = vor.u32 %v8511_v42, %v6897_v41  ;;  %5120 = vmatpush.bf16.msrb.mxu2 %v7170_v44  ;;  %5086 = vmatmul.bf16.vlgmr.msra.gmra.mxu3 %v9776_v17 }
 0x145   : > { %v7153_v47 = vld [vmem:[%s9651_s19 + $0x6c0] sm:$0xf]  ;;  %v8575_v49 = vld [vmem:[%s9651_s19 + $0x6cc] sm:$0xf0]  ;;  %v7026_v60 = vor.u32 %v8543_v46, %v7025_v45  ;;  %5134 = vmatpush.bf16.msrb.mxu3 %v7298_v48 }
 0x146   : > { %v7281_v50 = vld [vmem:[%s9651_s19 + $0x7c0] sm:$0xf]  ;;  %v8607_v51 = vld [vmem:[%s9651_s19 + $0x7cc] sm:$0xf0]  ;;  %v7154_v61 = vor.u32 %v8575_v49, %v7153_v47  ;;  %5093 = vmatpush.bf16.msrb.mxu0 %v6898_v55 }
 0x147   : > { %v6225_v52 = vld [vmem:[%s11095_s0] sm:$0xf]  ;;  %v8507_v57 = vld [vmem:[%s9651_s19 + $0x4ac] sm:$0xf0]  ;;  %v7282_v2 = vor.u32 %v8607_v51, %v7281_v50  ;;  %5107 = vmatpush.bf16.msrb.mxu1 %v7026_v60 }
 0x148   : > { %v8349_v53 = vld [vmem:[%s11095_s0 + $0x3c] sm:$0xf0]  ;;  %v8539_v63 = vld [vmem:[%s9651_s19 + $0x5ac] sm:$0xf0]  ;;  %5121 = vmatpush.bf16.msrb.mxu2 %v7154_v61 }
 0x149   : > { %v6881_v56 = vld [vmem:[%s9651_s19 + $0x4a0] sm:$0xf]  ;;  %v9744_v58 = vor.u32 %v8349_v53, %v6225_v52  ;;  %v8571_v3 = vld [vmem:[%s9651_s19 + $0x6ac] sm:$0xf0]  ;;  %5135 = vmatpush.bf16.msrb.mxu3 %v7282_v2 }
 0x14a   : > { %v7009_v62 = vld [vmem:[%s9651_s19 + $0x5a0] sm:$0xf]  ;;  %v8603_v5 = vld [vmem:[%s9651_s19 + $0x7ac] sm:$0xf0]  ;;  %v6882_v9 = vor.u32 %v8507_v57, %v6881_v56 }
 0x14b   : > { %v7137_v0 = vld [vmem:[%s9651_s19 + $0x6a0] sm:$0xf]  ;;  %5044 = vmatmul.bf16.vlgmr.msra.gmra.mxu0 %v9744_v58  ;;  %v7010_v12 = vor.u32 %v8539_v63, %v7009_v62  ;;  %v8503_v15 = vld [vmem:[%s9651_s19 + $0x48c] sm:$0xf0] }
 0x14c   : > { %v7265_v4 = vld [vmem:[%s9651_s19 + $0x7a0] sm:$0xf]  ;;  %v7138_v13 = vor.u32 %v8571_v3, %v7137_v0  ;;  %v8535_v19 = vld [vmem:[%s9651_s19 + $0x58c] sm:$0xf0]  ;;  %5094 = vmatpush.bf16.msrb.mxu0 %v6882_v9 }
 0x14d   : > { %v6865_v14 = vld [vmem:[%s9651_s19 + $0x480] sm:$0xf]  ;;  %v7266_v18 = vor.u32 %v8603_v5, %v7265_v4  ;;  %v8567_v21 = vld [vmem:[%s9651_s19 + $0x68c] sm:$0xf0]  ;;  %5108 = vmatpush.bf16.msrb.mxu1 %v7010_v12 }
 0x14e   : > { %v6993_v16 = vld [vmem:[%s9651_s19 + $0x580] sm:$0xf]  ;;  %v8599_v23 = vld [vmem:[%s9651_s19 + $0x78c] sm:$0xf0]  ;;  %v6866_v24 = vor.u32 %v8503_v15, %v6865_v14  ;;  %5122 = vmatpush.bf16.msrb.mxu2 %v7138_v13 }
 0x14f   : > { %v7121_v20 = vld [vmem:[%s9651_s19 + $0x680] sm:$0xf]  ;;  %v6994_v25 = vor.u32 %v8535_v19, %v6993_v16  ;;  %v8499_v28 = vld [vmem:[%s9651_s19 + $0x46c] sm:$0xf0]  ;;  %5136 = vmatpush.bf16.msrb.mxu3 %v7266_v18 }
 0x150   : > { %v7249_v22 = vld [vmem:[%s9651_s19 + $0x780] sm:$0xf]  ;;  %v7122_v26 = vor.u32 %v8567_v21, %v7121_v20  ;;  %v8531_v31 = vld [vmem:[%s9651_s19 + $0x56c] sm:$0xf0]  ;;  %5095 = vmatpush.bf16.msrb.mxu0 %v6866_v24 }
 0x151   : > { %v6849_v27 = vld [vmem:[%s9651_s19 + $0x460] sm:$0xf]  ;;  %v7250_v30 = vor.u32 %v8599_v23, %v7249_v22  ;;  %v8563_v33 = vld [vmem:[%s9651_s19 + $0x66c] sm:$0xf0]  ;;  %5109 = vmatpush.bf16.msrb.mxu1 %v6994_v25  ;;  %v6249_v25 = vld [vmem:[%s11095_s0 + $0x18] sm:$0xf] }
 0x152   : > { %v6977_v29 = vld [vmem:[%s9651_s19 + $0x560] sm:$0xf]  ;;  %v8595_v35 = vld [vmem:[%s9651_s19 + $0x76c] sm:$0xf0]  ;;  %v6850_v36 = vor.u32 %v8499_v28, %v6849_v27  ;;  %5123 = vmatpush.bf16.msrb.mxu2 %v7122_v26  ;;  %v8352_v26 = vld [vmem:[%s11095_s0 + $0x54] sm:$0xf0] }
 0x153   : > { %v7105_v32 = vld [vmem:[%s9651_s19 + $0x660] sm:$0xf]  ;;  %v6978_v37 = vor.u32 %v8531_v31, %v6977_v29  ;;  %v8495_v40 = vld [vmem:[%s9651_s19 + $0x44c] sm:$0xf0]  ;;  %5137 = vmatpush.bf16.msrb.mxu3 %v7250_v30  ;;  %v8343_v27 = vld [vmem:[%s11095_s0 + $0x14] sm:$0xf] }
 0x154   : > { %v7233_v34 = vld [vmem:[%s9651_s19 + $0x760] sm:$0xf]  ;;  %v7106_v38 = vor.u32 %v8563_v33, %v7105_v32  ;;  %v8527_v43 = vld [vmem:[%s9651_s19 + $0x54c] sm:$0xf0]  ;;  %5096 = vmatpush.bf16.msrb.mxu0 %v6850_v36  ;;  %v6243_v30 = vld [vmem:[%s11095_s0 + $0x50] sm:$0xf0] }
 0x155   : > { %v6833_v39 = vld [vmem:[%s9651_s19 + $0x440] sm:$0xf]  ;;  %v7234_v42 = vor.u32 %v8595_v35, %v7233_v34  ;;  %v8559_v45 = vld [vmem:[%s9651_s19 + $0x64c] sm:$0xf0]  ;;  %5110 = vmatpush.bf16.msrb.mxu1 %v6978_v37  ;;  %v8344_v31 = vld [vmem:[%s11095_s0 + $0x1c] sm:$0xf] }
 0x156   : > { %v6961_v41 = vld [vmem:[%s9651_s19 + $0x540] sm:$0xf]  ;;  %v8591_v47 = vld [vmem:[%s9651_s19 + $0x74c] sm:$0xf0]  ;;  %v6834_v48 = vor.u32 %v8495_v40, %v6833_v39  ;;  %5124 = vmatpush.bf16.msrb.mxu2 %v7106_v38  ;;  %v6251_v32 = vld [vmem:[%s11095_s0 + $0x58] sm:$0xf0] }
 0x157   : > { %v7089_v44 = vld [vmem:[%s9651_s19 + $0x640] sm:$0xf]  ;;  %v6962_v50 = vor.u32 %v8527_v43, %v6961_v41  ;;  %v8491_v52 = vld [vmem:[%s9651_s19 + $0x42c] sm:$0xf0]  ;;  %5138 = vmatpush.bf16.msrb.mxu3 %v7234_v42  ;;  %v9857_v43 = vor.u32 %v8352_v26, %v6249_v25 }
 0x158   : > { %v7217_v46 = vld [vmem:[%s9651_s19 + $0x740] sm:$0xf]  ;;  %v7090_v51 = vor.u32 %v8559_v45, %v7089_v44  ;;  %v8523_v54 = vld [vmem:[%s9651_s19 + $0x52c] sm:$0xf0]  ;;  %5097 = vmatpush.bf16.msrb.mxu0 %v6834_v48  ;;  %v9859_v44 = vor.u32 %v8343_v27, %v6243_v30 }
 0x159   : > { %v6817_v49 = vld [vmem:[%s9651_s19 + $0x420] sm:$0xf]  ;;  %v7218_v55 = vor.u32 %v8591_v47, %v7217_v46  ;;  %v8555_v57 = vld [vmem:[%s9651_s19 + $0x62c] sm:$0xf0]  ;;  %5111 = vmatpush.bf16.msrb.mxu1 %v6962_v50  ;;  %v9863_v47 = vor.u32 %v8344_v31, %v6251_v32 }
 0x15a   : > { %v6945_v53 = vld [vmem:[%s9651_s19 + $0x520] sm:$0xf]  ;;  %v8587_v60 = vld [vmem:[%s9651_s19 + $0x72c] sm:$0xf0]  ;;  %v6818_v63 = vor.u32 %v8491_v52, %v6817_v49  ;;  %5125 = vmatpush.bf16.msrb.mxu2 %v7090_v51 }
 0x15b   : > { %v7073_v56 = vld [vmem:[%s9651_s19 + $0x620] sm:$0xf]  ;;  %v8487_v62 = vld [vmem:[%s9651_s19 + $0x40c] sm:$0xf0]  ;;  %v6946_v5 = vor.u32 %v8523_v54, %v6945_v53  ;;  %5139 = vmatpush.bf16.msrb.mxu3 %v7218_v55 }
 0x15c   : > { %v7201_v59 = vld [vmem:[%s9651_s19 + $0x720] sm:$0xf]  ;;  %v8519_v2 = vld [vmem:[%s9651_s19 + $0x50c] sm:$0xf0]  ;;  %v7074_v6 = vor.u32 %v8555_v57, %v7073_v56  ;;  %5098 = vmatpush.bf16.msrb.mxu0 %v6818_v63 }
 0x15d   : > { %v6801_v61 = vld [vmem:[%s9651_s19 + $0x400] sm:$0xf]  ;;  %v8551_v4 = vld [vmem:[%s9651_s19 + $0x60c] sm:$0xf0]  ;;  %v7202_v11 = vor.u32 %v8587_v60, %v7201_v59  ;;  %5112 = vmatpush.bf16.msrb.mxu1 %v6946_v5 }
 0x15e   : > { %v6929_v0 = vld [vmem:[%s9651_s19 + $0x500] sm:$0xf]  ;;  %v8583_v8 = vld [vmem:[%s9651_s19 + $0x70c] sm:$0xf0]  ;;  %v6802_v19 = vor.u32 %v8487_v62, %v6801_v61  ;;  %5126 = vmatpush.bf16.msrb.mxu2 %v7074_v6 }
 0x15f   : > { %v7057_v3 = vld [vmem:[%s9651_s19 + $0x600] sm:$0xf]  ;;  %v8643_v12 = vld [vmem:[%s9651_s19 + $0x8ec] sm:$0xf0]  ;;  %v6930_v23 = vor.u32 %v8519_v2, %v6929_v0  ;;  %5140 = vmatpush.bf16.msrb.mxu3 %v7202_v11 }
 0x160   : > { %v7185_v7 = vld [vmem:[%s9651_s19 + $0x700] sm:$0xf]  ;;  %v8675_v14 = vld [vmem:[%s9651_s19 + $0x9ec] sm:$0xf0]  ;;  %v7058_v24 = vor.u32 %v8551_v4, %v7057_v3  ;;  %5099 = vmatpush.bf16.msrb.mxu0 %v6802_v19 }
 0x161   : > { %v7425_v9 = vld [vmem:[%s9651_s19 + $0x8e0] sm:$0xf]  ;;  %v8707_v16 = vld [vmem:[%s9651_s19 + $0xaec] sm:$0xf0]  ;;  %v7186_v28 = vor.u32 %v8583_v8, %v7185_v7  ;;  %5113 = vmatpush.bf16.msrb.mxu1 %v6930_v23 }
 0x162   : > { %v7553_v13 = vld [vmem:[%s9651_s19 + $0x9e0] sm:$0xf]  ;;  %v8739_v20 = vld [vmem:[%s9651_s19 + $0xbec] sm:$0xf0]  ;;  %v7426_v29 = vor.u32 %v8643_v12, %v7425_v9  ;;  %5127 = vmatpush.bf16.msrb.mxu2 %v7058_v24 }
 0x163   : > { %v7681_v15 = vld [vmem:[%s9651_s19 + $0xae0] sm:$0xf]  ;;  %v6241_v21 = vld [vmem:[%s11095_s0 + $0x10] sm:$0xf]  ;;  %v7554_v33 = vor.u32 %v8675_v14, %v7553_v13  ;;  %5141 = vmatpush.bf16.msrb.mxu3 %v7186_v28 }
 0x164   : > { %v7809_v18 = vld [vmem:[%s9651_s19 + $0xbe0] sm:$0xf]  ;;  %v8351_v22 = vld [vmem:[%s11095_s0 + $0x4c] sm:$0xf0]  ;;  %v7682_v34 = vor.u32 %v8707_v16, %v7681_v15  ;;  %5148 = vmatpush.bf16.msra.mxu0 %v7426_v29  ;;  %5114 = vmatmul.bf16.vlgmr.msrb.gmra.mxu1 %v9859_v44 }
 0x165   : > { %v7409_v35 = vld [vmem:[%s9651_s19 + $0x8c0] sm:$0xf]  ;;  %v8639_v36 = vld [vmem:[%s9651_s19 + $0x8cc] sm:$0xf0]  ;;  %v7810_v38 = vor.u32 %v8739_v20, %v7809_v18  ;;  %v9852_v39 = vor.u32 %v8351_v22, %v6241_v21  ;;  %5162 = vmatpush.bf16.msra.mxu1 %v7554_v33  ;;  %5128 = vmatmul.bf16.vlgmr.msrb.gmra.mxu2 %v9857_v43 }
 0x166   : > { %v7537_v37 = vld [vmem:[%s9651_s19 + $0x9c0] sm:$0xf]  ;;  %v8671_v40 = vld [vmem:[%s9651_s19 + $0x9cc] sm:$0xf0]  ;;  %v7410_v48 = vor.u32 %v8639_v36, %v7409_v35  ;;  %5176 = vmatpush.bf16.msra.mxu2 %v7682_v34  ;;  %5142 = vmatmul.bf16.vlgmr.msrb.gmra.mxu3 %v9863_v47 }
 0x167   : > { %v7665_v41 = vld [vmem:[%s9651_s19 + $0xac0] sm:$0xf]  ;;  %v8703_v42 = vld [vmem:[%s9651_s19 + $0xacc] sm:$0xf0]  ;;  %v7538_v49 = vor.u32 %v8671_v40, %v7537_v37  ;;  %5190 = vmatpush.bf16.msra.mxu3 %v7810_v38  ;;  %5100 = vmatmul.bf16.vlgmr.msrb.gmra.mxu0 %v9852_v39 }
 0x168   : > { %v7793_v45 = vld [vmem:[%s9651_s19 + $0xbc0] sm:$0xf]  ;;  %v8735_v46 = vld [vmem:[%s9651_s19 + $0xbcc] sm:$0xf0]  ;;  %v7666_v50 = vor.u32 %v8703_v42, %v7665_v41  ;;  %5149 = vmatpush.bf16.msra.mxu0 %v7410_v48 }
 0x169   : > { %v7393_v51 = vld [vmem:[%s9651_s19 + $0x8a0] sm:$0xf]  ;;  %v8635_v52 = vld [vmem:[%s9651_s19 + $0x8ac] sm:$0xf0]  ;;  %v7794_v54 = vor.u32 %v8735_v46, %v7793_v45  ;;  %5163 = vmatpush.bf16.msra.mxu1 %v7538_v49 }
 0x16a   : > { %v7521_v53 = vld [vmem:[%s9651_s19 + $0x9a0] sm:$0xf]  ;;  %v8667_v55 = vld [vmem:[%s9651_s19 + $0x9ac] sm:$0xf0]  ;;  %v7394_v61 = vor.u32 %v8635_v52, %v7393_v51  ;;  %5177 = vmatpush.bf16.msra.mxu2 %v7666_v50 }
 0x16b   : > { %v7649_v56 = vld [vmem:[%s9651_s19 + $0xaa0] sm:$0xf]  ;;  %v8699_v57 = vld [vmem:[%s9651_s19 + $0xaac] sm:$0xf0]  ;;  %v7522_v62 = vor.u32 %v8667_v55, %v7521_v53  ;;  %5191 = vmatpush.bf16.msra.mxu3 %v7794_v54 }
 0x16c   : > { %v7777_v59 = vld [vmem:[%s9651_s19 + $0xba0] sm:$0xf]  ;;  %v8731_v60 = vld [vmem:[%s9651_s19 + $0xbac] sm:$0xf0]  ;;  %v7650_v63 = vor.u32 %v8699_v57, %v7649_v56  ;;  %5150 = vmatpush.bf16.msra.mxu0 %v7394_v61 }
 0x16d   : > { %v7377_v0 = vld [vmem:[%s9651_s19 + $0x880] sm:$0xf]  ;;  %v8631_v2 = vld [vmem:[%s9651_s19 + $0x88c] sm:$0xf0]  ;;  %v7778_v4 = vor.u32 %v8731_v60, %v7777_v59  ;;  %5164 = vmatpush.bf16.msra.mxu1 %v7522_v62 }
 0x16e   : > { %v7505_v3 = vld [vmem:[%s9651_s19 + $0x980] sm:$0xf]  ;;  %v8663_v5 = vld [vmem:[%s9651_s19 + $0x98c] sm:$0xf0]  ;;  %v7378_v11 = vor.u32 %v8631_v2, %v7377_v0  ;;  %5178 = vmatpush.bf16.msra.mxu2 %v7650_v63 }
 0x16f   : > { %v7633_v6 = vld [vmem:[%s9651_s19 + $0xa80] sm:$0xf]  ;;  %v8695_v7 = vld [vmem:[%s9651_s19 + $0xa8c] sm:$0xf0]  ;;  %v7506_v12 = vor.u32 %v8663_v5, %v7505_v3  ;;  %5192 = vmatpush.bf16.msra.mxu3 %v7778_v4 }
 0x170   : > { %v7761_v8 = vld [vmem:[%s9651_s19 + $0xb80] sm:$0xf]  ;;  %v8727_v9 = vld [vmem:[%s9651_s19 + $0xb8c] sm:$0xf0]  ;;  %v7634_v13 = vor.u32 %v8695_v7, %v7633_v6  ;;  %5151 = vmatpush.bf16.msra.mxu0 %v7378_v11 }
 0x171   : > { %v7361_v14 = vld [vmem:[%s9651_s19 + $0x860] sm:$0xf]  ;;  %v8627_v15 = vld [vmem:[%s9651_s19 + $0x86c] sm:$0xf0]  ;;  %v7762_v18 = vor.u32 %v8727_v9, %v7761_v8  ;;  %5165 = vmatpush.bf16.msra.mxu1 %v7506_v12 }
 0x172   : > { %v7489_v16 = vld [vmem:[%s9651_s19 + $0x960] sm:$0xf]  ;;  %v8659_v19 = vld [vmem:[%s9651_s19 + $0x96c] sm:$0xf0]  ;;  %v7362_v24 = vor.u32 %v8627_v15, %v7361_v14  ;;  %5179 = vmatpush.bf16.msra.mxu2 %v7634_v13 }
 0x173   : > { %v7617_v20 = vld [vmem:[%s9651_s19 + $0xa60] sm:$0xf]  ;;  %v8691_v21 = vld [vmem:[%s9651_s19 + $0xa6c] sm:$0xf0]  ;;  %v7490_v25 = vor.u32 %v8659_v19, %v7489_v16  ;;  %5193 = vmatpush.bf16.msra.mxu3 %v7762_v18  ;;  %v6265_v16 = vld [vmem:[%s11095_s0 + $0x28] sm:$0xf] }
 0x174   : > { %v7745_v22 = vld [vmem:[%s9651_s19 + $0xb60] sm:$0xf]  ;;  %v8723_v23 = vld [vmem:[%s9651_s19 + $0xb6c] sm:$0xf0]  ;;  %v7618_v26 = vor.u32 %v8691_v21, %v7617_v20  ;;  %5152 = vmatpush.bf16.msra.mxu0 %v7362_v24  ;;  %v8354_v18 = vld [vmem:[%s11095_s0 + $0x64] sm:$0xf0] }
 0x175   : > { %v7345_v27 = vld [vmem:[%s9651_s19 + $0x840] sm:$0xf]  ;;  %v8623_v28 = vld [vmem:[%s9651_s19 + $0x84c] sm:$0xf0]  ;;  %v7746_v30 = vor.u32 %v8723_v23, %v7745_v22  ;;  %5166 = vmatpush.bf16.msra.mxu1 %v7490_v25  ;;  %v8345_v19 = vld [vmem:[%s11095_s0 + $0x24] sm:$0xf] }
 0x176   : > { %v7473_v29 = vld [vmem:[%s9651_s19 + $0x940] sm:$0xf]  ;;  %v8655_v31 = vld [vmem:[%s9651_s19 + $0x94c] sm:$0xf0]  ;;  %v7346_v36 = vor.u32 %v8623_v28, %v7345_v27  ;;  %5180 = vmatpush.bf16.msra.mxu2 %v7618_v26  ;;  %v6259_v22 = vld [vmem:[%s11095_s0 + $0x60] sm:$0xf0] }
 0x177   : > { %v7601_v32 = vld [vmem:[%s9651_s19 + $0xa40] sm:$0xf]  ;;  %v8687_v33 = vld [vmem:[%s9651_s19 + $0xa4c] sm:$0xf0]  ;;  %v7474_v38 = vor.u32 %v8655_v31, %v7473_v29  ;;  %5194 = vmatpush.bf16.msra.mxu3 %v7746_v30  ;;  %v8346_v23 = vld [vmem:[%s11095_s0 + $0x2c] sm:$0xf] }
 0x178   : > { %v7729_v34 = vld [vmem:[%s9651_s19 + $0xb40] sm:$0xf]  ;;  %v8719_v35 = vld [vmem:[%s9651_s19 + $0xb4c] sm:$0xf0]  ;;  %v7602_v40 = vor.u32 %v8687_v33, %v7601_v32  ;;  %5153 = vmatpush.bf16.msra.mxu0 %v7346_v36  ;;  %v6267_v24 = vld [vmem:[%s11095_s0 + $0x68] sm:$0xf0]  ;;  %v9959_v36 = vor.u32 %v8345_v19, %v6259_v22 }
 0x179   : > { %v7329_v37 = vld [vmem:[%s9651_s19 + $0x820] sm:$0xf]  ;;  %v8619_v41 = vld [vmem:[%s9651_s19 + $0x82c] sm:$0xf0]  ;;  %v7730_v46 = vor.u32 %v8719_v35, %v7729_v34  ;;  %5167 = vmatpush.bf16.msra.mxu1 %v7474_v38  ;;  %v9957_v35 = vor.u32 %v8354_v18, %v6265_v16 }
 0x17a   : > { %v7457_v42 = vld [vmem:[%s9651_s19 + $0x920] sm:$0xf]  ;;  %v8651_v45 = vld [vmem:[%s9651_s19 + $0x92c] sm:$0xf0]  ;;  %v7330_v54 = vor.u32 %v8619_v41, %v7329_v37  ;;  %5181 = vmatpush.bf16.msra.mxu2 %v7602_v40  ;;  %v9963_v40 = vor.u32 %v8346_v23, %v6267_v24 }
 0x17b   : > { %v7585_v48 = vld [vmem:[%s9651_s19 + $0xa20] sm:$0xf]  ;;  %v8683_v49 = vld [vmem:[%s9651_s19 + $0xa2c] sm:$0xf0]  ;;  %v7458_v60 = vor.u32 %v8651_v45, %v7457_v42  ;;  %5195 = vmatpush.bf16.msra.mxu3 %v7730_v46 }
 0x17c   : > { %v7713_v50 = vld [vmem:[%s9651_s19 + $0xb20] sm:$0xf]  ;;  %v8715_v51 = vld [vmem:[%s9651_s19 + $0xb2c] sm:$0xf0]  ;;  %v7586_v61 = vor.u32 %v8683_v49, %v7585_v48  ;;  %5154 = vmatpush.bf16.msra.mxu0 %v7330_v54 }
 0x17d   : > { %v7313_v52 = vld [vmem:[%s9651_s19 + $0x800] sm:$0xf]  ;;  %v8615_v53 = vld [vmem:[%s9651_s19 + $0x80c] sm:$0xf0]  ;;  %v7714_v2 = vor.u32 %v8715_v51, %v7713_v50  ;;  %5168 = vmatpush.bf16.msra.mxu1 %v7458_v60 }
 0x17e   : > { %v7441_v55 = vld [vmem:[%s9651_s19 + $0x900] sm:$0xf]  ;;  %v8647_v56 = vld [vmem:[%s9651_s19 + $0x90c] sm:$0xf0]  ;;  %v7314_v9 = vor.u32 %v8615_v53, %v7313_v52  ;;  %5182 = vmatpush.bf16.msra.mxu2 %v7586_v61 }
 0x17f   : > { %v7569_v57 = vld [vmem:[%s9651_s19 + $0xa00] sm:$0xf]  ;;  %v8679_v59 = vld [vmem:[%s9651_s19 + $0xa0c] sm:$0xf0]  ;;  %v7442_v14 = vor.u32 %v8647_v56, %v7441_v55  ;;  %5196 = vmatpush.bf16.msra.mxu3 %v7714_v2 }
 0x180   : > { %v7697_v62 = vld [vmem:[%s9651_s19 + $0xb00] sm:$0xf]  ;;  %v8711_v63 = vld [vmem:[%s9651_s19 + $0xb0c] sm:$0xf0]  ;;  %v7570_v15 = vor.u32 %v8679_v59, %v7569_v57  ;;  %5155 = vmatpush.bf16.msra.mxu0 %v7314_v9 }
 0x181   : > { %v7937_v0 = vld [vmem:[%s9651_s19 + $0xce0] sm:$0xf]  ;;  %v8771_v3 = vld [vmem:[%s9651_s19 + $0xcec] sm:$0xf0]  ;;  %v7698_v20 = vor.u32 %v8711_v63, %v7697_v62  ;;  %5169 = vmatpush.bf16.msra.mxu1 %v7442_v14 }
 0x182   : > { %v8065_v4 = vld [vmem:[%s9651_s19 + $0xde0] sm:$0xf]  ;;  %v8803_v5 = vld [vmem:[%s9651_s19 + $0xdec] sm:$0xf0]  ;;  %v7938_v21 = vor.u32 %v8771_v3, %v7937_v0  ;;  %5183 = vmatpush.bf16.msra.mxu2 %v7570_v15 }
 0x183   : > { %v8193_v6 = vld [vmem:[%s9651_s19 + $0xee0] sm:$0xf]  ;;  %v8835_v7 = vld [vmem:[%s9651_s19 + $0xeec] sm:$0xf0]  ;;  %v8066_v25 = vor.u32 %v8803_v5, %v8065_v4  ;;  %5197 = vmatpush.bf16.msra.mxu3 %v7698_v20 }
 0x184   : > { %v8321_v8 = vld [vmem:[%s9651_s19 + $0xfe0] sm:$0xf]  ;;  %v8867_v11 = vld [vmem:[%s9651_s19 + $0xfec] sm:$0xf0]  ;;  %v8194_v26 = vor.u32 %v8835_v7, %v8193_v6  ;;  %5204 = vmatpush.bf16.msrb.mxu0 %v7938_v21  ;;  %5170 = vmatmul.bf16.vlgmr.msra.gmra.mxu1 %v9959_v36 }
 0x185   : > { %v6257_v12 = vld [vmem:[%s11095_s0 + $0x20] sm:$0xf]  ;;  %v8767_v28 = vld [vmem:[%s9651_s19 + $0xccc] sm:$0xf0]  ;;  %v8322_v30 = vor.u32 %v8867_v11, %v8321_v8  ;;  %5218 = vmatpush.bf16.msrb.mxu1 %v8066_v25  ;;  %5184 = vmatmul.bf16.vlgmr.msra.gmra.mxu2 %v9957_v35 }
 0x186   : > { %v8353_v13 = vld [vmem:[%s11095_s0 + $0x5c] sm:$0xf0]  ;;  %v8799_v32 = vld [vmem:[%s9651_s19 + $0xdcc] sm:$0xf0]  ;;  %5232 = vmatpush.bf16.msrb.mxu2 %v8194_v26  ;;  %5198 = vmatmul.bf16.vlgmr.msra.gmra.mxu3 %v9963_v40 }
 0x187   : > { %v7921_v27 = vld [vmem:[%s9651_s19 + $0xcc0] sm:$0xf]  ;;  %v9952_v31 = vor.u32 %v8353_v13, %v6257_v12  ;;  %v8831_v34 = vld [vmem:[%s9651_s19 + $0xecc] sm:$0xf0]  ;;  %5246 = vmatpush.bf16.msrb.mxu3 %v8322_v30 }
 0x188   : > { %v8049_v29 = vld [vmem:[%s9651_s19 + $0xdc0] sm:$0xf]  ;;  %v8863_v38 = vld [vmem:[%s9651_s19 + $0xfcc] sm:$0xf0]  ;;  %v7922_v41 = vor.u32 %v8767_v28, %v7921_v27 }
 0x189   : > { %v8177_v33 = vld [vmem:[%s9651_s19 + $0xec0] sm:$0xf]  ;;  %v8050_v42 = vor.u32 %v8799_v32, %v8049_v29  ;;  %v8763_v48 = vld [vmem:[%s9651_s19 + $0xcac] sm:$0xf0]  ;;  %5156 = vmatmul.bf16.vlgmr.msra.gmra.mxu0 %v9952_v31 }
 0x18a   : > { %v8305_v37 = vld [vmem:[%s9651_s19 + $0xfc0] sm:$0xf]  ;;  %v8178_v45 = vor.u32 %v8831_v34, %v8177_v33  ;;  %v8795_v51 = vld [vmem:[%s9651_s19 + $0xdac] sm:$0xf0]  ;;  %5205 = vmatpush.bf16.msrb.mxu0 %v7922_v41 }
 0x18b   : > { %v7905_v46 = vld [vmem:[%s9651_s19 + $0xca0] sm:$0xf]  ;;  %v8306_v50 = vor.u32 %v8863_v38, %v8305_v37  ;;  %v8827_v53 = vld [vmem:[%s9651_s19 + $0xeac] sm:$0xf0]  ;;  %5219 = vmatpush.bf16.msrb.mxu1 %v8050_v42 }
 0x18c   : > { %v8033_v49 = vld [vmem:[%s9651_s19 + $0xda0] sm:$0xf]  ;;  %v8859_v55 = vld [vmem:[%s9651_s19 + $0xfac] sm:$0xf0]  ;;  %v7906_v56 = vor.u32 %v8763_v48, %v7905_v46  ;;  %5233 = vmatpush.bf16.msrb.mxu2 %v8178_v45 }
 0x18d   : > { %v8161_v52 = vld [vmem:[%s9651_s19 + $0xea0] sm:$0xf]  ;;  %v8034_v57 = vor.u32 %v8795_v51, %v8033_v49  ;;  %v8759_v61 = vld [vmem:[%s9651_s19 + $0xc8c] sm:$0xf0]  ;;  %5247 = vmatpush.bf16.msrb.mxu3 %v8306_v50 }
 0x18e   : > { %v8289_v54 = vld [vmem:[%s9651_s19 + $0xfa0] sm:$0xf]  ;;  %v8162_v59 = vor.u32 %v8827_v53, %v8161_v52  ;;  %v8791_v0 = vld [vmem:[%s9651_s19 + $0xd8c] sm:$0xf0]  ;;  %5206 = vmatpush.bf16.msrb.mxu0 %v7906_v56 }
 0x18f   : > { %v7889_v60 = vld [vmem:[%s9651_s19 + $0xc80] sm:$0xf]  ;;  %v8290_v63 = vor.u32 %v8859_v55, %v8289_v54  ;;  %v8823_v3 = vld [vmem:[%s9651_s19 + $0xe8c] sm:$0xf0]  ;;  %5220 = vmatpush.bf16.msrb.mxu1 %v8034_v57 }
 0x190   : > { %v8017_v62 = vld [vmem:[%s9651_s19 + $0xd80] sm:$0xf]  ;;  %v8855_v5 = vld [vmem:[%s9651_s19 + $0xf8c] sm:$0xf0]  ;;  %v7890_v6 = vor.u32 %v8759_v61, %v7889_v60  ;;  %5234 = vmatpush.bf16.msrb.mxu2 %v8162_v59 }
 0x191   : > { %v8145_v2 = vld [vmem:[%s9651_s19 + $0xe80] sm:$0xf]  ;;  %v8018_v7 = vor.u32 %v8791_v0, %v8017_v62  ;;  %v8755_v11 = vld [vmem:[%s9651_s19 + $0xc6c] sm:$0xf0]  ;;  %5248 = vmatpush.bf16.msrb.mxu3 %v8290_v63  ;;  %v8385_v0 = vld [vmem:[%s9651_s19 + $0xe4] sm:$0xf] }
 0x192   : > { %v8273_v4 = vld [vmem:[%s9651_s19 + $0xf80] sm:$0xf]  ;;  %v8146_v8 = vor.u32 %v8823_v3, %v8145_v2  ;;  %v8787_v14 = vld [vmem:[%s9651_s19 + $0xd6c] sm:$0xf0]  ;;  %5207 = vmatpush.bf16.msrb.mxu0 %v7890_v6  ;;  %v6403_v3 = vld [vmem:[%s9651_s19 + $0xf0] sm:$0xf0] }
 0x193   : > { %v7873_v9 = vld [vmem:[%s9651_s19 + $0xc60] sm:$0xf]  ;;  %v8274_v13 = vor.u32 %v8855_v5, %v8273_v4  ;;  %v8819_v16 = vld [vmem:[%s9651_s19 + $0xe6c] sm:$0xf0]  ;;  %5221 = vmatpush.bf16.msrb.mxu1 %v8018_v7  ;;  %v8417_v4 = vld [vmem:[%s9651_s19 + $0x1e4] sm:$0xf] }
 0x194   : > { %v8001_v12 = vld [vmem:[%s9651_s19 + $0xd60] sm:$0xf]  ;;  %v8851_v19 = vld [vmem:[%s9651_s19 + $0xf6c] sm:$0xf0]  ;;  %v7874_v20 = vor.u32 %v8755_v11, %v7873_v9  ;;  %5235 = vmatpush.bf16.msrb.mxu2 %v8146_v8  ;;  %v6531_v5 = vld [vmem:[%s9651_s19 + $0x1f0] sm:$0xf0] }
 0x195   : > { %v8129_v15 = vld [vmem:[%s9651_s19 + $0xe60] sm:$0xf]  ;;  %v8002_v21 = vor.u32 %v8787_v14, %v8001_v12  ;;  %v8751_v24 = vld [vmem:[%s9651_s19 + $0xc4c] sm:$0xf0]  ;;  %5249 = vmatpush.bf16.msrb.mxu3 %v8274_v13  ;;  %v8449_v6 = vld [vmem:[%s9651_s19 + $0x2e4] sm:$0xf] }
 0x196   : > { %v8257_v18 = vld [vmem:[%s9651_s19 + $0xf60] sm:$0xf]  ;;  %v8130_v22 = vor.u32 %v8819_v16, %v8129_v15  ;;  %v8783_v27 = vld [vmem:[%s9651_s19 + $0xd4c] sm:$0xf0]  ;;  %5208 = vmatpush.bf16.msrb.mxu0 %v7874_v20  ;;  %v6659_v7 = vld [vmem:[%s9651_s19 + $0x2f0] sm:$0xf0] }
 0x197   : > { %v7857_v23 = vld [vmem:[%s9651_s19 + $0xc40] sm:$0xf]  ;;  %v8258_v26 = vor.u32 %v8851_v19, %v8257_v18  ;;  %v8815_v29 = vld [vmem:[%s9651_s19 + $0xe4c] sm:$0xf0]  ;;  %5222 = vmatpush.bf16.msrb.mxu1 %v8002_v21  ;;  %v8481_v8 = vld [vmem:[%s9651_s19 + $0x3e4] sm:$0xf]  ;;  %v6406_v21 = vor.u32 %v8385_v0, %v6403_v3 }
 0x198   : > { %v7985_v25 = vld [vmem:[%s9651_s19 + $0xd40] sm:$0xf]  ;;  %v8847_v32 = vld [vmem:[%s9651_s19 + $0xf4c] sm:$0xf0]  ;;  %v7858_v33 = vor.u32 %v8751_v24, %v7857_v23  ;;  %5236 = vmatpush.bf16.msrb.mxu2 %v8130_v22  ;;  %v6787_v11 = vld [vmem:[%s9651_s19 + $0x3f0] sm:$0xf0] }
 0x199   : > { %v8113_v28 = vld [vmem:[%s9651_s19 + $0xe40] sm:$0xf]  ;;  %v7986_v37 = vor.u32 %v8783_v27, %v7985_v25  ;;  %v8747_v41 = vld [vmem:[%s9651_s19 + $0xc2c] sm:$0xf0]  ;;  %5250 = vmatpush.bf16.msrb.mxu3 %v8258_v26  ;;  %v6281_v16 = vld [vmem:[%s11095_s0 + $0x38] sm:$0xf]  ;;  %v6534_v25 = vor.u32 %v8417_v4, %v6531_v5  ;;  %v6662_v26 = vor.u32 %v8449_v6, %v6659_v7 }
 0x19a   : > { %v8241_v30 = vld [vmem:[%s9651_s19 + $0xf40] sm:$0xf]  ;;  %v8114_v38 = vor.u32 %v8815_v29, %v8113_v28  ;;  %v8779_v45 = vld [vmem:[%s9651_s19 + $0xd2c] sm:$0xf0]  ;;  %5209 = vmatpush.bf16.msrb.mxu0 %v7858_v33  ;;  %v8356_v18 = vld [vmem:[%s11095_s0 + $0x74] sm:$0xf0] }
 0x19b   : > { %v7841_v34 = vld [vmem:[%s9651_s19 + $0xc20] sm:$0xf]  ;;  %v8242_v46 = vor.u32 %v8847_v32, %v8241_v30  ;;  %v8811_v49 = vld [vmem:[%s9651_s19 + $0xe2c] sm:$0xf0]  ;;  %5223 = vmatpush.bf16.msrb.mxu1 %v7986_v37  ;;  %v8347_v19 = vld [vmem:[%s11095_s0 + $0x34] sm:$0xf]  ;;  %v6790_v30 = vor.u32 %v8481_v8, %v6787_v11 }
 0x19c   : > { %v7969_v42 = vld [vmem:[%s9651_s19 + $0xd20] sm:$0xf]  ;;  %v8843_v51 = vld [vmem:[%s9651_s19 + $0xf2c] sm:$0xf0]  ;;  %v7842_v54 = vor.u32 %v8747_v41, %v7841_v34  ;;  %5237 = vmatpush.bf16.msrb.mxu2 %v8114_v38  ;;  %v6275_v22 = vld [vmem:[%s11095_s0 + $0x70] sm:$0xf0]  ;;  %v10057_v38 = vor.u32 %v8356_v18, %v6281_v16 }
 0x19d   : > { %v8097_v48 = vld [vmem:[%s9651_s19 + $0xe20] sm:$0xf]  ;;  %v8743_v53 = vld [vmem:[%s9651_s19 + $0xc0c] sm:$0xf0]  ;;  %v7970_v60 = vor.u32 %v8779_v45, %v7969_v42  ;;  %5251 = vmatpush.bf16.msrb.mxu3 %v8242_v46  ;;  %v8348_v23 = vld [vmem:[%s11095_s0 + $0x3c] sm:$0xf]  ;;  %v10059_v41 = vor.u32 %v8347_v19, %v6275_v22 }
 0x19e   : > { %v8225_v50 = vld [vmem:[%s9651_s19 + $0xf20] sm:$0xf]  ;;  %v8775_v56 = vld [vmem:[%s9651_s19 + $0xd0c] sm:$0xf0]  ;;  %v8098_v61 = vor.u32 %v8811_v49, %v8097_v48  ;;  %5210 = vmatpush.bf16.msrb.mxu0 %v7842_v54  ;;  %v6283_v24 = vld [vmem:[%s11095_s0 + $0x78] sm:$0xf0] }
 0x19f   : > { %v7825_v52 = vld [vmem:[%s9651_s19 + $0xc00] sm:$0xf]  ;;  %v8807_v59 = vld [vmem:[%s9651_s19 + $0xe0c] sm:$0xf0]  ;;  %v8226_v2 = vor.u32 %v8843_v51, %v8225_v50  ;;  %5224 = vmatpush.bf16.msrb.mxu1 %v7970_v60  ;;  %v8381_v27 = vld [vmem:[%s9651_s19 + $0xc4] sm:$0xf]  ;;  %v10063_v46 = vor.u32 %v8348_v23, %v6283_v24 }
 0x1a0   : > { %v7953_v55 = vld [vmem:[%s9651_s19 + $0xd00] sm:$0xf]  ;;  %v8839_v63 = vld [vmem:[%s9651_s19 + $0xf0c] sm:$0xf0]  ;;  %v7826_v9 = vor.u32 %v8743_v53, %v7825_v52  ;;  %5238 = vmatpush.bf16.msrb.mxu2 %v8098_v61  ;;  %v6387_v28 = vld [vmem:[%s9651_s19 + $0xd0] sm:$0xf0] }
 0x1a1   : > { %v8081_v57 = vld [vmem:[%s9651_s19 + $0xe00] sm:$0xf]  ;;  %v6273_v12 = vld [vmem:[%s11095_s0 + $0x30] sm:$0xf]  ;;  %v7954_v14 = vor.u32 %v8775_v56, %v7953_v55  ;;  %5252 = vmatpush.bf16.msrb.mxu3 %v8226_v2  ;;  %v8413_v29 = vld [vmem:[%s9651_s19 + $0x1c4] sm:$0xf]  ;;  %v6390_v48 = vor.u32 %v8381_v27, %v6387_v28 }
 0x1a2   : > { %v8209_v62 = vld [vmem:[%s9651_s19 + $0xf00] sm:$0xf]  ;;  %v8355_v13 = vld [vmem:[%s11095_s0 + $0x6c] sm:$0xf0]  ;;  %v8082_v15 = vor.u32 %v8807_v59, %v8081_v57  ;;  %5211 = vmatpush.bf16.msrb.mxu0 %v7826_v9  ;;  %v6515_v33 = vld [vmem:[%s9651_s19 + $0x1d0] sm:$0xf0] }
 0x1a3   : > { %v8210_v20 = vor.u32 %v8839_v63, %v8209_v62  ;;  %v10052_v32 = vor.u32 %v8355_v13, %v6273_v12  ;;  %v8445_v34 = vld [vmem:[%s9651_s19 + $0x2c4] sm:$0xf]  ;;  %v6643_v37 = vld [vmem:[%s9651_s19 + $0x2d0] sm:$0xf0]  ;;  %5225 = vmatpush.bf16.msrb.mxu1 %v7954_v14  ;;  %v6518_v49 = vor.u32 %v8413_v29, %v6515_v33 }
 0x1a4   : > { %5239 = vmatpush.bf16.msrb.mxu2 %v8082_v15  ;;  %v8477_v42 = vld [vmem:[%s9651_s19 + $0x3c4] sm:$0xf]  ;;  %v6771_v45 = vld [vmem:[%s9651_s19 + $0x3d0] sm:$0xf0]  ;;  %v6646_v50 = vor.u32 %v8445_v34, %v6643_v37 }
 0x1a5   : > { %5253 = vmatpush.bf16.msrb.mxu3 %v8210_v20  ;;  %v8377_v51 = vld [vmem:[%s9651_s19 + $0xa4] sm:$0xf]  ;;  %v6371_v52 = vld [vmem:[%s9651_s19 + $0xb0] sm:$0xf0]  ;;  %5212 = vmatmul.bf16.vlgmr.msrb.gmra.mxu0 %v10052_v32  ;;  %v6774_v54 = vor.u32 %v8477_v42, %v6771_v45 }
 0x1a6   : > { %5260 = vmatpush.bf16.msra.mxu0 %v6406_v21  ;;  %v8409_v53 = vld [vmem:[%s9651_s19 + $0x1a4] sm:$0xf]  ;;  %v6499_v55 = vld [vmem:[%s9651_s19 + $0x1b0] sm:$0xf0]  ;;  %5226 = vmatmul.bf16.vlgmr.msrb.gmra.mxu1 %v10059_v41  ;;  %v6374_v61 = vor.u32 %v8377_v51, %v6371_v52 }
 0x1a7   : > { %5274 = vmatpush.bf16.msra.mxu1 %v6534_v25  ;;  %v8441_v56 = vld [vmem:[%s9651_s19 + $0x2a4] sm:$0xf]  ;;  %v6627_v57 = vld [vmem:[%s9651_s19 + $0x2b0] sm:$0xf0]  ;;  %5240 = vmatmul.bf16.vlgmr.msrb.gmra.mxu2 %v10057_v38  ;;  %v6502_v62 = vor.u32 %v8409_v53, %v6499_v55 }
 0x1a8   : > { %5288 = vmatpush.bf16.msra.mxu2 %v6662_v26  ;;  %v8473_v59 = vld [vmem:[%s9651_s19 + $0x3a4] sm:$0xf]  ;;  %v6755_v60 = vld [vmem:[%s9651_s19 + $0x3b0] sm:$0xf0]  ;;  %5254 = vmatmul.bf16.vlgmr.msrb.gmra.mxu3 %v10063_v46  ;;  %v6630_v63 = vor.u32 %v8441_v56, %v6627_v57 }
 0x1a9   : > { %5302 = vmatpush.bf16.msra.mxu3 %v6790_v30  ;;  %v8373_v0 = vld [vmem:[%s9651_s19 + $0x84] sm:$0xf]  ;;  %v6355_v2 = vld [vmem:[%s9651_s19 + $0x90] sm:$0xf0]  ;;  %v6758_v4 = vor.u32 %v8473_v59, %v6755_v60 }
 0x1aa   : > { %5261 = vmatpush.bf16.msra.mxu0 %v6390_v48  ;;  %v8405_v3 = vld [vmem:[%s9651_s19 + $0x184] sm:$0xf]  ;;  %v6483_v5 = vld [vmem:[%s9651_s19 + $0x190] sm:$0xf0]  ;;  %v6358_v11 = vor.u32 %v8373_v0, %v6355_v2 }
 0x1ab   : > { %5275 = vmatpush.bf16.msra.mxu1 %v6518_v49  ;;  %v8437_v6 = vld [vmem:[%s9651_s19 + $0x284] sm:$0xf]  ;;  %v6611_v7 = vld [vmem:[%s9651_s19 + $0x290] sm:$0xf0]  ;;  %v6486_v12 = vor.u32 %v8405_v3, %v6483_v5 }
 0x1ac   : > { %5289 = vmatpush.bf16.msra.mxu2 %v6646_v50  ;;  %v8469_v8 = vld [vmem:[%s9651_s19 + $0x384] sm:$0xf]  ;;  %v6739_v9 = vld [vmem:[%s9651_s19 + $0x390] sm:$0xf0]  ;;  %v6614_v13 = vor.u32 %v8437_v6, %v6611_v7 }
 0x1ad   : > { %5303 = vmatpush.bf16.msra.mxu3 %v6774_v54  ;;  %v8369_v14 = vld [vmem:[%s9651_s19 + $0x64] sm:$0xf]  ;;  %v6339_v15 = vld [vmem:[%s9651_s19 + $0x70] sm:$0xf0]  ;;  %v6742_v18 = vor.u32 %v8469_v8, %v6739_v9 }
 0x1ae   : > { %5262 = vmatpush.bf16.msra.mxu0 %v6374_v61  ;;  %v8401_v16 = vld [vmem:[%s9651_s19 + $0x164] sm:$0xf]  ;;  %v6467_v19 = vld [vmem:[%s9651_s19 + $0x170] sm:$0xf0]  ;;  %v6342_v24 = vor.u32 %v8369_v14, %v6339_v15 }
 0x1af   : > { %5276 = vmatpush.bf16.msra.mxu1 %v6502_v62  ;;  %v8433_v20 = vld [vmem:[%s9651_s19 + $0x264] sm:$0xf]  ;;  %v6595_v21 = vld [vmem:[%s9651_s19 + $0x270] sm:$0xf0]  ;;  %v6470_v25 = vor.u32 %v8401_v16, %v6467_v19 }
 0x1b0   : > { %5290 = vmatpush.bf16.msra.mxu2 %v6630_v63  ;;  %v8465_v22 = vld [vmem:[%s9651_s19 + $0x364] sm:$0xf]  ;;  %v6723_v23 = vld [vmem:[%s9651_s19 + $0x370] sm:$0xf0]  ;;  %v6598_v26 = vor.u32 %v8433_v20, %v6595_v21 }
 0x1b1   : > { %5304 = vmatpush.bf16.msra.mxu3 %v6758_v4  ;;  %v8365_v27 = vld [vmem:[%s9651_s19 + $0x44] sm:$0xf]  ;;  %v6323_v28 = vld [vmem:[%s9651_s19 + $0x50] sm:$0xf0]  ;;  %v6726_v30 = vor.u32 %v8465_v22, %v6723_v23 }
 0x1b2   : > { %5263 = vmatpush.bf16.msra.mxu0 %v6358_v11  ;;  %v8397_v29 = vld [vmem:[%s9651_s19 + $0x144] sm:$0xf]  ;;  %v6451_v33 = vld [vmem:[%s9651_s19 + $0x150] sm:$0xf0]  ;;  %v6326_v48 = vor.u32 %v8365_v27, %v6323_v28 }
 0x1b3   : > { %5277 = vmatpush.bf16.msra.mxu1 %v6486_v12  ;;  %v8429_v34 = vld [vmem:[%s9651_s19 + $0x244] sm:$0xf]  ;;  %v6579_v37 = vld [vmem:[%s9651_s19 + $0x250] sm:$0xf0]  ;;  %v6454_v49 = vor.u32 %v8397_v29, %v6451_v33 }
 0x1b4   : > { %5291 = vmatpush.bf16.msra.mxu2 %v6614_v13  ;;  %v8461_v42 = vld [vmem:[%s9651_s19 + $0x344] sm:$0xf]  ;;  %v6707_v45 = vld [vmem:[%s9651_s19 + $0x350] sm:$0xf0]  ;;  %v6582_v50 = vor.u32 %v8429_v34, %v6579_v37 }
 0x1b5   : > { %5305 = vmatpush.bf16.msra.mxu3 %v6742_v18  ;;  %v8361_v51 = vld [vmem:[%s9651_s19 + $0x24] sm:$0xf]  ;;  %v6307_v52 = vld [vmem:[%s9651_s19 + $0x30] sm:$0xf0]  ;;  %v6710_v54 = vor.u32 %v8461_v42, %v6707_v45 }
 0x1b6   : > { %5264 = vmatpush.bf16.msra.mxu0 %v6342_v24  ;;  %v8393_v53 = vld [vmem:[%s9651_s19 + $0x124] sm:$0xf]  ;;  %v6435_v55 = vld [vmem:[%s9651_s19 + $0x130] sm:$0xf0]  ;;  %v6310_v61 = vor.u32 %v8361_v51, %v6307_v52 }
 0x1b7   : > { %5278 = vmatpush.bf16.msra.mxu1 %v6470_v25  ;;  %v8425_v56 = vld [vmem:[%s9651_s19 + $0x224] sm:$0xf]  ;;  %v6563_v57 = vld [vmem:[%s9651_s19 + $0x230] sm:$0xf0]  ;;  %v6438_v0 = vor.u32 %v8393_v53, %v6435_v55 }
 0x1b8   : > { %5292 = vmatpush.bf16.msra.mxu2 %v6598_v26  ;;  %v8457_v59 = vld [vmem:[%s9651_s19 + $0x324] sm:$0xf]  ;;  %v6691_v60 = vld [vmem:[%s9651_s19 + $0x330] sm:$0xf0]  ;;  %v6566_v2 = vor.u32 %v8425_v56, %v6563_v57 }
 0x1b9   : > { %5306 = vmatpush.bf16.msra.mxu3 %v6726_v30  ;;  %v8357_v62 = vld [vmem:[%s9651_s19 + $0x4] sm:$0xf]  ;;  %v6291_v63 = vld [vmem:[%s9651_s19 + $0x10] sm:$0xf0]  ;;  %v6694_v6 = vor.u32 %v8457_v59, %v6691_v60 }
 0x1ba   : > { %5265 = vmatpush.bf16.msra.mxu0 %v6326_v48  ;;  %v8389_v3 = vld [vmem:[%s9651_s19 + $0x104] sm:$0xf]  ;;  %v6419_v4 = vld [vmem:[%s9651_s19 + $0x110] sm:$0xf0]  ;;  %v6294_v14 = vor.u32 %v8357_v62, %v6291_v63 }
 0x1bb   : > { %5279 = vmatpush.bf16.msra.mxu1 %v6454_v49  ;;  %v8421_v5 = vld [vmem:[%s9651_s19 + $0x204] sm:$0xf]  ;;  %v6547_v7 = vld [vmem:[%s9651_s19 + $0x210] sm:$0xf0]  ;;  %v6422_v19 = vor.u32 %v8389_v3, %v6419_v4 }
 0x1bc   : > { %5293 = vmatpush.bf16.msra.mxu2 %v6582_v50  ;;  %v8453_v8 = vld [vmem:[%s9651_s19 + $0x304] sm:$0xf]  ;;  %v6675_v9 = vld [vmem:[%s9651_s19 + $0x310] sm:$0xf0]  ;;  %v6550_v20 = vor.u32 %v8421_v5, %v6547_v7 }
 0x1bd   : > { %5307 = vmatpush.bf16.msra.mxu3 %v6710_v54  ;;  %v8513_v11 = vld [vmem:[%s9651_s19 + $0x4e4] sm:$0xf]  ;;  %v6915_v12 = vld [vmem:[%s9651_s19 + $0x4f0] sm:$0xf0]  ;;  %v6678_v23 = vor.u32 %v8453_v8, %v6675_v9 }
 0x1be   : > { %v8545_v13 = vld [vmem:[%s9651_s19 + $0x5e4] sm:$0xf]  ;;  %5266 = vmatpush.bf16.msra.mxu0 %v6310_v61  ;;  %v7043_v15 = vld [vmem:[%s9651_s19 + $0x5f0] sm:$0xf0]  ;;  %v6918_v24 = vor.u32 %v8513_v11, %v6915_v12 }
 0x1bf   : > { %v8577_v16 = vld [vmem:[%s9651_s19 + $0x6e4] sm:$0xf]  ;;  %v7171_v18 = vld [vmem:[%s9651_s19 + $0x6f0] sm:$0xf0]  ;;  %5280 = vmatpush.bf16.msra.mxu1 %v6438_v0  ;;  %v7046_v25 = vor.u32 %v8545_v13, %v7043_v15 }
 0x1c0   : > { %5294 = vmatpush.bf16.msra.mxu2 %v6566_v2  ;;  %v8609_v21 = vld [vmem:[%s9651_s19 + $0x7e4] sm:$0xf]  ;;  %v7299_v22 = vld [vmem:[%s9651_s19 + $0x7f0] sm:$0xf0]  ;;  %v7174_v26 = vor.u32 %v8577_v16, %v7171_v18 }
 0x1c1   : > { %5308 = vmatpush.bf16.msra.mxu3 %v6694_v6  ;;  %v8509_v27 = vld [vmem:[%s9651_s19 + $0x4c4] sm:$0xf]  ;;  %v6899_v28 = vld [vmem:[%s9651_s19 + $0x4d0] sm:$0xf0]  ;;  %v7302_v30 = vor.u32 %v8609_v21, %v7299_v22 }
 0x1c2   : > { %v8541_v29 = vld [vmem:[%s9651_s19 + $0x5c4] sm:$0xf]  ;;  %5267 = vmatpush.bf16.msra.mxu0 %v6294_v14  ;;  %v7027_v33 = vld [vmem:[%s9651_s19 + $0x5d0] sm:$0xf0]  ;;  %v6902_v48 = vor.u32 %v8509_v27, %v6899_v28 }
 0x1c3   : > { %v8573_v34 = vld [vmem:[%s9651_s19 + $0x6c4] sm:$0xf]  ;;  %v7155_v37 = vld [vmem:[%s9651_s19 + $0x6d0] sm:$0xf0]  ;;  %5281 = vmatpush.bf16.msra.mxu1 %v6422_v19  ;;  %v7030_v49 = vor.u32 %v8541_v29, %v7027_v33 }
 0x1c4   : > { %5295 = vmatpush.bf16.msra.mxu2 %v6550_v20  ;;  %v8605_v42 = vld [vmem:[%s9651_s19 + $0x7c4] sm:$0xf]  ;;  %v7283_v45 = vld [vmem:[%s9651_s19 + $0x7d0] sm:$0xf0]  ;;  %v7158_v50 = vor.u32 %v8573_v34, %v7155_v37 }
 0x1c5   : > { %5309 = vmatpush.bf16.msra.mxu3 %v6678_v23  ;;  %v8505_v51 = vld [vmem:[%s9651_s19 + $0x4a4] sm:$0xf]  ;;  %v6883_v52 = vld [vmem:[%s9651_s19 + $0x4b0] sm:$0xf0]  ;;  %v7286_v54 = vor.u32 %v8605_v42, %v7283_v45  ;;  %5268 = vmatmul.bf16.vlgmr.msra.gmra.mxu0 %v9744_v58 }
 0x1c6   : > { %5316 = vmatpush.bf16.msrb.mxu0 %v6918_v24  ;;  %v8537_v53 = vld [vmem:[%s9651_s19 + $0x5a4] sm:$0xf]  ;;  %v7011_v55 = vld [vmem:[%s9651_s19 + $0x5b0] sm:$0xf0]  ;;  %5282 = vmatmul.bf16.vlgmr.msra.gmra.mxu1 %v9768_v10  ;;  %v6886_v61 = vor.u32 %v8505_v51, %v6883_v52 }
 0x1c7   : > { %5330 = vmatpush.bf16.msrb.mxu1 %v7046_v25  ;;  %v8569_v56 = vld [vmem:[%s9651_s19 + $0x6a4] sm:$0xf]  ;;  %v7139_v57 = vld [vmem:[%s9651_s19 + $0x6b0] sm:$0xf0]  ;;  %5296 = vmatmul.bf16.vlgmr.msra.gmra.mxu2 %v9752_v1  ;;  %v7014_v62 = vor.u32 %v8537_v53, %v7011_v55 }
 0x1c8   : > { %5344 = vmatpush.bf16.msrb.mxu2 %v7174_v26  ;;  %v8601_v59 = vld [vmem:[%s9651_s19 + $0x7a4] sm:$0xf]  ;;  %v7267_v60 = vld [vmem:[%s9651_s19 + $0x7b0] sm:$0xf0]  ;;  %5310 = vmatmul.bf16.vlgmr.msra.gmra.mxu3 %v9776_v17  ;;  %v7142_v63 = vor.u32 %v8569_v56, %v7139_v57 }
 0x1c9   : > { %5358 = vmatpush.bf16.msrb.mxu3 %v7302_v30  ;;  %v8501_v0 = vld [vmem:[%s9651_s19 + $0x484] sm:$0xf]  ;;  %v6867_v2 = vld [vmem:[%s9651_s19 + $0x490] sm:$0xf0]  ;;  %v7270_v4 = vor.u32 %v8601_v59, %v7267_v60 }
 0x1ca   : > { %5317 = vmatpush.bf16.msrb.mxu0 %v6902_v48  ;;  %v8533_v3 = vld [vmem:[%s9651_s19 + $0x584] sm:$0xf]  ;;  %v6995_v5 = vld [vmem:[%s9651_s19 + $0x590] sm:$0xf0]  ;;  %v6870_v11 = vor.u32 %v8501_v0, %v6867_v2 }
 0x1cb   : > { %5331 = vmatpush.bf16.msrb.mxu1 %v7030_v49  ;;  %v8565_v6 = vld [vmem:[%s9651_s19 + $0x684] sm:$0xf]  ;;  %v7123_v7 = vld [vmem:[%s9651_s19 + $0x690] sm:$0xf0]  ;;  %v6998_v12 = vor.u32 %v8533_v3, %v6995_v5 }
 0x1cc   : > { %5345 = vmatpush.bf16.msrb.mxu2 %v7158_v50  ;;  %v8597_v8 = vld [vmem:[%s9651_s19 + $0x784] sm:$0xf]  ;;  %v7251_v9 = vld [vmem:[%s9651_s19 + $0x790] sm:$0xf0]  ;;  %v7126_v13 = vor.u32 %v8565_v6, %v7123_v7 }
 0x1cd   : > { %5359 = vmatpush.bf16.msrb.mxu3 %v7286_v54  ;;  %v8497_v14 = vld [vmem:[%s9651_s19 + $0x464] sm:$0xf]  ;;  %v6851_v15 = vld [vmem:[%s9651_s19 + $0x470] sm:$0xf0]  ;;  %v7254_v18 = vor.u32 %v8597_v8, %v7251_v9 }
 0x1ce   : > { %5318 = vmatpush.bf16.msrb.mxu0 %v6886_v61  ;;  %v8529_v16 = vld [vmem:[%s9651_s19 + $0x564] sm:$0xf]  ;;  %v6979_v19 = vld [vmem:[%s9651_s19 + $0x570] sm:$0xf0]  ;;  %v6854_v24 = vor.u32 %v8497_v14, %v6851_v15 }
 0x1cf   : > { %5332 = vmatpush.bf16.msrb.mxu1 %v7014_v62  ;;  %v8561_v20 = vld [vmem:[%s9651_s19 + $0x664] sm:$0xf]  ;;  %v7107_v21 = vld [vmem:[%s9651_s19 + $0x670] sm:$0xf0]  ;;  %v6982_v25 = vor.u32 %v8529_v16, %v6979_v19 }
 0x1d0   : > { %5346 = vmatpush.bf16.msrb.mxu2 %v7142_v63  ;;  %v8593_v22 = vld [vmem:[%s9651_s19 + $0x764] sm:$0xf]  ;;  %v7235_v23 = vld [vmem:[%s9651_s19 + $0x770] sm:$0xf0]  ;;  %v7110_v26 = vor.u32 %v8561_v20, %v7107_v21 }
 0x1d1   : > { %5360 = vmatpush.bf16.msrb.mxu3 %v7270_v4  ;;  %v8493_v27 = vld [vmem:[%s9651_s19 + $0x444] sm:$0xf]  ;;  %v6835_v28 = vld [vmem:[%s9651_s19 + $0x450] sm:$0xf0]  ;;  %v7238_v30 = vor.u32 %v8593_v22, %v7235_v23 }
 0x1d2   : > { %5319 = vmatpush.bf16.msrb.mxu0 %v6870_v11  ;;  %v8525_v29 = vld [vmem:[%s9651_s19 + $0x544] sm:$0xf]  ;;  %v6963_v33 = vld [vmem:[%s9651_s19 + $0x550] sm:$0xf0]  ;;  %v6838_v48 = vor.u32 %v8493_v27, %v6835_v28 }
 0x1d3   : > { %5333 = vmatpush.bf16.msrb.mxu1 %v6998_v12  ;;  %v8557_v34 = vld [vmem:[%s9651_s19 + $0x644] sm:$0xf]  ;;  %v7091_v37 = vld [vmem:[%s9651_s19 + $0x650] sm:$0xf0]  ;;  %v6966_v49 = vor.u32 %v8525_v29, %v6963_v33 }
 0x1d4   : > { %5347 = vmatpush.bf16.msrb.mxu2 %v7126_v13  ;;  %v8589_v42 = vld [vmem:[%s9651_s19 + $0x744] sm:$0xf]  ;;  %v7219_v45 = vld [vmem:[%s9651_s19 + $0x750] sm:$0xf0]  ;;  %v7094_v50 = vor.u32 %v8557_v34, %v7091_v37 }
 0x1d5   : > { %5361 = vmatpush.bf16.msrb.mxu3 %v7254_v18  ;;  %v8489_v51 = vld [vmem:[%s9651_s19 + $0x424] sm:$0xf]  ;;  %v6819_v52 = vld [vmem:[%s9651_s19 + $0x430] sm:$0xf0]  ;;  %v7222_v54 = vor.u32 %v8589_v42, %v7219_v45 }
 0x1d6   : > { %5320 = vmatpush.bf16.msrb.mxu0 %v6854_v24  ;;  %v8521_v53 = vld [vmem:[%s9651_s19 + $0x524] sm:$0xf]  ;;  %v6947_v55 = vld [vmem:[%s9651_s19 + $0x530] sm:$0xf0]  ;;  %v6822_v61 = vor.u32 %v8489_v51, %v6819_v52 }
 0x1d7   : > { %5334 = vmatpush.bf16.msrb.mxu1 %v6982_v25  ;;  %v8553_v56 = vld [vmem:[%s9651_s19 + $0x624] sm:$0xf]  ;;  %v7075_v57 = vld [vmem:[%s9651_s19 + $0x630] sm:$0xf0]  ;;  %v6950_v0 = vor.u32 %v8521_v53, %v6947_v55 }
 0x1d8   : > { %5348 = vmatpush.bf16.msrb.mxu2 %v7110_v26  ;;  %v8585_v59 = vld [vmem:[%s9651_s19 + $0x724] sm:$0xf]  ;;  %v7203_v60 = vld [vmem:[%s9651_s19 + $0x730] sm:$0xf0]  ;;  %v7078_v2 = vor.u32 %v8553_v56, %v7075_v57 }
 0x1d9   : > { %5362 = vmatpush.bf16.msrb.mxu3 %v7238_v30  ;;  %v8485_v62 = vld [vmem:[%s9651_s19 + $0x404] sm:$0xf]  ;;  %v6803_v63 = vld [vmem:[%s9651_s19 + $0x410] sm:$0xf0]  ;;  %v7206_v6 = vor.u32 %v8585_v59, %v7203_v60 }
 0x1da   : > { %5321 = vmatpush.bf16.msrb.mxu0 %v6838_v48  ;;  %v8517_v3 = vld [vmem:[%s9651_s19 + $0x504] sm:$0xf]  ;;  %v6931_v4 = vld [vmem:[%s9651_s19 + $0x510] sm:$0xf0]  ;;  %v6806_v14 = vor.u32 %v8485_v62, %v6803_v63 }
 0x1db   : > { %5335 = vmatpush.bf16.msrb.mxu1 %v6966_v49  ;;  %v8549_v5 = vld [vmem:[%s9651_s19 + $0x604] sm:$0xf]  ;;  %v7059_v7 = vld [vmem:[%s9651_s19 + $0x610] sm:$0xf0]  ;;  %v6934_v19 = vor.u32 %v8517_v3, %v6931_v4 }
 0x1dc   : > { %5349 = vmatpush.bf16.msrb.mxu2 %v7094_v50  ;;  %v8581_v8 = vld [vmem:[%s9651_s19 + $0x704] sm:$0xf]  ;;  %v7187_v9 = vld [vmem:[%s9651_s19 + $0x710] sm:$0xf0]  ;;  %v7062_v20 = vor.u32 %v8549_v5, %v7059_v7 }
 0x1dd   : > { %5363 = vmatpush.bf16.msrb.mxu3 %v7222_v54  ;;  %v8641_v11 = vld [vmem:[%s9651_s19 + $0x8e4] sm:$0xf]  ;;  %v7427_v12 = vld [vmem:[%s9651_s19 + $0x8f0] sm:$0xf0]  ;;  %v7190_v23 = vor.u32 %v8581_v8, %v7187_v9 }
 0x1de   : > { %v8673_v13 = vld [vmem:[%s9651_s19 + $0x9e4] sm:$0xf]  ;;  %5322 = vmatpush.bf16.msrb.mxu0 %v6822_v61  ;;  %v7555_v15 = vld [vmem:[%s9651_s19 + $0x9f0] sm:$0xf0]  ;;  %v7430_v24 = vor.u32 %v8641_v11, %v7427_v12 }
 0x1df   : > { %v8705_v16 = vld [vmem:[%s9651_s19 + $0xae4] sm:$0xf]  ;;  %v7683_v18 = vld [vmem:[%s9651_s19 + $0xaf0] sm:$0xf0]  ;;  %5336 = vmatpush.bf16.msrb.mxu1 %v6950_v0  ;;  %v7558_v25 = vor.u32 %v8673_v13, %v7555_v15 }
 0x1e0   : > { %5350 = vmatpush.bf16.msrb.mxu2 %v7078_v2  ;;  %v8737_v21 = vld [vmem:[%s9651_s19 + $0xbe4] sm:$0xf]  ;;  %v7811_v22 = vld [vmem:[%s9651_s19 + $0xbf0] sm:$0xf0]  ;;  %v7686_v26 = vor.u32 %v8705_v16, %v7683_v18 }
 0x1e1   : > { %5364 = vmatpush.bf16.msrb.mxu3 %v7206_v6  ;;  %v8637_v27 = vld [vmem:[%s9651_s19 + $0x8c4] sm:$0xf]  ;;  %v7411_v28 = vld [vmem:[%s9651_s19 + $0x8d0] sm:$0xf0]  ;;  %v7814_v30 = vor.u32 %v8737_v21, %v7811_v22  ;;  %v10227_v22 = vpop.f32.mrf.mxu0 }
 0x1e2   : > { %v8669_v29 = vld [vmem:[%s9651_s19 + $0x9c4] sm:$0xf]  ;;  %5323 = vmatpush.bf16.msrb.mxu0 %v6806_v14  ;;  %v7539_v33 = vld [vmem:[%s9651_s19 + $0x9d0] sm:$0xf0]  ;;  %v7414_v48 = vor.u32 %v8637_v27, %v7411_v28 }
 0x1e3   : > { %v8701_v34 = vld [vmem:[%s9651_s19 + $0xac4] sm:$0xf]  ;;  %v7667_v37 = vld [vmem:[%s9651_s19 + $0xad0] sm:$0xf0]  ;;  %5337 = vmatpush.bf16.msrb.mxu1 %v6934_v19  ;;  %v7542_v49 = vor.u32 %v8669_v29, %v7539_v33 }
 0x1e4   : > { %5351 = vmatpush.bf16.msrb.mxu2 %v7062_v20  ;;  %v8733_v42 = vld [vmem:[%s9651_s19 + $0xbc4] sm:$0xf]  ;;  %v7795_v45 = vld [vmem:[%s9651_s19 + $0xbd0] sm:$0xf0]  ;;  %v7670_v50 = vor.u32 %v8701_v34, %v7667_v37 }
 0x1e5   : > { %5365 = vmatpush.bf16.msrb.mxu3 %v7190_v23  ;;  %v8633_v51 = vld [vmem:[%s9651_s19 + $0x8a4] sm:$0xf]  ;;  %v7395_v52 = vld [vmem:[%s9651_s19 + $0x8b0] sm:$0xf0]  ;;  %5324 = vmatmul.bf16.vlgmr.msrb.gmra.mxu0 %v9852_v39  ;;  %v7798_v54 = vor.u32 %v8733_v42, %v7795_v45 }
 0x1e6   : > { %5372 = vmatpush.bf16.msra.mxu0 %v7430_v24  ;;  %v8665_v53 = vld [vmem:[%s9651_s19 + $0x9a4] sm:$0xf]  ;;  %v7523_v55 = vld [vmem:[%s9651_s19 + $0x9b0] sm:$0xf0]  ;;  %5338 = vmatmul.bf16.vlgmr.msrb.gmra.mxu1 %v9859_v44  ;;  %v7398_v61 = vor.u32 %v8633_v51, %v7395_v52 }
 0x1e7   : > { %5386 = vmatpush.bf16.msra.mxu1 %v7558_v25  ;;  %v8697_v56 = vld [vmem:[%s9651_s19 + $0xaa4] sm:$0xf]  ;;  %v7651_v57 = vld [vmem:[%s9651_s19 + $0xab0] sm:$0xf0]  ;;  %5352 = vmatmul.bf16.vlgmr.msrb.gmra.mxu2 %v9857_v43  ;;  %v7526_v62 = vor.u32 %v8665_v53, %v7523_v55  ;;  %v10231_v25 = vpop.f32.mrf.mxu1 }
 0x1e8   : > { %5400 = vmatpush.bf16.msra.mxu2 %v7686_v26  ;;  %v8729_v59 = vld [vmem:[%s9651_s19 + $0xba4] sm:$0xf]  ;;  %v7779_v60 = vld [vmem:[%s9651_s19 + $0xbb0] sm:$0xf0]  ;;  %5366 = vmatmul.bf16.vlgmr.msrb.gmra.mxu3 %v9863_v47  ;;  %v7654_v63 = vor.u32 %v8697_v56, %v7651_v57  ;;  %v10244_v56 = vpop.f32.mrf.mxu2 }
 0x1e9   : > { %5414 = vmatpush.bf16.msra.mxu3 %v7814_v30  ;;  %v8629_v0 = vld [vmem:[%s9651_s19 + $0x884] sm:$0xf]  ;;  %v7379_v2 = vld [vmem:[%s9651_s19 + $0x890] sm:$0xf0]  ;;  %v7782_v4 = vor.u32 %v8729_v59, %v7779_v60 }
 0x1ea   : > { %5373 = vmatpush.bf16.msra.mxu0 %v7414_v48  ;;  %v8661_v3 = vld [vmem:[%s9651_s19 + $0x984] sm:$0xf]  ;;  %v7507_v5 = vld [vmem:[%s9651_s19 + $0x990] sm:$0xf0]  ;;  %v7382_v11 = vor.u32 %v8629_v0, %v7379_v2 }
 0x1eb   : > { %5387 = vmatpush.bf16.msra.mxu1 %v7542_v49  ;;  %v8693_v6 = vld [vmem:[%s9651_s19 + $0xa84] sm:$0xf]  ;;  %v7635_v7 = vld [vmem:[%s9651_s19 + $0xa90] sm:$0xf0]  ;;  %v7510_v12 = vor.u32 %v8661_v3, %v7507_v5  ;;  %v10255_v5 = vpop.f32.mrf.mxu0 }
 0x1ec   : > { %5401 = vmatpush.bf16.msra.mxu2 %v7670_v50  ;;  %v8725_v8 = vld [vmem:[%s9651_s19 + $0xb84] sm:$0xf]  ;;  %v7763_v9 = vld [vmem:[%s9651_s19 + $0xb90] sm:$0xf0]  ;;  %v7638_v13 = vor.u32 %v8693_v6, %v7635_v7 }
 0x1ed   : > { %5415 = vmatpush.bf16.msra.mxu3 %v7798_v54  ;;  %v8625_v14 = vld [vmem:[%s9651_s19 + $0x864] sm:$0xf]  ;;  %v7363_v15 = vld [vmem:[%s9651_s19 + $0x870] sm:$0xf0]  ;;  %v7766_v18 = vor.u32 %v8725_v8, %v7763_v9 }
 0x1ee   : > { %5374 = vmatpush.bf16.msra.mxu0 %v7398_v61  ;;  %v8657_v16 = vld [vmem:[%s9651_s19 + $0x964] sm:$0xf]  ;;  %v7491_v19 = vld [vmem:[%s9651_s19 + $0x970] sm:$0xf0]  ;;  %v7366_v26 = vor.u32 %v8625_v14, %v7363_v15 }
 0x1ef   : > { %5388 = vmatpush.bf16.msra.mxu1 %v7526_v62  ;;  %v8689_v20 = vld [vmem:[%s9651_s19 + $0xa64] sm:$0xf]  ;;  %v7619_v21 = vld [vmem:[%s9651_s19 + $0xa70] sm:$0xf0]  ;;  %v7494_v27 = vor.u32 %v8657_v16, %v7491_v19  ;;  %v10249_v62 = vpop.f32.mrf.mxu3 }
 0x1f0   : > { %5402 = vmatpush.bf16.msra.mxu2 %v7654_v63  ;;  %v8721_v23 = vld [vmem:[%s9651_s19 + $0xb64] sm:$0xf]  ;;  %v7747_v24 = vld [vmem:[%s9651_s19 + $0xb70] sm:$0xf0]  ;;  %v7622_v28 = vor.u32 %v8689_v20, %v7619_v21 }
 0x1f1   : > { %5416 = vmatpush.bf16.msra.mxu3 %v7782_v4  ;;  %v8621_v29 = vld [vmem:[%s9651_s19 + $0x844] sm:$0xf]  ;;  %v7347_v30 = vld [vmem:[%s9651_s19 + $0x850] sm:$0xf0]  ;;  %v7750_v34 = vor.u32 %v8721_v23, %v7747_v24 }
 0x1f2   : > { %5375 = vmatpush.bf16.msra.mxu0 %v7382_v11  ;;  %v8653_v33 = vld [vmem:[%s9651_s19 + $0x944] sm:$0xf]  ;;  %v7475_v37 = vld [vmem:[%s9651_s19 + $0x950] sm:$0xf0]  ;;  %v7350_v50 = vor.u32 %v8621_v29, %v7347_v30 }
 0x1f3   : > { %5389 = vmatpush.bf16.msra.mxu1 %v7510_v12  ;;  %v8685_v42 = vld [vmem:[%s9651_s19 + $0xa44] sm:$0xf]  ;;  %v7603_v45 = vld [vmem:[%s9651_s19 + $0xa50] sm:$0xf0]  ;;  %v7478_v51 = vor.u32 %v8653_v33, %v7475_v37  ;;  %v10260_v12 = vpop.f32.mrf.mxu1 }
 0x1f4   : > { %5403 = vmatpush.bf16.msra.mxu2 %v7638_v13  ;;  %v8717_v48 = vld [vmem:[%s9651_s19 + $0xb44] sm:$0xf]  ;;  %v7731_v49 = vld [vmem:[%s9651_s19 + $0xb50] sm:$0xf0]  ;;  %v7606_v52 = vor.u32 %v8685_v42, %v7603_v45 }
 0x1f5   : > { %5417 = vmatpush.bf16.msra.mxu3 %v7766_v18  ;;  %v8617_v53 = vld [vmem:[%s9651_s19 + $0x824] sm:$0xf]  ;;  %v7331_v54 = vld [vmem:[%s9651_s19 + $0x830] sm:$0xf0]  ;;  %v7734_v57 = vor.u32 %v8717_v48, %v7731_v49 }
 0x1f6   : > { %5376 = vmatpush.bf16.msra.mxu0 %v7366_v26  ;;  %v8649_v55 = vld [vmem:[%s9651_s19 + $0x924] sm:$0xf]  ;;  %v7459_v59 = vld [vmem:[%s9651_s19 + $0x930] sm:$0xf0]  ;;  %v7334_v2 = vor.u32 %v8617_v53, %v7331_v54 }
 0x1f7   : > { %5390 = vmatpush.bf16.msra.mxu1 %v7494_v27  ;;  %v8681_v60 = vld [vmem:[%s9651_s19 + $0xa24] sm:$0xf]  ;;  %v7587_v61 = vld [vmem:[%s9651_s19 + $0xa30] sm:$0xf0]  ;;  %v7462_v6 = vor.u32 %v8649_v55, %v7459_v59  ;;  %v10281_v55 = vpop.f32.mrf.mxu3 }
 0x1f8   : > { %5404 = vmatpush.bf16.msra.mxu2 %v7622_v28  ;;  %v8713_v63 = vld [vmem:[%s9651_s19 + $0xb24] sm:$0xf]  ;;  %v7715_v0 = vld [vmem:[%s9651_s19 + $0xb30] sm:$0xf0]  ;;  %v7590_v7 = vor.u32 %v8681_v60, %v7587_v61  ;;  %v5060_v61 = vadd.f32 %v10231_v25, %v10227_v22 }
 0x1f9   : > { %5418 = vmatpush.bf16.msra.mxu3 %v7750_v34  ;;  %v8613_v3 = vld [vmem:[%s9651_s19 + $0x804] sm:$0xf]  ;;  %v7315_v4 = vld [vmem:[%s9651_s19 + $0x810] sm:$0xf0]  ;;  %v7718_v13 = vor.u32 %v8713_v63, %v7715_v0  ;;  %v5101_v63 = vpop.f32.mrf.mxu0 }
 0x1fa   : > { %5377 = vmatpush.bf16.msra.mxu0 %v7350_v50  ;;  %v8645_v8 = vld [vmem:[%s9651_s19 + $0x904] sm:$0xf]  ;;  %v7443_v9 = vld [vmem:[%s9651_s19 + $0x910] sm:$0xf0]  ;;  %v7318_v21 = vor.u32 %v8613_v3, %v7315_v4  ;;  %v10276_v50 = vpop.f32.mrf.mxu2 }
 0x1fb   : > { %5391 = vmatpush.bf16.msra.mxu1 %v7478_v51  ;;  %v8677_v11 = vld [vmem:[%s9651_s19 + $0xa04] sm:$0xf]  ;;  %v7571_v14 = vld [vmem:[%s9651_s19 + $0xa10] sm:$0xf0]  ;;  %v7446_v27 = vor.u32 %v8645_v8, %v7443_v9 }
 0x1fc   : > { %5405 = vmatpush.bf16.msra.mxu2 %v7606_v52  ;;  %v8709_v15 = vld [vmem:[%s9651_s19 + $0xb04] sm:$0xf]  ;;  %v7699_v16 = vld [vmem:[%s9651_s19 + $0xb10] sm:$0xf0]  ;;  %v7574_v28 = vor.u32 %v8677_v11, %v7571_v14 }
 0x1fd   : > { %5419 = vmatpush.bf16.msra.mxu3 %v7734_v57  ;;  %v8769_v18 = vld [vmem:[%s9651_s19 + $0xce4] sm:$0xf]  ;;  %v7939_v19 = vld [vmem:[%s9651_s19 + $0xcf0] sm:$0xf0]  ;;  %v7702_v33 = vor.u32 %v8709_v15, %v7699_v16  ;;  %v5074_v15 = vadd.f32 %v10244_v56, %v5060_v61 }
 0x1fe   : > { %v8801_v20 = vld [vmem:[%s9651_s19 + $0xde4] sm:$0xf]  ;;  %5378 = vmatpush.bf16.msra.mxu0 %v7334_v2  ;;  %v8067_v23 = vld [vmem:[%s9651_s19 + $0xdf0] sm:$0xf0]  ;;  %v7942_v34 = vor.u32 %v8769_v18, %v7939_v19 }
 0x1ff   : > { %v8833_v24 = vld [vmem:[%s9651_s19 + $0xee4] sm:$0xf]  ;;  %v8195_v26 = vld [vmem:[%s9651_s19 + $0xef0] sm:$0xf0]  ;;  %5392 = vmatpush.bf16.msra.mxu1 %v7462_v6  ;;  %v8070_v37 = vor.u32 %v8801_v20, %v8067_v23 }
 0x200   : > { %5406 = vmatpush.bf16.msra.mxu2 %v7590_v7  ;;  %v8865_v29 = vld [vmem:[%s9651_s19 + $0xfe4] sm:$0xf]  ;;  %v8323_v30 = vld [vmem:[%s9651_s19 + $0xff0] sm:$0xf0]  ;;  %v8198_v42 = vor.u32 %v8833_v24, %v8195_v26  ;;  %v10290_v7 = vpop.f32.mrf.mxu1 }
 0x201   : > { %5420 = vmatpush.bf16.msra.mxu3 %v7718_v13  ;;  %v8765_v45 = vld [vmem:[%s9651_s19 + $0xcc4] sm:$0xf]  ;;  %v7923_v48 = vld [vmem:[%s9651_s19 + $0xcd0] sm:$0xf0]  ;;  %v8326_v51 = vor.u32 %v8865_v29, %v8323_v30 }
 0x202   : > { %v8797_v49 = vld [vmem:[%s9651_s19 + $0xdc4] sm:$0xf]  ;;  %5379 = vmatpush.bf16.msra.mxu0 %v7318_v21  ;;  %v8051_v52 = vld [vmem:[%s9651_s19 + $0xdd0] sm:$0xf0]  ;;  %v7926_v60 = vor.u32 %v8765_v45, %v7923_v48  ;;  %v10310_v56 = vpop.f32.mrf.mxu2 }
 0x203   : > { %v8829_v53 = vld [vmem:[%s9651_s19 + $0xec4] sm:$0xf]  ;;  %v8179_v54 = vld [vmem:[%s9651_s19 + $0xed0] sm:$0xf0]  ;;  %5393 = vmatpush.bf16.msra.mxu1 %v7446_v27  ;;  %v8054_v0 = vor.u32 %v8797_v49, %v8051_v52 }
 0x204   : > { %5407 = vmatpush.bf16.msra.mxu2 %v7574_v28  ;;  %v8861_v57 = vld [vmem:[%s9651_s19 + $0xfc4] sm:$0xf]  ;;  %v8307_v59 = vld [vmem:[%s9651_s19 + $0xfd0] sm:$0xf0]  ;;  %v8182_v2 = vor.u32 %v8829_v53, %v8179_v54 }
 0x205   : > { %5421 = vmatpush.bf16.msra.mxu3 %v7702_v33  ;;  %v8761_v3 = vld [vmem:[%s9651_s19 + $0xca4] sm:$0xf]  ;;  %v7907_v4 = vld [vmem:[%s9651_s19 + $0xcb0] sm:$0xf0]  ;;  %5380 = vmatmul.bf16.vlgmr.msra.gmra.mxu0 %v9952_v31  ;;  %v8310_v8 = vor.u32 %v8861_v57, %v8307_v59  ;;  %v5088_v33 = vadd.f32 %v10249_v62, %v5074_v15  ;;  %v10321_v57 = vpop.f32.mrf.mxu0 }
 0x206   : > { %5428 = vmatpush.bf16.msrb.mxu0 %v7942_v34  ;;  %v8793_v6 = vld [vmem:[%s9651_s19 + $0xda4] sm:$0xf]  ;;  %v8035_v9 = vld [vmem:[%s9651_s19 + $0xdb0] sm:$0xf0]  ;;  %5394 = vmatmul.bf16.vlgmr.msra.gmra.mxu1 %v9959_v36  ;;  %v7910_v14 = vor.u32 %v8761_v3, %v7907_v4  ;;  %v10313_v34 = vpop.f32.mrf.mxu3 }
 0x207   : > { %5442 = vmatpush.bf16.msrb.mxu1 %v8070_v37  ;;  %v8825_v22 = vld [vmem:[%s9651_s19 + $0xea4] sm:$0xf]  ;;  %v8163_v25 = vld [vmem:[%s9651_s19 + $0xeb0] sm:$0xf0]  ;;  %5408 = vmatmul.bf16.vlgmr.msra.gmra.mxu2 %v9957_v35  ;;  %v8038_v16 = vor.u32 %v8793_v6, %v8035_v9 }
 0x208   : > { %5456 = vmatpush.bf16.msrb.mxu2 %v8198_v42  ;;  %v8857_v11 = vld [vmem:[%s9651_s19 + $0xfa4] sm:$0xf]  ;;  %v8291_v13 = vld [vmem:[%s9651_s19 + $0xfb0] sm:$0xf0]  ;;  %5422 = vmatmul.bf16.vlgmr.msra.gmra.mxu3 %v9963_v40  ;;  %v8166_v18 = vor.u32 %v8825_v22, %v8163_v25  ;;  %v10327_v61 = vpop.f32.mrf.mxu1 }
 0x209   : > { %5470 = vmatpush.bf16.msrb.mxu3 %v8326_v51  ;;  %v8757_v19 = vld [vmem:[%s9651_s19 + $0xc84] sm:$0xf]  ;;  %v7891_v20 = vld [vmem:[%s9651_s19 + $0xc90] sm:$0xf0]  ;;  %v8294_v23 = vor.u32 %v8857_v11, %v8291_v13 }
 0x20a   : > { %5429 = vmatpush.bf16.msrb.mxu0 %v7926_v60  ;;  %v8789_v21 = vld [vmem:[%s9651_s19 + $0xd84] sm:$0xf]  ;;  %v8019_v24 = vld [vmem:[%s9651_s19 + $0xd90] sm:$0xf0]  ;;  %v7894_v30 = vor.u32 %v8757_v19, %v7891_v20  ;;  %v5062_v60 = vadd.f32 %v10260_v12, %v10255_v5 }
 0x20b   : > { %5443 = vmatpush.bf16.msrb.mxu1 %v8054_v0  ;;  %v8821_v26 = vld [vmem:[%s9651_s19 + $0xe84] sm:$0xf]  ;;  %v8147_v27 = vld [vmem:[%s9651_s19 + $0xe90] sm:$0xf0]  ;;  %v8022_v37 = vor.u32 %v8789_v21, %v8019_v24 }
 0x20c   : > { %5457 = vmatpush.bf16.msrb.mxu2 %v8182_v2  ;;  %v8853_v28 = vld [vmem:[%s9651_s19 + $0xf84] sm:$0xf]  ;;  %v8275_v29 = vld [vmem:[%s9651_s19 + $0xf90] sm:$0xf0]  ;;  %v8150_v42 = vor.u32 %v8821_v26, %v8147_v27  ;;  %v5102_v2 = vadd.f32 %v5101_v63, %v5088_v33  ;;  %v5076_v63 = vadd.f32 %v10276_v50, %v5062_v60 }
 0x20d   : > { %5471 = vmatpush.bf16.msrb.mxu3 %v8310_v8  ;;  %v8753_v45 = vld [vmem:[%s9651_s19 + $0xc64] sm:$0xf]  ;;  %v7875_v48 = vld [vmem:[%s9651_s19 + $0xc70] sm:$0xf0]  ;;  %v8278_v51 = vor.u32 %v8853_v28, %v8275_v29  ;;  %v5157_v28 = vpop.f32.mrf.mxu0 }
 0x20e   : > { %5430 = vmatpush.bf16.msrb.mxu0 %v7910_v14  ;;  %v8785_v49 = vld [vmem:[%s9651_s19 + $0xd64] sm:$0xf]  ;;  %v8003_v52 = vld [vmem:[%s9651_s19 + $0xd70] sm:$0xf0]  ;;  %v7878_v0 = vor.u32 %v8753_v45, %v7875_v48  ;;  %v5116_v15 = vadd.f32 %v10290_v7, %v5102_v2  ;;  %v10348_v7 = vpop.f32.mrf.mxu3  ;;  %v5090_v33 = vadd.f32 %v10281_v55, %v5076_v63  ;;  %v6409_v2 = vld [vmem:[%s9651_s19 + $0xe8] sm:$0xf] }
 0x20f   : > { %5444 = vmatpush.bf16.msrb.mxu1 %v8038_v16  ;;  %v8817_v53 = vld [vmem:[%s9651_s19 + $0xe64] sm:$0xf]  ;;  %v8131_v54 = vld [vmem:[%s9651_s19 + $0xe70] sm:$0xf0]  ;;  %v8006_v3 = vor.u32 %v8785_v49, %v8003_v52 }
 0x210   : > { %5458 = vmatpush.bf16.msrb.mxu2 %v8166_v18  ;;  %v8849_v62 = vld [vmem:[%s9651_s19 + $0xf64] sm:$0xf]  ;;  %v8259_v59 = vld [vmem:[%s9651_s19 + $0xf70] sm:$0xf0]  ;;  %v8134_v4 = vor.u32 %v8817_v53, %v8131_v54  ;;  %v5130_v49 = vadd.f32 %v10310_v56, %v5116_v15  ;;  %v5104_v56 = vadd.f32 %v10321_v57, %v5090_v33  ;;  %v6793_v57 = vld [vmem:[%s9651_s19 + $0x3e8] sm:$0xf] }
 0x211   : > { %5472 = vmatpush.bf16.msrb.mxu3 %v8294_v23  ;;  %v8749_v6 = vld [vmem:[%s9651_s19 + $0xc44] sm:$0xf]  ;;  %v7859_v8 = vld [vmem:[%s9651_s19 + $0xc50] sm:$0xf0]  ;;  %v8262_v22 = vor.u32 %v8849_v62, %v8259_v59  ;;  %v10343_v23 = vpop.f32.mrf.mxu2 }
 0x212   : > { %5431 = vmatpush.bf16.msrb.mxu0 %v7894_v30  ;;  %v8781_v9 = vld [vmem:[%s9651_s19 + $0xd44] sm:$0xf]  ;;  %v7987_v5 = vld [vmem:[%s9651_s19 + $0xd50] sm:$0xf0]  ;;  %v7862_v14 = vor.u32 %v8749_v6, %v7859_v8  ;;  %v8420_v8 = vld [vmem:[%s9651_s19 + $0x1f4] sm:$0xf0] }
 0x213   : > { %5445 = vmatpush.bf16.msrb.mxu1 %v8022_v37  ;;  %v8813_v12 = vld [vmem:[%s9651_s19 + $0xe44] sm:$0xf]  ;;  %v8115_v25 = vld [vmem:[%s9651_s19 + $0xe50] sm:$0xf0]  ;;  %v7990_v16 = vor.u32 %v8781_v9, %v7987_v5  ;;  %v10353_v37 = vpop.f32.mrf.mxu1  ;;  %v6665_v9 = vld [vmem:[%s9651_s19 + $0x2e8] sm:$0xf]  ;;  %v5144_v5 = vadd.f32 %v10313_v34, %v5130_v49  ;;  %v5118_v34 = vadd.f32 %v10327_v61, %v5104_v56 }
 0x214   : > { %5459 = vmatpush.bf16.msrb.mxu2 %v8150_v42  ;;  %v8845_v11 = vld [vmem:[%s9651_s19 + $0xf44] sm:$0xf]  ;;  %v8243_v13 = vld [vmem:[%s9651_s19 + $0xf50] sm:$0xf0]  ;;  %v8118_v18 = vor.u32 %v8813_v12, %v8115_v25  ;;  %v6777_v61 = vld [vmem:[%s9651_s19 + $0x3c8] sm:$0xf] }
 0x215   : > { %5473 = vmatpush.bf16.msrb.mxu3 %v8278_v51  ;;  %v8745_v19 = vld [vmem:[%s9651_s19 + $0xc24] sm:$0xf]  ;;  %v7843_v20 = vld [vmem:[%s9651_s19 + $0xc30] sm:$0xf0]  ;;  %v8246_v50 = vor.u32 %v8845_v11, %v8243_v13  ;;  %v8484_v11 = vld [vmem:[%s9651_s19 + $0x3f4] sm:$0xf0]  ;;  %v5158_v15 = vadd.f32 %v5157_v28, %v5144_v5  ;;  %v5159_v33 = vpop.f32.mrf.mxu0 }
 0x216   : > { %5432 = vmatpush.bf16.msrb.mxu0 %v7878_v0  ;;  %v8777_v21 = vld [vmem:[%s9651_s19 + $0xd24] sm:$0xf]  ;;  %v7971_v24 = vld [vmem:[%s9651_s19 + $0xd30] sm:$0xf0]  ;;  %v7846_v42 = vor.u32 %v8745_v19, %v7843_v20  ;;  %v6393_v20 = vld [vmem:[%s9651_s19 + $0xc8] sm:$0xf] }
 0x217   : > { %5446 = vmatpush.bf16.msrb.mxu1 %v8006_v3  ;;  %v8809_v26 = vld [vmem:[%s9651_s19 + $0xe24] sm:$0xf]  ;;  %v8099_v27 = vld [vmem:[%s9651_s19 + $0xe30] sm:$0xf0]  ;;  %v7974_v55 = vor.u32 %v8777_v21, %v7971_v24  ;;  %v8388_v3 = vld [vmem:[%s9651_s19 + $0xf4] sm:$0xf0]  ;;  %v6794_v24 = vor.u32 %v8484_v11, %v6793_v57 }
 0x218   : > { %5460 = vmatpush.bf16.msrb.mxu2 %v8134_v4  ;;  %v8841_v29 = vld [vmem:[%s9651_s19 + $0xf24] sm:$0xf]  ;;  %v8227_v30 = vld [vmem:[%s9651_s19 + $0xf30] sm:$0xf0]  ;;  %v8102_v51 = vor.u32 %v8809_v26, %v8099_v27  ;;  %v6537_v4 = vld [vmem:[%s9651_s19 + $0x1e8] sm:$0xf] }
 0x219   : > { %5474 = vmatpush.bf16.msrb.mxu3 %v8262_v22  ;;  %v8741_v45 = vld [vmem:[%s9651_s19 + $0xc04] sm:$0xf]  ;;  %v7827_v48 = vld [vmem:[%s9651_s19 + $0xc10] sm:$0xf0]  ;;  %v8230_v62 = vor.u32 %v8841_v29, %v8227_v30  ;;  %v8452_v22 = vld [vmem:[%s9651_s19 + $0x2f4] sm:$0xf0]  ;;  %v5185_v13 = vpop.f32.mrf.mxu2  ;;  %v5132_v30 = vadd.f32 %v10343_v23, %v5118_v34 }
 0x21a   : > { %5433 = vmatpush.bf16.msrb.mxu0 %v7862_v14  ;;  %v8773_v52 = vld [vmem:[%s9651_s19 + $0xd04] sm:$0xf]  ;;  %v7955_v53 = vld [vmem:[%s9651_s19 + $0xd10] sm:$0xf0]  ;;  %v7830_v6 = vor.u32 %v8741_v45, %v7827_v48  ;;  %v6410_v14 = vor.u32 %v8388_v3, %v6409_v2  ;;  %v6666_v19 = vor.u32 %v8452_v22, %v6665_v9  ;;  %v8384_v21 = vld [vmem:[%s9651_s19 + $0xd4] sm:$0xf0]  ;;  %v5172_v48 = vadd.f32 %v10353_v37, %v5158_v15 }
 0x21b   : > { %5447 = vmatpush.bf16.msrb.mxu1 %v7990_v16  ;;  %v8805_v54 = vld [vmem:[%s9651_s19 + $0xe04] sm:$0xf]  ;;  %v8083_v59 = vld [vmem:[%s9651_s19 + $0xe10] sm:$0xf0]  ;;  %v7958_v12 = vor.u32 %v8773_v52, %v7955_v53  ;;  %v5199_v16 = vpop.f32.mrf.mxu3  ;;  %v8416_v26 = vld [vmem:[%s9651_s19 + $0x1d4] sm:$0xf0]  ;;  %v6394_v45 = vor.u32 %v8384_v21, %v6393_v20 }
 0x21c   : > { %5461 = vmatpush.bf16.msrb.mxu2 %v8118_v18  ;;  %v8837_v60 = vld [vmem:[%s9651_s19 + $0xf04] sm:$0xf]  ;;  %v8211_v0 = vld [vmem:[%s9651_s19 + $0xf10] sm:$0xf0]  ;;  %v8086_v25 = vor.u32 %v8805_v54, %v8083_v59  ;;  %v6538_v18 = vor.u32 %v8420_v8, %v6537_v4  ;;  %v6649_v27 = vld [vmem:[%s9651_s19 + $0x2c8] sm:$0xf]  ;;  %v5186_v37 = vadd.f32 %v5185_v13, %v5172_v48 }
 0x21d   : > { %5475 = vmatpush.bf16.msrb.mxu3 %v8246_v50  ;;  %v8214_v63 = vor.u32 %v8837_v60, %v8211_v0  ;;  %v6521_v50 = vld [vmem:[%s9651_s19 + $0x1c8] sm:$0xf]  ;;  %v8448_v29 = vld [vmem:[%s9651_s19 + $0x2d4] sm:$0xf0]  ;;  %v5146_v60 = vadd.f32 %v10348_v7, %v5132_v30  ;;  %v10425_v15 = vld [vmem:[%s10415_s23] sm:$0x77] }
 0x21e   : > { %5434 = vmatpush.bf16.msrb.mxu0 %v7846_v42  ;;  %v8480_v28 = vld [vmem:[%s9651_s19 + $0x3d4] sm:$0xf0]  ;;  %v5173_v42 = vpop.f32.mrf.mxu1  ;;  %v6522_v23 = vor.u32 %v8416_v26, %v6521_v50  ;;  %v6650_v49 = vor.u32 %v8448_v29, %v6649_v27  ;;  %v6505_v52 = vld [vmem:[%s9651_s19 + $0x1a8] sm:$0xf]  ;;  %v5200_v11 = vadd.f32 %v5199_v16, %v5186_v37 }
 0x21f   : > { %5448 = vmatpush.bf16.msrb.mxu1 %v7974_v55  ;;  %v6377_v55 = vld [vmem:[%s9651_s19 + $0xa8] sm:$0xf]  ;;  %v6778_v53 = vor.u32 %v8480_v28, %v6777_v61  ;;  %v8412_v54 = vld [vmem:[%s9651_s19 + $0x1b4] sm:$0xf0]  ;;  %v5160_v7 = vadd.f32 %v5159_v33, %v5146_v60  ;;  %v5963_v28 = vperm.slane %v10425_v15, 0 }
 0x220   : > { %5462 = vmatpush.bf16.msrb.mxu2 %v8102_v51  ;;  %v8380_v51 = vld [vmem:[%s9651_s19 + $0xb4] sm:$0xf0]  ;;  %v6761_v0 = vld [vmem:[%s9651_s19 + $0x3a8] sm:$0xf]  ;;  %v6506_v4 = vor.u32 %v8412_v54, %v6505_v52 }
 0x221   : > { %5476 = vmatpush.bf16.msrb.mxu3 %v8230_v62  ;;  %v6633_v62 = vld [vmem:[%s9651_s19 + $0x2a8] sm:$0xf]  ;;  %v8444_v59 = vld [vmem:[%s9651_s19 + $0x2b4] sm:$0xf0]  ;;  %v6378_v2 = vor.u32 %v8380_v51, %v6377_v55  ;;  %v5187_v5 = vpop.f32.mrf.mxu2  ;;  %v5174_v50 = vadd.f32 %v5173_v42, %v5160_v7  ;;  %v10440_v37 = vperm.slane %v5963_v28, 0 }
 0x222   : > { %5435 = vmatpush.bf16.msrb.mxu0 %v7830_v6  ;;  %v8476_v56 = vld [vmem:[%s9651_s19 + $0x3b4] sm:$0xf0]  ;;  %v6361_v3 = vld [vmem:[%s9651_s19 + $0x88] sm:$0xf]  ;;  %v6634_v6 = vor.u32 %v8444_v59, %v6633_v62 }
 0x223   : > { %5449 = vmatpush.bf16.msrb.mxu1 %v7958_v12  ;;  %v8376_v8 = vld [vmem:[%s9651_s19 + $0x94] sm:$0xf0]  ;;  %v6489_v9 = vld [vmem:[%s9651_s19 + $0x188] sm:$0xf]  ;;  %v6762_v12 = vor.u32 %v8476_v56, %v6761_v0  ;;  %v5201_v13 = vpop.f32.mrf.mxu3 }
 0x224   : > { %5463 = vmatpush.bf16.msrb.mxu2 %v8086_v25  ;;  %v8408_v22 = vld [vmem:[%s9651_s19 + $0x194] sm:$0xf0]  ;;  %v6617_v25 = vld [vmem:[%s9651_s19 + $0x288] sm:$0xf] }
 0x225   : > { %5477 = vmatpush.bf16.msrb.mxu3 %v8214_v63  ;;  %5436 = vmatmul.bf16.vlgmr.msrb.gmra.mxu0 %v10052_v32  ;;  %v8440_v57 = vld [vmem:[%s9651_s19 + $0x294] sm:$0xf0]  ;;  %v5213_v63 = vpop.f32.mrf.mxu0  ;;  %v6345_v21 = vld [vmem:[%s9651_s19 + $0x68] sm:$0xf] }
 0x226   : > { %5484 = vmatpush.bf16.msra.mxu0 %v6410_v14  ;;  %5450 = vmatmul.bf16.vlgmr.msrb.gmra.mxu1 %v10059_v41  ;;  %v6745_v14 = vld [vmem:[%s9651_s19 + $0x388] sm:$0xf]  ;;  %v8472_v34 = vld [vmem:[%s9651_s19 + $0x394] sm:$0xf0]  ;;  %v5227_v20 = vpop.f32.mrf.mxu1  ;;  %v5214_v16 = vadd.f32 %v5213_v63, %v5200_v11 }
 0x227   : > { %5498 = vmatpush.bf16.msra.mxu1 %v6538_v18  ;;  %5464 = vmatmul.bf16.vlgmr.msrb.gmra.mxu2 %v10057_v38  ;;  %v6362_v18 = vor.u32 %v8376_v8, %v6361_v3  ;;  %v8372_v26 = vld [vmem:[%s9651_s19 + $0x74] sm:$0xf0]  ;;  %v6473_v27 = vld [vmem:[%s9651_s19 + $0x168] sm:$0xf]  ;;  %v6746_v30 = vor.u32 %v8472_v34, %v6745_v14  ;;  %v6011_v8 = vperm.slane %v10425_v15, 2 }
 0x228   : > { %5512 = vmatpush.bf16.msra.mxu2 %v6666_v19  ;;  %5478 = vmatmul.bf16.vlgmr.msrb.gmra.mxu3 %v10063_v46  ;;  %v6490_v19 = vor.u32 %v8408_v22, %v6489_v9  ;;  %v8404_v29 = vld [vmem:[%s9651_s19 + $0x174] sm:$0xf0]  ;;  %v6601_v33 = vld [vmem:[%s9651_s19 + $0x268] sm:$0xf]  ;;  %v5228_v55 = vadd.f32 %v5227_v20, %v5214_v16 }
 0x229   : > { %5526 = vmatpush.bf16.msra.mxu3 %v6794_v24  ;;  %v6618_v24 = vor.u32 %v8440_v57, %v6617_v25  ;;  %v8436_v61 = vld [vmem:[%s9651_s19 + $0x274] sm:$0xf0]  ;;  %v6729_v48 = vld [vmem:[%s9651_s19 + $0x368] sm:$0xf]  ;;  %v6474_v51 = vor.u32 %v8404_v29, %v6473_v27  ;;  %v10461_v16 = vperm.slane %v6011_v8, 2 }
 0x22a   : > { %5485 = vmatpush.bf16.msra.mxu0 %v6394_v45  ;;  %v5188_v45 = vadd.f32 %v5187_v5, %v5174_v50  ;;  %v8468_v42 = vld [vmem:[%s9651_s19 + $0x374] sm:$0xf0]  ;;  %v6602_v52 = vor.u32 %v8436_v61, %v6601_v33  ;;  %v6457_v54 = vld [vmem:[%s9651_s19 + $0x148] sm:$0xf]  ;;  %v5241_v60 = vpop.f32.mrf.mxu2 }
 0x22b   : > { %5499 = vmatpush.bf16.msra.mxu1 %v6522_v23  ;;  %v6346_v23 = vor.u32 %v8372_v26, %v6345_v21  ;;  %v8400_v62 = vld [vmem:[%s9651_s19 + $0x154] sm:$0xf0]  ;;  %v6730_v59 = vor.u32 %v8468_v42, %v6729_v48  ;;  %v6585_v0 = vld [vmem:[%s9651_s19 + $0x248] sm:$0xf]  ;;  %v5242_v3 = vadd.f32 %v5241_v60, %v5228_v55 }
 0x22c   : > { %5513 = vmatpush.bf16.msra.mxu2 %v6650_v49  ;;  %v6329_v49 = vld [vmem:[%s9651_s19 + $0x48] sm:$0xf]  ;;  %v8432_v56 = vld [vmem:[%s9651_s19 + $0x254] sm:$0xf0] }
 0x22d   : > { %5527 = vmatpush.bf16.msra.mxu3 %v6778_v53  ;;  %v8368_v53 = vld [vmem:[%s9651_s19 + $0x54] sm:$0xf0]  ;;  %v5215_v7 = vpop.f32.mrf.mxu0  ;;  %v6713_v9 = vld [vmem:[%s9651_s19 + $0x348] sm:$0xf]  ;;  %v6586_v11 = vor.u32 %v8432_v56, %v6585_v0 }
 0x22e   : > { %5486 = vmatpush.bf16.msra.mxu0 %v6378_v2  ;;  %v5202_v2 = vadd.f32 %v5201_v13, %v5188_v45  ;;  %v8464_v22 = vld [vmem:[%s9651_s19 + $0x354] sm:$0xf0]  ;;  %v6330_v5 = vor.u32 %v8368_v53, %v6329_v49  ;;  %v6313_v13 = vld [vmem:[%s9651_s19 + $0x28] sm:$0xf] }
 0x22f   : > { %5500 = vmatpush.bf16.msra.mxu1 %v6506_v4  ;;  %v5255_v4 = vpop.f32.mrf.mxu3  ;;  %v8364_v63 = vld [vmem:[%s9651_s19 + $0x34] sm:$0xf0]  ;;  %v6441_v14 = vld [vmem:[%s9651_s19 + $0x128] sm:$0xf]  ;;  %v6714_v34 = vor.u32 %v8464_v22, %v6713_v9 }
 0x230   : > { %5514 = vmatpush.bf16.msra.mxu2 %v6634_v6  ;;  %v5991_v6 = vperm.slane %v10425_v15, 1  ;;  %v5216_v25 = vadd.f32 %v5215_v7, %v5202_v2  ;;  %v5256_v57 = vadd.f32 %v5255_v4, %v5242_v3  ;;  %v5229_v15 = vpop.f32.mrf.mxu1  ;;  %v8428_v20 = vld [vmem:[%s9651_s19 + $0x234] sm:$0xf0]  ;;  %v6314_v27 = vor.u32 %v8364_v63, %v6313_v13  ;;  %v6297_v29 = vld [vmem:[%s9651_s19 + $0x8] sm:$0xf] }
 0x231   : > { %5528 = vmatpush.bf16.msra.mxu3 %v6762_v12  ;;  %v6458_v12 = vor.u32 %v8400_v62, %v6457_v54  ;;  %v8460_v26 = vld [vmem:[%s9651_s19 + $0x334] sm:$0xf0]  ;;  %v6425_v33 = vld [vmem:[%s9651_s19 + $0x108] sm:$0xf] }
 0x232   : > { %5487 = vmatpush.bf16.msra.mxu0 %v6362_v18  ;;  %v8396_v18 = vld [vmem:[%s9651_s19 + $0x134] sm:$0xf0]  ;;  %v5975_v21 = vadd.f32 %v10440_v37, %v5256_v57  ;;  %v10459_v50 = vperm.slane %v5991_v6, 1  ;;  %v5230_v28 = vadd.f32 %v5229_v15, %v5216_v25  ;;  %v5243_v55 = vpop.f32.mrf.mxu2  ;;  %v6921_v60 = vld [vmem:[%s9651_s19 + $0x4e8] sm:$0xf] }
 0x233   : > { %5501 = vmatpush.bf16.msra.mxu1 %v6490_v19  ;;  %v6569_v19 = vld [vmem:[%s9651_s19 + $0x228] sm:$0xf]  ;;  %v6442_v45 = vor.u32 %v8396_v18, %v6441_v14  ;;  %v8392_v42 = vld [vmem:[%s9651_s19 + $0x114] sm:$0xf0] }
 0x234   : > { %5515 = vmatpush.bf16.msra.mxu2 %v6618_v24  ;;  %v6697_v24 = vld [vmem:[%s9651_s19 + $0x328] sm:$0xf]  ;;  %v5983_v61 = vmax.f32 %v5975_v21, 0.0  ;;  %v6570_v48 = vor.u32 %v8428_v20, %v6569_v19  ;;  %v8456_v53 = vld [vmem:[%s9651_s19 + $0x314] sm:$0xf0]  ;;  %v5244_v62 = vadd.f32 %v5243_v55, %v5230_v28  ;;  %v6426_v3 = vor.u32 %v8392_v42, %v6425_v33 }
 0x235   : > { %5529 = vmatpush.bf16.msra.mxu3 %v6746_v30  ;;  %v8360_v30 = vld [vmem:[%s9651_s19 + $0x14] sm:$0xf0]  ;;  %v6698_v49 = vor.u32 %v8460_v26, %v6697_v24  ;;  %v7049_v56 = vld [vmem:[%s9651_s19 + $0x5e8] sm:$0xf] }
 0x236   : > { %5488 = vmatpush.bf16.msra.mxu0 %v6346_v23  ;;  %v6553_v23 = vld [vmem:[%s9651_s19 + $0x208] sm:$0xf]  ;;  %v6003_v54 = vmul.f32 %v10459_v50, %v5983_v61  ;;  %v8516_v0 = vld [vmem:[%s9651_s19 + $0x4f4] sm:$0xf0]  ;;  %v6298_v2 = vor.u32 %v8360_v30, %v6297_v29 }
 0x237   : > { %5502 = vmatpush.bf16.msra.mxu1 %v6474_v51  ;;  %v8424_v51 = vld [vmem:[%s9651_s19 + $0x214] sm:$0xf0]  ;;  %v7177_v4 = vld [vmem:[%s9651_s19 + $0x6e8] sm:$0xf]  ;;  %v6922_v57 = vor.u32 %v8516_v0, %v6921_v60 }
 0x238   : > { %5516 = vmatpush.bf16.msra.mxu2 %v6602_v52  ;;  %v6681_v52 = vld [vmem:[%s9651_s19 + $0x308] sm:$0xf]  ;;  %v8548_v7 = vld [vmem:[%s9651_s19 + $0x5f4] sm:$0xf0]  ;;  %v6023_v8 = vadd.f32 %v10461_v16, %v6003_v54  ;;  %v6554_v22 = vor.u32 %v8424_v51, %v6553_v23 }
 0x239   : > { %5530 = vmatpush.bf16.msra.mxu3 %v6730_v59  ;;  %v5257_v59 = vpop.f32.mrf.mxu3  ;;  %v8580_v6 = vld [vmem:[%s9651_s19 + $0x6f4] sm:$0xf0]  ;;  %v6682_v25 = vor.u32 %v8456_v53, %v6681_v52  ;;  %v7050_v13 = vor.u32 %v8548_v7, %v7049_v56  ;;  %v6905_v14 = vld [vmem:[%s9651_s19 + $0x4c8] sm:$0xf] }
 0x23a   : > { %5489 = vmatpush.bf16.msra.mxu0 %v6330_v5  ;;  %v5258_v9 = vadd.f32 %v5257_v59, %v5244_v62  ;;  %v7305_v5 = vld [vmem:[%s9651_s19 + $0x7e8] sm:$0xf]  ;;  %6031 = vst [vmem:[%s10484_s12] sm:$0xff] %v6023_v8  ;;  %v7178_v63 = vor.u32 %v8580_v6, %v7177_v4  ;;  %v8544_v19 = vld [vmem:[%s9651_s19 + $0x5d4] sm:$0xf0] }
 0x23b   : > { %5503 = vmatpush.bf16.msra.mxu1 %v6458_v12  ;;  %v8612_v12 = vld [vmem:[%s9651_s19 + $0x7f4] sm:$0xf0]  ;;  %v7033_v15 = vld [vmem:[%s9651_s19 + $0x5c8] sm:$0xf] }
 0x23c   : > { %5517 = vmatpush.bf16.msra.mxu2 %v6586_v11  ;;  %v5979_v11 = vadd.f32 %v10440_v37, %v5258_v9  ;;  %v7306_v18 = vor.u32 %v8612_v12, %v7305_v5  ;;  %v7161_v20 = vld [vmem:[%s9651_s19 + $0x6c8] sm:$0xf]  ;;  %v8576_v21 = vld [vmem:[%s9651_s19 + $0x6d4] sm:$0xf0]  ;;  %v7034_v30 = vor.u32 %v8544_v19, %v7033_v15 }
 0x23d   : > { %5531 = vmatpush.bf16.msra.mxu3 %v6714_v34  ;;  %v8512_v34 = vld [vmem:[%s9651_s19 + $0x4d4] sm:$0xf0]  ;;  %v7289_v26 = vld [vmem:[%s9651_s19 + $0x7c8] sm:$0xf]  ;;  %v7162_v33 = vor.u32 %v8576_v21, %v7161_v20 }
 0x23e   : > { %5490 = vmatpush.bf16.msra.mxu0 %v6314_v27  ;;  %v5987_v24 = vmax.f32 %v5979_v11, 0.0  ;;  %v8608_v37 = vld [vmem:[%s9651_s19 + $0x7d4] sm:$0xf0]  ;;  %v6906_v27 = vor.u32 %v8512_v34, %v6905_v14  ;;  %v6889_v61 = vld [vmem:[%s9651_s19 + $0x4a8] sm:$0xf] }
 0x23f   : > { %5504 = vmatpush.bf16.msra.mxu1 %v6442_v45  ;;  %v8508_v28 = vld [vmem:[%s9651_s19 + $0x4b4] sm:$0xf0]  ;;  %v7017_v45 = vld [vmem:[%s9651_s19 + $0x5a8] sm:$0xf] }
 0x240   : > { %5518 = vmatpush.bf16.msra.mxu2 %v6570_v48  ;;  %v6007_v29 = vmul.f32 %v10459_v50, %v5987_v24  ;;  %v7290_v48 = vor.u32 %v8608_v37, %v7289_v26  ;;  %v8540_v42 = vld [vmem:[%s9651_s19 + $0x5b4] sm:$0xf0]  ;;  %v7145_v23 = vld [vmem:[%s9651_s19 + $0x6a8] sm:$0xf]  ;;  %v6890_v52 = vor.u32 %v8508_v28, %v6889_v61 }
 0x241   : > { %5532 = vmatpush.bf16.msra.mxu3 %v6698_v49  ;;  %v8572_v49 = vld [vmem:[%s9651_s19 + $0x6b4] sm:$0xf0]  ;;  %v7273_v55 = vld [vmem:[%s9651_s19 + $0x7a8] sm:$0xf] }
 0x242   : > { %5491 = vmatpush.bf16.msra.mxu0 %v6298_v2  ;;  %v6027_v50 = vadd.f32 %v10461_v16, %v6007_v29  ;;  %v8604_v51 = vld [vmem:[%s9651_s19 + $0x7b4] sm:$0xf0]  ;;  %v6873_v53 = vld [vmem:[%s9651_s19 + $0x488] sm:$0xf]  ;;  %v7018_v16 = vor.u32 %v8540_v42, %v7017_v45  ;;  %v7146_v54 = vor.u32 %v8572_v49, %v7145_v23 }
 0x243   : > { %5505 = vmatpush.bf16.msra.mxu1 %v6426_v3  ;;  %v8504_v62 = vld [vmem:[%s9651_s19 + $0x494] sm:$0xf0]  ;;  %v7001_v59 = vld [vmem:[%s9651_s19 + $0x588] sm:$0xf]  ;;  %v7274_v60 = vor.u32 %v8604_v51, %v7273_v55 }
 0x244   : > { %5519 = vmatpush.bf16.msra.mxu2 %v6554_v22  ;;  %6035 = vst [vmem:[%s10484_s12 + $0x20] sm:$0xff] %v6027_v50  ;;  %v8536_v0 = vld [vmem:[%s9651_s19 + $0x594] sm:$0xf0]  ;;  %v7129_v56 = vld [vmem:[%s9651_s19 + $0x688] sm:$0xf]  ;;  %v6874_v4 = vor.u32 %v8504_v62, %v6873_v53 }
 0x245   : > { %5533 = vmatpush.bf16.msra.mxu3 %v6682_v25  ;;  %5492 = vmatmul.bf16.vlgmr.msra.gmra.mxu0 %v9744_v58  ;;  %v8568_v2 = vld [vmem:[%s9651_s19 + $0x694] sm:$0xf0]  ;;  %v7257_v3 = vld [vmem:[%s9651_s19 + $0x788] sm:$0xf]  ;;  %v7002_v6 = vor.u32 %v8536_v0, %v7001_v59 }
 0x246   : > { %5540 = vmatpush.bf16.msrb.mxu0 %v6922_v57  ;;  %5506 = vmatmul.bf16.vlgmr.msra.gmra.mxu1 %v9768_v10  ;;  %v8600_v7 = vld [vmem:[%s9651_s19 + $0x794] sm:$0xf0]  ;;  %v7130_v8 = vor.u32 %v8568_v2, %v7129_v56  ;;  %v6857_v9 = vld [vmem:[%s9651_s19 + $0x468] sm:$0xf] }
 0x247   : > { %5554 = vmatpush.bf16.msrb.mxu1 %v7050_v13  ;;  %5520 = vmatmul.bf16.vlgmr.msra.gmra.mxu2 %v9752_v1  ;;  %v8500_v22 = vld [vmem:[%s9651_s19 + $0x474] sm:$0xf0]  ;;  %v6985_v5 = vld [vmem:[%s9651_s19 + $0x568] sm:$0xf]  ;;  %v7258_v12 = vor.u32 %v8600_v7, %v7257_v3 }
 0x248   : > { %5568 = vmatpush.bf16.msrb.mxu2 %v7178_v63  ;;  %5534 = vmatmul.bf16.vlgmr.msra.gmra.mxu3 %v9776_v17  ;;  %v8532_v25 = vld [vmem:[%s9651_s19 + $0x574] sm:$0xf0]  ;;  %v7113_v57 = vld [vmem:[%s9651_s19 + $0x668] sm:$0xf]  ;;  %v6858_v14 = vor.u32 %v8500_v22, %v6857_v9 }
 0x249   : > { %5582 = vmatpush.bf16.msrb.mxu3 %v7306_v18  ;;  %v8564_v11 = vld [vmem:[%s9651_s19 + $0x674] sm:$0xf0]  ;;  %v7241_v13 = vld [vmem:[%s9651_s19 + $0x768] sm:$0xf]  ;;  %v6986_v34 = vor.u32 %v8532_v25, %v6985_v5 }
 0x24a   : > { %5541 = vmatpush.bf16.msrb.mxu0 %v6906_v27  ;;  %v8596_v63 = vld [vmem:[%s9651_s19 + $0x774] sm:$0xf0]  ;;  %v7114_v15 = vor.u32 %v8564_v11, %v7113_v57  ;;  %v6841_v18 = vld [vmem:[%s9651_s19 + $0x448] sm:$0xf] }
 0x24b   : > { %5555 = vmatpush.bf16.msrb.mxu1 %v7034_v30  ;;  %v8496_v19 = vld [vmem:[%s9651_s19 + $0x454] sm:$0xf0]  ;;  %v6969_v20 = vld [vmem:[%s9651_s19 + $0x548] sm:$0xf]  ;;  %v7242_v21 = vor.u32 %v8596_v63, %v7241_v13 }
 0x24c   : > { %5569 = vmatpush.bf16.msrb.mxu2 %v7162_v33  ;;  %v8528_v24 = vld [vmem:[%s9651_s19 + $0x554] sm:$0xf0]  ;;  %v7097_v26 = vld [vmem:[%s9651_s19 + $0x648] sm:$0xf]  ;;  %v6842_v30 = vor.u32 %v8496_v19, %v6841_v18 }
 0x24d   : > { %5583 = vmatpush.bf16.msrb.mxu3 %v7290_v48  ;;  %v8560_v37 = vld [vmem:[%s9651_s19 + $0x654] sm:$0xf0]  ;;  %v7225_v27 = vld [vmem:[%s9651_s19 + $0x748] sm:$0xf]  ;;  %v6970_v33 = vor.u32 %v8528_v24, %v6969_v20 }
 0x24e   : > { %5542 = vmatpush.bf16.msrb.mxu0 %v6890_v52  ;;  %v8592_v29 = vld [vmem:[%s9651_s19 + $0x754] sm:$0xf0]  ;;  %v7098_v61 = vor.u32 %v8560_v37, %v7097_v26  ;;  %v6825_v28 = vld [vmem:[%s9651_s19 + $0x428] sm:$0xf] }
 0x24f   : > { %5556 = vmatpush.bf16.msrb.mxu1 %v7018_v16  ;;  %v8492_v45 = vld [vmem:[%s9651_s19 + $0x434] sm:$0xf0]  ;;  %v6953_v48 = vld [vmem:[%s9651_s19 + $0x528] sm:$0xf]  ;;  %v7226_v42 = vor.u32 %v8592_v29, %v7225_v27 }
 0x250   : > { %5570 = vmatpush.bf16.msrb.mxu2 %v7146_v54  ;;  %v8524_v23 = vld [vmem:[%s9651_s19 + $0x534] sm:$0xf0]  ;;  %v7081_v49 = vld [vmem:[%s9651_s19 + $0x628] sm:$0xf]  ;;  %v6826_v52 = vor.u32 %v8492_v45, %v6825_v28 }
 0x251   : > { %5584 = vmatpush.bf16.msrb.mxu3 %v7274_v60  ;;  %v8556_v50 = vld [vmem:[%s9651_s19 + $0x634] sm:$0xf0]  ;;  %v7209_v55 = vld [vmem:[%s9651_s19 + $0x728] sm:$0xf]  ;;  %v6954_v54 = vor.u32 %v8524_v23, %v6953_v48 }
 0x252   : > { %5543 = vmatpush.bf16.msrb.mxu0 %v6874_v4  ;;  %v8588_v51 = vld [vmem:[%s9651_s19 + $0x734] sm:$0xf0]  ;;  %v6809_v53 = vld [vmem:[%s9651_s19 + $0x408] sm:$0xf]  ;;  %v7082_v62 = vor.u32 %v8556_v50, %v7081_v49 }
 0x253   : > { %5557 = vmatpush.bf16.msrb.mxu1 %v7002_v6  ;;  %v8488_v16 = vld [vmem:[%s9651_s19 + $0x414] sm:$0xf0]  ;;  %v6937_v59 = vld [vmem:[%s9651_s19 + $0x508] sm:$0xf]  ;;  %v7210_v56 = vor.u32 %v8588_v51, %v7209_v55 }
 0x254   : > { %5571 = vmatpush.bf16.msrb.mxu2 %v7130_v8  ;;  %v8520_v60 = vld [vmem:[%s9651_s19 + $0x514] sm:$0xf0]  ;;  %v7065_v0 = vld [vmem:[%s9651_s19 + $0x608] sm:$0xf]  ;;  %v6810_v9 = vor.u32 %v8488_v16, %v6809_v53 }
 0x255   : > { %5585 = vmatpush.bf16.msrb.mxu3 %v7258_v12  ;;  %v8552_v2 = vld [vmem:[%s9651_s19 + $0x614] sm:$0xf0]  ;;  %v7193_v3 = vld [vmem:[%s9651_s19 + $0x708] sm:$0xf]  ;;  %v6938_v25 = vor.u32 %v8520_v60, %v6937_v59 }
 0x256   : > { %5544 = vmatpush.bf16.msrb.mxu0 %v6858_v14  ;;  %v8584_v7 = vld [vmem:[%s9651_s19 + $0x714] sm:$0xf0]  ;;  %v7433_v4 = vld [vmem:[%s9651_s19 + $0x8e8] sm:$0xf]  ;;  %v7066_v57 = vor.u32 %v8552_v2, %v7065_v0 }
 0x257   : > { %5558 = vmatpush.bf16.msrb.mxu1 %v6986_v34  ;;  %v8644_v6 = vld [vmem:[%s9651_s19 + $0x8f4] sm:$0xf0]  ;;  %v7561_v8 = vld [vmem:[%s9651_s19 + $0x9e8] sm:$0xf]  ;;  %v7194_v63 = vor.u32 %v8584_v7, %v7193_v3 }
 0x258   : > { %5572 = vmatpush.bf16.msrb.mxu2 %v7114_v15  ;;  %v8676_v22 = vld [vmem:[%s9651_s19 + $0x9f4] sm:$0xf0]  ;;  %v7689_v5 = vld [vmem:[%s9651_s19 + $0xae8] sm:$0xf]  ;;  %v7434_v14 = vor.u32 %v8644_v6, %v7433_v4 }
 0x259   : > { %5586 = vmatpush.bf16.msrb.mxu3 %v7242_v21  ;;  %v8708_v12 = vld [vmem:[%s9651_s19 + $0xaf4] sm:$0xf0]  ;;  %v7817_v11 = vld [vmem:[%s9651_s19 + $0xbe8] sm:$0xf]  ;;  %v7562_v34 = vor.u32 %v8676_v22, %v7561_v8 }
 0x25a   : > { %5545 = vmatpush.bf16.msrb.mxu0 %v6842_v30  ;;  %v8740_v13 = vld [vmem:[%s9651_s19 + $0xbf4] sm:$0xf0]  ;;  %v7690_v15 = vor.u32 %v8708_v12, %v7689_v5  ;;  %v7417_v18 = vld [vmem:[%s9651_s19 + $0x8c8] sm:$0xf] }
 0x25b   : > { %5559 = vmatpush.bf16.msrb.mxu1 %v6970_v33  ;;  %v8640_v19 = vld [vmem:[%s9651_s19 + $0x8d4] sm:$0xf0]  ;;  %v7545_v20 = vld [vmem:[%s9651_s19 + $0x9c8] sm:$0xf]  ;;  %v7818_v21 = vor.u32 %v8740_v13, %v7817_v11  ;;  %v10593_v13 = vpop.f32.mrf.mxu0 }
 0x25c   : > { %5573 = vmatpush.bf16.msrb.mxu2 %v7098_v61  ;;  %v8672_v24 = vld [vmem:[%s9651_s19 + $0x9d4] sm:$0xf0]  ;;  %v7673_v26 = vld [vmem:[%s9651_s19 + $0xac8] sm:$0xf]  ;;  %v7418_v30 = vor.u32 %v8640_v19, %v7417_v18 }
 0x25d   : > { %5587 = vmatpush.bf16.msrb.mxu3 %v7226_v42  ;;  %v8704_v37 = vld [vmem:[%s9651_s19 + $0xad4] sm:$0xf0]  ;;  %v7801_v27 = vld [vmem:[%s9651_s19 + $0xbc8] sm:$0xf]  ;;  %v7546_v33 = vor.u32 %v8672_v24, %v7545_v20 }
 0x25e   : > { %5546 = vmatpush.bf16.msrb.mxu0 %v6826_v52  ;;  %v8736_v29 = vld [vmem:[%s9651_s19 + $0xbd4] sm:$0xf0]  ;;  %v7674_v61 = vor.u32 %v8704_v37, %v7673_v26  ;;  %v7401_v28 = vld [vmem:[%s9651_s19 + $0x8a8] sm:$0xf] }
 0x25f   : > { %5560 = vmatpush.bf16.msrb.mxu1 %v6954_v54  ;;  %v8636_v45 = vld [vmem:[%s9651_s19 + $0x8b4] sm:$0xf0]  ;;  %v7529_v48 = vld [vmem:[%s9651_s19 + $0x9a8] sm:$0xf]  ;;  %v7802_v42 = vor.u32 %v8736_v29, %v7801_v27 }
 0x260   : > { %5574 = vmatpush.bf16.msrb.mxu2 %v7082_v62  ;;  %v8668_v23 = vld [vmem:[%s9651_s19 + $0x9b4] sm:$0xf0]  ;;  %v7657_v49 = vld [vmem:[%s9651_s19 + $0xaa8] sm:$0xf]  ;;  %v7402_v52 = vor.u32 %v8636_v45, %v7401_v28 }
 0x261   : > { %5588 = vmatpush.bf16.msrb.mxu3 %v7210_v56  ;;  %v8700_v50 = vld [vmem:[%s9651_s19 + $0xab4] sm:$0xf0]  ;;  %v7785_v55 = vld [vmem:[%s9651_s19 + $0xba8] sm:$0xf]  ;;  %v7530_v53 = vor.u32 %v8668_v23, %v7529_v48 }
 0x262   : > { %5547 = vmatpush.bf16.msrb.mxu0 %v6810_v9  ;;  %v8732_v51 = vld [vmem:[%s9651_s19 + $0xbb4] sm:$0xf0]  ;;  %v7658_v16 = vor.u32 %v8700_v50, %v7657_v49  ;;  %v7385_v54 = vld [vmem:[%s9651_s19 + $0x888] sm:$0xf]  ;;  %v10610_v49 = vpop.f32.mrf.mxu2 }
 0x263   : > { %5561 = vmatpush.bf16.msrb.mxu1 %v6938_v25  ;;  %v8632_v62 = vld [vmem:[%s9651_s19 + $0x894] sm:$0xf0]  ;;  %v7513_v59 = vld [vmem:[%s9651_s19 + $0x988] sm:$0xf]  ;;  %v7786_v60 = vor.u32 %v8732_v51, %v7785_v55 }
 0x264   : > { %5575 = vmatpush.bf16.msrb.mxu2 %v7066_v57  ;;  %v8664_v0 = vld [vmem:[%s9651_s19 + $0x994] sm:$0xf0]  ;;  %v7641_v56 = vld [vmem:[%s9651_s19 + $0xa88] sm:$0xf]  ;;  %v7386_v4 = vor.u32 %v8632_v62, %v7385_v54 }
 0x265   : > { %5589 = vmatpush.bf16.msrb.mxu3 %v7194_v63  ;;  %5548 = vmatmul.bf16.vlgmr.msrb.gmra.mxu0 %v9852_v39  ;;  %v8696_v2 = vld [vmem:[%s9651_s19 + $0xa94] sm:$0xf0]  ;;  %v7769_v3 = vld [vmem:[%s9651_s19 + $0xb88] sm:$0xf]  ;;  %v7514_v6 = vor.u32 %v8664_v0, %v7513_v59  ;;  %v10621_v0 = vpop.f32.mrf.mxu0 }
 0x266   : > { %5596 = vmatpush.bf16.msra.mxu0 %v7434_v14  ;;  %5562 = vmatmul.bf16.vlgmr.msrb.gmra.mxu1 %v9859_v44  ;;  %v8728_v7 = vld [vmem:[%s9651_s19 + $0xb94] sm:$0xf0]  ;;  %v7642_v8 = vor.u32 %v8696_v2, %v7641_v56  ;;  %v7369_v9 = vld [vmem:[%s9651_s19 + $0x868] sm:$0xf] }
 0x267   : > { %5610 = vmatpush.bf16.msra.mxu1 %v7562_v34  ;;  %5576 = vmatmul.bf16.vlgmr.msrb.gmra.mxu2 %v9857_v43  ;;  %v8628_v22 = vld [vmem:[%s9651_s19 + $0x874] sm:$0xf0]  ;;  %v7497_v5 = vld [vmem:[%s9651_s19 + $0x968] sm:$0xf]  ;;  %v7770_v12 = vor.u32 %v8728_v7, %v7769_v3  ;;  %v10597_v34 = vpop.f32.mrf.mxu1 }
 0x268   : > { %5624 = vmatpush.bf16.msra.mxu2 %v7690_v15  ;;  %5590 = vmatmul.bf16.vlgmr.msrb.gmra.mxu3 %v9863_v47  ;;  %v8660_v25 = vld [vmem:[%s9651_s19 + $0x974] sm:$0xf0]  ;;  %v7625_v57 = vld [vmem:[%s9651_s19 + $0xa68] sm:$0xf]  ;;  %v7370_v15 = vor.u32 %v8628_v22, %v7369_v9 }
 0x269   : > { %5638 = vmatpush.bf16.msra.mxu3 %v7818_v21  ;;  %v8692_v11 = vld [vmem:[%s9651_s19 + $0xa74] sm:$0xf0]  ;;  %v7753_v63 = vld [vmem:[%s9651_s19 + $0xb68] sm:$0xf]  ;;  %v7498_v18 = vor.u32 %v8660_v25, %v7497_v5 }
 0x26a   : > { %5597 = vmatpush.bf16.msra.mxu0 %v7418_v30  ;;  %v8724_v14 = vld [vmem:[%s9651_s19 + $0xb74] sm:$0xf0]  ;;  %v7626_v19 = vor.u32 %v8692_v11, %v7625_v57  ;;  %v7353_v20 = vld [vmem:[%s9651_s19 + $0x848] sm:$0xf] }
 0x26b   : > { %5611 = vmatpush.bf16.msra.mxu1 %v7546_v33  ;;  %v8624_v21 = vld [vmem:[%s9651_s19 + $0x854] sm:$0xf0]  ;;  %v7481_v24 = vld [vmem:[%s9651_s19 + $0x948] sm:$0xf]  ;;  %v7754_v26 = vor.u32 %v8724_v14, %v7753_v63 }
 0x26c   : > { %5625 = vmatpush.bf16.msra.mxu2 %v7674_v61  ;;  %v8656_v37 = vld [vmem:[%s9651_s19 + $0x954] sm:$0xf0]  ;;  %v7609_v27 = vld [vmem:[%s9651_s19 + $0xa48] sm:$0xf]  ;;  %v7354_v61 = vor.u32 %v8624_v21, %v7353_v20 }
 0x26d   : > { %5639 = vmatpush.bf16.msra.mxu3 %v7802_v42  ;;  %v8688_v29 = vld [vmem:[%s9651_s19 + $0xa54] sm:$0xf0]  ;;  %v7737_v30 = vld [vmem:[%s9651_s19 + $0xb48] sm:$0xf]  ;;  %v7482_v28 = vor.u32 %v8656_v37, %v7481_v24 }
 0x26e   : > { %5598 = vmatpush.bf16.msra.mxu0 %v7402_v52  ;;  %v8720_v33 = vld [vmem:[%s9651_s19 + $0xb54] sm:$0xf0]  ;;  %v7610_v45 = vor.u32 %v8688_v29, %v7609_v27  ;;  %v7337_v48 = vld [vmem:[%s9651_s19 + $0x828] sm:$0xf] }
 0x26f   : > { %5612 = vmatpush.bf16.msra.mxu1 %v7530_v53  ;;  %v8620_v42 = vld [vmem:[%s9651_s19 + $0x834] sm:$0xf0]  ;;  %v7465_v23 = vld [vmem:[%s9651_s19 + $0x928] sm:$0xf]  ;;  %v7738_v50 = vor.u32 %v8720_v33, %v7737_v30  ;;  %v10615_v53 = vpop.f32.mrf.mxu3 }
 0x270   : > { %5626 = vmatpush.bf16.msra.mxu2 %v7658_v16  ;;  %v8652_v55 = vld [vmem:[%s9651_s19 + $0x934] sm:$0xf0]  ;;  %v7593_v51 = vld [vmem:[%s9651_s19 + $0xa28] sm:$0xf]  ;;  %v7338_v62 = vor.u32 %v8620_v42, %v7337_v48 }
 0x271   : > { %5640 = vmatpush.bf16.msra.mxu3 %v7786_v60  ;;  %v8684_v52 = vld [vmem:[%s9651_s19 + $0xa34] sm:$0xf0]  ;;  %v7721_v16 = vld [vmem:[%s9651_s19 + $0xb28] sm:$0xf]  ;;  %v7466_v56 = vor.u32 %v8652_v55, %v7465_v23 }
 0x272   : > { %5599 = vmatpush.bf16.msra.mxu0 %v7386_v4  ;;  %v8716_v54 = vld [vmem:[%s9651_s19 + $0xb34] sm:$0xf0]  ;;  %v7321_v59 = vld [vmem:[%s9651_s19 + $0x808] sm:$0xf]  ;;  %v7594_v2 = vor.u32 %v8684_v52, %v7593_v51  ;;  %v5284_v52 = vadd.f32 %v10597_v34, %v10593_v13 }
 0x273   : > { %5613 = vmatpush.bf16.msra.mxu1 %v7514_v6  ;;  %v8616_v60 = vld [vmem:[%s9651_s19 + $0x814] sm:$0xf0]  ;;  %v7449_v3 = vld [vmem:[%s9651_s19 + $0x908] sm:$0xf]  ;;  %v10626_v6 = vpop.f32.mrf.mxu1 }
 0x274   : > { %5627 = vmatpush.bf16.msra.mxu2 %v7642_v8  ;;  %v8648_v7 = vld [vmem:[%s9651_s19 + $0x914] sm:$0xf0]  ;;  %v7577_v4 = vld [vmem:[%s9651_s19 + $0xa08] sm:$0xf]  ;;  %v7722_v8 = vor.u32 %v8716_v54, %v7721_v16  ;;  %v7322_v11 = vor.u32 %v8616_v60, %v7321_v59  ;;  %v5325_v16 = vpop.f32.mrf.mxu0 }
 0x275   : > { %5641 = vmatpush.bf16.msra.mxu3 %v7770_v12  ;;  %v8680_v9 = vld [vmem:[%s9651_s19 + $0xa14] sm:$0xf0]  ;;  %v7705_v22 = vld [vmem:[%s9651_s19 + $0xb08] sm:$0xf] }
 0x276   : > { %5600 = vmatpush.bf16.msra.mxu0 %v7370_v15  ;;  %v8712_v5 = vld [vmem:[%s9651_s19 + $0xb14] sm:$0xf0]  ;;  %v7945_v12 = vld [vmem:[%s9651_s19 + $0xce8] sm:$0xf] }
 0x277   : > { %5614 = vmatpush.bf16.msra.mxu1 %v7498_v18  ;;  %v8772_v25 = vld [vmem:[%s9651_s19 + $0xcf4] sm:$0xf0]  ;;  %v8073_v57 = vld [vmem:[%s9651_s19 + $0xde8] sm:$0xf]  ;;  %v7450_v18 = vor.u32 %v8648_v7, %v7449_v3  ;;  %v7706_v24 = vor.u32 %v8712_v5, %v7705_v22  ;;  %v10647_v23 = vpop.f32.mrf.mxu3  ;;  %v5298_v22 = vadd.f32 %v10610_v49, %v5284_v52 }
 0x278   : > { %5628 = vmatpush.bf16.msra.mxu2 %v7626_v19  ;;  %v8804_v63 = vld [vmem:[%s9651_s19 + $0xdf4] sm:$0xf0]  ;;  %v8201_v14 = vld [vmem:[%s9651_s19 + $0xee8] sm:$0xf]  ;;  %v7578_v19 = vor.u32 %v8680_v9, %v7577_v4 }
 0x279   : > { %5642 = vmatpush.bf16.msra.mxu3 %v7754_v26  ;;  %v8836_v15 = vld [vmem:[%s9651_s19 + $0xef4] sm:$0xf0]  ;;  %v8329_v20 = vld [vmem:[%s9651_s19 + $0xfe8] sm:$0xf]  ;;  %v7946_v26 = vor.u32 %v8772_v25, %v7945_v12  ;;  %v8074_v37 = vor.u32 %v8804_v63, %v8073_v57 }
 0x27a   : > { %5601 = vmatpush.bf16.msra.mxu0 %v7354_v61  ;;  %v8868_v21 = vld [vmem:[%s9651_s19 + $0xff4] sm:$0xf0]  ;;  %v8202_v27 = vor.u32 %v8836_v15, %v8201_v14  ;;  %v7929_v29 = vld [vmem:[%s9651_s19 + $0xcc8] sm:$0xf]  ;;  %v10642_v61 = vpop.f32.mrf.mxu2 }
 0x27b   : > { %5615 = vmatpush.bf16.msra.mxu1 %v7482_v28  ;;  %v8768_v30 = vld [vmem:[%s9651_s19 + $0xcd4] sm:$0xf0]  ;;  %v8057_v33 = vld [vmem:[%s9651_s19 + $0xdc8] sm:$0xf]  ;;  %v8330_v28 = vor.u32 %v8868_v21, %v8329_v20 }
 0x27c   : > { %5629 = vmatpush.bf16.msra.mxu2 %v7610_v45  ;;  %v8800_v45 = vld [vmem:[%s9651_s19 + $0xdd4] sm:$0xf0]  ;;  %v8185_v48 = vld [vmem:[%s9651_s19 + $0xec8] sm:$0xf]  ;;  %v7930_v51 = vor.u32 %v8768_v30, %v7929_v29 }
 0x27d   : > { %5643 = vmatpush.bf16.msra.mxu3 %v7738_v50  ;;  %v8832_v42 = vld [vmem:[%s9651_s19 + $0xed4] sm:$0xf0]  ;;  %v8313_v50 = vld [vmem:[%s9651_s19 + $0xfc8] sm:$0xf]  ;;  %v8058_v54 = vor.u32 %v8800_v45, %v8057_v33 }
 0x27e   : > { %5602 = vmatpush.bf16.msra.mxu0 %v7338_v62  ;;  %v8864_v55 = vld [vmem:[%s9651_s19 + $0xfd4] sm:$0xf0]  ;;  %v8186_v62 = vor.u32 %v8832_v42, %v8185_v48  ;;  %v7913_v59 = vld [vmem:[%s9651_s19 + $0xca8] sm:$0xf] }
 0x27f   : > { %5616 = vmatpush.bf16.msra.mxu1 %v7466_v56  ;;  %v8764_v60 = vld [vmem:[%s9651_s19 + $0xcb4] sm:$0xf0]  ;;  %v8041_v56 = vld [vmem:[%s9651_s19 + $0xda8] sm:$0xf]  ;;  %v8314_v3 = vor.u32 %v8864_v55, %v8313_v50  ;;  %v5327_v50 = vpop.f32.mrf.mxu0 }
 0x280   : > { %5630 = vmatpush.bf16.msra.mxu2 %v7594_v2  ;;  %v10656_v2 = vpop.f32.mrf.mxu1  ;;  %v8796_v7 = vld [vmem:[%s9651_s19 + $0xdb4] sm:$0xf0]  ;;  %v8169_v13 = vld [vmem:[%s9651_s19 + $0xea8] sm:$0xf]  ;;  %v7914_v9 = vor.u32 %v8764_v60, %v7913_v59 }
 0x281   : > { %5644 = vmatpush.bf16.msra.mxu3 %v7722_v8  ;;  %v8828_v34 = vld [vmem:[%s9651_s19 + $0xeb4] sm:$0xf0]  ;;  %v8297_v4 = vld [vmem:[%s9651_s19 + $0xfa8] sm:$0xf]  ;;  %v8042_v5 = vor.u32 %v8796_v7, %v8041_v56 }
 0x282   : > { %5603 = vmatpush.bf16.msra.mxu0 %v7322_v11  ;;  %v8860_v8 = vld [vmem:[%s9651_s19 + $0xfb4] sm:$0xf0]  ;;  %v8170_v12 = vor.u32 %v8828_v34, %v8169_v13  ;;  %v7897_v25 = vld [vmem:[%s9651_s19 + $0xc88] sm:$0xf]  ;;  %v10676_v49 = vpop.f32.mrf.mxu2 }
 0x283   : > { %5617 = vmatpush.bf16.msra.mxu1 %v7450_v18  ;;  %v8760_v57 = vld [vmem:[%s9651_s19 + $0xc94] sm:$0xf0]  ;;  %v8025_v11 = vld [vmem:[%s9651_s19 + $0xd88] sm:$0xf]  ;;  %v8298_v63 = vor.u32 %v8860_v8, %v8297_v4 }
 0x284   : > { %5631 = vmatpush.bf16.msra.mxu2 %v7578_v19  ;;  %v8792_v14 = vld [vmem:[%s9651_s19 + $0xd94] sm:$0xf0]  ;;  %v8153_v15 = vld [vmem:[%s9651_s19 + $0xe88] sm:$0xf]  ;;  %v7898_v21 = vor.u32 %v8760_v57, %v7897_v25 }
 0x285   : > { %5645 = vmatpush.bf16.msra.mxu3 %v7706_v24  ;;  %5604 = vmatmul.bf16.vlgmr.msra.gmra.mxu0 %v9952_v31  ;;  %v8824_v18 = vld [vmem:[%s9651_s19 + $0xe94] sm:$0xf0]  ;;  %v8281_v19 = vld [vmem:[%s9651_s19 + $0xf88] sm:$0xf]  ;;  %v5312_v24 = vadd.f32 %v10615_v53, %v5298_v22 }
 0x286   : > { %5652 = vmatpush.bf16.msrb.mxu0 %v7946_v26  ;;  %5618 = vmatmul.bf16.vlgmr.msra.gmra.mxu1 %v9959_v36  ;;  %v8856_v20 = vld [vmem:[%s9651_s19 + $0xf94] sm:$0xf0]  ;;  %v10679_v26 = vpop.f32.mrf.mxu3  ;;  %v7881_v29 = vld [vmem:[%s9651_s19 + $0xc68] sm:$0xf] }
 0x287   : > { %5666 = vmatpush.bf16.msrb.mxu1 %v8074_v37  ;;  %5632 = vmatmul.bf16.vlgmr.msra.gmra.mxu2 %v9957_v35  ;;  %v8026_v37 = vor.u32 %v8792_v14, %v8025_v11  ;;  %v8756_v30 = vld [vmem:[%s9651_s19 + $0xc74] sm:$0xf0]  ;;  %v8009_v33 = vld [vmem:[%s9651_s19 + $0xd68] sm:$0xf] }
 0x288   : > { %5680 = vmatpush.bf16.msrb.mxu2 %v8202_v27  ;;  %5646 = vmatmul.bf16.vlgmr.msra.gmra.mxu3 %v9963_v40  ;;  %v8154_v27 = vor.u32 %v8824_v18, %v8153_v15  ;;  %v8788_v45 = vld [vmem:[%s9651_s19 + $0xd74] sm:$0xf0]  ;;  %v8137_v48 = vld [vmem:[%s9651_s19 + $0xe68] sm:$0xf]  ;;  %v10691_v52 = vpop.f32.mrf.mxu1 }
 0x289   : > { %5694 = vmatpush.bf16.msrb.mxu3 %v8330_v28  ;;  %v8282_v28 = vor.u32 %v8856_v20, %v8281_v19  ;;  %v8820_v42 = vld [vmem:[%s9651_s19 + $0xe74] sm:$0xf0]  ;;  %v8265_v53 = vld [vmem:[%s9651_s19 + $0xf68] sm:$0xf]  ;;  %v8010_v59 = vor.u32 %v8788_v45, %v8009_v33 }
 0x28a   : > { %5653 = vmatpush.bf16.msrb.mxu0 %v7930_v51  ;;  %v8852_v55 = vld [vmem:[%s9651_s19 + $0xf74] sm:$0xf0]  ;;  %v5286_v51 = vadd.f32 %v10626_v6, %v10621_v0  ;;  %v8138_v60 = vor.u32 %v8820_v42, %v8137_v48  ;;  %v7865_v56 = vld [vmem:[%s9651_s19 + $0xc48] sm:$0xf] }
 0x28b   : > { %5667 = vmatpush.bf16.msrb.mxu1 %v8058_v54  ;;  %v7882_v54 = vor.u32 %v8756_v30, %v7881_v29  ;;  %v7993_v7 = vld [vmem:[%s9651_s19 + $0xd48] sm:$0xf]  ;;  %v8266_v13 = vor.u32 %v8852_v55, %v8265_v53  ;;  %v8784_v0 = vld [vmem:[%s9651_s19 + $0xd54] sm:$0xf0] }
 0x28c   : > { %5681 = vmatpush.bf16.msrb.mxu2 %v8186_v62  ;;  %v5326_v62 = vadd.f32 %v5325_v16, %v5312_v24  ;;  %v8121_v6 = vld [vmem:[%s9651_s19 + $0xe48] sm:$0xf]  ;;  %v8816_v34 = vld [vmem:[%s9651_s19 + $0xe54] sm:$0xf0]  ;;  %v5300_v16 = vadd.f32 %v10642_v61, %v5286_v51 }
 0x28d   : > { %5695 = vmatpush.bf16.msrb.mxu3 %v8314_v3  ;;  %v8752_v3 = vld [vmem:[%s9651_s19 + $0xc54] sm:$0xf0]  ;;  %v8249_v4 = vld [vmem:[%s9651_s19 + $0xf48] sm:$0xf] }
 0x28e   : > { %5654 = vmatpush.bf16.msrb.mxu0 %v7914_v9  ;;  %v8848_v8 = vld [vmem:[%s9651_s19 + $0xf54] sm:$0xf0]  ;;  %v7866_v9 = vor.u32 %v8752_v3, %v7865_v56  ;;  %v5340_v22 = vadd.f32 %v10656_v2, %v5326_v62  ;;  %v7849_v25 = vld [vmem:[%s9651_s19 + $0xc28] sm:$0xf]  ;;  %v10709_v19 = vpop.f32.mrf.mxu3  ;;  %v5381_v2 = vpop.f32.mrf.mxu0  ;;  %v5314_v24 = vadd.f32 %v10647_v23, %v5300_v16  ;;  %v6539_v3 = vld [vmem:[%s9651_s19 + $0x1f8] sm:$0xf0] }
 0x28f   : > { %5668 = vmatpush.bf16.msrb.mxu1 %v8042_v5  ;;  %v7994_v5 = vor.u32 %v8784_v0, %v7993_v7  ;;  %v8748_v57 = vld [vmem:[%s9651_s19 + $0xc34] sm:$0xf0]  ;;  %v7977_v11 = vld [vmem:[%s9651_s19 + $0xd28] sm:$0xf]  ;;  %v8250_v14 = vor.u32 %v8848_v8, %v8249_v4  ;;  %v8450_v7 = vld [vmem:[%s9651_s19 + $0x2ec] sm:$0xf] }
 0x290   : > { %5682 = vmatpush.bf16.msrb.mxu2 %v8170_v12  ;;  %v8122_v12 = vor.u32 %v8816_v34, %v8121_v6  ;;  %v8780_v61 = vld [vmem:[%s9651_s19 + $0xd34] sm:$0xf0]  ;;  %v8105_v15 = vld [vmem:[%s9651_s19 + $0xe28] sm:$0xf]  ;;  %v5354_v33 = vadd.f32 %v10676_v49, %v5340_v22  ;;  %v5328_v62 = vadd.f32 %v5327_v50, %v5314_v24  ;;  %v8386_v49 = vld [vmem:[%s9651_s19 + $0xec] sm:$0xf] }
 0x291   : > { %5696 = vmatpush.bf16.msrb.mxu3 %v8298_v63  ;;  %v5355_v63 = vpop.f32.mrf.mxu2  ;;  %v8812_v18 = vld [vmem:[%s9651_s19 + $0xe34] sm:$0xf0]  ;;  %v8233_v20 = vld [vmem:[%s9651_s19 + $0xf28] sm:$0xf]  ;;  %v8482_v4 = vld [vmem:[%s9651_s19 + $0x3ec] sm:$0xf] }
 0x292   : > { %5655 = vmatpush.bf16.msrb.mxu0 %v7898_v21  ;;  %v8844_v21 = vld [vmem:[%s9651_s19 + $0xf34] sm:$0xf0]  ;;  %v7833_v29 = vld [vmem:[%s9651_s19 + $0xc08] sm:$0xf]  ;;  %v8106_v45 = vor.u32 %v8812_v18, %v8105_v15  ;;  %v5368_v0 = vadd.f32 %v10679_v26, %v5354_v33  ;;  %v6795_v50 = vld [vmem:[%s9651_s19 + $0x3f8] sm:$0xf0]  ;;  %v5342_v22 = vadd.f32 %v10691_v52, %v5328_v62 }
 0x293   : > { %5669 = vmatpush.bf16.msrb.mxu1 %v8026_v37  ;;  %v5395_v37 = vpop.f32.mrf.mxu1  ;;  %v8744_v30 = vld [vmem:[%s9651_s19 + $0xc14] sm:$0xf0]  ;;  %v7961_v23 = vld [vmem:[%s9651_s19 + $0xd08] sm:$0xf]  ;;  %v8234_v53 = vor.u32 %v8844_v21, %v8233_v20  ;;  %v6523_v15 = vld [vmem:[%s9651_s19 + $0x1d8] sm:$0xf0] }
 0x294   : > { %5683 = vmatpush.bf16.msrb.mxu2 %v8154_v27  ;;  %v7850_v27 = vor.u32 %v8748_v57, %v7849_v25  ;;  %v8776_v48 = vld [vmem:[%s9651_s19 + $0xd14] sm:$0xf0]  ;;  %v8089_v42 = vld [vmem:[%s9651_s19 + $0xe08] sm:$0xf]  ;;  %v7834_v56 = vor.u32 %v8744_v30, %v7833_v29  ;;  %v8382_v57 = vld [vmem:[%s9651_s19 + $0xcc] sm:$0xf]  ;;  %v5356_v21 = vadd.f32 %v5355_v63, %v5342_v22 }
 0x295   : > { %5697 = vmatpush.bf16.msrb.mxu3 %v8282_v28  ;;  %v7978_v28 = vor.u32 %v8780_v61, %v7977_v11  ;;  %v8808_v55 = vld [vmem:[%s9651_s19 + $0xe14] sm:$0xf0]  ;;  %v8217_v51 = vld [vmem:[%s9651_s19 + $0xf08] sm:$0xf]  ;;  %v7962_v6 = vor.u32 %v8776_v48, %v7961_v23  ;;  %v6395_v11 = vld [vmem:[%s9651_s19 + $0xd8] sm:$0xf0]  ;;  %v6798_v61 = vor.u32 %v8482_v4, %v6795_v50 }
 0x296   : > { %5656 = vmatpush.bf16.msrb.mxu0 %v7882_v54  ;;  %v8840_v54 = vld [vmem:[%s9651_s19 + $0xf14] sm:$0xf0]  ;;  %v8090_v34 = vor.u32 %v8808_v55, %v8089_v42  ;;  %v5423_v26 = vpop.f32.mrf.mxu3  ;;  %v8446_v18 = vld [vmem:[%s9651_s19 + $0x2cc] sm:$0xf]  ;;  %v6651_v20 = vld [vmem:[%s9651_s19 + $0x2d8] sm:$0xf0]  ;;  %v5383_v24 = vpop.f32.mrf.mxu0  ;;  %v6398_v29 = vor.u32 %v8382_v57, %v6395_v11 }
 0x297   : > { %5670 = vmatpush.bf16.msrb.mxu1 %v8010_v59  ;;  %v6411_v59 = vld [vmem:[%s9651_s19 + $0xf8] sm:$0xf0]  ;;  %v8218_v16 = vor.u32 %v8840_v54, %v8217_v51  ;;  %v8478_v52 = vld [vmem:[%s9651_s19 + $0x3cc] sm:$0xf]  ;;  %v6654_v63 = vor.u32 %v8446_v18, %v6651_v20 }
 0x298   : > { %5684 = vmatpush.bf16.msrb.mxu2 %v8138_v60  ;;  %v8418_v60 = vld [vmem:[%s9651_s19 + $0x1ec] sm:$0xf]  ;;  %v6507_v42 = vld [vmem:[%s9651_s19 + $0x1b8] sm:$0xf0] }
 0x299   : > { %5698 = vmatpush.bf16.msrb.mxu3 %v8266_v13  ;;  %v6667_v13 = vld [vmem:[%s9651_s19 + $0x2f8] sm:$0xf0]  ;;  %v5409_v8 = vpop.f32.mrf.mxu2  ;;  %v8410_v23 = vld [vmem:[%s9651_s19 + $0x1ac] sm:$0xf] }
 0x29a   : > { %5657 = vmatpush.bf16.msrb.mxu0 %v7866_v9  ;;  %v6414_v9 = vor.u32 %v8386_v49, %v6411_v59  ;;  %v6670_v25 = vor.u32 %v8450_v7, %v6667_v13  ;;  %v6635_v55 = vld [vmem:[%s9651_s19 + $0x2b8] sm:$0xf0]  ;;  %v8474_v54 = vld [vmem:[%s9651_s19 + $0x3ac] sm:$0xf] }
 0x29b   : > { %5671 = vmatpush.bf16.msrb.mxu1 %v7994_v5  ;;  %v5382_v5 = vadd.f32 %v5381_v2, %v5368_v0  ;;  %v6779_v2 = vld [vmem:[%s9651_s19 + $0x3d8] sm:$0xf0]  ;;  %v8374_v59 = vld [vmem:[%s9651_s19 + $0x8c] sm:$0xf] }
 0x29c   : > { %5685 = vmatpush.bf16.msrb.mxu2 %v8122_v12  ;;  %v6542_v12 = vor.u32 %v8418_v60, %v6539_v3  ;;  %v6782_v48 = vor.u32 %v8478_v52, %v6779_v2  ;;  %v6763_v62 = vld [vmem:[%s9651_s19 + $0x3b8] sm:$0xf0]  ;;  %v8406_v7 = vld [vmem:[%s9651_s19 + $0x18c] sm:$0xf]  ;;  %v8942_v52 = vld [vmem:[%s10415_s23] sm:$0x77] }
 0x29d   : > { %5699 = vmatpush.bf16.msrb.mxu3 %v8250_v14  ;;  %v8414_v14 = vld [vmem:[%s9651_s19 + $0x1cc] sm:$0xf]  ;;  %v5396_v30 = vadd.f32 %v5395_v37, %v5382_v5  ;;  %v5370_v37 = vadd.f32 %v10709_v19, %v5356_v21  ;;  %v6510_v19 = vor.u32 %v8410_v23, %v6507_v42  ;;  %v6363_v3 = vld [vmem:[%s9651_s19 + $0x98] sm:$0xf0]  ;;  %v5964_v2 = vperm.slane %v8942_v52, 4 }
 0x29e   : > { %5658 = vmatpush.bf16.msrb.mxu0 %v7850_v27  ;;  %v5397_v27 = vpop.f32.mrf.mxu1  ;;  %v6526_v33 = vor.u32 %v8414_v14, %v6523_v15  ;;  %v6491_v13 = vld [vmem:[%s9651_s19 + $0x198] sm:$0xf0]  ;;  %v6366_v5 = vor.u32 %v8374_v59, %v6363_v3  ;;  %v8370_v57 = vld [vmem:[%s9651_s19 + $0x6c] sm:$0xf]  ;;  %v6012_v3 = vperm.slane %v8942_v52, 6 }
 0x29f   : > { %5672 = vmatpush.bf16.msrb.mxu1 %v7978_v28  ;;  %v8378_v28 = vld [vmem:[%s9651_s19 + $0xac] sm:$0xf]  ;;  %v5410_v51 = vadd.f32 %v5409_v8, %v5396_v30  ;;  %v5384_v60 = vadd.f32 %v5383_v24, %v5370_v37  ;;  %v6619_v4 = vld [vmem:[%s9651_s19 + $0x298] sm:$0xf0]  ;;  %v5425_v8 = vpop.f32.mrf.mxu3 }
 0x2a0   : > { %5686 = vmatpush.bf16.msrb.mxu2 %v8106_v45  ;;  %v6379_v45 = vld [vmem:[%s9651_s19 + $0xb8] sm:$0xf0]  ;;  %v8402_v15 = vld [vmem:[%s9651_s19 + $0x16c] sm:$0xf] }
 0x2a1   : > { %5700 = vmatpush.bf16.msrb.mxu3 %v8234_v53  ;;  %v8442_v53 = vld [vmem:[%s9651_s19 + $0x2ac] sm:$0xf]  ;;  %v6382_v49 = vor.u32 %v8378_v28, %v6379_v45  ;;  %v5411_v0 = vpop.f32.mrf.mxu2  ;;  %v5424_v50 = vadd.f32 %v5423_v26, %v5410_v51  ;;  %v6747_v22 = vld [vmem:[%s9651_s19 + $0x398] sm:$0xf0]  ;;  %v5398_v11 = vadd.f32 %v5397_v27, %v5384_v60  ;;  %v10775_v51 = vperm.slane %v5964_v2, 0 }
 0x2a2   : > { %5659 = vmatpush.bf16.msrb.mxu0 %v7834_v56  ;;  %v6638_v56 = vor.u32 %v8442_v53, %v6635_v55  ;;  %v6475_v18 = vld [vmem:[%s9651_s19 + $0x178] sm:$0xf0]  ;;  %v8434_v21 = vld [vmem:[%s9651_s19 + $0x26c] sm:$0xf] }
 0x2a3   : > { %5673 = vmatpush.bf16.msrb.mxu1 %v7962_v6  ;;  %v6766_v6 = vor.u32 %v8474_v54, %v6763_v62  ;;  %v6603_v24 = vld [vmem:[%s9651_s19 + $0x278] sm:$0xf0]  ;;  %v8466_v27 = vld [vmem:[%s9651_s19 + $0x36c] sm:$0xf]  ;;  %v6478_v45 = vor.u32 %v8402_v15, %v6475_v18 }
 0x2a4   : > { %5687 = vmatpush.bf16.msrb.mxu2 %v8090_v34  ;;  %v8438_v34 = vld [vmem:[%s9651_s19 + $0x28c] sm:$0xf]  ;;  %v6731_v30 = vld [vmem:[%s9651_s19 + $0x378] sm:$0xf0]  ;;  %v6606_v23 = vor.u32 %v8434_v21, %v6603_v24 }
 0x2a5   : > { %5701 = vmatpush.bf16.msrb.mxu3 %v8218_v16  ;;  %5660 = vmatmul.bf16.vlgmr.msrb.gmra.mxu0 %v10052_v32  ;;  %v5437_v16 = vpop.f32.mrf.mxu0  ;;  %v6622_v14 = vor.u32 %v8438_v34, %v6619_v4  ;;  %v8398_v42 = vld [vmem:[%s9651_s19 + $0x14c] sm:$0xf]  ;;  %v6459_v53 = vld [vmem:[%s9651_s19 + $0x158] sm:$0xf0]  ;;  %v6734_v55 = vor.u32 %v8466_v27, %v6731_v30 }
 0x2a6   : > { %5708 = vmatpush.bf16.msra.mxu0 %v6414_v9  ;;  %5674 = vmatmul.bf16.vlgmr.msrb.gmra.mxu1 %v10059_v41  ;;  %v8470_v9 = vld [vmem:[%s9651_s19 + $0x38c] sm:$0xf]  ;;  %v5438_v26 = vadd.f32 %v5437_v16, %v5424_v50  ;;  %v6587_v62 = vld [vmem:[%s9651_s19 + $0x258] sm:$0xf0] }
 0x2a7   : > { %5722 = vmatpush.bf16.msra.mxu1 %v6542_v12  ;;  %5688 = vmatmul.bf16.vlgmr.msrb.gmra.mxu2 %v10057_v38  ;;  %v6494_v12 = vor.u32 %v8406_v7, %v6491_v13  ;;  %v6750_v20 = vor.u32 %v8470_v9, %v6747_v22  ;;  %v8430_v54 = vld [vmem:[%s9651_s19 + $0x24c] sm:$0xf]  ;;  %v6715_v13 = vld [vmem:[%s9651_s19 + $0x358] sm:$0xf0] }
 0x2a8   : > { %5736 = vmatpush.bf16.msra.mxu2 %v6670_v25  ;;  %5702 = vmatmul.bf16.vlgmr.msrb.gmra.mxu3 %v10063_v46  ;;  %v5451_v25 = vpop.f32.mrf.mxu1  ;;  %v8462_v7 = vld [vmem:[%s9651_s19 + $0x34c] sm:$0xf]  ;;  %v6590_v50 = vor.u32 %v8430_v54, %v6587_v62  ;;  %v6315_v16 = vld [vmem:[%s9651_s19 + $0x38] sm:$0xf0] }
 0x2a9   : > { %5750 = vmatpush.bf16.msra.mxu3 %v6798_v61  ;;  %v6347_v61 = vld [vmem:[%s9651_s19 + $0x78] sm:$0xf0]  ;;  %v5452_v28 = vadd.f32 %v5451_v25, %v5438_v26  ;;  %v8394_v9 = vld [vmem:[%s9651_s19 + $0x12c] sm:$0xf]  ;;  %v6718_v22 = vor.u32 %v8462_v7, %v6715_v13 }
 0x2aa   : > { %5709 = vmatpush.bf16.msra.mxu0 %v6398_v29  ;;  %v5412_v29 = vadd.f32 %v5411_v0, %v5398_v11  ;;  %v5465_v37 = vpop.f32.mrf.mxu2  ;;  %v8426_v25 = vld [vmem:[%s9651_s19 + $0x22c] sm:$0xf]  ;;  %v6699_v15 = vld [vmem:[%s9651_s19 + $0x338] sm:$0xf0] }
 0x2ab   : > { %5723 = vmatpush.bf16.msra.mxu1 %v6526_v33  ;;  %v6350_v33 = vor.u32 %v8370_v57, %v6347_v61  ;;  %v5466_v59 = vadd.f32 %v5465_v37, %v5452_v28  ;;  %v6571_v57 = vld [vmem:[%s9651_s19 + $0x238] sm:$0xf0]  ;;  %v8458_v61 = vld [vmem:[%s9651_s19 + $0x32c] sm:$0xf] }
 0x2ac   : > { %5737 = vmatpush.bf16.msra.mxu2 %v6654_v63  ;;  %v8366_v63 = vld [vmem:[%s9651_s19 + $0x4c] sm:$0xf]  ;;  %v6299_v21 = vld [vmem:[%s9651_s19 + $0x18] sm:$0xf0]  ;;  %v6574_v27 = vor.u32 %v8426_v25, %v6571_v57 }
 0x2ad   : > { %5751 = vmatpush.bf16.msra.mxu3 %v6782_v48  ;;  %v6331_v48 = vld [vmem:[%s9651_s19 + $0x58] sm:$0xf0]  ;;  %v5439_v60 = vpop.f32.mrf.mxu0  ;;  %v8390_v24 = vld [vmem:[%s9651_s19 + $0x10c] sm:$0xf] }
 0x2ae   : > { %5710 = vmatpush.bf16.msra.mxu0 %v6382_v49  ;;  %v5426_v49 = vadd.f32 %v5425_v8, %v5412_v29  ;;  %v6334_v0 = vor.u32 %v8366_v63, %v6331_v48  ;;  %v8362_v8 = vld [vmem:[%s9651_s19 + $0x2c] sm:$0xf]  ;;  %v6427_v30 = vld [vmem:[%s9651_s19 + $0x118] sm:$0xf0]  ;;  %v6702_v63 = vor.u32 %v8458_v61, %v6699_v15 }
 0x2af   : > { %5724 = vmatpush.bf16.msra.mxu1 %v6510_v19  ;;  %v5479_v19 = vpop.f32.mrf.mxu3  ;;  %v6318_v18 = vor.u32 %v8362_v8, %v6315_v16  ;;  %v6683_v48 = vld [vmem:[%s9651_s19 + $0x318] sm:$0xf0]  ;;  %v8514_v37 = vld [vmem:[%s9651_s19 + $0x4ec] sm:$0xf] }
 0x2b0   : > { %5738 = vmatpush.bf16.msra.mxu2 %v6638_v56  ;;  %v5992_v56 = vperm.slane %v8942_v52, 5  ;;  %v5440_v34 = vadd.f32 %v5439_v60, %v5426_v49  ;;  %v5480_v4 = vadd.f32 %v5479_v19, %v5466_v59  ;;  %v6923_v54 = vld [vmem:[%s9651_s19 + $0x4f8] sm:$0xf0]  ;;  %v8546_v62 = vld [vmem:[%s9651_s19 + $0x5ec] sm:$0xf]  ;;  %v6430_v59 = vor.u32 %v8390_v24, %v6427_v30 }
 0x2b1   : > { %5752 = vmatpush.bf16.msra.mxu3 %v6766_v6  ;;  %v6462_v6 = vor.u32 %v8398_v42, %v6459_v53  ;;  %v7051_v60 = vld [vmem:[%s9651_s19 + $0x5f8] sm:$0xf0]  ;;  %v8578_v19 = vld [vmem:[%s9651_s19 + $0x6ec] sm:$0xf] }
 0x2b2   : > { %5711 = vmatpush.bf16.msra.mxu0 %v6366_v5  ;;  %v5453_v5 = vpop.f32.mrf.mxu1  ;;  %v5976_v11 = vadd.f32 %v10775_v51, %v5480_v4  ;;  %v10788_v26 = vperm.slane %v5992_v56, 1  ;;  %v5467_v28 = vpop.f32.mrf.mxu2  ;;  %v7179_v56 = vld [vmem:[%s9651_s19 + $0x6f8] sm:$0xf0]  ;;  %v6926_v4 = vor.u32 %v8514_v37, %v6923_v54  ;;  %v7054_v16 = vor.u32 %v8546_v62, %v7051_v60  ;;  %v8574_v57 = vld [vmem:[%s9651_s19 + $0x6cc] sm:$0xf] }
 0x2b3   : > { %5725 = vmatpush.bf16.msra.mxu1 %v6494_v12  ;;  %v6443_v12 = vld [vmem:[%s9651_s19 + $0x138] sm:$0xf0]  ;;  %v5454_v2 = vadd.f32 %v5453_v5, %v5440_v34  ;;  %v8542_v5 = vld [vmem:[%s9651_s19 + $0x5cc] sm:$0xf] }
 0x2b4   : > { %5739 = vmatpush.bf16.msra.mxu2 %v6622_v14  ;;  %v10790_v14 = vperm.slane %v6012_v3, 2  ;;  %v5984_v52 = vmax.f32 %v5976_v11, 0.0  ;;  %v6446_v29 = vor.u32 %v8394_v9, %v6443_v12  ;;  %v7182_v9 = vor.u32 %v8578_v19, %v7179_v56  ;;  %v7035_v25 = vld [vmem:[%s9651_s19 + $0x5d8] sm:$0xf0]  ;;  %v8606_v15 = vld [vmem:[%s9651_s19 + $0x7cc] sm:$0xf] }
 0x2b5   : > { %5753 = vmatpush.bf16.msra.mxu3 %v6750_v20  ;;  %v8358_v20 = vld [vmem:[%s9651_s19 + $0xc] sm:$0xf]  ;;  %v5468_v53 = vadd.f32 %v5467_v28, %v5454_v2  ;;  %v7163_v11 = vld [vmem:[%s9651_s19 + $0x6d8] sm:$0xf0] }
 0x2b6   : > { %5712 = vmatpush.bf16.msra.mxu0 %v6350_v33  ;;  %v8422_v33 = vld [vmem:[%s9651_s19 + $0x20c] sm:$0xf]  ;;  %v6004_v42 = vmul.f32 %v10788_v26, %v5984_v52  ;;  %v6302_v49 = vor.u32 %v8358_v20, %v6299_v21  ;;  %v7038_v21 = vor.u32 %v8542_v5, %v7035_v25  ;;  %v7166_v24 = vor.u32 %v8574_v57, %v7163_v11  ;;  %v6891_v2 = vld [vmem:[%s9651_s19 + $0x4b8] sm:$0xf0] }
 0x2b7   : > { %5726 = vmatpush.bf16.msra.mxu1 %v6478_v45  ;;  %v6555_v45 = vld [vmem:[%s9651_s19 + $0x218] sm:$0xf0]  ;;  %v8506_v52 = vld [vmem:[%s9651_s19 + $0x4ac] sm:$0xf] }
 0x2b8   : > { %5740 = vmatpush.bf16.msra.mxu2 %v6606_v23  ;;  %v8454_v23 = vld [vmem:[%s9651_s19 + $0x30c] sm:$0xf]  ;;  %v6024_v3 = vadd.f32 %v10790_v14, %v6004_v42  ;;  %v6558_v13 = vor.u32 %v8422_v33, %v6555_v45  ;;  %v7019_v30 = vld [vmem:[%s9651_s19 + $0x5b8] sm:$0xf0] }
 0x2b9   : > { %5754 = vmatpush.bf16.msra.mxu3 %v6734_v55  ;;  %v5481_v55 = vpop.f32.mrf.mxu3  ;;  %v6686_v34 = vor.u32 %v8454_v23, %v6683_v48  ;;  %v8570_v33 = vld [vmem:[%s9651_s19 + $0x6ac] sm:$0xf]  ;;  %v7275_v45 = vld [vmem:[%s9651_s19 + $0x7b8] sm:$0xf0]  ;;  %v6894_v23 = vor.u32 %v8506_v52, %v6891_v2 }
 0x2ba   : > { %5713 = vmatpush.bf16.msra.mxu0 %v6334_v0  ;;  %v5482_v7 = vadd.f32 %v5481_v55, %v5468_v53  ;;  %v8610_v0 = vld [vmem:[%s9651_s19 + $0x7ec] sm:$0xf]  ;;  %6032 = vst [vmem:[%s10484_s12 + $0x8] sm:$0xff] %v6024_v3  ;;  %v6875_v42 = vld [vmem:[%s9651_s19 + $0x498] sm:$0xf0] }
 0x2bb   : > { %5727 = vmatpush.bf16.msra.mxu1 %v6462_v6  ;;  %v7307_v6 = vld [vmem:[%s9651_s19 + $0x7f8] sm:$0xf0]  ;;  %v8602_v28 = vld [vmem:[%s9651_s19 + $0x7ac] sm:$0xf] }
 0x2bc   : > { %5741 = vmatpush.bf16.msra.mxu2 %v6590_v50  ;;  %v8510_v50 = vld [vmem:[%s9651_s19 + $0x4cc] sm:$0xf]  ;;  %v5980_v8 = vadd.f32 %v10775_v51, %v5482_v7  ;;  %v7310_v12 = vor.u32 %v8610_v0, %v7307_v6  ;;  %v7003_v53 = vld [vmem:[%s9651_s19 + $0x598] sm:$0xf0] }
 0x2bd   : > { %5755 = vmatpush.bf16.msra.mxu3 %v6718_v22  ;;  %v6907_v22 = vld [vmem:[%s9651_s19 + $0x4d8] sm:$0xf0]  ;;  %v8502_v48 = vld [vmem:[%s9651_s19 + $0x48c] sm:$0xf] }
 0x2be   : > { %5714 = vmatpush.bf16.msra.mxu0 %v6318_v18  ;;  %v5988_v61 = vmax.f32 %v5980_v8, 0.0  ;;  %v7291_v18 = vld [vmem:[%s9651_s19 + $0x7d8] sm:$0xf0]  ;;  %v6910_v51 = vor.u32 %v8510_v50, %v6907_v22  ;;  %v8566_v55 = vld [vmem:[%s9651_s19 + $0x68c] sm:$0xf]  ;;  %v6878_v62 = vor.u32 %v8502_v48, %v6875_v42 }
 0x2bf   : > { %5728 = vmatpush.bf16.msra.mxu1 %v6446_v29  ;;  %v8538_v29 = vld [vmem:[%s9651_s19 + $0x5ac] sm:$0xf]  ;;  %v7131_v37 = vld [vmem:[%s9651_s19 + $0x698] sm:$0xf0] }
 0x2c0   : > { %5742 = vmatpush.bf16.msra.mxu2 %v6574_v27  ;;  %v6008_v20 = vmul.f32 %v10788_v26, %v5988_v61  ;;  %v7294_v27 = vor.u32 %v8606_v15, %v7291_v18  ;;  %v8598_v54 = vld [vmem:[%s9651_s19 + $0x78c] sm:$0xf]  ;;  %v6859_v19 = vld [vmem:[%s9651_s19 + $0x478] sm:$0xf0] }
 0x2c1   : > { %5756 = vmatpush.bf16.msra.mxu3 %v6702_v63  ;;  %v7147_v63 = vld [vmem:[%s9651_s19 + $0x6b8] sm:$0xf0]  ;;  %v8498_v60 = vld [vmem:[%s9651_s19 + $0x46c] sm:$0xf] }
 0x2c2   : > { %5715 = vmatpush.bf16.msra.mxu0 %v6302_v49  ;;  %v6028_v26 = vadd.f32 %v10790_v14, %v6008_v20  ;;  %v7150_v14 = vor.u32 %v8570_v33, %v7147_v63  ;;  %v8530_v56 = vld [vmem:[%s9651_s19 + $0x56c] sm:$0xf]  ;;  %v6987_v7 = vld [vmem:[%s9651_s19 + $0x578] sm:$0xf0] }
 0x2c3   : > { %5729 = vmatpush.bf16.msra.mxu1 %v6430_v59  ;;  %v7134_v59 = vor.u32 %v8566_v55, %v7131_v37  ;;  %v7115_v0 = vld [vmem:[%s9651_s19 + $0x678] sm:$0xf0]  ;;  %v8594_v6 = vld [vmem:[%s9651_s19 + $0x76c] sm:$0xf]  ;;  %v6990_v50 = vor.u32 %v8530_v56, %v6987_v7 }
 0x2c4   : > { %5743 = vmatpush.bf16.msra.mxu2 %v6558_v13  ;;  %6036 = vst [vmem:[%s10484_s12 + $0x28] sm:$0xff] %v6028_v26  ;;  %v8562_v13 = vld [vmem:[%s9651_s19 + $0x66c] sm:$0xf]  ;;  %v7099_v57 = vld [vmem:[%s9651_s19 + $0x658] sm:$0xf0] }
 0x2c5   : > { %5757 = vmatpush.bf16.msra.mxu3 %v6686_v34  ;;  %5716 = vmatmul.bf16.vlgmr.msra.gmra.mxu0 %v9744_v58  ;;  %v7022_v58 = vor.u32 %v8538_v29, %v7019_v30  ;;  %v7243_v34 = vld [vmem:[%s9651_s19 + $0x778] sm:$0xf0]  ;;  %v7118_v8 = vor.u32 %v8562_v13, %v7115_v0  ;;  %v8526_v22 = vld [vmem:[%s9651_s19 + $0x54c] sm:$0xf] }
 0x2c6   : > { %5764 = vmatpush.bf16.msrb.mxu0 %v6926_v4  ;;  %5730 = vmatmul.bf16.vlgmr.msra.gmra.mxu1 %v9768_v10  ;;  %v7278_v10 = vor.u32 %v8602_v28, %v7275_v45  ;;  %v6862_v4 = vor.u32 %v8498_v60, %v6859_v19  ;;  %v7246_v5 = vor.u32 %v8594_v6, %v7243_v34  ;;  %v8558_v25 = vld [vmem:[%s9651_s19 + $0x64c] sm:$0xf]  ;;  %v7227_v61 = vld [vmem:[%s9651_s19 + $0x758] sm:$0xf0] }
 0x2c7   : > { %5778 = vmatpush.bf16.msrb.mxu1 %v7054_v16  ;;  %5744 = vmatmul.bf16.vlgmr.msra.gmra.mxu2 %v9752_v1  ;;  %v8534_v1 = vld [vmem:[%s9651_s19 + $0x58c] sm:$0xf]  ;;  %v6955_v2 = vld [vmem:[%s9651_s19 + $0x538] sm:$0xf0] }
 0x2c8   : > { %5792 = vmatpush.bf16.msrb.mxu2 %v7182_v9  ;;  %5758 = vmatmul.bf16.vlgmr.msra.gmra.mxu3 %v9776_v17  ;;  %v7259_v17 = vld [vmem:[%s9651_s19 + $0x798] sm:$0xf0]  ;;  %v7006_v49 = vor.u32 %v8534_v1, %v7003_v53  ;;  %v8494_v16 = vld [vmem:[%s9651_s19 + $0x44c] sm:$0xf] }
 0x2c9   : > { %5806 = vmatpush.bf16.msrb.mxu3 %v7310_v12  ;;  %v7262_v3 = vor.u32 %v8598_v54, %v7259_v17  ;;  %v6843_v9 = vld [vmem:[%s9651_s19 + $0x458] sm:$0xf0]  ;;  %v8590_v11 = vld [vmem:[%s9651_s19 + $0x74c] sm:$0xf] }
 0x2ca   : > { %5765 = vmatpush.bf16.msrb.mxu0 %v6910_v51  ;;  %v6971_v12 = vld [vmem:[%s9651_s19 + $0x558] sm:$0xf0]  ;;  %v6846_v15 = vor.u32 %v8494_v16, %v6843_v9  ;;  %v7102_v51 = vor.u32 %v8558_v25, %v7099_v57  ;;  %v8490_v20 = vld [vmem:[%s9651_s19 + $0x42c] sm:$0xf]  ;;  %v7230_v52 = vor.u32 %v8590_v11, %v7227_v61 }
 0x2cb   : > { %5779 = vmatpush.bf16.msrb.mxu1 %v7038_v21  ;;  %v6974_v18 = vor.u32 %v8526_v22, %v6971_v12  ;;  %v6827_v21 = vld [vmem:[%s9651_s19 + $0x438] sm:$0xf0]  ;;  %v8554_v29 = vld [vmem:[%s9651_s19 + $0x62c] sm:$0xf] }
 0x2cc   : > { %5793 = vmatpush.bf16.msrb.mxu2 %v7166_v24  ;;  %v8522_v24 = vld [vmem:[%s9651_s19 + $0x52c] sm:$0xf]  ;;  %v7211_v33 = vld [vmem:[%s9651_s19 + $0x738] sm:$0xf0]  ;;  %v6830_v63 = vor.u32 %v8490_v20, %v6827_v21 }
 0x2cd   : > { %5807 = vmatpush.bf16.msrb.mxu3 %v7294_v27  ;;  %v7083_v27 = vld [vmem:[%s9651_s19 + $0x638] sm:$0xf0]  ;;  %v8586_v30 = vld [vmem:[%s9651_s19 + $0x72c] sm:$0xf]  ;;  %v6958_v45 = vor.u32 %v8522_v24, %v6955_v2 }
 0x2ce   : > { %5766 = vmatpush.bf16.msrb.mxu0 %v6894_v23  ;;  %v8486_v26 = vld [vmem:[%s9651_s19 + $0x40c] sm:$0xf]  ;;  %v6811_v28 = vld [vmem:[%s9651_s19 + $0x418] sm:$0xf0]  ;;  %v7086_v23 = vor.u32 %v8554_v29, %v7083_v27  ;;  %v7214_v42 = vor.u32 %v8586_v30, %v7211_v33 }
 0x2cf   : > { %5780 = vmatpush.bf16.msrb.mxu1 %v7022_v58  ;;  %v8518_v48 = vld [vmem:[%s9651_s19 + $0x50c] sm:$0xf]  ;;  %v6939_v58 = vld [vmem:[%s9651_s19 + $0x518] sm:$0xf0]  ;;  %v6814_v17 = vor.u32 %v8486_v26, %v6811_v28 }
 0x2d0   : > { %5794 = vmatpush.bf16.msrb.mxu2 %v7150_v14  ;;  %v8550_v14 = vld [vmem:[%s9651_s19 + $0x60c] sm:$0xf]  ;;  %v7067_v1 = vld [vmem:[%s9651_s19 + $0x618] sm:$0xf0]  ;;  %v6942_v60 = vor.u32 %v8518_v48, %v6939_v58 }
 0x2d1   : > { %5808 = vmatpush.bf16.msrb.mxu3 %v7278_v10  ;;  %v8582_v10 = vld [vmem:[%s9651_s19 + $0x70c] sm:$0xf]  ;;  %v7195_v53 = vld [vmem:[%s9651_s19 + $0x718] sm:$0xf0]  ;;  %v7070_v19 = vor.u32 %v8550_v14, %v7067_v1 }
 0x2d2   : > { %5767 = vmatpush.bf16.msrb.mxu0 %v6878_v62  ;;  %v8642_v55 = vld [vmem:[%s9651_s19 + $0x8ec] sm:$0xf]  ;;  %v7435_v37 = vld [vmem:[%s9651_s19 + $0x8f8] sm:$0xf0]  ;;  %v7198_v7 = vor.u32 %v8582_v10, %v7195_v53 }
 0x2d3   : > { %5781 = vmatpush.bf16.msrb.mxu1 %v7006_v49  ;;  %v8674_v54 = vld [vmem:[%s9651_s19 + $0x9ec] sm:$0xf]  ;;  %v7563_v62 = vld [vmem:[%s9651_s19 + $0x9f8] sm:$0xf0]  ;;  %v7438_v13 = vor.u32 %v8642_v55, %v7435_v37 }
 0x2d4   : > { %5795 = vmatpush.bf16.msrb.mxu2 %v7134_v59  ;;  %v8706_v49 = vld [vmem:[%s9651_s19 + $0xaec] sm:$0xf]  ;;  %v7691_v59 = vld [vmem:[%s9651_s19 + $0xaf8] sm:$0xf0]  ;;  %v7566_v0 = vor.u32 %v8674_v54, %v7563_v62  ;;  %v10919_v54 = vpop.f32.mrf.mxu0 }
 0x2d5   : > { %5809 = vmatpush.bf16.msrb.mxu3 %v7262_v3  ;;  %v8738_v56 = vld [vmem:[%s9651_s19 + $0xbec] sm:$0xf]  ;;  %v7819_v3 = vld [vmem:[%s9651_s19 + $0xbf8] sm:$0xf0]  ;;  %v7694_v6 = vor.u32 %v8706_v49, %v7691_v59  ;;  %v10923_v49 = vpop.f32.mrf.mxu1 }
 0x2d6   : > { %5768 = vmatpush.bf16.msrb.mxu0 %v6862_v4  ;;  %v8638_v34 = vld [vmem:[%s9651_s19 + $0x8cc] sm:$0xf]  ;;  %v7419_v4 = vld [vmem:[%s9651_s19 + $0x8d8] sm:$0xf0] }
 0x2d7   : > { %5782 = vmatpush.bf16.msrb.mxu1 %v6990_v50  ;;  %v8670_v50 = vld [vmem:[%s9651_s19 + $0x9cc] sm:$0xf]  ;;  %v7547_v16 = vld [vmem:[%s9651_s19 + $0x9d8] sm:$0xf0]  ;;  %v7422_v25 = vor.u32 %v8638_v34, %v7419_v4 }
 0x2d8   : > { %5796 = vmatpush.bf16.msrb.mxu2 %v7118_v8  ;;  %v7822_v8 = vor.u32 %v8738_v56, %v7819_v3  ;;  %v8702_v9 = vld [vmem:[%s9651_s19 + $0xacc] sm:$0xf]  ;;  %v7675_v22 = vld [vmem:[%s9651_s19 + $0xad8] sm:$0xf0]  ;;  %v7550_v57 = vor.u32 %v8670_v50, %v7547_v16 }
 0x2d9   : > { %5810 = vmatpush.bf16.msrb.mxu3 %v7246_v5  ;;  %v8734_v5 = vld [vmem:[%s9651_s19 + $0xbcc] sm:$0xf]  ;;  %v7803_v12 = vld [vmem:[%s9651_s19 + $0xbd8] sm:$0xf0]  ;;  %v7678_v11 = vor.u32 %v8702_v9, %v7675_v22 }
 0x2da   : > { %5769 = vmatpush.bf16.msrb.mxu0 %v6846_v15  ;;  %v8634_v61 = vld [vmem:[%s9651_s19 + $0x8ac] sm:$0xf]  ;;  %v7403_v15 = vld [vmem:[%s9651_s19 + $0x8b8] sm:$0xf0] }
 0x2db   : > { %5783 = vmatpush.bf16.msrb.mxu1 %v6974_v18  ;;  %v8666_v18 = vld [vmem:[%s9651_s19 + $0x9ac] sm:$0xf]  ;;  %v7531_v20 = vld [vmem:[%s9651_s19 + $0x9b8] sm:$0xf0] }
 0x2dc   : > { %5797 = vmatpush.bf16.msrb.mxu2 %v7102_v51  ;;  %v7806_v51 = vor.u32 %v8734_v5, %v7803_v12  ;;  %v8698_v21 = vld [vmem:[%s9651_s19 + $0xaac] sm:$0xf]  ;;  %v7659_v24 = vld [vmem:[%s9651_s19 + $0xab8] sm:$0xf0]  ;;  %v7534_v29 = vor.u32 %v8666_v18, %v7531_v20  ;;  %v10941_v18 = vpop.f32.mrf.mxu3 }
 0x2dd   : > { %5811 = vmatpush.bf16.msrb.mxu3 %v7230_v52  ;;  %v8730_v52 = vld [vmem:[%s9651_s19 + $0xbac] sm:$0xf]  ;;  %v7787_v2 = vld [vmem:[%s9651_s19 + $0xbb8] sm:$0xf0]  ;;  %v7662_v27 = vor.u32 %v8698_v21, %v7659_v24 }
 0x2de   : > { %5770 = vmatpush.bf16.msrb.mxu0 %v6830_v63  ;;  %v8630_v30 = vld [vmem:[%s9651_s19 + $0x88c] sm:$0xf]  ;;  %v7515_v63 = vld [vmem:[%s9651_s19 + $0x998] sm:$0xf0] }
 0x2df   : > { %5784 = vmatpush.bf16.msrb.mxu1 %v6958_v45  ;;  %v8662_v33 = vld [vmem:[%s9651_s19 + $0x98c] sm:$0xf]  ;;  %v7771_v45 = vld [vmem:[%s9651_s19 + $0xb98] sm:$0xf0] }
 0x2e0   : > { %5798 = vmatpush.bf16.msrb.mxu2 %v7086_v23  ;;  %v8694_v26 = vld [vmem:[%s9651_s19 + $0xa8c] sm:$0xf]  ;;  %v7518_v48 = vor.u32 %v8662_v33, %v7515_v63  ;;  %v7499_v53 = vld [vmem:[%s9651_s19 + $0x978] sm:$0xf0]  ;;  %v10952_v33 = vpop.f32.mrf.mxu1 }
 0x2e1   : > { %5812 = vmatpush.bf16.msrb.mxu3 %v7214_v42  ;;  %v8726_v28 = vld [vmem:[%s9651_s19 + $0xb8c] sm:$0xf]  ;;  %v7371_v42 = vld [vmem:[%s9651_s19 + $0x878] sm:$0xf0] }
 0x2e2   : > { %5771 = vmatpush.bf16.msrb.mxu0 %v6814_v17  ;;  %v8626_v14 = vld [vmem:[%s9651_s19 + $0x86c] sm:$0xf]  ;;  %v7774_v10 = vor.u32 %v8726_v28, %v7771_v45  ;;  %v7627_v37 = vld [vmem:[%s9651_s19 + $0xa78] sm:$0xf0] }
 0x2e3   : > { %5785 = vmatpush.bf16.msrb.mxu1 %v6942_v60  ;;  %v8658_v1 = vld [vmem:[%s9651_s19 + $0x96c] sm:$0xf]  ;;  %v7755_v62 = vld [vmem:[%s9651_s19 + $0xb78] sm:$0xf0]  ;;  %v7374_v59 = vor.u32 %v8626_v14, %v7371_v42 }
 0x2e4   : > { %5799 = vmatpush.bf16.msrb.mxu2 %v7070_v19  ;;  %v8690_v55 = vld [vmem:[%s9651_s19 + $0xa6c] sm:$0xf]  ;;  %v7502_v60 = vor.u32 %v8658_v1, %v7499_v53  ;;  %v7355_v3 = vld [vmem:[%s9651_s19 + $0x858] sm:$0xf0] }
 0x2e5   : > { %5813 = vmatpush.bf16.msrb.mxu3 %v7198_v7  ;;  %5772 = vmatmul.bf16.vlgmr.msrb.gmra.mxu0 %v9852_v39  ;;  %v7406_v39 = vor.u32 %v8634_v61, %v7403_v15  ;;  %v8722_v17 = vld [vmem:[%s9651_s19 + $0xb6c] sm:$0xf]  ;;  %v7630_v19 = vor.u32 %v8690_v55, %v7627_v37  ;;  %v7611_v34 = vld [vmem:[%s9651_s19 + $0xa58] sm:$0xf0] }
 0x2e6   : > { %5820 = vmatpush.bf16.msra.mxu0 %v7438_v13  ;;  %5786 = vmatmul.bf16.vlgmr.msrb.gmra.mxu1 %v9859_v44  ;;  %v7790_v44 = vor.u32 %v8730_v52, %v7787_v2  ;;  %v8622_v56 = vld [vmem:[%s9651_s19 + $0x84c] sm:$0xf]  ;;  %v7758_v13 = vor.u32 %v8722_v17, %v7755_v62  ;;  %v7739_v50 = vld [vmem:[%s9651_s19 + $0xb58] sm:$0xf0]  ;;  %v10947_v2 = vpop.f32.mrf.mxu0 }
 0x2e7   : > { %5834 = vmatpush.bf16.msra.mxu1 %v7566_v0  ;;  %5800 = vmatmul.bf16.vlgmr.msrb.gmra.mxu2 %v9857_v43  ;;  %v7387_v43 = vld [vmem:[%s9651_s19 + $0x898] sm:$0xf0]  ;;  %v8654_v7 = vld [vmem:[%s9651_s19 + $0x94c] sm:$0xf] }
 0x2e8   : > { %5848 = vmatpush.bf16.msra.mxu2 %v7694_v6  ;;  %5814 = vmatmul.bf16.vlgmr.msrb.gmra.mxu3 %v9863_v47  ;;  %v7643_v47 = vld [vmem:[%s9651_s19 + $0xa98] sm:$0xf0]  ;;  %v7390_v23 = vor.u32 %v8630_v30, %v7387_v43  ;;  %v8686_v6 = vld [vmem:[%s9651_s19 + $0xa4c] sm:$0xf] }
 0x2e9   : > { %5862 = vmatpush.bf16.msra.mxu3 %v7822_v8  ;;  %v7646_v58 = vor.u32 %v8694_v26, %v7643_v47  ;;  %v7483_v0 = vld [vmem:[%s9651_s19 + $0x958] sm:$0xf0]  ;;  %v8718_v4 = vld [vmem:[%s9651_s19 + $0xb4c] sm:$0xf]  ;;  %v7358_v8 = vor.u32 %v8622_v56, %v7355_v3  ;;  %v7614_v9 = vor.u32 %v8686_v6, %v7611_v34  ;;  %v10973_v34 = vpop.f32.mrf.mxu3 }
 0x2ea   : > { %5821 = vmatpush.bf16.msra.mxu0 %v7422_v25  ;;  %v7486_v16 = vor.u32 %v8654_v7, %v7483_v0  ;;  %v8618_v22 = vld [vmem:[%s9651_s19 + $0x82c] sm:$0xf]  ;;  %v7339_v5 = vld [vmem:[%s9651_s19 + $0x838] sm:$0xf0]  ;;  %v10936_v25 = vpop.f32.mrf.mxu2 }
 0x2eb   : > { %5835 = vmatpush.bf16.msra.mxu1 %v7550_v57  ;;  %v8650_v12 = vld [vmem:[%s9651_s19 + $0x92c] sm:$0xf]  ;;  %v7742_v57 = vor.u32 %v8718_v4, %v7739_v50  ;;  %v7595_v15 = vld [vmem:[%s9651_s19 + $0xa38] sm:$0xf0]  ;;  %v7342_v21 = vor.u32 %v8618_v22, %v7339_v5 }
 0x2ec   : > { %5849 = vmatpush.bf16.msra.mxu2 %v7678_v11  ;;  %v7467_v11 = vld [vmem:[%s9651_s19 + $0x938] sm:$0xf0]  ;;  %v8682_v61 = vld [vmem:[%s9651_s19 + $0xa2c] sm:$0xf] }
 0x2ed   : > { %5863 = vmatpush.bf16.msra.mxu3 %v7806_v51  ;;  %v8714_v51 = vld [vmem:[%s9651_s19 + $0xb2c] sm:$0xf]  ;;  %v7723_v20 = vld [vmem:[%s9651_s19 + $0xb38] sm:$0xf0] }
 0x2ee   : > { %5822 = vmatpush.bf16.msra.mxu0 %v7406_v39  ;;  %v8614_v24 = vld [vmem:[%s9651_s19 + $0x80c] sm:$0xf]  ;;  %v7323_v52 = vld [vmem:[%s9651_s19 + $0x818] sm:$0xf0]  ;;  %v7470_v39 = vor.u32 %v8650_v12, %v7467_v11 }
 0x2ef   : > { %5836 = vmatpush.bf16.msra.mxu1 %v7534_v29  ;;  %v7598_v29 = vor.u32 %v8682_v61, %v7595_v15  ;;  %v7451_v30 = vld [vmem:[%s9651_s19 + $0x918] sm:$0xf0]  ;;  %v8678_v43 = vld [vmem:[%s9651_s19 + $0xa0c] sm:$0xf]  ;;  %v10982_v61 = vpop.f32.mrf.mxu1 }
 0x2f0   : > { %5850 = vmatpush.bf16.msra.mxu2 %v7662_v27  ;;  %v8646_v27 = vld [vmem:[%s9651_s19 + $0x90c] sm:$0xf]  ;;  %v7579_v63 = vld [vmem:[%s9651_s19 + $0xa18] sm:$0xf0] }
 0x2f1   : > { %5864 = vmatpush.bf16.msra.mxu3 %v7790_v44  ;;  %v7726_v44 = vor.u32 %v8714_v51, %v7723_v20  ;;  %v8710_v26 = vld [vmem:[%s9651_s19 + $0xb0c] sm:$0xf]  ;;  %v7707_v47 = vld [vmem:[%s9651_s19 + $0xb18] sm:$0xf0]  ;;  %v7454_v1 = vor.u32 %v8646_v27, %v7451_v30 }
 0x2f2   : > { %5823 = vmatpush.bf16.msra.mxu0 %v7390_v23  ;;  %v8770_v28 = vld [vmem:[%s9651_s19 + $0xcec] sm:$0xf]  ;;  %v7947_v45 = vld [vmem:[%s9651_s19 + $0xcf8] sm:$0xf0]  ;;  %v7710_v37 = vor.u32 %v8710_v26, %v7707_v47  ;;  %v10968_v3 = vpop.f32.mrf.mxu2 }
 0x2f3   : > { %5837 = vmatpush.bf16.msra.mxu1 %v7518_v48  ;;  %v8802_v23 = vld [vmem:[%s9651_s19 + $0xdec] sm:$0xf]  ;;  %v7326_v48 = vor.u32 %v8614_v24, %v7323_v52  ;;  %v8203_v42 = vld [vmem:[%s9651_s19 + $0xef8] sm:$0xf0]  ;;  %v7950_v17 = vor.u32 %v8770_v28, %v7947_v45  ;;  %v11005_v28 = vpop.f32.mrf.mxu3 }
 0x2f4   : > { %5851 = vmatpush.bf16.msra.mxu2 %v7646_v58  ;;  %v8075_v58 = vld [vmem:[%s9651_s19 + $0xdf8] sm:$0xf0]  ;;  %v8834_v14 = vld [vmem:[%s9651_s19 + $0xeec] sm:$0xf] }
 0x2f5   : > { %5865 = vmatpush.bf16.msra.mxu3 %v7774_v10  ;;  %v7582_v10 = vor.u32 %v8678_v43, %v7579_v63  ;;  %v8866_v53 = vld [vmem:[%s9651_s19 + $0xfec] sm:$0xf]  ;;  %v8331_v55 = vld [vmem:[%s9651_s19 + $0xff8] sm:$0xf0]  ;;  %v8078_v62 = vor.u32 %v8802_v23, %v8075_v58 }
 0x2f6   : > { %5824 = vmatpush.bf16.msra.mxu0 %v7374_v59  ;;  %v8206_v59 = vor.u32 %v8834_v14, %v8203_v42  ;;  %v8798_v56 = vld [vmem:[%s9651_s19 + $0xdcc] sm:$0xf]  ;;  %v8334_v7 = vor.u32 %v8866_v53, %v8331_v55  ;;  %v8187_v6 = vld [vmem:[%s9651_s19 + $0xed8] sm:$0xf0] }
 0x2f7   : > { %5838 = vmatpush.bf16.msra.mxu1 %v7502_v60  ;;  %v8766_v60 = vld [vmem:[%s9651_s19 + $0xccc] sm:$0xf]  ;;  %v8315_v50 = vld [vmem:[%s9651_s19 + $0xfd8] sm:$0xf0] }
 0x2f8   : > { %5852 = vmatpush.bf16.msra.mxu2 %v7630_v19  ;;  %v7931_v19 = vld [vmem:[%s9651_s19 + $0xcd8] sm:$0xf0]  ;;  %v8830_v0 = vld [vmem:[%s9651_s19 + $0xecc] sm:$0xf] }
 0x2f9   : > { %5866 = vmatpush.bf16.msra.mxu3 %v7758_v13  ;;  %v8059_v13 = vld [vmem:[%s9651_s19 + $0xdd8] sm:$0xf0]  ;;  %v8862_v4 = vld [vmem:[%s9651_s19 + $0xfcc] sm:$0xf]  ;;  %v8190_v5 = vor.u32 %v8830_v0, %v8187_v6 }
 0x2fa   : > { %5825 = vmatpush.bf16.msra.mxu0 %v7358_v8  ;;  %v7934_v8 = vor.u32 %v8766_v60, %v7931_v19  ;;  %v8062_v22 = vor.u32 %v8798_v56, %v8059_v13  ;;  %v8762_v12 = vld [vmem:[%s9651_s19 + $0xcac] sm:$0xf]  ;;  %v8318_v15 = vor.u32 %v8862_v4, %v8315_v50  ;;  %v8043_v51 = vld [vmem:[%s9651_s19 + $0xdb8] sm:$0xf0] }
 0x2fb   : > { %5839 = vmatpush.bf16.msra.mxu1 %v7486_v16  ;;  %v5508_v16 = vadd.f32 %v10923_v49, %v10919_v54  ;;  %v8794_v11 = vld [vmem:[%s9651_s19 + $0xdac] sm:$0xf]  ;;  %v8171_v49 = vld [vmem:[%s9651_s19 + $0xeb8] sm:$0xf0] }
 0x2fc   : > { %5853 = vmatpush.bf16.msra.mxu2 %v7614_v9  ;;  %v5549_v9 = vpop.f32.mrf.mxu0  ;;  %v8826_v54 = vld [vmem:[%s9651_s19 + $0xeac] sm:$0xf]  ;;  %v8046_v52 = vor.u32 %v8794_v11, %v8043_v51  ;;  %v8027_v30 = vld [vmem:[%s9651_s19 + $0xd98] sm:$0xf0] }
 0x2fd   : > { %5867 = vmatpush.bf16.msra.mxu3 %v7742_v57  ;;  %v7915_v57 = vld [vmem:[%s9651_s19 + $0xcb8] sm:$0xf0]  ;;  %v8858_v20 = vld [vmem:[%s9651_s19 + $0xfac] sm:$0xf]  ;;  %v5522_v24 = vadd.f32 %v10936_v25, %v5508_v16  ;;  %v11002_v25 = vpop.f32.mrf.mxu2 }
 0x2fe   : > { %5826 = vmatpush.bf16.msra.mxu0 %v7342_v21  ;;  %v8299_v21 = vld [vmem:[%s9651_s19 + $0xfb8] sm:$0xf0]  ;;  %v8786_v14 = vld [vmem:[%s9651_s19 + $0xd6c] sm:$0xf] }
 0x2ff   : > { %5840 = vmatpush.bf16.msra.mxu1 %v7470_v39  ;;  %v8174_v39 = vor.u32 %v8826_v54, %v8171_v49  ;;  %v8302_v27 = vor.u32 %v8858_v20, %v8299_v21  ;;  %v8155_v43 = vld [vmem:[%s9651_s19 + $0xe98] sm:$0xf0]  ;;  %v5536_v47 = vadd.f32 %v10941_v18, %v5522_v24  ;;  %v8850_v18 = vld [vmem:[%s9651_s19 + $0xf6c] sm:$0xf]  ;;  %v5593_v21 = vpop.f32.mrf.mxu3 }
 0x300   : > { %5854 = vmatpush.bf16.msra.mxu2 %v7598_v29  ;;  %v7899_v29 = vld [vmem:[%s9651_s19 + $0xc98] sm:$0xf0]  ;;  %v8782_v0 = vld [vmem:[%s9651_s19 + $0xd4c] sm:$0xf] }
 0x301   : > { %5868 = vmatpush.bf16.msra.mxu3 %v7726_v44  ;;  %v8854_v44 = vld [vmem:[%s9651_s19 + $0xf8c] sm:$0xf]  ;;  %v8283_v63 = vld [vmem:[%s9651_s19 + $0xf98] sm:$0xf0]  ;;  %v5550_v60 = vadd.f32 %v5549_v9, %v5536_v47 }
 0x302   : > { %5827 = vmatpush.bf16.msra.mxu0 %v7326_v48  ;;  %v8754_v48 = vld [vmem:[%s9651_s19 + $0xc6c] sm:$0xf]  ;;  %v7883_v58 = vld [vmem:[%s9651_s19 + $0xc78] sm:$0xf0]  ;;  %v8286_v42 = vor.u32 %v8854_v44, %v8283_v63 }
 0x303   : > { %5841 = vmatpush.bf16.msra.mxu1 %v7454_v1  ;;  %v8011_v1 = vld [vmem:[%s9651_s19 + $0xd78] sm:$0xf0]  ;;  %v8846_v50 = vld [vmem:[%s9651_s19 + $0xf4c] sm:$0xf] }
 0x304   : > { %5855 = vmatpush.bf16.msra.mxu2 %v7582_v10  ;;  %v8818_v10 = vld [vmem:[%s9651_s19 + $0xe6c] sm:$0xf]  ;;  %v8139_v53 = vld [vmem:[%s9651_s19 + $0xe78] sm:$0xf0]  ;;  %v5551_v55 = vpop.f32.mrf.mxu0  ;;  %v8014_v19 = vor.u32 %v8786_v14, %v8011_v1 }
 0x305   : > { %5869 = vmatpush.bf16.msra.mxu3 %v7710_v37  ;;  %5828 = vmatmul.bf16.vlgmr.msra.gmra.mxu0 %v9952_v31  ;;  %v7918_v31 = vor.u32 %v8762_v12, %v7915_v57  ;;  %v8267_v37 = vld [vmem:[%s9651_s19 + $0xf78] sm:$0xf0]  ;;  %v8142_v56 = vor.u32 %v8818_v10, %v8139_v53  ;;  %v8746_v57 = vld [vmem:[%s9651_s19 + $0xc2c] sm:$0xf]  ;;  %v5579_v51 = vpop.f32.mrf.mxu2 }
 0x306   : > { %5876 = vmatpush.bf16.msrb.mxu0 %v7950_v17  ;;  %5842 = vmatmul.bf16.vlgmr.msra.gmra.mxu1 %v9959_v36  ;;  %v8790_v36 = vld [vmem:[%s9651_s19 + $0xd8c] sm:$0xf]  ;;  %v5510_v17 = vadd.f32 %v10952_v33, %v10947_v2  ;;  %v7867_v13 = vld [vmem:[%s9651_s19 + $0xc58] sm:$0xf0]  ;;  %v8270_v6 = vor.u32 %v8850_v18, %v8267_v37 }
 0x307   : > { %5890 = vmatpush.bf16.msrb.mxu1 %v8078_v62  ;;  %5856 = vmatmul.bf16.vlgmr.msra.gmra.mxu2 %v9957_v35  ;;  %v8758_v35 = vld [vmem:[%s9651_s19 + $0xc8c] sm:$0xf]  ;;  %v8030_v45 = vor.u32 %v8790_v36, %v8027_v30  ;;  %v11017_v62 = vpop.f32.mrf.mxu1  ;;  %v7995_v2 = vld [vmem:[%s9651_s19 + $0xd58] sm:$0xf0] }
 0x308   : > { %5904 = vmatpush.bf16.msrb.mxu2 %v8206_v59  ;;  %5870 = vmatmul.bf16.vlgmr.msra.gmra.mxu3 %v9963_v40  ;;  %v8822_v40 = vld [vmem:[%s9651_s19 + $0xe8c] sm:$0xf]  ;;  %v7902_v26 = vor.u32 %v8758_v35, %v7899_v29  ;;  %v7886_v59 = vor.u32 %v8754_v48, %v7883_v58  ;;  %v8123_v4 = vld [vmem:[%s9651_s19 + $0xe58] sm:$0xf0]  ;;  %v5524_v16 = vadd.f32 %v10968_v3, %v5510_v17 }
 0x309   : > { %5918 = vmatpush.bf16.msrb.mxu3 %v8334_v7  ;;  %v8158_v23 = vor.u32 %v8822_v40, %v8155_v43  ;;  %v8750_v7 = vld [vmem:[%s9651_s19 + $0xc4c] sm:$0xf]  ;;  %v7851_v11 = vld [vmem:[%s9651_s19 + $0xc38] sm:$0xf0] }
 0x30a   : > { %5877 = vmatpush.bf16.msrb.mxu0 %v7934_v8  ;;  %v8814_v33 = vld [vmem:[%s9651_s19 + $0xe4c] sm:$0xf]  ;;  %v8251_v8 = vld [vmem:[%s9651_s19 + $0xf58] sm:$0xf0]  ;;  %v7870_v9 = vor.u32 %v8750_v7, %v7867_v13  ;;  %v7854_v35 = vor.u32 %v8746_v57, %v7851_v11 }
 0x30b   : > { %5891 = vmatpush.bf16.msrb.mxu1 %v8062_v22  ;;  %v5564_v22 = vadd.f32 %v10982_v61, %v5550_v60  ;;  %v8126_v12 = vor.u32 %v8814_v33, %v8123_v4  ;;  %v8254_v54 = vor.u32 %v8846_v50, %v8251_v8  ;;  %v7979_v49 = vld [vmem:[%s9651_s19 + $0xd38] sm:$0xf0]  ;;  %v8810_v3 = vld [vmem:[%s9651_s19 + $0xe2c] sm:$0xf]  ;;  %v5647_v18 = vpop.f32.mrf.mxu3 }
 0x30c   : > { %5905 = vmatpush.bf16.msrb.mxu2 %v8190_v5  ;;  %v7998_v5 = vor.u32 %v8782_v0, %v7995_v2  ;;  %v8107_v20 = vld [vmem:[%s9651_s19 + $0xe38] sm:$0xf0]  ;;  %v5605_v61 = vpop.f32.mrf.mxu0  ;;  %v8742_v30 = vld [vmem:[%s9651_s19 + $0xc0c] sm:$0xf] }
 0x30d   : > { %5919 = vmatpush.bf16.msrb.mxu3 %v8318_v15  ;;  %v8778_v15 = vld [vmem:[%s9651_s19 + $0xd2c] sm:$0xf]  ;;  %v8235_v24 = vld [vmem:[%s9651_s19 + $0xf38] sm:$0xf0]  ;;  %v5578_v29 = vadd.f32 %v11002_v25, %v5564_v22 }
 0x30e   : > { %5878 = vmatpush.bf16.msrb.mxu0 %v7918_v31  ;;  %v8842_v31 = vld [vmem:[%s9651_s19 + $0xf2c] sm:$0xf]  ;;  %v7982_v36 = vor.u32 %v8778_v15, %v7979_v49  ;;  %v7835_v40 = vld [vmem:[%s9651_s19 + $0xc18] sm:$0xf0] }
 0x30f   : > { %5892 = vmatpush.bf16.msrb.mxu1 %v8046_v52  ;;  %v5538_v52 = vadd.f32 %v10973_v34, %v5524_v16  ;;  %v8774_v43 = vld [vmem:[%s9651_s19 + $0xd0c] sm:$0xf]  ;;  %v8238_v44 = vor.u32 %v8842_v31, %v8235_v24  ;;  %v7963_v63 = vld [vmem:[%s9651_s19 + $0xd18] sm:$0xf0]  ;;  %v7838_v48 = vor.u32 %v8742_v30, %v7835_v40  ;;  %v5592_v58 = vadd.f32 %v11005_v28, %v5578_v29 }
 0x310   : > { %5906 = vmatpush.bf16.msrb.mxu2 %v8174_v39  ;;  %v5619_v39 = vpop.f32.mrf.mxu1  ;;  %v8091_v34 = vld [vmem:[%s9651_s19 + $0xe18] sm:$0xf0]  ;;  %v7966_v25 = vor.u32 %v8774_v43, %v7963_v63 }
 0x311   : > { %5920 = vmatpush.bf16.msrb.mxu3 %v8302_v27  ;;  %v8110_v27 = vor.u32 %v8810_v3, %v8107_v20  ;;  %v5552_v47 = vadd.f32 %v5551_v55, %v5538_v52  ;;  %v5606_v53 = vadd.f32 %v5605_v61, %v5592_v58 }
 0x312   : > { %5879 = vmatpush.bf16.msrb.mxu0 %v7902_v26  ;;  %v8806_v26 = vld [vmem:[%s9651_s19 + $0xe0c] sm:$0xf] }
 0x313   : > { %5893 = vmatpush.bf16.msrb.mxu1 %v8030_v45  ;;  %v8838_v45 = vld [vmem:[%s9651_s19 + $0xf0c] sm:$0xf]  ;;  %v8094_v14 = vor.u32 %v8806_v26, %v8091_v34  ;;  %v5566_v10 = vadd.f32 %v11017_v62, %v5552_v47  ;;  %v5620_v28 = vadd.f32 %v5619_v39, %v5606_v53  ;;  %v5649_v7 = vpop.f32.mrf.mxu3 }
 0x314   : > { %5907 = vmatpush.bf16.msrb.mxu2 %v8158_v23  ;;  %v8219_v23 = vld [vmem:[%s9651_s19 + $0xf18] sm:$0xf0]  ;;  %v5607_v55 = vpop.f32.mrf.mxu0 }
 0x315   : > { %5921 = vmatpush.bf16.msrb.mxu3 %v8286_v42  ;;  %v5633_v42 = vpop.f32.mrf.mxu2  ;;  %v8222_v1 = vor.u32 %v8838_v45, %v8219_v23  ;;  %v5580_v37 = vadd.f32 %v5579_v51, %v5566_v10 }
 0x316   : > { %5880 = vmatpush.bf16.msrb.mxu0 %v7886_v59  ;;  %v5634_v60 = vadd.f32 %v5633_v42, %v5620_v28 }
 0x317   : > { %5894 = vmatpush.bf16.msrb.mxu1 %v8014_v19  ;;  %v5594_v59 = vadd.f32 %v5593_v21, %v5580_v37 }
 0x318   : > { %5908 = vmatpush.bf16.msrb.mxu2 %v8142_v56  ;;  %v5621_v17 = vpop.f32.mrf.mxu1  ;;  %v5648_v56 = vadd.f32 %v5647_v18, %v5634_v60 }
 0x319   : > { %5922 = vmatpush.bf16.msrb.mxu3 %v8270_v6  ;;  %v5608_v62 = vadd.f32 %v5607_v55, %v5594_v59  ;;  %v11054_v6 = vld [vmem:[%s10415_s23 + $0x8] sm:$0x77] }
 0x31a   : > { %5881 = vmatpush.bf16.msrb.mxu0 %v7870_v9  ;;  %v5993_v22 = vperm.slane %v11054_v6, 1  ;;  %v6013_v57 = vperm.slane %v11054_v6, 2 }
 0x31b   : > { %5895 = vmatpush.bf16.msrb.mxu1 %v7998_v5  ;;  %v5622_v2 = vadd.f32 %v5621_v17, %v5608_v62 }
 0x31c   : > { %5909 = vmatpush.bf16.msrb.mxu2 %v8126_v12  ;;  %v6001_v51 = vperm.slane %v5993_v22, 1  ;;  %v6021_v49 = vperm.slane %v6013_v57, 2 }
 0x31d   : > { %5923 = vmatpush.bf16.msrb.mxu3 %v8254_v54  ;;  %v5635_v19 = vpop.f32.mrf.mxu2 }
 0x31e   : > { %5882 = vmatpush.bf16.msrb.mxu0 %v7854_v35  ;;  %v5636_v4 = vadd.f32 %v5635_v19, %v5622_v2 }
 0x31f   : > { %5896 = vmatpush.bf16.msrb.mxu1 %v7982_v36 }
 0x320   : > { %5910 = vmatpush.bf16.msrb.mxu2 %v8110_v27 }
 0x321   : > { %5924 = vmatpush.bf16.msrb.mxu3 %v8238_v44 }
 0x322   : > { %5883 = vmatpush.bf16.msrb.mxu0 %v7838_v48  ;;  %v5661_v13 = vpop.f32.mrf.mxu0 }
 0x323   : > { %5897 = vmatpush.bf16.msrb.mxu1 %v7966_v25  ;;  %v5675_v0 = vpop.f32.mrf.mxu1  ;;  %v5662_v33 = vadd.f32 %v5661_v13, %v5648_v56 }
 0x324   : > { %5911 = vmatpush.bf16.msrb.mxu2 %v8094_v14 }
 0x325   : > { %5925 = vmatpush.bf16.msrb.mxu3 %v8222_v1  ;;  %5884 = vmatmul.bf16.vlgmr.msrb.gmra.mxu0 %v10052_v32  ;;  %v5965_v32 = vperm.slane %v11054_v6, 0 }
 0x326   : > { %5898 = vmatmul.bf16.vlgmr.msrb.gmra.mxu1 %v10059_v41  ;;  %v5676_v41 = vadd.f32 %v5675_v0, %v5662_v33 }
 0x327   : > { %5912 = vmatmul.bf16.vlgmr.msrb.gmra.mxu2 %v10057_v38  ;;  %v5650_v38 = vadd.f32 %v5649_v7, %v5636_v4 }
 0x328   : > { %5926 = vmatmul.bf16.vlgmr.msrb.gmra.mxu3 %v10063_v46  ;;  %v5973_v46 = vperm.slane %v5965_v32, 0 }
 0x32a   : > { %v5689_v50 = vpop.f32.mrf.mxu2  ;;  %v5663_v16 = vpop.f32.mrf.mxu0 }
 0x32b   : > { %v5690_v8 = vadd.f32 %v5689_v50, %v5676_v41  ;;  %v5703_v9 = vpop.f32.mrf.mxu3  ;;  %v5664_v5 = vadd.f32 %v5663_v16, %v5650_v38  ;;  %v5677_v11 = vpop.f32.mrf.mxu1 }
 0x32d   : > { %v5704_v12 = vadd.f32 %v5703_v9, %v5690_v8  ;;  %v5678_v3 = vadd.f32 %v5677_v11, %v5664_v5 }
 0x32f   : > { %v5977_v15 = vadd.f32 %v5973_v46, %v5704_v12 }
 0x331   : > { %v5985_v54 = vmax.f32 %v5977_v15, 0.0  ;;  %v5966_v15 = vperm.slane %v11054_v6, 4 }
 0x332   : > { %v5691_v20 = vpop.f32.mrf.mxu2 }
 0x333   : > { %v6005_v21 = vmul.f32 %v6001_v51, %v5985_v54  ;;  %v5692_v61 = vadd.f32 %v5691_v20, %v5678_v3  ;;  %v5705_v31 = vpop.f32.mrf.mxu3 }
 0x335   : > { %v6025_v24 = vadd.f32 %v6021_v49, %v6005_v21  ;;  %v5706_v52 = vadd.f32 %v5705_v31, %v5692_v61  ;;  %v5974_v21 = vperm.slane %v5966_v15, 0  ;;  %v5994_v61 = vperm.slane %v11054_v6, 5 }
 0x337   : > { %6033 = vst [vmem:[%s10484_s12 + $0x10] sm:$0xff] %v6025_v24  ;;  %v5981_v39 = vadd.f32 %v5973_v46, %v5706_v52  ;;  %v6014_v52 = vperm.slane %v11054_v6, 6  ;;  %v6064_v6 = vld [vmem:[%s10484_s12] sm:$0xff] (%p9070_p6) }
 0x338   : > { %6065 = vst [vmem:[%s6051_s26] sm:$0xff] (%p9070_p6), %v6064_v6 }
 0x339   : > { %v5989_v35 = vmax.f32 %v5981_v39, 0.0 }
 0x33b   : > { %v6009_v29 = vmul.f32 %v6001_v51, %v5989_v35 }
 0x33d   : > { %v6029_v36 = vadd.f32 %v6021_v49, %v6009_v29  ;;  %v6002_v29 = vperm.slane %v5994_v61, 1 }
 0x33f   : > { %6037 = vst [vmem:[%s10484_s12 + $0x30] sm:$0xff] %v6029_v36 }
 0x342   : > { %v5717_v27 = vpop.f32.mrf.mxu0 }
 0x343   : > { %v5731_v30 = vpop.f32.mrf.mxu1 }
 0x344   : > { %v5732_v47 = vadd.f32 %v5731_v30, %v5717_v27  ;;  %v6022_v30 = vperm.slane %v6014_v52, 2 }
 0x34a   : > { %v5745_v40 = vpop.f32.mrf.mxu2  ;;  %v5719_v44 = vpop.f32.mrf.mxu0 }
 0x34b   : > { %v5759_v43 = vpop.f32.mrf.mxu3  ;;  %v5733_v63 = vpop.f32.mrf.mxu1  ;;  %v5746_v48 = vadd.f32 %v5745_v40, %v5732_v47 }
 0x34c   : > { %v5734_v1 = vadd.f32 %v5733_v63, %v5719_v44 }
 0x34d   : > { %v5760_v25 = vadd.f32 %v5759_v43, %v5746_v48 }
 0x352   : > { %v5747_v26 = vpop.f32.mrf.mxu2 }
 0x353   : > { %v5761_v34 = vpop.f32.mrf.mxu3  ;;  %v5748_v18 = vadd.f32 %v5747_v26, %v5734_v1  ;;  %v6072_v1 = vld [vmem:[%s10484_s12 + $0x20] sm:$0xff] (%p9070_p6) }
 0x354   : > { %6073 = vst [vmem:[%s6051_s26 + $0x40] sm:$0xff] (%p9070_p6), %v6072_v1 }
 0x355   : > { %v5762_v59 = vadd.f32 %v5761_v34, %v5748_v18 }
 0x362   : > { %v5773_v45 = vpop.f32.mrf.mxu0 }
 0x363   : > { %v5787_v23 = vpop.f32.mrf.mxu1  ;;  %v5774_v10 = vadd.f32 %v5773_v45, %v5760_v25  ;;  %v6066_v25 = vld [vmem:[%s10484_s12 + $0x8] sm:$0xff] (%p9070_p6) }
 0x364   : > { %6067 = vst [vmem:[%s6051_s26 + $0x8] sm:$0xff] (%p9070_p6), %v6066_v25 }
 0x365   : > { %v5788_v37 = vadd.f32 %v5787_v23, %v5774_v10  ;;  %v6074_v10 = vld [vmem:[%s10484_s12 + $0x28] sm:$0xff] (%p9070_p6) }
 0x366   : > { %6075 = vst [vmem:[%s6051_s26 + $0x48] sm:$0xff] (%p9070_p6), %v6074_v10 }
 0x36a   : > { %v5801_v58 = vpop.f32.mrf.mxu2  ;;  %v5775_v42 = vpop.f32.mrf.mxu0 }
 0x36b   : > { %v5815_v14 = vpop.f32.mrf.mxu3  ;;  %v5789_v53 = vpop.f32.mrf.mxu1  ;;  %v5802_v60 = vadd.f32 %v5801_v58, %v5788_v37  ;;  %v5776_v19 = vadd.f32 %v5775_v42, %v5762_v59 }
 0x36d   : > { %v5816_v56 = vadd.f32 %v5815_v14, %v5802_v60  ;;  %v5790_v13 = vadd.f32 %v5789_v53, %v5776_v19  ;;  %v6068_v14 = vld [vmem:[%s10484_s12 + $0x10] sm:$0xff] (%p9070_p6) }
 0x36e   : > { %6069 = vst [vmem:[%s6051_s26 + $0x10] sm:$0xff] (%p9070_p6), %v6068_v14  ;;  %v6076_v53 = vld [vmem:[%s10484_s12 + $0x30] sm:$0xff] (%p9070_p6) }
 0x36f   : > { %6077 = vst [vmem:[%s6051_s26 + $0x50] sm:$0xff] (%p9070_p6), %v6076_v53 }
 0x372   : > { %v5803_v55 = vpop.f32.mrf.mxu2 }
 0x373   : > { %v5817_v17 = vpop.f32.mrf.mxu3  ;;  %v5804_v33 = vadd.f32 %v5803_v55, %v5790_v13 }
 0x375   : > { %v5818_v50 = vadd.f32 %v5817_v17, %v5804_v33 }
 0x382   : > { %v5829_v28 = vpop.f32.mrf.mxu0 }
 0x383   : > { %v5843_v62 = vpop.f32.mrf.mxu1  ;;  %v5830_v0 = vadd.f32 %v5829_v28, %v5816_v56 }
 0x385   : > { %v5844_v32 = vadd.f32 %v5843_v62, %v5830_v0 }
 0x38a   : > { %v5857_v7 = vpop.f32.mrf.mxu2  ;;  %v5831_v4 = vpop.f32.mrf.mxu0 }
 0x38b   : > { %v5871_v2 = vpop.f32.mrf.mxu3  ;;  %v5845_v41 = vpop.f32.mrf.mxu1  ;;  %v5858_v38 = vadd.f32 %v5857_v7, %v5844_v32  ;;  %v5832_v8 = vadd.f32 %v5831_v4, %v5818_v50 }
 0x38d   : > { %v5872_v9 = vadd.f32 %v5871_v2, %v5858_v38  ;;  %v5846_v5 = vadd.f32 %v5845_v41, %v5832_v8 }
 0x392   : > { %v5859_v16 = vpop.f32.mrf.mxu2 }
 0x393   : > { %v5873_v46 = vpop.f32.mrf.mxu3  ;;  %v5860_v11 = vadd.f32 %v5859_v16, %v5846_v5 }
 0x395   : > { %v5874_v49 = vadd.f32 %v5873_v46, %v5860_v11 }
 0x3a2   : > { %v5885_v22 = vpop.f32.mrf.mxu0 }
 0x3a3   : > { %v5886_v12 = vadd.f32 %v5885_v22, %v5872_v9  ;;  %v5899_v57 = vpop.f32.mrf.mxu1 }
 0x3a5   : > { %v5900_v51 = vadd.f32 %v5899_v57, %v5886_v12 }
 0x3aa   : > { %v5913_v54 = vpop.f32.mrf.mxu2  ;;  %v5887_v31 = vpop.f32.mrf.mxu0 }
 0x3ab   : > { %v5914_v3 = vadd.f32 %v5913_v54, %v5900_v51  ;;  %v5927_v20 = vpop.f32.mrf.mxu3  ;;  %v5888_v39 = vadd.f32 %v5887_v31, %v5874_v49  ;;  %v5901_v36 = vpop.f32.mrf.mxu1 }
 0x3ad   : > { %v5928_v24 = vadd.f32 %v5927_v20, %v5914_v3  ;;  %v5902_v40 = vadd.f32 %v5901_v36, %v5888_v39 }
 0x3af   : > { %v5978_v35 = vadd.f32 %v5974_v21, %v5928_v24 }
 0x3b1   : > { %v5986_v27 = vmax.f32 %v5978_v35, 0.0 }
 0x3b2   : > { %v5915_v43 = vpop.f32.mrf.mxu2 }
 0x3b3   : > { %v6006_v44 = vmul.f32 %v6002_v29, %v5986_v27  ;;  %v5916_v63 = vadd.f32 %v5915_v43, %v5902_v40  ;;  %v5929_v26 = vpop.f32.mrf.mxu3 }
 0x3b5   : > { %v6026_v34 = vadd.f32 %v6022_v30, %v6006_v44  ;;  %v5930_v47 = vadd.f32 %v5929_v26, %v5916_v63 }
 0x3b7   : > { %6034 = vst [vmem:[%s10484_s12 + $0x18] sm:$0xff] %v6026_v34  ;;  %v5982_v45 = vadd.f32 %v5974_v21, %v5930_v47 }
 0x3b9   : > { %v5990_v23 = vmax.f32 %v5982_v45, 0.0 }
 0x3bb   : > { %v6010_v48 = vmul.f32 %v6002_v29, %v5990_v23  ;;  %6045 = sbr.rel (!%p9070_p6) target bundleno = 968 (0x3c8), region = 81 }
 0x3bd   : > { %v6030_v58 = vadd.f32 %v6022_v30, %v6010_v48 }
 0x3be   : > { %v6070_v42 = vld [vmem:[%s10484_s12 + $0x18] sm:$0xff] (%p9070_p6) }
 0x3bf   : > { %6038 = vst [vmem:[%s10484_s12 + $0x38] sm:$0xff] %v6030_v58 }
 0x3c0   : > { %6071 = vst [vmem:[%s6051_s26 + $0x18] sm:$0xff] %v6070_v42 }
 0x3c6   : > { %v6078_v18 = vld [vmem:[%s10484_s12 + $0x38] sm:$0xff] }
 0x3c7   : > { %6079 = vst [vmem:[%s6051_s26 + $0x58] sm:$0xff] %v6078_v18 }
 0x3c8 PF: > { %s13_s16 = sadd.s32 1, %s8997_s16   ;;  %s11106_s12 = smov %s8985_s13 }
 0x3c9   : > { %p10_p0 = scmp.ge.s32.totalorder %s13_s16, 4   ;;  %s11107_s13 = smov %s9075_s22 }
 0x3ca   : > { %s11108_s14 = smov %s8993_s15  ;;  %s11109_s15 = smov %s11111_s17 }
 0x3cb   :  { %12 = sbr.rel (!%p10_p0) target bundleno = 3 (0x3), region = 154 }

</bundles_post_ra>
